<compile_context>
chip_gen: v7x
topology: tpu7x:2x2x1
jax: 0.10.0
libtpu: 0.0.40
codegen_flags: <defaults>
</compile_context>

<pallas_src>
import math
import functools

import jax
import jax.numpy as jnp
from jax import lax
from jax.experimental import pallas as pl
from jax.experimental.pallas import tpu as pltpu


NUM_HEADS = 4
D_MODEL = 256
D_FF = 2048
NUM_LAYERS = 3


# --------------------------------------------------------------------------------------
# Pallas kernels
# --------------------------------------------------------------------------------------

def _conv_block_kernel(x_ref, w_ref, b_ref, s1_ref, t1_ref, s2_ref, t2_ref, o_ref,
                       *, N, L, Lp):
    """One ConvolutionBlock for the whole batch, flattened batch-major.

    x_ref: (N*L, Cin)   w_ref: (3, Cin, Cout)   b/s1/t1/s2/t2: (1, Cout)   o_ref: (N*Lp, Cout)
    Conv1d(k=3) -> BN1(eval, folded) -> ReLU -> MaxPool1d(k=3, s=2) -> BN2(eval, folded)
    Rows near the batch seams of the flat conv output are cross-batch garbage; the
    selection matmul below never picks them, so the result is exact.
    """
    NL = x_ref.shape[0]
    M = NL - 2                                   # flat conv-row count (incl. seam garbage)

    x = x_ref[...]
    acc = jnp.dot(x[0:M, :], w_ref[0], preferred_element_type=jnp.float32)
    acc = acc + jnp.dot(x[1:M + 1, :], w_ref[1], preferred_element_type=jnp.float32)
    acc = acc + jnp.dot(x[2:M + 2, :], w_ref[2], preferred_element_type=jnp.float32)
    acc = acc + b_ref[...]                       # conv bias
    acc = acc * s1_ref[...] + t1_ref[...]        # BatchNorm1d #1 (eval, folded)
    acc = jnp.maximum(acc, 0.0)                  # ReLU

    # MaxPool1d(kernel=3, stride=2): stride-1 3-tap max, then pick window starts (n*L + 2t)
    # with a 0/1 selection matrix on the MXU -> one dense store.
    w3 = jnp.maximum(jnp.maximum(acc[0:M - 2, :], acc[1:M - 1, :]), acc[2:M, :])   # (M-2, C)
    sel_rows = []
    for n in range(N):                           # N is small & static -> unrolled
        t_iota = lax.broadcasted_iota(jnp.int32, (Lp, M - 2), 0)
        c_iota = lax.broadcasted_iota(jnp.int32, (Lp, M - 2), 1)
        sel_rows.append((c_iota == n * L + 2 * t_iota).astype(jnp.float32))
    sel = jnp.concatenate(sel_rows, axis=0)                                         # (N*Lp, M-2)
    pooled = jnp.dot(sel, w3, preferred_element_type=jnp.float32)                   # (N*Lp, C)

    o_ref[...] = pooled * s2_ref[...] + t2_ref[...]        # BatchNorm1d #2 (eval, folded)


def _layer_norm(x, g, b, eps):
    mu = jnp.mean(x, axis=-1, keepdims=True)
    xc = x - mu
    var = jnp.mean(xc * xc, axis=-1, keepdims=True)
    return xc * lax.rsqrt(var + eps) * g + b


def _transformer_kernel(x_ref, mask_ref,
                        wqkv_ref, bqkv_ref, wo_ref, bo_ref, ln1g_ref, ln1b_ref,
                        w1_ref, b1_ref, w2_ref, b2_ref, ln2g_ref, ln2b_ref,
                        o_ref, *, num_heads, batch, seq, eps):
    """One fused post-norm TransformerEncoderLayer per grid step (grid = num_layers).

    The activation (B*S, E) lives in o_ref, which maps to the same output block for every
    grid step -> it stays resident in VMEM across layers.  Only weights are streamed.
    x_ref: (B*S, E) f32 (batch-major rows b*S+s)     mask_ref: (B, S) f32, 1.0 == padded key
    weights: bf16 per-layer blocks; biases / LN params: f32 (1, ...) blocks.
    """
    @pl.when(pl.program_id(0) == 0)
    def _():
        o_ref[...] = x_ref[...]

    E = o_ref.shape[1]
    Dh = E // num_heads
    scale = 1.0 / math.sqrt(Dh)

    h = o_ref[...]                                                # (B*S, E) f32
    neg = mask_ref[...] * jnp.float32(-1e30)                      # (B, S) key-padding bias

    # ---- multi-head self-attention ----
    qkv = jnp.dot(h.astype(jnp.bfloat16), wqkv_ref[...],
                  preferred_element_type=jnp.float32) + bqkv_ref[...]   # (B*S, 3E)

    attn_rows = []
    for b in range(batch):                                        # B, H static -> unrolled
        blk = qkv[b * seq:(b + 1) * seq, :]                       # (S, 3E)
        bias = neg[b:b + 1, :]                                    # (1, S)
        heads = []
        for hd in range(num_heads):
            q = blk[:, hd * Dh:(hd + 1) * Dh]
            k = blk[:, E + hd * Dh:E + (hd + 1) * Dh]
            v = blk[:, 2 * E + hd * Dh:2 * E + (hd + 1) * Dh]
            s = lax.dot_general(q, k, (((1,), (1,)), ((), ())),
                                preferred_element_type=jnp.float32) * scale     # (S, S)
            s = s + bias                                          # mask padded keys
            s = s - jnp.max(s, axis=-1, keepdims=True)
            e = jnp.exp(s)
            p = e * pl.reciprocal(jnp.sum(e, axis=-1, keepdims=True), approx=True)
            heads.append(jnp.dot(p, v, preferred_element_type=jnp.float32))     # (S, Dh)
        attn_rows.append(jnp.concatenate(heads, axis=-1))         # (S, E)
    attn = jnp.concatenate(attn_rows, axis=0)                     # (B*S, E)

    attn = jnp.dot(attn.astype(jnp.bfloat16), wo_ref[...],
                   preferred_element_type=jnp.float32) + bo_ref[...]
    h = _layer_norm(h + attn, ln1g_ref[...], ln1b_ref[...], eps)

    # ---- feed-forward ----
    ff = jnp.dot(h.astype(jnp.bfloat16), w1_ref[...],
                 preferred_element_type=jnp.float32) + b1_ref[...]
    ff = jnp.maximum(ff, 0.0)
    ff = jnp.dot(ff.astype(jnp.bfloat16), w2_ref[...],
                 preferred_element_type=jnp.float32) + b2_ref[...]
    h = _layer_norm(h + ff, ln2g_ref[...], ln2b_ref[...], eps)

    o_ref[...] = h


def _tail_kernel(x_ref, len_ref, w1_ref, b1_ref, w2_ref, b2_ref, o_ref):
    """stats pooling (mean | unbiased var over valid frames) -> Linear(512,128) -> Linear(128,2).

    x_ref: (B, S, E)   len_ref: (B,) int32 in SMEM   o_ref: (B, 2)
    """
    B, S, E = x_ref.shape
    rows = []
    for b in range(B):                                            # B small & static -> unrolled
        l = len_ref[b]
        lf = l.astype(jnp.float32)
        x = x_ref[b]                                              # (S, E)
        valid = (lax.broadcasted_iota(jnp.int32, (S, E), 0) < l).astype(jnp.float32)
        mean = jnp.sum(x * valid, axis=0, keepdims=True) / lf
        diff = (x - mean) * valid
        denom = jnp.maximum(lf - 1.0, 1.0)                        # guard length-1 utterances
        var = jnp.sum(diff * diff, axis=0, keepdims=True) / denom  # unbiased (torch.var)
        rows.append(jnp.concatenate([mean, var], axis=-1))        # (1, 2E)
    stats = jnp.concatenate(rows, axis=0)                         # (B, 2E)

    h = jnp.dot(stats, w1_ref[...], preferred_element_type=jnp.float32) + b1_ref[...]
    out = jnp.dot(h, w2_ref[...], preferred_element_type=jnp.float32) + b2_ref[...]
    o_ref[...] = out.astype(o_ref.dtype)


# --------------------------------------------------------------------------------------
# Pallas-call wrappers
# --------------------------------------------------------------------------------------

def conv_block(x, p):
    """x: (N, L, Cin) channels-last -> (N, Lp, Cout)."""
    N, L, Cin = x.shape
    Kc = p["w"].shape[1]                        # possibly zero-padded Cin (lane-dense K)
    Cout = p["w"].shape[2]
    if Kc != Cin:
        x = jnp.pad(x, ((0, 0), (0, 0), (0, Kc - Cin)))
    Lc = L - 2
    Lp = (Lc - 3) // 2 + 1
    xf = x.reshape(N * L, Kc)

    full2 = lambda i: (0, 0)
    out = pl.pallas_call(
        functools.partial(_conv_block_kernel, N=N, L=L, Lp=Lp),
        grid=(1,),
        in_specs=[
            pl.BlockSpec((N * L, Kc), full2),
            pl.BlockSpec((3, Kc, Cout), lambda i: (0, 0, 0)),
            pl.BlockSpec((1, Cout), full2),
            pl.BlockSpec((1, Cout), full2),
            pl.BlockSpec((1, Cout), full2),
            pl.BlockSpec((1, Cout), full2),
            pl.BlockSpec((1, Cout), full2),
        ],
        out_specs=pl.BlockSpec((N * Lp, Cout), full2),
        out_shape=jax.ShapeDtypeStruct((N * Lp, Cout), jnp.float32),
    )(xf, p["w"], p["b"], p["s1"], p["t1"], p["s2"], p["t2"])
    return out.reshape(N, Lp, Cout)


def transformer_apply(x_bse, pad_mask_f, tp):
    """Fused 3-layer post-norm TransformerEncoder (relu FFN, eval mode).

    x_bse: (B, S, E).  The kernel works on the batch-major (B*S, E) layout; this is
    mathematically identical to PyTorch's (S, B, E) batch_first=False path.
    """
    B, S, E = x_bse.shape
    F = tp["w1"].shape[2]
    nl = tp["wqkv"].shape[0]
    x2 = x_bse.reshape(B * S, E)

    full2 = lambda i: (0, 0)
    per_layer = lambda i: (i, 0, 0)
    out = pl.pallas_call(
        functools.partial(_transformer_kernel, num_heads=NUM_HEADS,
                          batch=B, seq=S, eps=1e-5),
        grid=(nl,),
        in_specs=[
            pl.BlockSpec((B * S, E), full2),                 # x (resident copy source)
            pl.BlockSpec((B, S), full2),                     # key padding mask
            pl.BlockSpec((None, E, 3 * E), per_layer),       # wqkv (bf16)
            pl.BlockSpec((None, 1, 3 * E), per_layer),       # bqkv
            pl.BlockSpec((None, E, E), per_layer),           # wo   (bf16)
            pl.BlockSpec((None, 1, E), per_layer),           # bo
            pl.BlockSpec((None, 1, E), per_layer),           # ln1_g
            pl.BlockSpec((None, 1, E), per_layer),           # ln1_b
            pl.BlockSpec((None, E, F), per_layer),           # w1   (bf16)
            pl.BlockSpec((None, 1, F), per_layer),           # b1
            pl.BlockSpec((None, F, E), per_layer),           # w2   (bf16)
            pl.BlockSpec((None, 1, E), per_layer),           # b2
            pl.BlockSpec((None, 1, E), per_layer),           # ln2_g
            pl.BlockSpec((None, 1, E), per_layer),           # ln2_b
        ],
        out_specs=pl.BlockSpec((B * S, E), full2),           # same block every step -> VMEM-resident
        out_shape=jax.ShapeDtypeStruct((B * S, E), jnp.float32),
        compiler_params=pltpu.CompilerParams(dimension_semantics=("arbitrary",)),
    )(x2, pad_mask_f, tp["wqkv"], tp["bqkv"], tp["wo"], tp["bo"],
      tp["ln1_g"], tp["ln1_b"], tp["w1"], tp["b1"], tp["w2"], tp["b2"],
      tp["ln2_g"], tp["ln2_b"])
    return out.reshape(B, S, E)


def head_apply(x_bse, lengths, params):
    """Fused stats pooling + Linear(512,128) + Linear(128,2)."""
    B, S, E = x_bse.shape
    full2 = lambda i: (0, 0)
    return pl.pallas_call(
        _tail_kernel,
        grid=(1,),
        in_specs=[
            pl.BlockSpec((B, S, E), lambda i: (0, 0, 0)),
            pl.BlockSpec(memory_space=pltpu.MemorySpace.SMEM),
            pl.BlockSpec((2 * E, 128), full2),
            pl.BlockSpec((1, 128), full2),
            pl.BlockSpec((128, 2), full2),
            pl.BlockSpec((1, 2), full2),
        ],
        out_specs=pl.BlockSpec((B, 2), full2),
        out_shape=jax.ShapeDtypeStruct((B, 2), jnp.float32),
    )(x_bse, lengths, params["l1_w"], params["l1_b"], params["l2_w"], params["l2_b"])


# --------------------------------------------------------------------------------------
# Model glue
# --------------------------------------------------------------------------------------

def conformer_forward(params, x_ncl, attn_mask, lengths):
    """x_ncl: (B, input_dim, T) like PyTorch, attn_mask: (B, S) bool (True == pad)."""
    x = jnp.transpose(x_ncl, (0, 2, 1)).astype(jnp.float32)      # -> channels-last (B, T, C)
    for blk in params["conv_blocks"]:
        x = conv_block(x, blk)                                   # (B, L', Cout)
    # x is now (B, S, E); PyTorch's permute(2,0,1) -> (S, B, E) is just a layout change,
    # the fused transformer kernel consumes the batch-major layout directly.
    pad_mask_f = attn_mask.astype(jnp.float32)
    x = transformer_apply(x, pad_mask_f, params["tr"])           # (B, S, E)
    return head_apply(x, lengths, params)                        # (B, 2)


def conv_out_len(L, n_blocks=4):
    for _ in range(n_blocks):
        L = L - 2                    # Conv1d(kernel=3)
        L = (L - 3) // 2 + 1         # MaxPool1d(kernel=3, stride=2)
    return L


def init_params(key, input_dim=257):
    in_f = [input_dim, 64, 128, 256]
    out_f = [64, 128, 256, 256]
    keys = iter(jax.random.split(key, 256))

    def unif(shape, scale, dtype=jnp.float32):
        return jax.random.uniform(next(keys), shape, jnp.float32, -scale, scale).astype(dtype)

    def bn_fold(c):
        # eval-mode BatchNorm1d: y = (x - rm) / sqrt(rv + eps) * gamma + beta
        g = 1.0 + 0.1 * jax.random.normal(next(keys), (c,), jnp.float32)
        bb = 0.1 * jax.random.normal(next(keys), (c,), jnp.float32)
        rm = 0.1 * jax.random.normal(next(keys), (c,), jnp.float32)
        rv = 1.0 + 0.1 * jnp.abs(jax.random.normal(next(keys), (c,), jnp.float32))
        sc = g / jnp.sqrt(rv + 1e-5)
        sh = bb - rm * sc
        return sc.reshape(1, c), sh.reshape(1, c)

    params = {"conv_blocks": []}
    for cin, cout in zip(in_f, out_f):
        s = 1.0 / math.sqrt(cin * 3)
        w = unif((3, cin, cout), s)              # (k, Cin, Cout) == Conv1d weight transposed
        # zero-pad K (input channels) to a lane multiple when beneficial (exact: extra
        # channels are zero inputs x zero weights).
        if cin > 128 and cin % 128 != 0:
            cin_pad = ((cin + 127) // 128) * 128
            w = jnp.pad(w, ((0, 0), (0, cin_pad - cin), (0, 0)))
        s1, t1 = bn_fold(cout)
        s2, t2 = bn_fold(cout)
        params["conv_blocks"].append(dict(w=w, b=unif((1, cout), s),
                                          s1=s1, t1=t1, s2=s2, t2=t2))

    E, F, NL = D_MODEL, D_FF, NUM_LAYERS
    se, sf = 1.0 / math.sqrt(E), 1.0 / math.sqrt(F)
    params["tr"] = dict(
        wqkv=unif((NL, E, 3 * E), se, jnp.bfloat16),
        bqkv=unif((NL, 1, 3 * E), se),
        wo=unif((NL, E, E), se, jnp.bfloat16),
        bo=unif((NL, 1, E), se),
        ln1_g=jnp.ones((NL, 1, E), jnp.float32),
        ln1_b=jnp.zeros((NL, 1, E), jnp.float32),
        w1=unif((NL, E, F), se, jnp.bfloat16),
        b1=unif((NL, 1, F), se),
        w2=unif((NL, F, E), sf, jnp.bfloat16),
        b2=unif((NL, 1, E), sf),
        ln2_g=jnp.ones((NL, 1, E), jnp.float32),
        ln2_b=jnp.zeros((NL, 1, E), jnp.float32),
    )

    params["l1_w"] = unif((2 * E, 128), 1.0 / math.sqrt(2 * E))
    params["l1_b"] = unif((1, 128), 1.0 / math.sqrt(2 * E))
    params["l2_w"] = unif((128, 2), 1.0 / math.sqrt(128))
    params["l2_b"] = unif((1, 2), 1.0 / math.sqrt(128))
    return params


# --------------------------------------------------------------------------------------

if __name__ == "__main__":
    INPUT_DIM = 257
    BATCH = 2
    T = 100
    S = conv_out_len(T)            # sequence length after the 4 conv blocks (== 3 here)

    key = jax.random.PRNGKey(0)
    k_x, k_p = jax.random.split(key)
    x = jax.random.normal(k_x, (BATCH, INPUT_DIM, T), jnp.float32)    # PyTorch NCL input
    lengths = jnp.array([S, S - 1], dtype=jnp.int32)
    attn_mask = jnp.arange(S)[None, :] >= lengths[:, None]            # (B, S) bool, True == pad

    params = init_params(k_p, INPUT_DIM)
    fwd = jax.jit(conformer_forward)
    out = fwd(params, x, attn_mask, lengths)
    out = jax.block_until_ready(out)
    assert out.shape == (BATCH, 2) and out.dtype == jnp.float32
    print("KERNEL_OK")
</pallas_src>

<mosaic_0001>
module attributes {stable_mosaic.version = 11 : i64} {
  func.func @_conv_block_kernel(%arg0: i32, %arg1: memref<18x256xf32, #tpu.memory_space<vmem>>, %arg2: memref<3x256x256xf32, #tpu.memory_space<vmem>>, %arg3: memref<1x256xf32, #tpu.memory_space<vmem>>, %arg4: memref<1x256xf32, #tpu.memory_space<vmem>>, %arg5: memref<1x256xf32, #tpu.memory_space<vmem>>, %arg6: memref<1x256xf32, #tpu.memory_space<vmem>>, %arg7: memref<1x256xf32, #tpu.memory_space<vmem>>, %arg8: memref<6x256xf32, #tpu.memory_space<vmem>>) attributes {dimension_semantics = [#tpu.dimension_semantics<arbitrary>], iteration_bounds = array<i64: 1>, scalar_prefetch = 0 : i64, scratch_operands = 0 : i64, tpu.core_type = #tpu.core_type<tc>, window_params = [{pipeline_mode = #tpu.pipeline_mode<synchronous>, transform_indices = @transform_0, window_bounds = array<i64: 18, 256>}, {pipeline_mode = #tpu.pipeline_mode<synchronous>, transform_indices = @transform_1, window_bounds = array<i64: 3, 256, 256>}, {pipeline_mode = #tpu.pipeline_mode<synchronous>, transform_indices = @transform_2, window_bounds = array<i64: 1, 256>}, {pipeline_mode = #tpu.pipeline_mode<synchronous>, transform_indices = @transform_3, window_bounds = array<i64: 1, 256>}, {pipeline_mode = #tpu.pipeline_mode<synchronous>, transform_indices = @transform_4, window_bounds = array<i64: 1, 256>}, {pipeline_mode = #tpu.pipeline_mode<synchronous>, transform_indices = @transform_5, window_bounds = array<i64: 1, 256>}, {pipeline_mode = #tpu.pipeline_mode<synchronous>, transform_indices = @transform_6, window_bounds = array<i64: 1, 256>}, {pipeline_mode = #tpu.pipeline_mode<synchronous>, transform_indices = @transform_7, window_bounds = array<i64: 6, 256>}]} {
    %c0 = arith.constant 0 : index
    %c0_0 = arith.constant 0 : index
    %0 = vector.load %arg1[%c0, %c0_0] : memref<18x256xf32, #tpu.memory_space<vmem>>, vector<18x256xf32>
    %1 = vector.extract_strided_slice %0 {offsets = [0, 0], sizes = [16, 256], strides = [1, 1]} : vector<18x256xf32> to vector<16x256xf32>
    %c0_1 = arith.constant 0 : index
    %c0_2 = arith.constant 0 : index
    %c0_3 = arith.constant 0 : index
    %2 = vector.load %arg2[%c0_1, %c0_2, %c0_3] : memref<3x256x256xf32, #tpu.memory_space<vmem>>, vector<1x256x256xf32>
    %3 = vector.shape_cast %2 : vector<1x256x256xf32> to vector<256x256xf32>
    %cst = arith.constant dense<0.000000e+00> : vector<16x256xf32>
    %4 = tpu.matmul %1, %3, %cst {dimension_numbers = #tpu.dot_dimension_numbers<[1], [0], [0], [1], [0, 0, 1, 1], [], []>} : vector<16x256xf32>, vector<256x256xf32>, vector<16x256xf32> -> vector<16x256xf32>
    %5 = vector.extract_strided_slice %0 {offsets = [1, 0], sizes = [16, 256], strides = [1, 1]} : vector<18x256xf32> to vector<16x256xf32>
    %c1 = arith.constant 1 : index
    %c0_4 = arith.constant 0 : index
    %c0_5 = arith.constant 0 : index
    %6 = vector.load %arg2[%c1, %c0_4, %c0_5] : memref<3x256x256xf32, #tpu.memory_space<vmem>>, vector<1x256x256xf32>
    %7 = vector.shape_cast %6 : vector<1x256x256xf32> to vector<256x256xf32>
    %cst_6 = arith.constant dense<0.000000e+00> : vector<16x256xf32>
    %8 = tpu.matmul %5, %7, %cst_6 {dimension_numbers = #tpu.dot_dimension_numbers<[1], [0], [0], [1], [0, 0, 1, 1], [], []>} : vector<16x256xf32>, vector<256x256xf32>, vector<16x256xf32> -> vector<16x256xf32>
    %9 = arith.addf %4, %8 : vector<16x256xf32>
    %10 = vector.extract_strided_slice %0 {offsets = [2, 0], sizes = [16, 256], strides = [1, 1]} : vector<18x256xf32> to vector<16x256xf32>
    %c2 = arith.constant 2 : index
    %c0_7 = arith.constant 0 : index
    %c0_8 = arith.constant 0 : index
    %11 = vector.load %arg2[%c2, %c0_7, %c0_8] : memref<3x256x256xf32, #tpu.memory_space<vmem>>, vector<1x256x256xf32>
    %12 = vector.shape_cast %11 : vector<1x256x256xf32> to vector<256x256xf32>
    %cst_9 = arith.constant dense<0.000000e+00> : vector<16x256xf32>
    %13 = tpu.matmul %10, %12, %cst_9 {dimension_numbers = #tpu.dot_dimension_numbers<[1], [0], [0], [1], [0, 0, 1, 1], [], []>} : vector<16x256xf32>, vector<256x256xf32>, vector<16x256xf32> -> vector<16x256xf32>
    %14 = arith.addf %9, %13 : vector<16x256xf32>
    %c0_10 = arith.constant 0 : index
    %c0_11 = arith.constant 0 : index
    %15 = vector.load %arg3[%c0_10, %c0_11] : memref<1x256xf32, #tpu.memory_space<vmem>>, vector<1x256xf32>
    %16 = vector.broadcast %15 : vector<1x256xf32> to vector<16x256xf32>
    %17 = arith.addf %14, %16 : vector<16x256xf32>
    %c0_12 = arith.constant 0 : index
    %c0_13 = arith.constant 0 : index
    %18 = vector.load %arg4[%c0_12, %c0_13] : memref<1x256xf32, #tpu.memory_space<vmem>>, vector<1x256xf32>
    %19 = vector.broadcast %18 : vector<1x256xf32> to vector<16x256xf32>
    %20 = arith.mulf %17, %19 : vector<16x256xf32>
    %c0_14 = arith.constant 0 : index
    %c0_15 = arith.constant 0 : index
    %21 = vector.load %arg5[%c0_14, %c0_15] : memref<1x256xf32, #tpu.memory_space<vmem>>, vector<1x256xf32>
    %22 = vector.broadcast %21 : vector<1x256xf32> to vector<16x256xf32>
    %23 = arith.addf %20, %22 : vector<16x256xf32>
    %cst_16 = arith.constant 0.000000e+00 : f32
    %24 = vector.broadcast %cst_16 : f32 to vector<16x256xf32>
    %25 = arith.maximumf %23, %24 : vector<16x256xf32>
    %26 = vector.extract_strided_slice %25 {offsets = [0, 0], sizes = [14, 256], strides = [1, 1]} : vector<16x256xf32> to vector<14x256xf32>
    %27 = vector.extract_strided_slice %25 {offsets = [1, 0], sizes = [14, 256], strides = [1, 1]} : vector<16x256xf32> to vector<14x256xf32>
    %28 = arith.maximumf %26, %27 : vector<14x256xf32>
    %29 = vector.extract_strided_slice %25 {offsets = [2, 0], sizes = [14, 256], strides = [1, 1]} : vector<16x256xf32> to vector<14x256xf32>
    %30 = arith.maximumf %28, %29 : vector<14x256xf32>
    %31 = tpu.iota {dimensions = array<i32: 0>} : vector<3x14xi32>
    %32 = tpu.iota {dimensions = array<i32: 1>} : vector<3x14xi32>
    %c2_i32 = arith.constant 2 : i32
    %33 = vector.broadcast %c2_i32 : i32 to vector<3x14xi32>
    %34 = arith.muli %33, %31 : vector<3x14xi32>
    %c0_i32 = arith.constant 0 : i32
    %35 = vector.broadcast %c0_i32 : i32 to vector<3x14xi32>
    %36 = arith.addi %35, %34 : vector<3x14xi32>
    %37 = arith.cmpi eq, %32, %36 : vector<3x14xi32>
    %38 = arith.extui %37 : vector<3x14xi1> to vector<3x14xi32>
    %39 = arith.sitofp %38 : vector<3x14xi32> to vector<3x14xf32>
    %40 = tpu.iota {dimensions = array<i32: 0>} : vector<3x14xi32>
    %41 = tpu.iota {dimensions = array<i32: 1>} : vector<3x14xi32>
    %c2_i32_17 = arith.constant 2 : i32
    %42 = vector.broadcast %c2_i32_17 : i32 to vector<3x14xi32>
    %43 = arith.muli %42, %40 : vector<3x14xi32>
    %c9_i32 = arith.constant 9 : i32
    %44 = vector.broadcast %c9_i32 : i32 to vector<3x14xi32>
    %45 = arith.addi %44, %43 : vector<3x14xi32>
    %46 = arith.cmpi eq, %41, %45 : vector<3x14xi32>
    %47 = arith.extui %46 : vector<3x14xi1> to vector<3x14xi32>
    %48 = arith.sitofp %47 : vector<3x14xi32> to vector<3x14xf32>
    %49 = tpu.concatenate %39, %48 in 0 : vector<3x14xf32>, vector<3x14xf32> -> vector<6x14xf32>
    %cst_18 = arith.constant dense<0.000000e+00> : vector<6x256xf32>
    %50 = tpu.matmul %49, %30, %cst_18 {dimension_numbers = #tpu.dot_dimension_numbers<[1], [0], [0], [1], [0, 0, 1, 1], [], []>} : vector<6x14xf32>, vector<14x256xf32>, vector<6x256xf32> -> vector<6x256xf32>
    %c0_19 = arith.constant 0 : index
    %c0_20 = arith.constant 0 : index
    %51 = vector.load %arg6[%c0_19, %c0_20] : memref<1x256xf32, #tpu.memory_space<vmem>>, vector<1x256xf32>
    %52 = vector.broadcast %51 : vector<1x256xf32> to vector<6x256xf32>
    %53 = arith.mulf %50, %52 : vector<6x256xf32>
    %c0_21 = arith.constant 0 : index
    %c0_22 = arith.constant 0 : index
    %54 = vector.load %arg7[%c0_21, %c0_22] : memref<1x256xf32, #tpu.memory_space<vmem>>, vector<1x256xf32>
    %55 = vector.broadcast %54 : vector<1x256xf32> to vector<6x256xf32>
    %56 = arith.addf %53, %55 : vector<6x256xf32>
    %c0_23 = arith.constant 0 : index
    %c0_24 = arith.constant 0 : index
    %57 = vector.load %arg8[%c0_23, %c0_24] : memref<6x256xf32, #tpu.memory_space<vmem>>, vector<6x256xf32>
    tpu.vector_store %arg8[%c0_23, %c0_24], %56 {strides = array<i32>} : memref<6x256xf32, #tpu.memory_space<vmem>>, vector<6x256xf32>,
    return
  }
  func.func @transform_0(%arg0: i32) -> (i32, i32) {
    %c0_i32 = arith.constant 0 : i32
    %c0_i32_0 = arith.constant 0 : i32
    %c0_i32_1 = arith.constant 0 : i32
    return %c0_i32, %c0_i32_0 : i32, i32
  }
  func.func @transform_1(%arg0: i32) -> (i32, i32, i32) {
    %c0_i32 = arith.constant 0 : i32
    %c0_i32_0 = arith.constant 0 : i32
    %c0_i32_1 = arith.constant 0 : i32
    %c0_i32_2 = arith.constant 0 : i32
    return %c0_i32, %c0_i32_0, %c0_i32_1 : i32, i32, i32
  }
  func.func @transform_2(%arg0: i32) -> (i32, i32) {
    %c0_i32 = arith.constant 0 : i32
    %c0_i32_0 = arith.constant 0 : i32
    %c0_i32_1 = arith.constant 0 : i32
    return %c0_i32, %c0_i32_0 : i32, i32
  }
  func.func @transform_3(%arg0: i32) -> (i32, i32) {
    %c0_i32 = arith.constant 0 : i32
    %c0_i32_0 = arith.constant 0 : i32
    %c0_i32_1 = arith.constant 0 : i32
    return %c0_i32, %c0_i32_0 : i32, i32
  }
  func.func @transform_4(%arg0: i32) -> (i32, i32) {
    %c0_i32 = arith.constant 0 : i32
    %c0_i32_0 = arith.constant 0 : i32
    %c0_i32_1 = arith.constant 0 : i32
    return %c0_i32, %c0_i32_0 : i32, i32
  }
  func.func @transform_5(%arg0: i32) -> (i32, i32) {
    %c0_i32 = arith.constant 0 : i32
    %c0_i32_0 = arith.constant 0 : i32
    %c0_i32_1 = arith.constant 0 : i32
    return %c0_i32, %c0_i32_0 : i32, i32
  }
  func.func @transform_6(%arg0: i32) -> (i32, i32) {
    %c0_i32 = arith.constant 0 : i32
    %c0_i32_0 = arith.constant 0 : i32
    %c0_i32_1 = arith.constant 0 : i32
    return %c0_i32, %c0_i32_0 : i32, i32
  }
  func.func @transform_7(%arg0: i32) -> (i32, i32) {
    %c0_i32 = arith.constant 0 : i32
    %c0_i32_0 = arith.constant 0 : i32
    %c0_i32_1 = arith.constant 0 : i32
    return %c0_i32, %c0_i32_0 : i32, i32
  }
}

module attributes {stable_mosaic.version = 11 : i64} {
  func.func @_conv_block_kernel(%arg0: i32, %arg1: memref<44x128xf32, #tpu.memory_space<vmem>>, %arg2: memref<3x128x256xf32, #tpu.memory_space<vmem>>, %arg3: memref<1x256xf32, #tpu.memory_space<vmem>>, %arg4: memref<1x256xf32, #tpu.memory_space<vmem>>, %arg5: memref<1x256xf32, #tpu.memory_space<vmem>>, %arg6: memref<1x256xf32, #tpu.memory_space<vmem>>, %arg7: memref<1x256xf32, #tpu.memory_space<vmem>>, %arg8: memref<18x256xf32, #tpu.memory_space<vmem>>) attributes {dimension_semantics = [#tpu.dimension_semantics<arbitrary>], iteration_bounds = array<i64: 1>, scalar_prefetch = 0 : i64, scratch_operands = 0 : i64, tpu.core_type = #tpu.core_type<tc>, window_params = [{pipeline_mode = #tpu.pipeline_mode<synchronous>, transform_indices = @transform_0, window_bounds = array<i64: 44, 128>}, {pipeline_mode = #tpu.pipeline_mode<synchronous>, transform_indices = @transform_1, window_bounds = array<i64: 3, 128, 256>}, {pipeline_mode = #tpu.pipeline_mode<synchronous>, transform_indices = @transform_2, window_bounds = array<i64: 1, 256>}, {pipeline_mode = #tpu.pipeline_mode<synchronous>, transform_indices = @transform_3, window_bounds = array<i64: 1, 256>}, {pipeline_mode = #tpu.pipeline_mode<synchronous>, transform_indices = @transform_4, window_bounds = array<i64: 1, 256>}, {pipeline_mode = #tpu.pipeline_mode<synchronous>, transform_indices = @transform_5, window_bounds = array<i64: 1, 256>}, {pipeline_mode = #tpu.pipeline_mode<synchronous>, transform_indices = @transform_6, window_bounds = array<i64: 1, 256>}, {pipeline_mode = #tpu.pipeline_mode<synchronous>, transform_indices = @transform_7, window_bounds = array<i64: 18, 256>}]} {
    %c0 = arith.constant 0 : index
    %c0_0 = arith.constant 0 : index
    %0 = vector.load %arg1[%c0, %c0_0] : memref<44x128xf32, #tpu.memory_space<vmem>>, vector<44x128xf32>
    %1 = vector.extract_strided_slice %0 {offsets = [0, 0], sizes = [42, 128], strides = [1, 1]} : vector<44x128xf32> to vector<42x128xf32>
    %c0_1 = arith.constant 0 : index
    %c0_2 = arith.constant 0 : index
    %c0_3 = arith.constant 0 : index
    %2 = vector.load %arg2[%c0_1, %c0_2, %c0_3] : memref<3x128x256xf32, #tpu.memory_space<vmem>>, vector<1x128x256xf32>
    %3 = vector.shape_cast %2 : vector<1x128x256xf32> to vector<128x256xf32>
    %cst = arith.constant dense<0.000000e+00> : vector<42x256xf32>
    %4 = tpu.matmul %1, %3, %cst {dimension_numbers = #tpu.dot_dimension_numbers<[1], [0], [0], [1], [0, 0, 1, 1], [], []>} : vector<42x128xf32>, vector<128x256xf32>, vector<42x256xf32> -> vector<42x256xf32>
    %5 = vector.extract_strided_slice %0 {offsets = [1, 0], sizes = [42, 128], strides = [1, 1]} : vector<44x128xf32> to vector<42x128xf32>
    %c1 = arith.constant 1 : index
    %c0_4 = arith.constant 0 : index
    %c0_5 = arith.constant 0 : index
    %6 = vector.load %arg2[%c1, %c0_4, %c0_5] : memref<3x128x256xf32, #tpu.memory_space<vmem>>, vector<1x128x256xf32>
    %7 = vector.shape_cast %6 : vector<1x128x256xf32> to vector<128x256xf32>
    %cst_6 = arith.constant dense<0.000000e+00> : vector<42x256xf32>
    %8 = tpu.matmul %5, %7, %cst_6 {dimension_numbers = #tpu.dot_dimension_numbers<[1], [0], [0], [1], [0, 0, 1, 1], [], []>} : vector<42x128xf32>, vector<128x256xf32>, vector<42x256xf32> -> vector<42x256xf32>
    %9 = arith.addf %4, %8 : vector<42x256xf32>
    %10 = vector.extract_strided_slice %0 {offsets = [2, 0], sizes = [42, 128], strides = [1, 1]} : vector<44x128xf32> to vector<42x128xf32>
    %c2 = arith.constant 2 : index
    %c0_7 = arith.constant 0 : index
    %c0_8 = arith.constant 0 : index
    %11 = vector.load %arg2[%c2, %c0_7, %c0_8] : memref<3x128x256xf32, #tpu.memory_space<vmem>>, vector<1x128x256xf32>
    %12 = vector.shape_cast %11 : vector<1x128x256xf32> to vector<128x256xf32>
    %cst_9 = arith.constant dense<0.000000e+00> : vector<42x256xf32>
    %13 = tpu.matmul %10, %12, %cst_9 {dimension_numbers = #tpu.dot_dimension_numbers<[1], [0], [0], [1], [0, 0, 1, 1], [], []>} : vector<42x128xf32>, vector<128x256xf32>, vector<42x256xf32> -> vector<42x256xf32>
    %14 = arith.addf %9, %13 : vector<42x256xf32>
    %c0_10 = arith.constant 0 : index
    %c0_11 = arith.constant 0 : index
    %15 = vector.load %arg3[%c0_10, %c0_11] : memref<1x256xf32, #tpu.memory_space<vmem>>, vector<1x256xf32>
    %16 = vector.broadcast %15 : vector<1x256xf32> to vector<42x256xf32>
    %17 = arith.addf %14, %16 : vector<42x256xf32>
    %c0_12 = arith.constant 0 : index
    %c0_13 = arith.constant 0 : index
    %18 = vector.load %arg4[%c0_12, %c0_13] : memref<1x256xf32, #tpu.memory_space<vmem>>, vector<1x256xf32>
    %19 = vector.broadcast %18 : vector<1x256xf32> to vector<42x256xf32>
    %20 = arith.mulf %17, %19 : vector<42x256xf32>
    %c0_14 = arith.constant 0 : index
    %c0_15 = arith.constant 0 : index
    %21 = vector.load %arg5[%c0_14, %c0_15] : memref<1x256xf32, #tpu.memory_space<vmem>>, vector<1x256xf32>
    %22 = vector.broadcast %21 : vector<1x256xf32> to vector<42x256xf32>
    %23 = arith.addf %20, %22 : vector<42x256xf32>
    %cst_16 = arith.constant 0.000000e+00 : f32
    %24 = vector.broadcast %cst_16 : f32 to vector<42x256xf32>
    %25 = arith.maximumf %23, %24 : vector<42x256xf32>
    %26 = vector.extract_strided_slice %25 {offsets = [0, 0], sizes = [40, 256], strides = [1, 1]} : vector<42x256xf32> to vector<40x256xf32>
    %27 = vector.extract_strided_slice %25 {offsets = [1, 0], sizes = [40, 256], strides = [1, 1]} : vector<42x256xf32> to vector<40x256xf32>
    %28 = arith.maximumf %26, %27 : vector<40x256xf32>
    %29 = vector.extract_strided_slice %25 {offsets = [2, 0], sizes = [40, 256], strides = [1, 1]} : vector<42x256xf32> to vector<40x256xf32>
    %30 = arith.maximumf %28, %29 : vector<40x256xf32>
    %31 = tpu.iota {dimensions = array<i32: 0>} : vector<9x40xi32>
    %32 = tpu.iota {dimensions = array<i32: 1>} : vector<9x40xi32>
    %c2_i32 = arith.constant 2 : i32
    %33 = vector.broadcast %c2_i32 : i32 to vector<9x40xi32>
    %34 = arith.muli %33, %31 : vector<9x40xi32>
    %c0_i32 = arith.constant 0 : i32
    %35 = vector.broadcast %c0_i32 : i32 to vector<9x40xi32>
    %36 = arith.addi %35, %34 : vector<9x40xi32>
    %37 = arith.cmpi eq, %32, %36 : vector<9x40xi32>
    %38 = arith.extui %37 : vector<9x40xi1> to vector<9x40xi32>
    %39 = arith.sitofp %38 : vector<9x40xi32> to vector<9x40xf32>
    %40 = tpu.iota {dimensions = array<i32: 0>} : vector<9x40xi32>
    %41 = tpu.iota {dimensions = array<i32: 1>} : vector<9x40xi32>
    %c2_i32_17 = arith.constant 2 : i32
    %42 = vector.broadcast %c2_i32_17 : i32 to vector<9x40xi32>
    %43 = arith.muli %42, %40 : vector<9x40xi32>
    %c22_i32 = arith.constant 22 : i32
    %44 = vector.broadcast %c22_i32 : i32 to vector<9x40xi32>
    %45 = arith.addi %44, %43 : vector<9x40xi32>
    %46 = arith.cmpi eq, %41, %45 : vector<9x40xi32>
    %47 = arith.extui %46 : vector<9x40xi1> to vector<9x40xi32>
    %48 = arith.sitofp %47 : vector<9x40xi32> to vector<9x40xf32>
    %49 = tpu.concatenate %39, %48 in 0 : vector<9x40xf32>, vector<9x40xf32> -> vector<18x40xf32>
    %cst_18 = arith.constant dense<0.000000e+00> : vector<18x256xf32>
    %50 = tpu.matmul %49, %30, %cst_18 {dimension_numbers = #tpu.dot_dimension_numbers<[1], [0], [0], [1], [0, 0, 1, 1], [], []>} : vector<18x40xf32>, vector<40x256xf32>, vector<18x256xf32> -> vector<18x256xf32>
    %c0_19 = arith.constant 0 : index
    %c0_20 = arith.constant 0 : index
    %51 = vector.load %arg6[%c0_19, %c0_20] : memref<1x256xf32, #tpu.memory_space<vmem>>, vector<1x256xf32>
    %52 = vector.broadcast %51 : vector<1x256xf32> to vector<18x256xf32>
    %53 = arith.mulf %50, %52 : vector<18x256xf32>
    %c0_21 = arith.constant 0 : index
    %c0_22 = arith.constant 0 : index
    %54 = vector.load %arg7[%c0_21, %c0_22] : memref<1x256xf32, #tpu.memory_space<vmem>>, vector<1x256xf32>
    %55 = vector.broadcast %54 : vector<1x256xf32> to vector<18x256xf32>
    %56 = arith.addf %53, %55 : vector<18x256xf32>
    %c0_23 = arith.constant 0 : index
    %c0_24 = arith.constant 0 : index
    %57 = vector.load %arg8[%c0_23, %c0_24] : memref<18x256xf32, #tpu.memory_space<vmem>>, vector<18x256xf32>
    tpu.vector_store %arg8[%c0_23, %c0_24], %56 {strides = array<i32>} : memref<18x256xf32, #tpu.memory_space<vmem>>, vector<18x256xf32>,
    return
  }
  func.func @transform_0(%arg0: i32) -> (i32, i32) {
    %c0_i32 = arith.constant 0 : i32
    %c0_i32_0 = arith.constant 0 : i32
    %c0_i32_1 = arith.constant 0 : i32
    return %c0_i32, %c0_i32_0 : i32, i32
  }
  func.func @transform_1(%arg0: i32) -> (i32, i32, i32) {
    %c0_i32 = arith.constant 0 : i32
    %c0_i32_0 = arith.constant 0 : i32
    %c0_i32_1 = arith.constant 0 : i32
    %c0_i32_2 = arith.constant 0 : i32
    return %c0_i32, %c0_i32_0, %c0_i32_1 : i32, i32, i32
  }
  func.func @transform_2(%arg0: i32) -> (i32, i32) {
    %c0_i32 = arith.constant 0 : i32
    %c0_i32_0 = arith.constant 0 : i32
    %c0_i32_1 = arith.constant 0 : i32
    return %c0_i32, %c0_i32_0 : i32, i32
  }
  func.func @transform_3(%arg0: i32) -> (i32, i32) {
    %c0_i32 = arith.constant 0 : i32
    %c0_i32_0 = arith.constant 0 : i32
    %c0_i32_1 = arith.constant 0 : i32
    return %c0_i32, %c0_i32_0 : i32, i32
  }
  func.func @transform_4(%arg0: i32) -> (i32, i32) {
    %c0_i32 = arith.constant 0 : i32
    %c0_i32_0 = arith.constant 0 : i32
    %c0_i32_1 = arith.constant 0 : i32
    return %c0_i32, %c0_i32_0 : i32, i32
  }
  func.func @transform_5(%arg0: i32) -> (i32, i32) {
    %c0_i32 = arith.constant 0 : i32
    %c0_i32_0 = arith.constant 0 : i32
    %c0_i32_1 = arith.constant 0 : i32
    return %c0_i32, %c0_i32_0 : i32, i32
  }
  func.func @transform_6(%arg0: i32) -> (i32, i32) {
    %c0_i32 = arith.constant 0 : i32
    %c0_i32_0 = arith.constant 0 : i32
    %c0_i32_1 = arith.constant 0 : i32
    return %c0_i32, %c0_i32_0 : i32, i32
  }
  func.func @transform_7(%arg0: i32) -> (i32, i32) {
    %c0_i32 = arith.constant 0 : i32
    %c0_i32_0 = arith.constant 0 : i32
    %c0_i32_1 = arith.constant 0 : i32
    return %c0_i32, %c0_i32_0 : i32, i32
  }
}

module attributes {stable_mosaic.version = 11 : i64} {
  func.func @_conv_block_kernel(%arg0: i32, %arg1: memref<96x64xf32, #tpu.memory_space<vmem>>, %arg2: memref<3x64x128xf32, #tpu.memory_space<vmem>>, %arg3: memref<1x128xf32, #tpu.memory_space<vmem>>, %arg4: memref<1x128xf32, #tpu.memory_space<vmem>>, %arg5: memref<1x128xf32, #tpu.memory_space<vmem>>, %arg6: memref<1x128xf32, #tpu.memory_space<vmem>>, %arg7: memref<1x128xf32, #tpu.memory_space<vmem>>, %arg8: memref<44x128xf32, #tpu.memory_space<vmem>>) attributes {dimension_semantics = [#tpu.dimension_semantics<arbitrary>], iteration_bounds = array<i64: 1>, scalar_prefetch = 0 : i64, scratch_operands = 0 : i64, tpu.core_type = #tpu.core_type<tc>, window_params = [{pipeline_mode = #tpu.pipeline_mode<synchronous>, transform_indices = @transform_0, window_bounds = array<i64: 96, 64>}, {pipeline_mode = #tpu.pipeline_mode<synchronous>, transform_indices = @transform_1, window_bounds = array<i64: 3, 64, 128>}, {pipeline_mode = #tpu.pipeline_mode<synchronous>, transform_indices = @transform_2, window_bounds = array<i64: 1, 128>}, {pipeline_mode = #tpu.pipeline_mode<synchronous>, transform_indices = @transform_3, window_bounds = array<i64: 1, 128>}, {pipeline_mode = #tpu.pipeline_mode<synchronous>, transform_indices = @transform_4, window_bounds = array<i64: 1, 128>}, {pipeline_mode = #tpu.pipeline_mode<synchronous>, transform_indices = @transform_5, window_bounds = array<i64: 1, 128>}, {pipeline_mode = #tpu.pipeline_mode<synchronous>, transform_indices = @transform_6, window_bounds = array<i64: 1, 128>}, {pipeline_mode = #tpu.pipeline_mode<synchronous>, transform_indices = @transform_7, window_bounds = array<i64: 44, 128>}]} {
    %c0 = arith.constant 0 : index
    %c0_0 = arith.constant 0 : index
    %0 = vector.load %arg1[%c0, %c0_0] : memref<96x64xf32, #tpu.memory_space<vmem>>, vector<96x64xf32>
    %1 = vector.extract_strided_slice %0 {offsets = [0, 0], sizes = [94, 64], strides = [1, 1]} : vector<96x64xf32> to vector<94x64xf32>
    %c0_1 = arith.constant 0 : index
    %c0_2 = arith.constant 0 : index
    %c0_3 = arith.constant 0 : index
    %2 = vector.load %arg2[%c0_1, %c0_2, %c0_3] : memref<3x64x128xf32, #tpu.memory_space<vmem>>, vector<1x64x128xf32>
    %3 = vector.shape_cast %2 : vector<1x64x128xf32> to vector<64x128xf32>
    %cst = arith.constant dense<0.000000e+00> : vector<94x128xf32>
    %4 = tpu.matmul %1, %3, %cst {dimension_numbers = #tpu.dot_dimension_numbers<[1], [0], [0], [1], [0, 0, 1, 1], [], []>} : vector<94x64xf32>, vector<64x128xf32>, vector<94x128xf32> -> vector<94x128xf32>
    %5 = vector.extract_strided_slice %0 {offsets = [1, 0], sizes = [94, 64], strides = [1, 1]} : vector<96x64xf32> to vector<94x64xf32>
    %c1 = arith.constant 1 : index
    %c0_4 = arith.constant 0 : index
    %c0_5 = arith.constant 0 : index
    %6 = vector.load %arg2[%c1, %c0_4, %c0_5] : memref<3x64x128xf32, #tpu.memory_space<vmem>>, vector<1x64x128xf32>
    %7 = vector.shape_cast %6 : vector<1x64x128xf32> to vector<64x128xf32>
    %cst_6 = arith.constant dense<0.000000e+00> : vector<94x128xf32>
    %8 = tpu.matmul %5, %7, %cst_6 {dimension_numbers = #tpu.dot_dimension_numbers<[1], [0], [0], [1], [0, 0, 1, 1], [], []>} : vector<94x64xf32>, vector<64x128xf32>, vector<94x128xf32> -> vector<94x128xf32>
    %9 = arith.addf %4, %8 : vector<94x128xf32>
    %10 = vector.extract_strided_slice %0 {offsets = [2, 0], sizes = [94, 64], strides = [1, 1]} : vector<96x64xf32> to vector<94x64xf32>
    %c2 = arith.constant 2 : index
    %c0_7 = arith.constant 0 : index
    %c0_8 = arith.constant 0 : index
    %11 = vector.load %arg2[%c2, %c0_7, %c0_8] : memref<3x64x128xf32, #tpu.memory_space<vmem>>, vector<1x64x128xf32>
    %12 = vector.shape_cast %11 : vector<1x64x128xf32> to vector<64x128xf32>
    %cst_9 = arith.constant dense<0.000000e+00> : vector<94x128xf32>
    %13 = tpu.matmul %10, %12, %cst_9 {dimension_numbers = #tpu.dot_dimension_numbers<[1], [0], [0], [1], [0, 0, 1, 1], [], []>} : vector<94x64xf32>, vector<64x128xf32>, vector<94x128xf32> -> vector<94x128xf32>
    %14 = arith.addf %9, %13 : vector<94x128xf32>
    %c0_10 = arith.constant 0 : index
    %c0_11 = arith.constant 0 : index
    %15 = vector.load %arg3[%c0_10, %c0_11] : memref<1x128xf32, #tpu.memory_space<vmem>>, vector<1x128xf32>
    %16 = vector.broadcast %15 : vector<1x128xf32> to vector<94x128xf32>
    %17 = arith.addf %14, %16 : vector<94x128xf32>
    %c0_12 = arith.constant 0 : index
    %c0_13 = arith.constant 0 : index
    %18 = vector.load %arg4[%c0_12, %c0_13] : memref<1x128xf32, #tpu.memory_space<vmem>>, vector<1x128xf32>
    %19 = vector.broadcast %18 : vector<1x128xf32> to vector<94x128xf32>
    %20 = arith.mulf %17, %19 : vector<94x128xf32>
    %c0_14 = arith.constant 0 : index
    %c0_15 = arith.constant 0 : index
    %21 = vector.load %arg5[%c0_14, %c0_15] : memref<1x128xf32, #tpu.memory_space<vmem>>, vector<1x128xf32>
    %22 = vector.broadcast %21 : vector<1x128xf32> to vector<94x128xf32>
    %23 = arith.addf %20, %22 : vector<94x128xf32>
    %cst_16 = arith.constant 0.000000e+00 : f32
    %24 = vector.broadcast %cst_16 : f32 to vector<94x128xf32>
    %25 = arith.maximumf %23, %24 : vector<94x128xf32>
    %26 = vector.extract_strided_slice %25 {offsets = [0, 0], sizes = [92, 128], strides = [1, 1]} : vector<94x128xf32> to vector<92x128xf32>
    %27 = vector.extract_strided_slice %25 {offsets = [1, 0], sizes = [92, 128], strides = [1, 1]} : vector<94x128xf32> to vector<92x128xf32>
    %28 = arith.maximumf %26, %27 : vector<92x128xf32>
    %29 = vector.extract_strided_slice %25 {offsets = [2, 0], sizes = [92, 128], strides = [1, 1]} : vector<94x128xf32> to vector<92x128xf32>
    %30 = arith.maximumf %28, %29 : vector<92x128xf32>
    %31 = tpu.iota {dimensions = array<i32: 0>} : vector<22x92xi32>
    %32 = tpu.iota {dimensions = array<i32: 1>} : vector<22x92xi32>
    %c2_i32 = arith.constant 2 : i32
    %33 = vector.broadcast %c2_i32 : i32 to vector<22x92xi32>
    %34 = arith.muli %33, %31 : vector<22x92xi32>
    %c0_i32 = arith.constant 0 : i32
    %35 = vector.broadcast %c0_i32 : i32 to vector<22x92xi32>
    %36 = arith.addi %35, %34 : vector<22x92xi32>
    %37 = arith.cmpi eq, %32, %36 : vector<22x92xi32>
    %38 = arith.extui %37 : vector<22x92xi1> to vector<22x92xi32>
    %39 = arith.sitofp %38 : vector<22x92xi32> to vector<22x92xf32>
    %40 = tpu.iota {dimensions = array<i32: 0>} : vector<22x92xi32>
    %41 = tpu.iota {dimensions = array<i32: 1>} : vector<22x92xi32>
    %c2_i32_17 = arith.constant 2 : i32
    %42 = vector.broadcast %c2_i32_17 : i32 to vector<22x92xi32>
    %43 = arith.muli %42, %40 : vector<22x92xi32>
    %c48_i32 = arith.constant 48 : i32
    %44 = vector.broadcast %c48_i32 : i32 to vector<22x92xi32>
    %45 = arith.addi %44, %43 : vector<22x92xi32>
    %46 = arith.cmpi eq, %41, %45 : vector<22x92xi32>
    %47 = arith.extui %46 : vector<22x92xi1> to vector<22x92xi32>
    %48 = arith.sitofp %47 : vector<22x92xi32> to vector<22x92xf32>
    %49 = tpu.concatenate %39, %48 in 0 : vector<22x92xf32>, vector<22x92xf32> -> vector<44x92xf32>
    %cst_18 = arith.constant dense<0.000000e+00> : vector<44x128xf32>
    %50 = tpu.matmul %49, %30, %cst_18 {dimension_numbers = #tpu.dot_dimension_numbers<[1], [0], [0], [1], [0, 0, 1, 1], [], []>} : vector<44x92xf32>, vector<92x128xf32>, vector<44x128xf32> -> vector<44x128xf32>
    %c0_19 = arith.constant 0 : index
    %c0_20 = arith.constant 0 : index
    %51 = vector.load %arg6[%c0_19, %c0_20] : memref<1x128xf32, #tpu.memory_space<vmem>>, vector<1x128xf32>
    %52 = vector.broadcast %51 : vector<1x128xf32> to vector<44x128xf32>
    %53 = arith.mulf %50, %52 : vector<44x128xf32>
    %c0_21 = arith.constant 0 : index
    %c0_22 = arith.constant 0 : index
    %54 = vector.load %arg7[%c0_21, %c0_22] : memref<1x128xf32, #tpu.memory_space<vmem>>, vector<1x128xf32>
    %55 = vector.broadcast %54 : vector<1x128xf32> to vector<44x128xf32>
    %56 = arith.addf %53, %55 : vector<44x128xf32>
    %c0_23 = arith.constant 0 : index
    %c0_24 = arith.constant 0 : index
    %57 = vector.load %arg8[%c0_23, %c0_24] : memref<44x128xf32, #tpu.memory_space<vmem>>, vector<44x128xf32>
    tpu.vector_store %arg8[%c0_23, %c0_24], %56 {strides = array<i32>} : memref<44x128xf32, #tpu.memory_space<vmem>>, vector<44x128xf32>,
    return
  }
  func.func @transform_0(%arg0: i32) -> (i32, i32) {
    %c0_i32 = arith.constant 0 : i32
    %c0_i32_0 = arith.constant 0 : i32
    %c0_i32_1 = arith.constant 0 : i32
    return %c0_i32, %c0_i32_0 : i32, i32
  }
  func.func @transform_1(%arg0: i32) -> (i32, i32, i32) {
    %c0_i32 = arith.constant 0 : i32
    %c0_i32_0 = arith.constant 0 : i32
    %c0_i32_1 = arith.constant 0 : i32
    %c0_i32_2 = arith.constant 0 : i32
    return %c0_i32, %c0_i32_0, %c0_i32_1 : i32, i32, i32
  }
  func.func @transform_2(%arg0: i32) -> (i32, i32) {
    %c0_i32 = arith.constant 0 : i32
    %c0_i32_0 = arith.constant 0 : i32
    %c0_i32_1 = arith.constant 0 : i32
    return %c0_i32, %c0_i32_0 : i32, i32
  }
  func.func @transform_3(%arg0: i32) -> (i32, i32) {
    %c0_i32 = arith.constant 0 : i32
    %c0_i32_0 = arith.constant 0 : i32
    %c0_i32_1 = arith.constant 0 : i32
    return %c0_i32, %c0_i32_0 : i32, i32
  }
  func.func @transform_4(%arg0: i32) -> (i32, i32) {
    %c0_i32 = arith.constant 0 : i32
    %c0_i32_0 = arith.constant 0 : i32
    %c0_i32_1 = arith.constant 0 : i32
    return %c0_i32, %c0_i32_0 : i32, i32
  }
  func.func @transform_5(%arg0: i32) -> (i32, i32) {
    %c0_i32 = arith.constant 0 : i32
    %c0_i32_0 = arith.constant 0 : i32
    %c0_i32_1 = arith.constant 0 : i32
    return %c0_i32, %c0_i32_0 : i32, i32
  }
  func.func @transform_6(%arg0: i32) -> (i32, i32) {
    %c0_i32 = arith.constant 0 : i32
    %c0_i32_0 = arith.constant 0 : i32
    %c0_i32_1 = arith.constant 0 : i32
    return %c0_i32, %c0_i32_0 : i32, i32
  }
  func.func @transform_7(%arg0: i32) -> (i32, i32) {
    %c0_i32 = arith.constant 0 : i32
    %c0_i32_0 = arith.constant 0 : i32
    %c0_i32_1 = arith.constant 0 : i32
    return %c0_i32, %c0_i32_0 : i32, i32
  }
}

module attributes {stable_mosaic.version = 11 : i64} {
  func.func @_conv_block_kernel(%arg0: i32, %arg1: memref<200x384xf32, #tpu.memory_space<vmem>>, %arg2: memref<3x384x64xf32, #tpu.memory_space<vmem>>, %arg3: memref<1x64xf32, #tpu.memory_space<vmem>>, %arg4: memref<1x64xf32, #tpu.memory_space<vmem>>, %arg5: memref<1x64xf32, #tpu.memory_space<vmem>>, %arg6: memref<1x64xf32, #tpu.memory_space<vmem>>, %arg7: memref<1x64xf32, #tpu.memory_space<vmem>>, %arg8: memref<96x64xf32, #tpu.memory_space<vmem>>) attributes {dimension_semantics = [#tpu.dimension_semantics<arbitrary>], iteration_bounds = array<i64: 1>, scalar_prefetch = 0 : i64, scratch_operands = 0 : i64, tpu.core_type = #tpu.core_type<tc>, window_params = [{pipeline_mode = #tpu.pipeline_mode<synchronous>, transform_indices = @transform_0, window_bounds = array<i64: 200, 384>}, {pipeline_mode = #tpu.pipeline_mode<synchronous>, transform_indices = @transform_1, window_bounds = array<i64: 3, 384, 64>}, {pipeline_mode = #tpu.pipeline_mode<synchronous>, transform_indices = @transform_2, window_bounds = array<i64: 1, 64>}, {pipeline_mode = #tpu.pipeline_mode<synchronous>, transform_indices = @transform_3, window_bounds = array<i64: 1, 64>}, {pipeline_mode = #tpu.pipeline_mode<synchronous>, transform_indices = @transform_4, window_bounds = array<i64: 1, 64>}, {pipeline_mode = #tpu.pipeline_mode<synchronous>, transform_indices = @transform_5, window_bounds = array<i64: 1, 64>}, {pipeline_mode = #tpu.pipeline_mode<synchronous>, transform_indices = @transform_6, window_bounds = array<i64: 1, 64>}, {pipeline_mode = #tpu.pipeline_mode<synchronous>, transform_indices = @transform_7, window_bounds = array<i64: 96, 64>}]} {
    %c0 = arith.constant 0 : index
    %c0_0 = arith.constant 0 : index
    %0 = vector.load %arg1[%c0, %c0_0] : memref<200x384xf32, #tpu.memory_space<vmem>>, vector<200x384xf32>
    %1 = vector.extract_strided_slice %0 {offsets = [0, 0], sizes = [198, 384], strides = [1, 1]} : vector<200x384xf32> to vector<198x384xf32>
    %c0_1 = arith.constant 0 : index
    %c0_2 = arith.constant 0 : index
    %c0_3 = arith.constant 0 : index
    %2 = vector.load %arg2[%c0_1, %c0_2, %c0_3] : memref<3x384x64xf32, #tpu.memory_space<vmem>>, vector<1x384x64xf32>
    %3 = vector.shape_cast %2 : vector<1x384x64xf32> to vector<384x64xf32>
    %cst = arith.constant dense<0.000000e+00> : vector<198x64xf32>
    %4 = tpu.matmul %1, %3, %cst {dimension_numbers = #tpu.dot_dimension_numbers<[1], [0], [0], [1], [0, 0, 1, 1], [], []>} : vector<198x384xf32>, vector<384x64xf32>, vector<198x64xf32> -> vector<198x64xf32>
    %5 = vector.extract_strided_slice %0 {offsets = [1, 0], sizes = [198, 384], strides = [1, 1]} : vector<200x384xf32> to vector<198x384xf32>
    %c1 = arith.constant 1 : index
    %c0_4 = arith.constant 0 : index
    %c0_5 = arith.constant 0 : index
    %6 = vector.load %arg2[%c1, %c0_4, %c0_5] : memref<3x384x64xf32, #tpu.memory_space<vmem>>, vector<1x384x64xf32>
    %7 = vector.shape_cast %6 : vector<1x384x64xf32> to vector<384x64xf32>
    %cst_6 = arith.constant dense<0.000000e+00> : vector<198x64xf32>
    %8 = tpu.matmul %5, %7, %cst_6 {dimension_numbers = #tpu.dot_dimension_numbers<[1], [0], [0], [1], [0, 0, 1, 1], [], []>} : vector<198x384xf32>, vector<384x64xf32>, vector<198x64xf32> -> vector<198x64xf32>
    %9 = arith.addf %4, %8 : vector<198x64xf32>
    %10 = vector.extract_strided_slice %0 {offsets = [2, 0], sizes = [198, 384], strides = [1, 1]} : vector<200x384xf32> to vector<198x384xf32>
    %c2 = arith.constant 2 : index
    %c0_7 = arith.constant 0 : index
    %c0_8 = arith.constant 0 : index
    %11 = vector.load %arg2[%c2, %c0_7, %c0_8] : memref<3x384x64xf32, #tpu.memory_space<vmem>>, vector<1x384x64xf32>
    %12 = vector.shape_cast %11 : vector<1x384x64xf32> to vector<384x64xf32>
    %cst_9 = arith.constant dense<0.000000e+00> : vector<198x64xf32>
    %13 = tpu.matmul %10, %12, %cst_9 {dimension_numbers = #tpu.dot_dimension_numbers<[1], [0], [0], [1], [0, 0, 1, 1], [], []>} : vector<198x384xf32>, vector<384x64xf32>, vector<198x64xf32> -> vector<198x64xf32>
    %14 = arith.addf %9, %13 : vector<198x64xf32>
    %c0_10 = arith.constant 0 : index
    %c0_11 = arith.constant 0 : index
    %15 = vector.load %arg3[%c0_10, %c0_11] : memref<1x64xf32, #tpu.memory_space<vmem>>, vector<1x64xf32>
    %16 = vector.broadcast %15 : vector<1x64xf32> to vector<198x64xf32>
    %17 = arith.addf %14, %16 : vector<198x64xf32>
    %c0_12 = arith.constant 0 : index
    %c0_13 = arith.constant 0 : index
    %18 = vector.load %arg4[%c0_12, %c0_13] : memref<1x64xf32, #tpu.memory_space<vmem>>, vector<1x64xf32>
    %19 = vector.broadcast %18 : vector<1x64xf32> to vector<198x64xf32>
    %20 = arith.mulf %17, %19 : vector<198x64xf32>
    %c0_14 = arith.constant 0 : index
    %c0_15 = arith.constant 0 : index
    %21 = vector.load %arg5[%c0_14, %c0_15] : memref<1x64xf32, #tpu.memory_space<vmem>>, vector<1x64xf32>
    %22 = vector.broadcast %21 : vector<1x64xf32> to vector<198x64xf32>
    %23 = arith.addf %20, %22 : vector<198x64xf32>
    %cst_16 = arith.constant 0.000000e+00 : f32
    %24 = vector.broadcast %cst_16 : f32 to vector<198x64xf32>
    %25 = arith.maximumf %23, %24 : vector<198x64xf32>
    %26 = vector.extract_strided_slice %25 {offsets = [0, 0], sizes = [196, 64], strides = [1, 1]} : vector<198x64xf32> to vector<196x64xf32>
    %27 = vector.extract_strided_slice %25 {offsets = [1, 0], sizes = [196, 64], strides = [1, 1]} : vector<198x64xf32> to vector<196x64xf32>
    %28 = arith.maximumf %26, %27 : vector<196x64xf32>
    %29 = vector.extract_strided_slice %25 {offsets = [2, 0], sizes = [196, 64], strides = [1, 1]} : vector<198x64xf32> to vector<196x64xf32>
    %30 = arith.maximumf %28, %29 : vector<196x64xf32>
    %31 = tpu.iota {dimensions = array<i32: 0>} : vector<48x196xi32>
    %32 = tpu.iota {dimensions = array<i32: 1>} : vector<48x196xi32>
    %c2_i32 = arith.constant 2 : i32
    %33 = vector.broadcast %c2_i32 : i32 to vector<48x196xi32>
    %34 = arith.muli %33, %31 : vector<48x196xi32>
    %c0_i32 = arith.constant 0 : i32
    %35 = vector.broadcast %c0_i32 : i32 to vector<48x196xi32>
    %36 = arith.addi %35, %34 : vector<48x196xi32>
    %37 = arith.cmpi eq, %32, %36 : vector<48x196xi32>
    %38 = arith.extui %37 : vector<48x196xi1> to vector<48x196xi32>
    %39 = arith.sitofp %38 : vector<48x196xi32> to vector<48x196xf32>
    %40 = tpu.iota {dimensions = array<i32: 0>} : vector<48x196xi32>
    %41 = tpu.iota {dimensions = array<i32: 1>} : vector<48x196xi32>
    %c2_i32_17 = arith.constant 2 : i32
    %42 = vector.broadcast %c2_i32_17 : i32 to vector<48x196xi32>
    %43 = arith.muli %42, %40 : vector<48x196xi32>
    %c100_i32 = arith.constant 100 : i32
    %44 = vector.broadcast %c100_i32 : i32 to vector<48x196xi32>
    %45 = arith.addi %44, %43 : vector<48x196xi32>
    %46 = arith.cmpi eq, %41, %45 : vector<48x196xi32>
    %47 = arith.extui %46 : vector<48x196xi1> to vector<48x196xi32>
    %48 = arith.sitofp %47 : vector<48x196xi32> to vector<48x196xf32>
    %49 = tpu.concatenate %39, %48 in 0 : vector<48x196xf32>, vector<48x196xf32> -> vector<96x196xf32>
    %cst_18 = arith.constant dense<0.000000e+00> : vector<96x64xf32>
    %50 = tpu.matmul %49, %30, %cst_18 {dimension_numbers = #tpu.dot_dimension_numbers<[1], [0], [0], [1], [0, 0, 1, 1], [], []>} : vector<96x196xf32>, vector<196x64xf32>, vector<96x64xf32> -> vector<96x64xf32>
    %c0_19 = arith.constant 0 : index
    %c0_20 = arith.constant 0 : index
    %51 = vector.load %arg6[%c0_19, %c0_20] : memref<1x64xf32, #tpu.memory_space<vmem>>, vector<1x64xf32>
    %52 = vector.broadcast %51 : vector<1x64xf32> to vector<96x64xf32>
    %53 = arith.mulf %50, %52 : vector<96x64xf32>
    %c0_21 = arith.constant 0 : index
    %c0_22 = arith.constant 0 : index
    %54 = vector.load %arg7[%c0_21, %c0_22] : memref<1x64xf32, #tpu.memory_space<vmem>>, vector<1x64xf32>
    %55 = vector.broadcast %54 : vector<1x64xf32> to vector<96x64xf32>
    %56 = arith.addf %53, %55 : vector<96x64xf32>
    %c0_23 = arith.constant 0 : index
    %c0_24 = arith.constant 0 : index
    %57 = vector.load %arg8[%c0_23, %c0_24] : memref<96x64xf32, #tpu.memory_space<vmem>>, vector<96x64xf32>
    tpu.vector_store %arg8[%c0_23, %c0_24], %56 {strides = array<i32>} : memref<96x64xf32, #tpu.memory_space<vmem>>, vector<96x64xf32>,
    return
  }
  func.func @transform_0(%arg0: i32) -> (i32, i32) {
    %c0_i32 = arith.constant 0 : i32
    %c0_i32_0 = arith.constant 0 : i32
    %c0_i32_1 = arith.constant 0 : i32
    return %c0_i32, %c0_i32_0 : i32, i32
  }
  func.func @transform_1(%arg0: i32) -> (i32, i32, i32) {
    %c0_i32 = arith.constant 0 : i32
    %c0_i32_0 = arith.constant 0 : i32
    %c0_i32_1 = arith.constant 0 : i32
    %c0_i32_2 = arith.constant 0 : i32
    return %c0_i32, %c0_i32_0, %c0_i32_1 : i32, i32, i32
  }
  func.func @transform_2(%arg0: i32) -> (i32, i32) {
    %c0_i32 = arith.constant 0 : i32
    %c0_i32_0 = arith.constant 0 : i32
    %c0_i32_1 = arith.constant 0 : i32
    return %c0_i32, %c0_i32_0 : i32, i32
  }
  func.func @transform_3(%arg0: i32) -> (i32, i32) {
    %c0_i32 = arith.constant 0 : i32
    %c0_i32_0 = arith.constant 0 : i32
    %c0_i32_1 = arith.constant 0 : i32
    return %c0_i32, %c0_i32_0 : i32, i32
  }
  func.func @transform_4(%arg0: i32) -> (i32, i32) {
    %c0_i32 = arith.constant 0 : i32
    %c0_i32_0 = arith.constant 0 : i32
    %c0_i32_1 = arith.constant 0 : i32
    return %c0_i32, %c0_i32_0 : i32, i32
  }
  func.func @transform_5(%arg0: i32) -> (i32, i32) {
    %c0_i32 = arith.constant 0 : i32
    %c0_i32_0 = arith.constant 0 : i32
    %c0_i32_1 = arith.constant 0 : i32
    return %c0_i32, %c0_i32_0 : i32, i32
  }
  func.func @transform_6(%arg0: i32) -> (i32, i32) {
    %c0_i32 = arith.constant 0 : i32
    %c0_i32_0 = arith.constant 0 : i32
    %c0_i32_1 = arith.constant 0 : i32
    return %c0_i32, %c0_i32_0 : i32, i32
  }
  func.func @transform_7(%arg0: i32) -> (i32, i32) {
    %c0_i32 = arith.constant 0 : i32
    %c0_i32_0 = arith.constant 0 : i32
    %c0_i32_1 = arith.constant 0 : i32
    return %c0_i32, %c0_i32_0 : i32, i32
  }
}

module attributes {stable_mosaic.version = 11 : i64} {
  func.func @_tail_kernel(%arg0: i32, %arg1: memref<2x3x256xf32, #tpu.memory_space<vmem>>, %arg2: memref<2xi32, #tpu.memory_space<smem>>, %arg3: memref<512x128xf32, #tpu.memory_space<vmem>>, %arg4: memref<1x128xf32, #tpu.memory_space<vmem>>, %arg5: memref<128x2xf32, #tpu.memory_space<vmem>>, %arg6: memref<1x2xf32, #tpu.memory_space<vmem>>, %arg7: memref<2x2xf32, #tpu.memory_space<vmem>>) attributes {dimension_semantics = [#tpu.dimension_semantics<arbitrary>], iteration_bounds = array<i64: 1>, scalar_prefetch = 0 : i64, scratch_operands = 0 : i64, tpu.core_type = #tpu.core_type<tc>, window_params = [{pipeline_mode = #tpu.pipeline_mode<synchronous>, transform_indices = @transform_0, window_bounds = array<i64: 2, 3, 256>}, {transform_indices = @transform_1, window_bounds = array<i64: 2>}, {pipeline_mode = #tpu.pipeline_mode<synchronous>, transform_indices = @transform_2, window_bounds = array<i64: 512, 128>}, {pipeline_mode = #tpu.pipeline_mode<synchronous>, transform_indices = @transform_3, window_bounds = array<i64: 1, 128>}, {pipeline_mode = #tpu.pipeline_mode<synchronous>, transform_indices = @transform_4, window_bounds = array<i64: 128, 2>}, {pipeline_mode = #tpu.pipeline_mode<synchronous>, transform_indices = @transform_5, window_bounds = array<i64: 1, 2>}, {pipeline_mode = #tpu.pipeline_mode<synchronous>, transform_indices = @transform_6, window_bounds = array<i64: 2, 2>}]} {
    %c0 = arith.constant 0 : index
    %0 = memref.load %arg2[%c0] : memref<2xi32, #tpu.memory_space<smem>>
    %1 = arith.sitofp %0 : i32 to f32
    %c0_0 = arith.constant 0 : index
    %c0_1 = arith.constant 0 : index
    %c0_2 = arith.constant 0 : index
    %2 = vector.load %arg1[%c0_0, %c0_1, %c0_2] : memref<2x3x256xf32, #tpu.memory_space<vmem>>, vector<1x3x256xf32>
    %3 = vector.shape_cast %2 : vector<1x3x256xf32> to vector<3x256xf32>
    %4 = tpu.iota {dimensions = array<i32: 0>} : vector<3x256xi32>
    %5 = vector.broadcast %0 : i32 to vector<3x256xi32>
    %6 = arith.cmpi slt, %4, %5 : vector<3x256xi32>
    %7 = arith.extui %6 : vector<3x256xi1> to vector<3x256xi32>
    %8 = arith.sitofp %7 : vector<3x256xi32> to vector<3x256xf32>
    %9 = arith.mulf %3, %8 : vector<3x256xf32>
    %cst = arith.constant dense<0.000000e+00> : vector<256xf32>
    %10 = vector.multi_reduction <add>, %9, %cst [0] : vector<3x256xf32> to vector<256xf32>
    %11 = vector.shape_cast %10 : vector<256xf32> to vector<1x256xf32>
    %12 = vector.broadcast %1 : f32 to vector<1x256xf32>
    %13 = arith.divf %11, %12 : vector<1x256xf32>
    %14 = vector.broadcast %13 : vector<1x256xf32> to vector<3x256xf32>
    %15 = arith.subf %3, %14 : vector<3x256xf32>
    %16 = arith.mulf %15, %8 : vector<3x256xf32>
    %cst_3 = arith.constant 1.000000e+00 : f32
    %17 = arith.subf %1, %cst_3 : f32
    %cst_4 = arith.constant 1.000000e+00 : f32
    %18 = arith.maximumf %17, %cst_4 : f32
    %19 = arith.mulf %16, %16 : vector<3x256xf32>
    %cst_5 = arith.constant dense<0.000000e+00> : vector<256xf32>
    %20 = vector.multi_reduction <add>, %19, %cst_5 [0] : vector<3x256xf32> to vector<256xf32>
    %21 = vector.shape_cast %20 : vector<256xf32> to vector<1x256xf32>
    %22 = vector.broadcast %18 : f32 to vector<1x256xf32>
    %23 = arith.divf %21, %22 : vector<1x256xf32>
    %24 = tpu.concatenate %13, %23 in 1 : vector<1x256xf32>, vector<1x256xf32> -> vector<1x512xf32>
    %c1 = arith.constant 1 : index
    %25 = memref.load %arg2[%c1] : memref<2xi32, #tpu.memory_space<smem>>
    %26 = arith.sitofp %25 : i32 to f32
    %c1_6 = arith.constant 1 : index
    %c0_7 = arith.constant 0 : index
    %c0_8 = arith.constant 0 : index
    %27 = vector.load %arg1[%c1_6, %c0_7, %c0_8] : memref<2x3x256xf32, #tpu.memory_space<vmem>>, vector<1x3x256xf32>
    %28 = vector.shape_cast %27 : vector<1x3x256xf32> to vector<3x256xf32>
    %29 = tpu.iota {dimensions = array<i32: 0>} : vector<3x256xi32>
    %30 = vector.broadcast %25 : i32 to vector<3x256xi32>
    %31 = arith.cmpi slt, %29, %30 : vector<3x256xi32>
    %32 = arith.extui %31 : vector<3x256xi1> to vector<3x256xi32>
    %33 = arith.sitofp %32 : vector<3x256xi32> to vector<3x256xf32>
    %34 = arith.mulf %28, %33 : vector<3x256xf32>
    %cst_9 = arith.constant dense<0.000000e+00> : vector<256xf32>
    %35 = vector.multi_reduction <add>, %34, %cst_9 [0] : vector<3x256xf32> to vector<256xf32>
    %36 = vector.shape_cast %35 : vector<256xf32> to vector<1x256xf32>
    %37 = vector.broadcast %26 : f32 to vector<1x256xf32>
    %38 = arith.divf %36, %37 : vector<1x256xf32>
    %39 = vector.broadcast %38 : vector<1x256xf32> to vector<3x256xf32>
    %40 = arith.subf %28, %39 : vector<3x256xf32>
    %41 = arith.mulf %40, %33 : vector<3x256xf32>
    %cst_10 = arith.constant 1.000000e+00 : f32
    %42 = arith.subf %26, %cst_10 : f32
    %cst_11 = arith.constant 1.000000e+00 : f32
    %43 = arith.maximumf %42, %cst_11 : f32
    %44 = arith.mulf %41, %41 : vector<3x256xf32>
    %cst_12 = arith.constant dense<0.000000e+00> : vector<256xf32>
    %45 = vector.multi_reduction <add>, %44, %cst_12 [0] : vector<3x256xf32> to vector<256xf32>
    %46 = vector.shape_cast %45 : vector<256xf32> to vector<1x256xf32>
    %47 = vector.broadcast %43 : f32 to vector<1x256xf32>
    %48 = arith.divf %46, %47 : vector<1x256xf32>
    %49 = tpu.concatenate %38, %48 in 1 : vector<1x256xf32>, vector<1x256xf32> -> vector<1x512xf32>
    %50 = tpu.concatenate %24, %49 in 0 : vector<1x512xf32>, vector<1x512xf32> -> vector<2x512xf32>
    %c0_13 = arith.constant 0 : index
    %c0_14 = arith.constant 0 : index
    %51 = vector.load %arg3[%c0_13, %c0_14] : memref<512x128xf32, #tpu.memory_space<vmem>>, vector<512x128xf32>
    %cst_15 = arith.constant dense<0.000000e+00> : vector<2x128xf32>
    %52 = tpu.matmul %50, %51, %cst_15 {dimension_numbers = #tpu.dot_dimension_numbers<[1], [0], [0], [1], [0, 0, 1, 1], [], []>} : vector<2x512xf32>, vector<512x128xf32>, vector<2x128xf32> -> vector<2x128xf32>
    %c0_16 = arith.constant 0 : index
    %c0_17 = arith.constant 0 : index
    %53 = vector.load %arg4[%c0_16, %c0_17] : memref<1x128xf32, #tpu.memory_space<vmem>>, vector<1x128xf32>
    %54 = vector.broadcast %53 : vector<1x128xf32> to vector<2x128xf32>
    %55 = arith.addf %52, %54 : vector<2x128xf32>
    %c0_18 = arith.constant 0 : index
    %c0_19 = arith.constant 0 : index
    %56 = vector.load %arg5[%c0_18, %c0_19] : memref<128x2xf32, #tpu.memory_space<vmem>>, vector<128x2xf32>
    %cst_20 = arith.constant dense<0.000000e+00> : vector<2x2xf32>
    %57 = tpu.matmul %55, %56, %cst_20 {dimension_numbers = #tpu.dot_dimension_numbers<[1], [0], [0], [1], [0, 0, 1, 1], [], []>} : vector<2x128xf32>, vector<128x2xf32>, vector<2x2xf32> -> vector<2x2xf32>
    %c0_21 = arith.constant 0 : index
    %c0_22 = arith.constant 0 : index
    %58 = vector.load %arg6[%c0_21, %c0_22] : memref<1x2xf32, #tpu.memory_space<vmem>>, vector<1x2xf32>
    %59 = vector.broadcast %58 : vector<1x2xf32> to vector<2x2xf32>
    %60 = arith.addf %57, %59 : vector<2x2xf32>
    %c0_23 = arith.constant 0 : index
    %c0_24 = arith.constant 0 : index
    %61 = vector.load %arg7[%c0_23, %c0_24] : memref<2x2xf32, #tpu.memory_space<vmem>>, vector<2x2xf32>
    tpu.vector_store %arg7[%c0_23, %c0_24], %60 {strides = array<i32>} : memref<2x2xf32, #tpu.memory_space<vmem>>, vector<2x2xf32>,
    return
  }
  func.func @transform_0(%arg0: i32) -> (i32, i32, i32) {
    %c0_i32 = arith.constant 0 : i32
    %c0_i32_0 = arith.constant 0 : i32
    %c0_i32_1 = arith.constant 0 : i32
    %c0_i32_2 = arith.constant 0 : i32
    return %c0_i32, %c0_i32_0, %c0_i32_1 : i32, i32, i32
  }
  func.func @transform_1(%arg0: i32) -> i32 {
    %c0_i32 = arith.constant 0 : i32
    %c0_i32_0 = arith.constant 0 : i32
    return %c0_i32 : i32
  }
  func.func @transform_2(%arg0: i32) -> (i32, i32) {
    %c0_i32 = arith.constant 0 : i32
    %c0_i32_0 = arith.constant 0 : i32
    %c0_i32_1 = arith.constant 0 : i32
    return %c0_i32, %c0_i32_0 : i32, i32
  }
  func.func @transform_3(%arg0: i32) -> (i32, i32) {
    %c0_i32 = arith.constant 0 : i32
    %c0_i32_0 = arith.constant 0 : i32
    %c0_i32_1 = arith.constant 0 : i32
    return %c0_i32, %c0_i32_0 : i32, i32
  }
  func.func @transform_4(%arg0: i32) -> (i32, i32) {
    %c0_i32 = arith.constant 0 : i32
    %c0_i32_0 = arith.constant 0 : i32
    %c0_i32_1 = arith.constant 0 : i32
    return %c0_i32, %c0_i32_0 : i32, i32
  }
  func.func @transform_5(%arg0: i32) -> (i32, i32) {
    %c0_i32 = arith.constant 0 : i32
    %c0_i32_0 = arith.constant 0 : i32
    %c0_i32_1 = arith.constant 0 : i32
    return %c0_i32, %c0_i32_0 : i32, i32
  }
  func.func @transform_6(%arg0: i32) -> (i32, i32) {
    %c0_i32 = arith.constant 0 : i32
    %c0_i32_0 = arith.constant 0 : i32
    %c0_i32_1 = arith.constant 0 : i32
    return %c0_i32, %c0_i32_0 : i32, i32
  }
}

module attributes {stable_mosaic.version = 11 : i64} {
  func.func @_transformer_kernel(%arg0: i32, %arg1: memref<6x256xf32, #tpu.memory_space<vmem>>, %arg2: memref<2x3xf32, #tpu.memory_space<vmem>>, %arg3: memref<1x256x768xbf16, #tpu.memory_space<vmem>>, %arg4: memref<1x1x768xf32, #tpu.memory_space<vmem>>, %arg5: memref<1x256x256xbf16, #tpu.memory_space<vmem>>, %arg6: memref<1x1x256xf32, #tpu.memory_space<vmem>>, %arg7: memref<1x1x256xf32, #tpu.memory_space<vmem>>, %arg8: memref<1x1x256xf32, #tpu.memory_space<vmem>>, %arg9: memref<1x256x2048xbf16, #tpu.memory_space<vmem>>, %arg10: memref<1x1x2048xf32, #tpu.memory_space<vmem>>, %arg11: memref<1x2048x256xbf16, #tpu.memory_space<vmem>>, %arg12: memref<1x1x256xf32, #tpu.memory_space<vmem>>, %arg13: memref<1x1x256xf32, #tpu.memory_space<vmem>>, %arg14: memref<1x1x256xf32, #tpu.memory_space<vmem>>, %arg15: memref<6x256xf32, #tpu.memory_space<vmem>>) attributes {dimension_semantics = [#tpu.dimension_semantics<arbitrary>], iteration_bounds = array<i64: 3>, scalar_prefetch = 0 : i64, scratch_operands = 0 : i64, tpu.core_type = #tpu.core_type<tc>, window_params = [{pipeline_mode = #tpu.pipeline_mode<synchronous>, transform_indices = @transform_0, window_bounds = array<i64: 6, 256>}, {pipeline_mode = #tpu.pipeline_mode<synchronous>, transform_indices = @transform_1, window_bounds = array<i64: 2, 3>}, {transform_indices = @transform_2, window_bounds = array<i64: 1, 256, 768>}, {transform_indices = @transform_3, window_bounds = array<i64: 1, 1, 768>}, {transform_indices = @transform_4, window_bounds = array<i64: 1, 256, 256>}, {transform_indices = @transform_5, window_bounds = array<i64: 1, 1, 256>}, {transform_indices = @transform_6, window_bounds = array<i64: 1, 1, 256>}, {transform_indices = @transform_7, window_bounds = array<i64: 1, 1, 256>}, {transform_indices = @transform_8, window_bounds = array<i64: 1, 256, 2048>}, {transform_indices = @transform_9, window_bounds = array<i64: 1, 1, 2048>}, {transform_indices = @transform_10, window_bounds = array<i64: 1, 2048, 256>}, {transform_indices = @transform_11, window_bounds = array<i64: 1, 1, 256>}, {transform_indices = @transform_12, window_bounds = array<i64: 1, 1, 256>}, {transform_indices = @transform_13, window_bounds = array<i64: 1, 1, 256>}, {pipeline_mode = #tpu.pipeline_mode<synchronous>, transform_indices = @transform_14, window_bounds = array<i64: 6, 256>}]} {
    %c0_i32 = arith.constant 0 : i32
    %0 = arith.cmpi eq, %arg0, %c0_i32 : i32
    %1 = arith.extui %0 : i1 to i32
    %c0_i32_0 = arith.constant 0 : i32
    %2 = arith.cmpi ne, %1, %c0_i32_0 : i32
    scf.if %2 {
      %c0_97 = arith.constant 0 : index
      %c0_98 = arith.constant 0 : index
      %251 = vector.load %arg1[%c0_97, %c0_98] : memref<6x256xf32, #tpu.memory_space<vmem>>, vector<6x256xf32>
      %c0_99 = arith.constant 0 : index
      %c0_100 = arith.constant 0 : index
      %252 = vector.load %arg15[%c0_99, %c0_100] : memref<6x256xf32, #tpu.memory_space<vmem>>, vector<6x256xf32>
      tpu.vector_store %arg15[%c0_99, %c0_100], %251 {strides = array<i32>} : memref<6x256xf32, #tpu.memory_space<vmem>>, vector<6x256xf32>,
    } else {
    }
    %c0 = arith.constant 0 : index
    %c0_1 = arith.constant 0 : index
    %3 = vector.load %arg15[%c0, %c0_1] : memref<6x256xf32, #tpu.memory_space<vmem>>, vector<6x256xf32>
    %c0_2 = arith.constant 0 : index
    %c0_3 = arith.constant 0 : index
    %4 = vector.load %arg2[%c0_2, %c0_3] : memref<2x3xf32, #tpu.memory_space<vmem>>, vector<2x3xf32>
    %cst = arith.constant -1.000000e+30 : f32
    %5 = vector.broadcast %cst : f32 to vector<2x3xf32>
    %6 = arith.mulf %4, %5 : vector<2x3xf32>
    %7 = arith.truncf %3 : vector<6x256xf32> to vector<6x256xbf16>
    %c0_4 = arith.constant 0 : index
    %c0_5 = arith.constant 0 : index
    %c0_6 = arith.constant 0 : index
    %8 = vector.load %arg3[%c0_4, %c0_5, %c0_6] : memref<1x256x768xbf16, #tpu.memory_space<vmem>>, vector<1x256x768xbf16>
    %9 = vector.shape_cast %8 : vector<1x256x768xbf16> to vector<256x768xbf16>
    %cst_7 = arith.constant dense<0.000000e+00> : vector<6x768xf32>
    %10 = tpu.matmul %7, %9, %cst_7 {dimension_numbers = #tpu.dot_dimension_numbers<[1], [0], [0], [1], [0, 0, 1, 1], [], []>} : vector<6x256xbf16>, vector<256x768xbf16>, vector<6x768xf32> -> vector<6x768xf32>
    %c0_8 = arith.constant 0 : index
    %c0_9 = arith.constant 0 : index
    %c0_10 = arith.constant 0 : index
    %11 = vector.load %arg4[%c0_8, %c0_9, %c0_10] : memref<1x1x768xf32, #tpu.memory_space<vmem>>, vector<1x1x768xf32>
    %12 = vector.shape_cast %11 : vector<1x1x768xf32> to vector<1x768xf32>
    %13 = vector.broadcast %12 : vector<1x768xf32> to vector<6x768xf32>
    %14 = arith.addf %10, %13 : vector<6x768xf32>
    %15 = vector.extract_strided_slice %14 {offsets = [0, 0], sizes = [3, 768], strides = [1, 1]} : vector<6x768xf32> to vector<3x768xf32>
    %16 = vector.extract_strided_slice %6 {offsets = [0, 0], sizes = [1, 3], strides = [1, 1]} : vector<2x3xf32> to vector<1x3xf32>
    %17 = vector.extract_strided_slice %15 {offsets = [0, 0], sizes = [3, 64], strides = [1, 1]} : vector<3x768xf32> to vector<3x64xf32>
    %18 = vector.extract_strided_slice %15 {offsets = [0, 256], sizes = [3, 64], strides = [1, 1]} : vector<3x768xf32> to vector<3x64xf32>
    %19 = vector.extract_strided_slice %15 {offsets = [0, 512], sizes = [3, 64], strides = [1, 1]} : vector<3x768xf32> to vector<3x64xf32>
    %cst_11 = arith.constant dense<0.000000e+00> : vector<3x3xf32>
    %20 = tpu.matmul %17, %18, %cst_11 {dimension_numbers = #tpu.dot_dimension_numbers<[1], [1], [0], [0], [0, 0, 1, 0], [], []>} : vector<3x64xf32>, vector<3x64xf32>, vector<3x3xf32> -> vector<3x3xf32>
    %cst_12 = arith.constant 1.250000e-01 : f32
    %21 = vector.broadcast %cst_12 : f32 to vector<3x3xf32>
    %22 = arith.mulf %20, %21 : vector<3x3xf32>
    %23 = vector.broadcast %16 : vector<1x3xf32> to vector<3x3xf32>
    %24 = arith.addf %22, %23 : vector<3x3xf32>
    %cst_13 = arith.constant dense<0xFF800000> : vector<3xf32>
    %25 = vector.multi_reduction <maximumf>, %24, %cst_13 [1] : vector<3x3xf32> to vector<3xf32>
    %26 = vector.shape_cast %25 : vector<3xf32> to vector<3x1xf32>
    %27 = vector.broadcast %26 : vector<3x1xf32> to vector<3x3xf32>
    %28 = arith.subf %24, %27 : vector<3x3xf32>
    %29 = math.exp %28 : vector<3x3xf32>
    %cst_14 = arith.constant dense<0.000000e+00> : vector<3xf32>
    %30 = vector.multi_reduction <add>, %29, %cst_14 [1] : vector<3x3xf32> to vector<3xf32>
    %31 = vector.shape_cast %30 : vector<3xf32> to vector<3x1xf32>
    %32 = tpu.reciprocal %31 {approx = true} : vector<3x1xf32> -> vector<3x1xf32>
    %33 = vector.broadcast %32 : vector<3x1xf32> to vector<3x3xf32>
    %34 = arith.mulf %29, %33 : vector<3x3xf32>
    %cst_15 = arith.constant dense<0.000000e+00> : vector<3x64xf32>
    %35 = tpu.matmul %34, %19, %cst_15 {dimension_numbers = #tpu.dot_dimension_numbers<[1], [0], [0], [1], [0, 0, 1, 1], [], []>} : vector<3x3xf32>, vector<3x64xf32>, vector<3x64xf32> -> vector<3x64xf32>
    %36 = vector.extract_strided_slice %15 {offsets = [0, 64], sizes = [3, 64], strides = [1, 1]} : vector<3x768xf32> to vector<3x64xf32>
    %37 = vector.extract_strided_slice %15 {offsets = [0, 320], sizes = [3, 64], strides = [1, 1]} : vector<3x768xf32> to vector<3x64xf32>
    %38 = vector.extract_strided_slice %15 {offsets = [0, 576], sizes = [3, 64], strides = [1, 1]} : vector<3x768xf32> to vector<3x64xf32>
    %cst_16 = arith.constant dense<0.000000e+00> : vector<3x3xf32>
    %39 = tpu.matmul %36, %37, %cst_16 {dimension_numbers = #tpu.dot_dimension_numbers<[1], [1], [0], [0], [0, 0, 1, 0], [], []>} : vector<3x64xf32>, vector<3x64xf32>, vector<3x3xf32> -> vector<3x3xf32>
    %cst_17 = arith.constant 1.250000e-01 : f32
    %40 = vector.broadcast %cst_17 : f32 to vector<3x3xf32>
    %41 = arith.mulf %39, %40 : vector<3x3xf32>
    %42 = vector.broadcast %16 : vector<1x3xf32> to vector<3x3xf32>
    %43 = arith.addf %41, %42 : vector<3x3xf32>
    %cst_18 = arith.constant dense<0xFF800000> : vector<3xf32>
    %44 = vector.multi_reduction <maximumf>, %43, %cst_18 [1] : vector<3x3xf32> to vector<3xf32>
    %45 = vector.shape_cast %44 : vector<3xf32> to vector<3x1xf32>
    %46 = vector.broadcast %45 : vector<3x1xf32> to vector<3x3xf32>
    %47 = arith.subf %43, %46 : vector<3x3xf32>
    %48 = math.exp %47 : vector<3x3xf32>
    %cst_19 = arith.constant dense<0.000000e+00> : vector<3xf32>
    %49 = vector.multi_reduction <add>, %48, %cst_19 [1] : vector<3x3xf32> to vector<3xf32>
    %50 = vector.shape_cast %49 : vector<3xf32> to vector<3x1xf32>
    %51 = tpu.reciprocal %50 {approx = true} : vector<3x1xf32> -> vector<3x1xf32>
    %52 = vector.broadcast %51 : vector<3x1xf32> to vector<3x3xf32>
    %53 = arith.mulf %48, %52 : vector<3x3xf32>
    %cst_20 = arith.constant dense<0.000000e+00> : vector<3x64xf32>
    %54 = tpu.matmul %53, %38, %cst_20 {dimension_numbers = #tpu.dot_dimension_numbers<[1], [0], [0], [1], [0, 0, 1, 1], [], []>} : vector<3x3xf32>, vector<3x64xf32>, vector<3x64xf32> -> vector<3x64xf32>
    %55 = vector.extract_strided_slice %15 {offsets = [0, 128], sizes = [3, 64], strides = [1, 1]} : vector<3x768xf32> to vector<3x64xf32>
    %56 = vector.extract_strided_slice %15 {offsets = [0, 384], sizes = [3, 64], strides = [1, 1]} : vector<3x768xf32> to vector<3x64xf32>
    %57 = vector.extract_strided_slice %15 {offsets = [0, 640], sizes = [3, 64], strides = [1, 1]} : vector<3x768xf32> to vector<3x64xf32>
    %cst_21 = arith.constant dense<0.000000e+00> : vector<3x3xf32>
    %58 = tpu.matmul %55, %56, %cst_21 {dimension_numbers = #tpu.dot_dimension_numbers<[1], [1], [0], [0], [0, 0, 1, 0], [], []>} : vector<3x64xf32>, vector<3x64xf32>, vector<3x3xf32> -> vector<3x3xf32>
    %cst_22 = arith.constant 1.250000e-01 : f32
    %59 = vector.broadcast %cst_22 : f32 to vector<3x3xf32>
    %60 = arith.mulf %58, %59 : vector<3x3xf32>
    %61 = vector.broadcast %16 : vector<1x3xf32> to vector<3x3xf32>
    %62 = arith.addf %60, %61 : vector<3x3xf32>
    %cst_23 = arith.constant dense<0xFF800000> : vector<3xf32>
    %63 = vector.multi_reduction <maximumf>, %62, %cst_23 [1] : vector<3x3xf32> to vector<3xf32>
    %64 = vector.shape_cast %63 : vector<3xf32> to vector<3x1xf32>
    %65 = vector.broadcast %64 : vector<3x1xf32> to vector<3x3xf32>
    %66 = arith.subf %62, %65 : vector<3x3xf32>
    %67 = math.exp %66 : vector<3x3xf32>
    %cst_24 = arith.constant dense<0.000000e+00> : vector<3xf32>
    %68 = vector.multi_reduction <add>, %67, %cst_24 [1] : vector<3x3xf32> to vector<3xf32>
    %69 = vector.shape_cast %68 : vector<3xf32> to vector<3x1xf32>
    %70 = tpu.reciprocal %69 {approx = true} : vector<3x1xf32> -> vector<3x1xf32>
    %71 = vector.broadcast %70 : vector<3x1xf32> to vector<3x3xf32>
    %72 = arith.mulf %67, %71 : vector<3x3xf32>
    %cst_25 = arith.constant dense<0.000000e+00> : vector<3x64xf32>
    %73 = tpu.matmul %72, %57, %cst_25 {dimension_numbers = #tpu.dot_dimension_numbers<[1], [0], [0], [1], [0, 0, 1, 1], [], []>} : vector<3x3xf32>, vector<3x64xf32>, vector<3x64xf32> -> vector<3x64xf32>
    %74 = vector.extract_strided_slice %15 {offsets = [0, 192], sizes = [3, 64], strides = [1, 1]} : vector<3x768xf32> to vector<3x64xf32>
    %75 = vector.extract_strided_slice %15 {offsets = [0, 448], sizes = [3, 64], strides = [1, 1]} : vector<3x768xf32> to vector<3x64xf32>
    %76 = vector.extract_strided_slice %15 {offsets = [0, 704], sizes = [3, 64], strides = [1, 1]} : vector<3x768xf32> to vector<3x64xf32>
    %cst_26 = arith.constant dense<0.000000e+00> : vector<3x3xf32>
    %77 = tpu.matmul %74, %75, %cst_26 {dimension_numbers = #tpu.dot_dimension_numbers<[1], [1], [0], [0], [0, 0, 1, 0], [], []>} : vector<3x64xf32>, vector<3x64xf32>, vector<3x3xf32> -> vector<3x3xf32>
    %cst_27 = arith.constant 1.250000e-01 : f32
    %78 = vector.broadcast %cst_27 : f32 to vector<3x3xf32>
    %79 = arith.mulf %77, %78 : vector<3x3xf32>
    %80 = vector.broadcast %16 : vector<1x3xf32> to vector<3x3xf32>
    %81 = arith.addf %79, %80 : vector<3x3xf32>
    %cst_28 = arith.constant dense<0xFF800000> : vector<3xf32>
    %82 = vector.multi_reduction <maximumf>, %81, %cst_28 [1] : vector<3x3xf32> to vector<3xf32>
    %83 = vector.shape_cast %82 : vector<3xf32> to vector<3x1xf32>
    %84 = vector.broadcast %83 : vector<3x1xf32> to vector<3x3xf32>
    %85 = arith.subf %81, %84 : vector<3x3xf32>
    %86 = math.exp %85 : vector<3x3xf32>
    %cst_29 = arith.constant dense<0.000000e+00> : vector<3xf32>
    %87 = vector.multi_reduction <add>, %86, %cst_29 [1] : vector<3x3xf32> to vector<3xf32>
    %88 = vector.shape_cast %87 : vector<3xf32> to vector<3x1xf32>
    %89 = tpu.reciprocal %88 {approx = true} : vector<3x1xf32> -> vector<3x1xf32>
    %90 = vector.broadcast %89 : vector<3x1xf32> to vector<3x3xf32>
    %91 = arith.mulf %86, %90 : vector<3x3xf32>
    %cst_30 = arith.constant dense<0.000000e+00> : vector<3x64xf32>
    %92 = tpu.matmul %91, %76, %cst_30 {dimension_numbers = #tpu.dot_dimension_numbers<[1], [0], [0], [1], [0, 0, 1, 1], [], []>} : vector<3x3xf32>, vector<3x64xf32>, vector<3x64xf32> -> vector<3x64xf32>
    %93 = tpu.concatenate %35, %54, %73, %92 in 1 : vector<3x64xf32>, vector<3x64xf32>, vector<3x64xf32>, vector<3x64xf32> -> vector<3x256xf32>
    %94 = vector.extract_strided_slice %14 {offsets = [3, 0], sizes = [3, 768], strides = [1, 1]} : vector<6x768xf32> to vector<3x768xf32>
    %95 = vector.extract_strided_slice %6 {offsets = [1, 0], sizes = [1, 3], strides = [1, 1]} : vector<2x3xf32> to vector<1x3xf32>
    %96 = vector.extract_strided_slice %94 {offsets = [0, 0], sizes = [3, 64], strides = [1, 1]} : vector<3x768xf32> to vector<3x64xf32>
    %97 = vector.extract_strided_slice %94 {offsets = [0, 256], sizes = [3, 64], strides = [1, 1]} : vector<3x768xf32> to vector<3x64xf32>
    %98 = vector.extract_strided_slice %94 {offsets = [0, 512], sizes = [3, 64], strides = [1, 1]} : vector<3x768xf32> to vector<3x64xf32>
    %cst_31 = arith.constant dense<0.000000e+00> : vector<3x3xf32>
    %99 = tpu.matmul %96, %97, %cst_31 {dimension_numbers = #tpu.dot_dimension_numbers<[1], [1], [0], [0], [0, 0, 1, 0], [], []>} : vector<3x64xf32>, vector<3x64xf32>, vector<3x3xf32> -> vector<3x3xf32>
    %cst_32 = arith.constant 1.250000e-01 : f32
    %100 = vector.broadcast %cst_32 : f32 to vector<3x3xf32>
    %101 = arith.mulf %99, %100 : vector<3x3xf32>
    %102 = vector.broadcast %95 : vector<1x3xf32> to vector<3x3xf32>
    %103 = arith.addf %101, %102 : vector<3x3xf32>
    %cst_33 = arith.constant dense<0xFF800000> : vector<3xf32>
    %104 = vector.multi_reduction <maximumf>, %103, %cst_33 [1] : vector<3x3xf32> to vector<3xf32>
    %105 = vector.shape_cast %104 : vector<3xf32> to vector<3x1xf32>
    %106 = vector.broadcast %105 : vector<3x1xf32> to vector<3x3xf32>
    %107 = arith.subf %103, %106 : vector<3x3xf32>
    %108 = math.exp %107 : vector<3x3xf32>
    %cst_34 = arith.constant dense<0.000000e+00> : vector<3xf32>
    %109 = vector.multi_reduction <add>, %108, %cst_34 [1] : vector<3x3xf32> to vector<3xf32>
    %110 = vector.shape_cast %109 : vector<3xf32> to vector<3x1xf32>
    %111 = tpu.reciprocal %110 {approx = true} : vector<3x1xf32> -> vector<3x1xf32>
    %112 = vector.broadcast %111 : vector<3x1xf32> to vector<3x3xf32>
    %113 = arith.mulf %108, %112 : vector<3x3xf32>
    %cst_35 = arith.constant dense<0.000000e+00> : vector<3x64xf32>
    %114 = tpu.matmul %113, %98, %cst_35 {dimension_numbers = #tpu.dot_dimension_numbers<[1], [0], [0], [1], [0, 0, 1, 1], [], []>} : vector<3x3xf32>, vector<3x64xf32>, vector<3x64xf32> -> vector<3x64xf32>
    %115 = vector.extract_strided_slice %94 {offsets = [0, 64], sizes = [3, 64], strides = [1, 1]} : vector<3x768xf32> to vector<3x64xf32>
    %116 = vector.extract_strided_slice %94 {offsets = [0, 320], sizes = [3, 64], strides = [1, 1]} : vector<3x768xf32> to vector<3x64xf32>
    %117 = vector.extract_strided_slice %94 {offsets = [0, 576], sizes = [3, 64], strides = [1, 1]} : vector<3x768xf32> to vector<3x64xf32>
    %cst_36 = arith.constant dense<0.000000e+00> : vector<3x3xf32>
    %118 = tpu.matmul %115, %116, %cst_36 {dimension_numbers = #tpu.dot_dimension_numbers<[1], [1], [0], [0], [0, 0, 1, 0], [], []>} : vector<3x64xf32>, vector<3x64xf32>, vector<3x3xf32> -> vector<3x3xf32>
    %cst_37 = arith.constant 1.250000e-01 : f32
    %119 = vector.broadcast %cst_37 : f32 to vector<3x3xf32>
    %120 = arith.mulf %118, %119 : vector<3x3xf32>
    %121 = vector.broadcast %95 : vector<1x3xf32> to vector<3x3xf32>
    %122 = arith.addf %120, %121 : vector<3x3xf32>
    %cst_38 = arith.constant dense<0xFF800000> : vector<3xf32>
    %123 = vector.multi_reduction <maximumf>, %122, %cst_38 [1] : vector<3x3xf32> to vector<3xf32>
    %124 = vector.shape_cast %123 : vector<3xf32> to vector<3x1xf32>
    %125 = vector.broadcast %124 : vector<3x1xf32> to vector<3x3xf32>
    %126 = arith.subf %122, %125 : vector<3x3xf32>
    %127 = math.exp %126 : vector<3x3xf32>
    %cst_39 = arith.constant dense<0.000000e+00> : vector<3xf32>
    %128 = vector.multi_reduction <add>, %127, %cst_39 [1] : vector<3x3xf32> to vector<3xf32>
    %129 = vector.shape_cast %128 : vector<3xf32> to vector<3x1xf32>
    %130 = tpu.reciprocal %129 {approx = true} : vector<3x1xf32> -> vector<3x1xf32>
    %131 = vector.broadcast %130 : vector<3x1xf32> to vector<3x3xf32>
    %132 = arith.mulf %127, %131 : vector<3x3xf32>
    %cst_40 = arith.constant dense<0.000000e+00> : vector<3x64xf32>
    %133 = tpu.matmul %132, %117, %cst_40 {dimension_numbers = #tpu.dot_dimension_numbers<[1], [0], [0], [1], [0, 0, 1, 1], [], []>} : vector<3x3xf32>, vector<3x64xf32>, vector<3x64xf32> -> vector<3x64xf32>
    %134 = vector.extract_strided_slice %94 {offsets = [0, 128], sizes = [3, 64], strides = [1, 1]} : vector<3x768xf32> to vector<3x64xf32>
    %135 = vector.extract_strided_slice %94 {offsets = [0, 384], sizes = [3, 64], strides = [1, 1]} : vector<3x768xf32> to vector<3x64xf32>
    %136 = vector.extract_strided_slice %94 {offsets = [0, 640], sizes = [3, 64], strides = [1, 1]} : vector<3x768xf32> to vector<3x64xf32>
    %cst_41 = arith.constant dense<0.000000e+00> : vector<3x3xf32>
    %137 = tpu.matmul %134, %135, %cst_41 {dimension_numbers = #tpu.dot_dimension_numbers<[1], [1], [0], [0], [0, 0, 1, 0], [], []>} : vector<3x64xf32>, vector<3x64xf32>, vector<3x3xf32> -> vector<3x3xf32>
    %cst_42 = arith.constant 1.250000e-01 : f32
    %138 = vector.broadcast %cst_42 : f32 to vector<3x3xf32>
    %139 = arith.mulf %137, %138 : vector<3x3xf32>
    %140 = vector.broadcast %95 : vector<1x3xf32> to vector<3x3xf32>
    %141 = arith.addf %139, %140 : vector<3x3xf32>
    %cst_43 = arith.constant dense<0xFF800000> : vector<3xf32>
    %142 = vector.multi_reduction <maximumf>, %141, %cst_43 [1] : vector<3x3xf32> to vector<3xf32>
    %143 = vector.shape_cast %142 : vector<3xf32> to vector<3x1xf32>
    %144 = vector.broadcast %143 : vector<3x1xf32> to vector<3x3xf32>
    %145 = arith.subf %141, %144 : vector<3x3xf32>
    %146 = math.exp %145 : vector<3x3xf32>
    %cst_44 = arith.constant dense<0.000000e+00> : vector<3xf32>
    %147 = vector.multi_reduction <add>, %146, %cst_44 [1] : vector<3x3xf32> to vector<3xf32>
    %148 = vector.shape_cast %147 : vector<3xf32> to vector<3x1xf32>
    %149 = tpu.reciprocal %148 {approx = true} : vector<3x1xf32> -> vector<3x1xf32>
    %150 = vector.broadcast %149 : vector<3x1xf32> to vector<3x3xf32>
    %151 = arith.mulf %146, %150 : vector<3x3xf32>
    %cst_45 = arith.constant dense<0.000000e+00> : vector<3x64xf32>
    %152 = tpu.matmul %151, %136, %cst_45 {dimension_numbers = #tpu.dot_dimension_numbers<[1], [0], [0], [1], [0, 0, 1, 1], [], []>} : vector<3x3xf32>, vector<3x64xf32>, vector<3x64xf32> -> vector<3x64xf32>
    %153 = vector.extract_strided_slice %94 {offsets = [0, 192], sizes = [3, 64], strides = [1, 1]} : vector<3x768xf32> to vector<3x64xf32>
    %154 = vector.extract_strided_slice %94 {offsets = [0, 448], sizes = [3, 64], strides = [1, 1]} : vector<3x768xf32> to vector<3x64xf32>
    %155 = vector.extract_strided_slice %94 {offsets = [0, 704], sizes = [3, 64], strides = [1, 1]} : vector<3x768xf32> to vector<3x64xf32>
    %cst_46 = arith.constant dense<0.000000e+00> : vector<3x3xf32>
    %156 = tpu.matmul %153, %154, %cst_46 {dimension_numbers = #tpu.dot_dimension_numbers<[1], [1], [0], [0], [0, 0, 1, 0], [], []>} : vector<3x64xf32>, vector<3x64xf32>, vector<3x3xf32> -> vector<3x3xf32>
    %cst_47 = arith.constant 1.250000e-01 : f32
    %157 = vector.broadcast %cst_47 : f32 to vector<3x3xf32>
    %158 = arith.mulf %156, %157 : vector<3x3xf32>
    %159 = vector.broadcast %95 : vector<1x3xf32> to vector<3x3xf32>
    %160 = arith.addf %158, %159 : vector<3x3xf32>
    %cst_48 = arith.constant dense<0xFF800000> : vector<3xf32>
    %161 = vector.multi_reduction <maximumf>, %160, %cst_48 [1] : vector<3x3xf32> to vector<3xf32>
    %162 = vector.shape_cast %161 : vector<3xf32> to vector<3x1xf32>
    %163 = vector.broadcast %162 : vector<3x1xf32> to vector<3x3xf32>
    %164 = arith.subf %160, %163 : vector<3x3xf32>
    %165 = math.exp %164 : vector<3x3xf32>
    %cst_49 = arith.constant dense<0.000000e+00> : vector<3xf32>
    %166 = vector.multi_reduction <add>, %165, %cst_49 [1] : vector<3x3xf32> to vector<3xf32>
    %167 = vector.shape_cast %166 : vector<3xf32> to vector<3x1xf32>
    %168 = tpu.reciprocal %167 {approx = true} : vector<3x1xf32> -> vector<3x1xf32>
    %169 = vector.broadcast %168 : vector<3x1xf32> to vector<3x3xf32>
    %170 = arith.mulf %165, %169 : vector<3x3xf32>
    %cst_50 = arith.constant dense<0.000000e+00> : vector<3x64xf32>
    %171 = tpu.matmul %170, %155, %cst_50 {dimension_numbers = #tpu.dot_dimension_numbers<[1], [0], [0], [1], [0, 0, 1, 1], [], []>} : vector<3x3xf32>, vector<3x64xf32>, vector<3x64xf32> -> vector<3x64xf32>
    %172 = tpu.concatenate %114, %133, %152, %171 in 1 : vector<3x64xf32>, vector<3x64xf32>, vector<3x64xf32>, vector<3x64xf32> -> vector<3x256xf32>
    %173 = tpu.concatenate %93, %172 in 0 : vector<3x256xf32>, vector<3x256xf32> -> vector<6x256xf32>
    %174 = arith.truncf %173 : vector<6x256xf32> to vector<6x256xbf16>
    %c0_51 = arith.constant 0 : index
    %c0_52 = arith.constant 0 : index
    %c0_53 = arith.constant 0 : index
    %175 = vector.load %arg5[%c0_51, %c0_52, %c0_53] : memref<1x256x256xbf16, #tpu.memory_space<vmem>>, vector<1x256x256xbf16>
    %176 = vector.shape_cast %175 : vector<1x256x256xbf16> to vector<256x256xbf16>
    %cst_54 = arith.constant dense<0.000000e+00> : vector<6x256xf32>
    %177 = tpu.matmul %174, %176, %cst_54 {dimension_numbers = #tpu.dot_dimension_numbers<[1], [0], [0], [1], [0, 0, 1, 1], [], []>} : vector<6x256xbf16>, vector<256x256xbf16>, vector<6x256xf32> -> vector<6x256xf32>
    %c0_55 = arith.constant 0 : index
    %c0_56 = arith.constant 0 : index
    %c0_57 = arith.constant 0 : index
    %178 = vector.load %arg6[%c0_55, %c0_56, %c0_57] : memref<1x1x256xf32, #tpu.memory_space<vmem>>, vector<1x1x256xf32>
    %179 = vector.shape_cast %178 : vector<1x1x256xf32> to vector<1x256xf32>
    %180 = vector.broadcast %179 : vector<1x256xf32> to vector<6x256xf32>
    %181 = arith.addf %177, %180 : vector<6x256xf32>
    %182 = arith.addf %3, %181 : vector<6x256xf32>
    %c0_58 = arith.constant 0 : index
    %c0_59 = arith.constant 0 : index
    %c0_60 = arith.constant 0 : index
    %183 = vector.load %arg7[%c0_58, %c0_59, %c0_60] : memref<1x1x256xf32, #tpu.memory_space<vmem>>, vector<1x1x256xf32>
    %184 = vector.shape_cast %183 : vector<1x1x256xf32> to vector<1x256xf32>
    %c0_61 = arith.constant 0 : index
    %c0_62 = arith.constant 0 : index
    %c0_63 = arith.constant 0 : index
    %185 = vector.load %arg8[%c0_61, %c0_62, %c0_63] : memref<1x1x256xf32, #tpu.memory_space<vmem>>, vector<1x1x256xf32>
    %186 = vector.shape_cast %185 : vector<1x1x256xf32> to vector<1x256xf32>
    %cst_64 = arith.constant dense<0.000000e+00> : vector<6xf32>
    %187 = vector.multi_reduction <add>, %182, %cst_64 [1] : vector<6x256xf32> to vector<6xf32>
    %188 = vector.shape_cast %187 : vector<6xf32> to vector<6x1xf32>
    %cst_65 = arith.constant 2.560000e+02 : f32
    %189 = vector.broadcast %cst_65 : f32 to vector<6x1xf32>
    %190 = arith.divf %188, %189 : vector<6x1xf32>
    %191 = vector.broadcast %190 : vector<6x1xf32> to vector<6x256xf32>
    %192 = arith.subf %182, %191 : vector<6x256xf32>
    %193 = arith.mulf %192, %192 : vector<6x256xf32>
    %cst_66 = arith.constant dense<0.000000e+00> : vector<6xf32>
    %194 = vector.multi_reduction <add>, %193, %cst_66 [1] : vector<6x256xf32> to vector<6xf32>
    %195 = vector.shape_cast %194 : vector<6xf32> to vector<6x1xf32>
    %cst_67 = arith.constant 2.560000e+02 : f32
    %196 = vector.broadcast %cst_67 : f32 to vector<6x1xf32>
    %197 = arith.divf %195, %196 : vector<6x1xf32>
    %cst_68 = arith.constant 9.99999974E-6 : f32
    %198 = vector.broadcast %cst_68 : f32 to vector<6x1xf32>
    %199 = arith.addf %197, %198 : vector<6x1xf32>
    %200 = math.rsqrt %199 : vector<6x1xf32>
    %201 = vector.broadcast %200 : vector<6x1xf32> to vector<6x256xf32>
    %202 = arith.mulf %192, %201 : vector<6x256xf32>
    %203 = vector.broadcast %184 : vector<1x256xf32> to vector<6x256xf32>
    %204 = arith.mulf %202, %203 : vector<6x256xf32>
    %205 = vector.broadcast %186 : vector<1x256xf32> to vector<6x256xf32>
    %206 = arith.addf %204, %205 : vector<6x256xf32>
    %207 = arith.truncf %206 : vector<6x256xf32> to vector<6x256xbf16>
    %c0_69 = arith.constant 0 : index
    %c0_70 = arith.constant 0 : index
    %c0_71 = arith.constant 0 : index
    %208 = vector.load %arg9[%c0_69, %c0_70, %c0_71] : memref<1x256x2048xbf16, #tpu.memory_space<vmem>>, vector<1x256x2048xbf16>
    %209 = vector.shape_cast %208 : vector<1x256x2048xbf16> to vector<256x2048xbf16>
    %cst_72 = arith.constant dense<0.000000e+00> : vector<6x2048xf32>
    %210 = tpu.matmul %207, %209, %cst_72 {dimension_numbers = #tpu.dot_dimension_numbers<[1], [0], [0], [1], [0, 0, 1, 1], [], []>} : vector<6x256xbf16>, vector<256x2048xbf16>, vector<6x2048xf32> -> vector<6x2048xf32>
    %c0_73 = arith.constant 0 : index
    %c0_74 = arith.constant 0 : index
    %c0_75 = arith.constant 0 : index
    %211 = vector.load %arg10[%c0_73, %c0_74, %c0_75] : memref<1x1x2048xf32, #tpu.memory_space<vmem>>, vector<1x1x2048xf32>
    %212 = vector.shape_cast %211 : vector<1x1x2048xf32> to vector<1x2048xf32>
    %213 = vector.broadcast %212 : vector<1x2048xf32> to vector<6x2048xf32>
    %214 = arith.addf %210, %213 : vector<6x2048xf32>
    %cst_76 = arith.constant 0.000000e+00 : f32
    %215 = vector.broadcast %cst_76 : f32 to vector<6x2048xf32>
    %216 = arith.maximumf %214, %215 : vector<6x2048xf32>
    %217 = arith.truncf %216 : vector<6x2048xf32> to vector<6x2048xbf16>
    %c0_77 = arith.constant 0 : index
    %c0_78 = arith.constant 0 : index
    %c0_79 = arith.constant 0 : index
    %218 = vector.load %arg11[%c0_77, %c0_78, %c0_79] : memref<1x2048x256xbf16, #tpu.memory_space<vmem>>, vector<1x2048x256xbf16>
    %219 = vector.shape_cast %218 : vector<1x2048x256xbf16> to vector<2048x256xbf16>
    %cst_80 = arith.constant dense<0.000000e+00> : vector<6x256xf32>
    %220 = tpu.matmul %217, %219, %cst_80 {dimension_numbers = #tpu.dot_dimension_numbers<[1], [0], [0], [1], [0, 0, 1, 1], [], []>} : vector<6x2048xbf16>, vector<2048x256xbf16>, vector<6x256xf32> -> vector<6x256xf32>
    %c0_81 = arith.constant 0 : index
    %c0_82 = arith.constant 0 : index
    %c0_83 = arith.constant 0 : index
    %221 = vector.load %arg12[%c0_81, %c0_82, %c0_83] : memref<1x1x256xf32, #tpu.memory_space<vmem>>, vector<1x1x256xf32>
    %222 = vector.shape_cast %221 : vector<1x1x256xf32> to vector<1x256xf32>
    %223 = vector.broadcast %222 : vector<1x256xf32> to vector<6x256xf32>
    %224 = arith.addf %220, %223 : vector<6x256xf32>
    %225 = arith.addf %206, %224 : vector<6x256xf32>
    %c0_84 = arith.constant 0 : index
    %c0_85 = arith.constant 0 : index
    %c0_86 = arith.constant 0 : index
    %226 = vector.load %arg13[%c0_84, %c0_85, %c0_86] : memref<1x1x256xf32, #tpu.memory_space<vmem>>, vector<1x1x256xf32>
    %227 = vector.shape_cast %226 : vector<1x1x256xf32> to vector<1x256xf32>
    %c0_87 = arith.constant 0 : index
    %c0_88 = arith.constant 0 : index
    %c0_89 = arith.constant 0 : index
    %228 = vector.load %arg14[%c0_87, %c0_88, %c0_89] : memref<1x1x256xf32, #tpu.memory_space<vmem>>, vector<1x1x256xf32>
    %229 = vector.shape_cast %228 : vector<1x1x256xf32> to vector<1x256xf32>
    %cst_90 = arith.constant dense<0.000000e+00> : vector<6xf32>
    %230 = vector.multi_reduction <add>, %225, %cst_90 [1] : vector<6x256xf32> to vector<6xf32>
    %231 = vector.shape_cast %230 : vector<6xf32> to vector<6x1xf32>
    %cst_91 = arith.constant 2.560000e+02 : f32
    %232 = vector.broadcast %cst_91 : f32 to vector<6x1xf32>
    %233 = arith.divf %231, %232 : vector<6x1xf32>
    %234 = vector.broadcast %233 : vector<6x1xf32> to vector<6x256xf32>
    %235 = arith.subf %225, %234 : vector<6x256xf32>
    %236 = arith.mulf %235, %235 : vector<6x256xf32>
    %cst_92 = arith.constant dense<0.000000e+00> : vector<6xf32>
    %237 = vector.multi_reduction <add>, %236, %cst_92 [1] : vector<6x256xf32> to vector<6xf32>
    %238 = vector.shape_cast %237 : vector<6xf32> to vector<6x1xf32>
    %cst_93 = arith.constant 2.560000e+02 : f32
    %239 = vector.broadcast %cst_93 : f32 to vector<6x1xf32>
    %240 = arith.divf %238, %239 : vector<6x1xf32>
    %cst_94 = arith.constant 9.99999974E-6 : f32
    %241 = vector.broadcast %cst_94 : f32 to vector<6x1xf32>
    %242 = arith.addf %240, %241 : vector<6x1xf32>
    %243 = math.rsqrt %242 : vector<6x1xf32>
    %244 = vector.broadcast %243 : vector<6x1xf32> to vector<6x256xf32>
    %245 = arith.mulf %235, %244 : vector<6x256xf32>
    %246 = vector.broadcast %227 : vector<1x256xf32> to vector<6x256xf32>
    %247 = arith.mulf %245, %246 : vector<6x256xf32>
    %248 = vector.broadcast %229 : vector<1x256xf32> to vector<6x256xf32>
    %249 = arith.addf %247, %248 : vector<6x256xf32>
    %c0_95 = arith.constant 0 : index
    %c0_96 = arith.constant 0 : index
    %250 = vector.load %arg15[%c0_95, %c0_96] : memref<6x256xf32, #tpu.memory_space<vmem>>, vector<6x256xf32>
    tpu.vector_store %arg15[%c0_95, %c0_96], %249 {strides = array<i32>} : memref<6x256xf32, #tpu.memory_space<vmem>>, vector<6x256xf32>,
    return
  }
  func.func @transform_0(%arg0: i32) -> (i32, i32) {
    %c0_i32 = arith.constant 0 : i32
    %c0_i32_0 = arith.constant 0 : i32
    %c0_i32_1 = arith.constant 0 : i32
    return %c0_i32, %c0_i32_0 : i32, i32
  }
  func.func @transform_1(%arg0: i32) -> (i32, i32) {
    %c0_i32 = arith.constant 0 : i32
    %c0_i32_0 = arith.constant 0 : i32
    %c0_i32_1 = arith.constant 0 : i32
    return %c0_i32, %c0_i32_0 : i32, i32
  }
  func.func @transform_2(%arg0: i32) -> (i32, i32, i32) {
    %c0_i32 = arith.constant 0 : i32
    %c0_i32_0 = arith.constant 0 : i32
    %c0_i32_1 = arith.constant 0 : i32
    return %arg0, %c0_i32, %c0_i32_0 : i32, i32, i32
  }
  func.func @transform_3(%arg0: i32) -> (i32, i32, i32) {
    %c0_i32 = arith.constant 0 : i32
    %c0_i32_0 = arith.constant 0 : i32
    %c0_i32_1 = arith.constant 0 : i32
    return %arg0, %c0_i32, %c0_i32_0 : i32, i32, i32
  }
  func.func @transform_4(%arg0: i32) -> (i32, i32, i32) {
    %c0_i32 = arith.constant 0 : i32
    %c0_i32_0 = arith.constant 0 : i32
    %c0_i32_1 = arith.constant 0 : i32
    return %arg0, %c0_i32, %c0_i32_0 : i32, i32, i32
  }
  func.func @transform_5(%arg0: i32) -> (i32, i32, i32) {
    %c0_i32 = arith.constant 0 : i32
    %c0_i32_0 = arith.constant 0 : i32
    %c0_i32_1 = arith.constant 0 : i32
    return %arg0, %c0_i32, %c0_i32_0 : i32, i32, i32
  }
  func.func @transform_6(%arg0: i32) -> (i32, i32, i32) {
    %c0_i32 = arith.constant 0 : i32
    %c0_i32_0 = arith.constant 0 : i32
    %c0_i32_1 = arith.constant 0 : i32
    return %arg0, %c0_i32, %c0_i32_0 : i32, i32, i32
  }
  func.func @transform_7(%arg0: i32) -> (i32, i32, i32) {
    %c0_i32 = arith.constant 0 : i32
    %c0_i32_0 = arith.constant 0 : i32
    %c0_i32_1 = arith.constant 0 : i32
    return %arg0, %c0_i32, %c0_i32_0 : i32, i32, i32
  }
  func.func @transform_8(%arg0: i32) -> (i32, i32, i32) {
    %c0_i32 = arith.constant 0 : i32
    %c0_i32_0 = arith.constant 0 : i32
    %c0_i32_1 = arith.constant 0 : i32
    return %arg0, %c0_i32, %c0_i32_0 : i32, i32, i32
  }
  func.func @transform_9(%arg0: i32) -> (i32, i32, i32) {
    %c0_i32 = arith.constant 0 : i32
    %c0_i32_0 = arith.constant 0 : i32
    %c0_i32_1 = arith.constant 0 : i32
    return %arg0, %c0_i32, %c0_i32_0 : i32, i32, i32
  }
  func.func @transform_10(%arg0: i32) -> (i32, i32, i32) {
    %c0_i32 = arith.constant 0 : i32
    %c0_i32_0 = arith.constant 0 : i32
    %c0_i32_1 = arith.constant 0 : i32
    return %arg0, %c0_i32, %c0_i32_0 : i32, i32, i32
  }
  func.func @transform_11(%arg0: i32) -> (i32, i32, i32) {
    %c0_i32 = arith.constant 0 : i32
    %c0_i32_0 = arith.constant 0 : i32
    %c0_i32_1 = arith.constant 0 : i32
    return %arg0, %c0_i32, %c0_i32_0 : i32, i32, i32
  }
  func.func @transform_12(%arg0: i32) -> (i32, i32, i32) {
    %c0_i32 = arith.constant 0 : i32
    %c0_i32_0 = arith.constant 0 : i32
    %c0_i32_1 = arith.constant 0 : i32
    return %arg0, %c0_i32, %c0_i32_0 : i32, i32, i32
  }
  func.func @transform_13(%arg0: i32) -> (i32, i32, i32) {
    %c0_i32 = arith.constant 0 : i32
    %c0_i32_0 = arith.constant 0 : i32
    %c0_i32_1 = arith.constant 0 : i32
    return %arg0, %c0_i32, %c0_i32_0 : i32, i32, i32
  }
  func.func @transform_14(%arg0: i32) -> (i32, i32) {
    %c0_i32 = arith.constant 0 : i32
    %c0_i32_0 = arith.constant 0 : i32
    %c0_i32_1 = arith.constant 0 : i32
    return %c0_i32, %c0_i32_0 : i32, i32
  }
}

</mosaic_0001>

<bundles_post_ra>
// kernel: conformer_forward.8
= control target key start
LH: loop header
LB: loop body
LE: loop exit
PB: predicated region body
PF: predicated region fallthrough
CT: control target
= control target key end

     0   :  { %12 = vsyncpa [#allocation3], 0  ;;  %s1012_s24 = smov [#allocation2]   ;;  %s1347_s0 = inlined_call_operand.vmem [shape: f32[44,128], index: 0, kind: input, shape index: {}]   ;;  %s1348_s1 = inlined_call_operand.hbm [shape: f32[3,128,256], index: 1, kind: input, shape index: {}]   ;;  %s1349_s2 = inlined_call_operand.vmem [shape: f32[1,256], index: 2, kind: input, shape index: {}]   ;;  %s1350_s3 = inlined_call_operand.vmem [shape: f32[1,256], index: 3, kind: input, shape index: {}]   ;;  %s1351_s4 = inlined_call_operand.vmem [shape: f32[1,256], index: 4, kind: input, shape index: {}]   ;;  %s1352_s5 = inlined_call_operand.vmem [shape: f32[1,256], index: 5, kind: input, shape index: {}]   ;;  %s1353_s6 = inlined_call_operand.vmem [shape: f32[1,256], index: 6, kind: input, shape index: {}]   ;;  %s1354_s7 = inlined_call_operand.vmem [shape: f32[18,256], index: 7, kind: output, shape index: {}]  }
   0x1   :  { %s20_s25 = sshll.u32 %s1012_s24, 4  ;;  %s988_s28 = scalar_lea.hbm %s1348_s1, 12288  ;;  %s21_s25 = int_to_ptr.vmem [resolvable:$true] %s20_s25 }
   0x2   :  { %p989_p0 = scmp.ne.s32.totalorder %s1348_s1, %s988_s28  ;;  %p992_p1 = scmp.lt.u32.totalorder %s988_s28, %s1348_s1 }
   0x4   :  { %p994_p2 = pnand %p992_p1, %p989_p0 }
   0x6   :  { %997 = shalt.err (!%p994_p2)
}
   0x7   :  { %s998_s10 = scalar_lea.vmem %s21_s25, 12288  ;;  %p1003_p4 = scmp.lt.s32.totalorder %s21_s25, %s21_s25 }
   0x8   :  { %p999_p3 = scmp.ne.s32.totalorder %s21_s25, %s998_s10  ;;  %p1004_p5 = scmp.lt.s32.totalorder %s998_s10, %s998_s10 }
   0xa   :  { %p1005_p6 = por %p1004_p5, %p1003_p4 }
   0xc   :  { %p1006_p7 = pnand %p1005_p6, %p999_p3 }
   0xe   :  { %1009 = shalt.err (!%p1006_p7)
}
   0xf   :  { %s1013_s11 = smov 256   ;;  %s1014_s12 = smov 16  }
  0x10   :  { %26 = dma.hbm_to_vmem [thread:$0]  %s1348_s1, 12288, %s21_s25, [#allocation3], %s1013_s11, %s1013_s11, %s1014_s12  }
  0x11   :  { %1010 = dma.done.wait [#allocation3], 12288  }
  0x12   :  { %1011 = vsyncadd [#allocation3], 4294955008  ;;  %v1015_v0 = vmov 0.0   ;;  %v47_v1 = vld [vmem:[#allocation2 + $0x8] sm:$0xff]  ;;  %v49_v2 = vld [vmem:[#allocation2 + $0x18] sm:$0xff]  ;;  %vm117_vm0 = vcmask 1046528  }
  0x13   :  { %300 = vmatprep.mubr.f32.mxu0 %v1015_v0  ;;  %199 = vmatprep.mubr.f32.mxu1 %v1015_v0  ;;  %v46_v3 = vld [vmem:[#allocation2] sm:$0xff]  ;;  %v888_v4 = vpack.c.bf16 %v49_v2, %v47_v1  ;;  %v48_v5 = vld [vmem:[#allocation2 + $0x10] sm:$0xff]  ;;  %v51_v6 = vld [vmem:[#allocation2 + $0x28] sm:$0xff]  ;;  %vm370_vm1 = vcmask 1045504   ;;  %vm710_vm6 = vcmask 326656   ;;  %vm704_vm7 = vcmask 1040384  }
  0x14   :  { %v53_v7 = vld [vmem:[#allocation2 + $0x38] sm:$0xff]  ;;  %v890_v8 = vpack.c.bf16 %v48_v5, %v46_v3  ;;  %v50_v10 = vld [vmem:[#allocation2 + $0x20] sm:$0xff]  ;;  %v52_v11 = vld [vmem:[#allocation2 + $0x30] sm:$0xff] }
  0x15   :  { %v892_v9 = vpack.c.bf16 %v53_v7, %v51_v6  ;;  %v55_v12 = vld [vmem:[#allocation2 + $0x48] sm:$0xff]  ;;  %889 = vmatprep.subr.bf16.mxu0 %v888_v4  ;;  %v57_v13 = vld [vmem:[#allocation2 + $0x58] sm:$0xff]  ;;  %v894_v14 = vpack.c.bf16 %v52_v11, %v50_v10  ;;  %v54_v16 = vld [vmem:[#allocation2 + $0x40] sm:$0xff] }
  0x16   :  { %891 = vmatpush1.bf16.msra.mxu0 %v890_v8  ;;  %v896_v15 = vpack.c.bf16 %v57_v13, %v55_v12  ;;  %v56_v17 = vld [vmem:[#allocation2 + $0x50] sm:$0xff]  ;;  %v59_v18 = vld [vmem:[#allocation2 + $0x68] sm:$0xff]  ;;  %v61_v19 = vld [vmem:[#allocation2 + $0x78] sm:$0xff] }
  0x17   :  { %893 = vmatprep.subr.bf16.mxu0 %v892_v9  ;;  %v898_v20 = vpack.c.bf16 %v56_v17, %v54_v16  ;;  %v900_v21 = vpack.c.bf16 %v61_v19, %v59_v18  ;;  %v58_v22 = vld [vmem:[#allocation2 + $0x60] sm:$0xff]  ;;  %v60_v23 = vld [vmem:[#allocation2 + $0x70] sm:$0xff]  ;;  %v63_v24 = vld [vmem:[#allocation2 + $0x88] sm:$0xff] }
  0x18   :  { %v65_v25 = vld [vmem:[#allocation2 + $0x98] sm:$0xff]  ;;  %v80_v26 = vld [vmem:[#allocation2 + $0x108] sm:$0xff]  ;;  %v79_v28 = vld [vmem:[#allocation2 + $0x100] sm:$0xff]  ;;  %v902_v30 = vpack.c.bf16 %v60_v23, %v58_v22 }
  0x19   :  { %v82_v27 = vld [vmem:[#allocation2 + $0x118] sm:$0xff]  ;;  %v81_v29 = vld [vmem:[#allocation2 + $0x110] sm:$0xff]  ;;  %v62_v31 = vld [vmem:[#allocation2 + $0x80] sm:$0xff]  ;;  %v904_v35 = vpack.c.bf16 %v65_v25, %v63_v24 }
  0x1a   :  { %895 = vmatpush1.bf16.msra.mxu0 %v894_v14  ;;  %v64_v32 = vld [vmem:[#allocation2 + $0x90] sm:$0xff]  ;;  %v856_v33 = vpack.c.bf16 %v82_v27, %v80_v26  ;;  %v858_v34 = vpack.c.bf16 %v81_v29, %v79_v28  ;;  %v67_v36 = vld [vmem:[#allocation2 + $0xa8] sm:$0xff]  ;;  %v69_v37 = vld [vmem:[#allocation2 + $0xb8] sm:$0xff] }
  0x1b   :  { %897 = vmatprep.subr.bf16.mxu0 %v896_v15  ;;  %v84_v38 = vld [vmem:[#allocation2 + $0x128] sm:$0xff]  ;;  %v86_v39 = vld [vmem:[#allocation2 + $0x138] sm:$0xff]  ;;  %v83_v40 = vld [vmem:[#allocation2 + $0x120] sm:$0xff]  ;;  %v906_v44 = vpack.c.bf16 %v64_v32, %v62_v31  ;;  %v908_v48 = vpack.c.bf16 %v69_v37, %v67_v36 }
  0x1c   :  { %857 = vmatprep.subr.bf16.mxu1 %v856_v33  ;;  %v85_v41 = vld [vmem:[#allocation2 + $0x130] sm:$0xff]  ;;  %v860_v42 = vpack.c.bf16 %v86_v39, %v84_v38  ;;  %v66_v45 = vld [vmem:[#allocation2 + $0xa0] sm:$0xff]  ;;  %v88_v46 = vld [vmem:[#allocation2 + $0x148] sm:$0xff] }
  0x1d   :  { %859 = vmatpush1.bf16.msra.mxu1 %v858_v34  ;;  %v862_v43 = vpack.c.bf16 %v85_v41, %v83_v40  ;;  %v90_v47 = vld [vmem:[#allocation2 + $0x158] sm:$0xff]  ;;  %v68_v49 = vld [vmem:[#allocation2 + $0xb0] sm:$0xff]  ;;  %v87_v51 = vld [vmem:[#allocation2 + $0x140] sm:$0xff] }
  0x1e   :  { %899 = vmatpush1.bf16.msra.mxu0 %v898_v20  ;;  %861 = vmatprep.subr.bf16.mxu1 %v860_v42  ;;  %v864_v50 = vpack.c.bf16 %v90_v47, %v88_v46  ;;  %v89_v52 = vld [vmem:[#allocation2 + $0x150] sm:$0xff]  ;;  %v71_v53 = vld [vmem:[#allocation2 + $0xc8] sm:$0xff]  ;;  %v73_v54 = vld [vmem:[#allocation2 + $0xd8] sm:$0xff]  ;;  %v910_v58 = vpack.c.bf16 %v68_v49, %v66_v45 }
  0x1f   :  { %901 = vmatprep.subr.bf16.mxu0 %v900_v21  ;;  %v866_v55 = vpack.c.bf16 %v89_v52, %v87_v51  ;;  %v92_v56 = vld [vmem:[#allocation2 + $0x168] sm:$0xff]  ;;  %v94_v57 = vld [vmem:[#allocation2 + $0x178] sm:$0xff]  ;;  %v91_v60 = vld [vmem:[#allocation2 + $0x160] sm:$0xff]  ;;  %v912_v62 = vpack.c.bf16 %v73_v54, %v71_v53 }
  0x20   :  { %v868_v59 = vpack.c.bf16 %v94_v57, %v92_v56  ;;  %v93_v61 = vld [vmem:[#allocation2 + $0x170] sm:$0xff]  ;;  %v70_v63 = vld [vmem:[#allocation2 + $0xc0] sm:$0xff]  ;;  %v75_v2 = vld [vmem:[#allocation2 + $0xe8] sm:$0xff] }
  0x21   :  { %863 = vmatpush1.bf16.msra.mxu1 %v862_v43  ;;  %v72_v1 = vld [vmem:[#allocation2 + $0xd0] sm:$0xff]  ;;  %v77_v3 = vld [vmem:[#allocation2 + $0xf8] sm:$0xff]  ;;  %v96_v4 = vld [vmem:[#allocation2 + $0x188] sm:$0xff]  ;;  %v870_v6 = vpack.c.bf16 %v93_v61, %v91_v60 }
  0x22   :  { %903 = vmatpush1.bf16.msra.mxu0 %v902_v30  ;;  %865 = vmatprep.subr.bf16.mxu1 %v864_v50  ;;  %v98_v5 = vld [vmem:[#allocation2 + $0x198] sm:$0xff]  ;;  %v914_v7 = vpack.c.bf16 %v72_v1, %v70_v63  ;;  %v74_v8 = vld [vmem:[#allocation2 + $0xe0] sm:$0xff]  ;;  %v97_v11 = vld [vmem:[#allocation2 + $0x190] sm:$0xff]  ;;  %v916_v12 = vpack.c.bf16 %v77_v3, %v75_v2 }
  0x23   :  { %905 = vmatprep.subr.bf16.mxu0 %v904_v35  ;;  %v872_v9 = vpack.c.bf16 %v98_v5, %v96_v4  ;;  %v95_v10 = vld [vmem:[#allocation2 + $0x180] sm:$0xff]  ;;  %v76_v13 = vld [vmem:[#allocation2 + $0xf0] sm:$0xff]  ;;  %v100_v14 = vld [vmem:[#allocation2 + $0x1a8] sm:$0xff] }
  0x24   :  { %v102_v15 = vld [vmem:[#allocation2 + $0x1b8] sm:$0xff]  ;;  %v339_v16 = vld [vmem:[#allocation2 + $0x208] sm:$0xff]  ;;  %v874_v18 = vpack.c.bf16 %v97_v11, %v95_v10  ;;  %v918_v19 = vpack.c.bf16 %v76_v13, %v74_v8  ;;  %v99_v21 = vld [vmem:[#allocation2 + $0x1a0] sm:$0xff] }
  0x25   :  { %867 = vmatpush1.bf16.msra.mxu1 %v866_v55  ;;  %v341_v17 = vld [vmem:[#allocation2 + $0x218] sm:$0xff]  ;;  %v876_v20 = vpack.c.bf16 %v102_v15, %v100_v14  ;;  %v101_v22 = vld [vmem:[#allocation2 + $0x1b0] sm:$0xff]  ;;  %v338_v24 = vld [vmem:[#allocation2 + $0x200] sm:$0xff] }
  0x26   :  { %907 = vmatpush1.bf16.msra.mxu0 %v906_v44  ;;  %869 = vmatprep.subr.bf16.mxu1 %v868_v59  ;;  %v920_v23 = vpack.c.bf16 %v341_v17, %v339_v16  ;;  %v340_v25 = vld [vmem:[#allocation2 + $0x210] sm:$0xff]  ;;  %v343_v26 = vld [vmem:[#allocation2 + $0x228] sm:$0xff]  ;;  %v345_v27 = vld [vmem:[#allocation2 + $0x238] sm:$0xff]  ;;  %v878_v30 = vpack.c.bf16 %v101_v22, %v99_v21 }
  0x27   :  { %909 = vmatprep.subr.bf16.mxu0 %v908_v48  ;;  %v104_v28 = vld [vmem:[#allocation2 + $0x1c8] sm:$0xff]  ;;  %v106_v29 = vld [vmem:[#allocation2 + $0x1d8] sm:$0xff]  ;;  %v1073_v31 = vld [vmem:[%s1347_s0] sm:$0xff]  ;;  %v922_v32 = vpack.c.bf16 %v340_v25, %v338_v24  ;;  %v924_v35 = vpack.c.bf16 %v345_v27, %v343_v26 }
  0x28   :  { %v103_v33 = vld [vmem:[#allocation2 + $0x1c0] sm:$0xff]  ;;  %v105_v34 = vld [vmem:[#allocation2 + $0x1d0] sm:$0xff]  ;;  %v347_v38 = vld [vmem:[#allocation2 + $0x248] sm:$0xff]  ;;  %v880_v39 = vpack.c.bf16 %v106_v29, %v104_v28  ;;  %v118_v54 = vrot.slane %v1073_v31, 1 }
  0x29   :  { %871 = vmatpush1.bf16.msra.mxu1 %v870_v6  ;;  %v342_v36 = vld [vmem:[#allocation2 + $0x220] sm:$0xff]  ;;  %v344_v37 = vld [vmem:[#allocation2 + $0x230] sm:$0xff]  ;;  %v349_v40 = vld [vmem:[#allocation2 + $0x258] sm:$0xff]  ;;  %v882_v43 = vpack.c.bf16 %v105_v34, %v103_v33 }
  0x2a   :  { %911 = vmatpush1.bf16.msra.mxu0 %v910_v58  ;;  %873 = vmatprep.subr.bf16.mxu1 %v872_v9  ;;  %v108_v41 = vld [vmem:[#allocation2 + $0x1e8] sm:$0xff]  ;;  %v110_v42 = vld [vmem:[#allocation2 + $0x1f8] sm:$0xff]  ;;  %v926_v44 = vpack.c.bf16 %v344_v37, %v342_v36  ;;  %v107_v46 = vld [vmem:[#allocation2 + $0x1e0] sm:$0xff]  ;;  %v928_v48 = vpack.c.bf16 %v349_v40, %v347_v38  ;;  %v371_v36 = vrot.slane %v1073_v31, 2 }
  0x2b   :  { %913 = vmatprep.subr.bf16.mxu0 %v912_v62  ;;  %v1080_v45 = vld [vmem:[%s1347_s0 + $0x8] sm:$0xff]  ;;  %v109_v47 = vld [vmem:[#allocation2 + $0x1f0] sm:$0xff]  ;;  %v346_v49 = vld [vmem:[#allocation2 + $0x240] sm:$0xff]  ;;  %v884_v51 = vpack.c.bf16 %v110_v42, %v108_v41 }
  0x2c   :  { %v348_v50 = vld [vmem:[#allocation2 + $0x250] sm:$0xff]  ;;  %v351_v52 = vld [vmem:[#allocation2 + $0x268] sm:$0xff]  ;;  %v353_v53 = vld [vmem:[#allocation2 + $0x278] sm:$0xff]  ;;  %v119_v55 = vrot.slane %v1080_v45, 1  ;;  %v886_v56 = vpack.c.bf16 %v109_v47, %v107_v46  ;;  %v372_v37 = vrot.slane %v1080_v45, 2 }
  0x2d   :  { %875 = vmatpush1.bf16.msra.mxu1 %v874_v18  ;;  %v930_v57 = vpack.c.bf16 %v348_v50, %v346_v49  ;;  %v1089_v58 = vld [vmem:[%s1347_s0 + $0x10] sm:$0xff]  ;;  %v932_v59 = vpack.c.bf16 %v353_v53, %v351_v52  ;;  %v350_v60 = vld [vmem:[#allocation2 + $0x260] sm:$0xff]  ;;  %v355_v62 = vld [vmem:[#allocation2 + $0x288] sm:$0xff] }
  0x2e   :  { %915 = vmatpush1.bf16.msra.mxu0 %v914_v7  ;;  %877 = vmatprep.subr.bf16.mxu1 %v876_v20  ;;  %v352_v61 = vld [vmem:[#allocation2 + $0x270] sm:$0xff]  ;;  %v357_v63 = vld [vmem:[#allocation2 + $0x298] sm:$0xff]  ;;  %v121_v1 = vrot.slane %v1089_v58, 1  ;;  %v120_v2 = vsel %vm117_vm0, %v118_v54, %v119_v55  ;;  %v354_v6 = vld [vmem:[#allocation2 + $0x280] sm:$0xff]  ;;  %v373_v40 = vsel %vm370_vm1, %v371_v36, %v372_v37 }
  0x2f   :  { %917 = vmatprep.subr.bf16.mxu0 %v916_v12  ;;  %v934_v3 = vpack.c.bf16 %v352_v61, %v350_v60  ;;  %v1098_v4 = vld [vmem:[%s1347_s0 + $0x18] sm:$0xff]  ;;  %v936_v5 = vpack.c.bf16 %v357_v63, %v355_v62  ;;  %v356_v7 = vld [vmem:[#allocation2 + $0x290] sm:$0xff]  ;;  %v359_v8 = vld [vmem:[#allocation2 + $0x2a8] sm:$0xff] }
  0x30   :  { %v361_v9 = vld [vmem:[#allocation2 + $0x2b8] sm:$0xff]  ;;  %v123_v10 = vrot.slane %v1098_v4, 1  ;;  %v122_v11 = vsel %vm117_vm0, %v119_v55, %v121_v1  ;;  %v938_v12 = vpack.c.bf16 %v356_v7, %v354_v6  ;;  %v1108_v13 = vld [vmem:[%s1347_s0 + $0x20] sm:$0xff]  ;;  %v360_v16 = vld [vmem:[#allocation2 + $0x2b0] sm:$0xff] }
  0x31   :  { %879 = vmatpush1.bf16.msra.mxu1 %v878_v30  ;;  %v940_v14 = vpack.c.bf16 %v361_v9, %v359_v8  ;;  %v358_v15 = vld [vmem:[#allocation2 + $0x2a0] sm:$0xff]  ;;  %v363_v17 = vld [vmem:[#allocation2 + $0x2c8] sm:$0xff]  ;;  %v365_v18 = vld [vmem:[#allocation2 + $0x2d8] sm:$0xff]  ;;  %v378_v42 = vrot.slane %v1108_v13, 2 }
  0x32   :  { %919 = vmatpush1.bf16.msra.mxu0 %v918_v19  ;;  %881 = vmatprep.subr.bf16.mxu1 %v880_v39  ;;  %v125_v19 = vrot.slane %v1108_v13, 1  ;;  %v124_v20 = vsel %vm117_vm0, %v121_v1, %v123_v10  ;;  %v942_v21 = vpack.c.bf16 %v360_v16, %v358_v15  ;;  %v45_v22 = vld [vmem:[%s1347_s0 + $0x28] sm:$0xf]  ;;  %v362_v24 = vld [vmem:[#allocation2 + $0x2c0] sm:$0xff]  ;;  %v364_v25 = vld [vmem:[#allocation2 + $0x2d0] sm:$0xff]  ;;  %v374_v39 = vrot.slane %v1089_v58, 2 }
  0x33   :  { %921 = vmatprep.subr.bf16.mxu0 %v920_v23  ;;  %v944_v23 = vpack.c.bf16 %v365_v18, %v363_v17  ;;  %v367_v26 = vld [vmem:[#allocation2 + $0x2e8] sm:$0xff]  ;;  %v369_v27 = vld [vmem:[#allocation2 + $0x2f8] sm:$0xff]  ;;  %v127_v28 = vrot.slane %v45_v22, 1  ;;  %v946_v30 = vpack.c.bf16 %v364_v25, %v362_v24  ;;  %v366_v33 = vld [vmem:[#allocation2 + $0x2e0] sm:$0xff] }
  0x34   :  { %v126_v29 = vsel %vm117_vm0, %v123_v10, %v125_v19  ;;  %v368_v34 = vld [vmem:[#allocation2 + $0x2f0] sm:$0xff]  ;;  %v375_v41 = vsel %vm370_vm1, %v372_v37, %v374_v39  ;;  %v525_v62 = vld [vmem:[%s1350_s3] sm:$0x3] }
  0x35   :  { %301 = vmatmul.mubr.f32.vlgmr.msra.gmra.mrb[0].mxu0 %v1073_v31  ;;  %883 = vmatpush1.bf16.msra.mxu1 %v882_v43  ;;  %v950_v38 = vpack.c.bf16 %v368_v34, %v366_v33  ;;  %v376_v31 = vrot.slane %v1098_v4, 2 }
  0x36   :  { %923 = vmatpush1.bf16.msra.mxu0 %v922_v32  ;;  %306 = vmatprep.mubr.f32.mxu0 %v1015_v0  ;;  %v948_v32 = vpack.c.bf16 %v369_v27, %v367_v26 }
  0x37   :  { %925 = vmatprep.subr.bf16.mxu0 %v924_v35  ;;  %885 = vmatprep.subr.bf16.mxu1 %v884_v51  ;;  %v128_v35 = vsel %vm117_vm0, %v125_v19, %v127_v28  ;;  %v377_v43 = vsel %vm370_vm1, %v374_v39, %v376_v31  ;;  %v503_v51 = vlaneseq }
  0x39   :  { %307 = vmatmul.mubr.f32.gmra.mrb[2].mxu0 %v1080_v45  ;;  %887 = vmatpush1.bf16.msra.mxu1 %v886_v56  ;;  %v379_v45 = vsel %vm370_vm1, %v376_v31, %v378_v42  ;;  %v1140_v54 = vshrl.u32 %v503_v51, 7  ;;  %v1201_v36 = vand.u32 127, %v503_v51 }
  0x3a   :  { %927 = vmatpush1.bf16.msra.mxu0 %v926_v44  ;;  %312 = vmatprep.mubr.f32.mxu0 %v1015_v0  ;;  %v380_v44 = vrot.slane %v45_v22, 2 }
  0x3b   :  { %929 = vmatprep.subr.bf16.mxu0 %v928_v48  ;;  %v1151_v60 = vsub.s32 1, %v1140_v54  ;;  %v1191_v24 = vadd.s32 8, %v1140_v54 }
  0x3c   :  { %200 = vmatmul.mubr.f32.vlgmr.msra.gmra.mrb[0].mxu1 %v120_v2  ;;  %v381_v46 = vsel %vm370_vm1, %v378_v42, %v380_v44 }
  0x3d   :  { %313 = vmatmul.mubr.f32.gmra.mrb[4].mxu0 %v1089_v58  ;;  %205 = vmatprep.mubr.f32.mxu1 %v1015_v0  ;;  %v1175_v10 = vrot.slane %v525_v62, %v1151_v60  ;;  %v687_v39 = vmul.u32 2, %v1191_v24 }
  0x3e   :  { %931 = vmatpush1.bf16.msra.mxu0 %v930_v57  ;;  %318 = vmatprep.mubr.f32.mxu0 %v1015_v0  ;;  %v1143_v57 = vsub.s32 0, %v1140_v54 }
  0x3f   :  { %933 = vmatprep.subr.bf16.mxu0 %v932_v59  ;;  %v501_v59 = vld [vmem:[%s1349_s2] sm:$0x3]  ;;  %vm689_vm4 = vcmp.eq.s32.totalorder %v1201_v36, %v687_v39 }
  0x40   :  { %206 = vmatmul.mubr.f32.gmra.mrb[2].mxu1 %v122_v11  ;;  %v1159_v63 = vrot.slane %v501_v59, %v1143_v57  ;;  %v1172_v7 = vrot.slane %v525_v62, %v1143_v57 }
  0x41   :  { %319 = vmatmul.mubr.f32.gmra.mrb[6].mxu0 %v1098_v4  ;;  %211 = vmatprep.mubr.f32.mxu1 %v1015_v0  ;;  %v1167_v4 = vrot.slane %v501_v59, %v1151_v60 }
  0x42   :  { %935 = vmatpush1.bf16.msra.mxu0 %v934_v3  ;;  %324 = vmatprep.mubr.f32.mxu0 %v1015_v0  ;;  %v549_v3 = vld [vmem:[%s1351_s4] sm:$0x3] }
  0x43   :  { %937 = vmatprep.subr.bf16.mxu0 %v936_v5 }
  0x44   :  { %212 = vmatmul.mubr.f32.gmra.mrb[4].mxu1 %v124_v20 }
  0x45   :  { %325 = vmatmul.mubr.f32.gmra.mrb[8].mxu0 %v1108_v13  ;;  %217 = vmatprep.mubr.f32.mxu1 %v1015_v0 }
  0x46   :  { %939 = vmatpush1.bf16.msra.mxu0 %v938_v12  ;;  %330 = vmatprep.mubr.f32.mxu0 %v1015_v0  ;;  %v1179_v12 = vrot.slane %v549_v3, %v1143_v57 }
  0x47   :  { %941 = vmatprep.subr.bf16.mxu0 %v940_v14  ;;  %v1183_v14 = vrot.slane %v549_v3, %v1151_v60 }
  0x48   :  { %218 = vmatmul.mubr.f32.gmra.mrb[6].mxu1 %v126_v29 }
  0x49   :  { %331 = vmatmul.mubr.f32.gmra.mrb[10].mxu0 %v45_v22  ;;  %223 = vmatprep.mubr.f32.mxu1 %v1015_v0 }
  0x4a   :  { %943 = vmatpush1.bf16.msra.mxu0 %v942_v21  ;;  %452 = vmatprep.mubr.f32.mxu0 %v1015_v0 }
  0x4b   :  { %945 = vmatprep.subr.bf16.mxu0 %v944_v23  ;;  %v686_v23 = vmul.u32 2, %v1140_v54  ;;  %v850_v54 = vsel %vm689_vm4, 1.0, %v1015_v0 }
  0x4c   :  { %224 = vmatmul.mubr.f32.gmra.mrb[8].mxu1 %v128_v35 }
  0x4d   :  { %229 = vmatprep.mubr.f32.mxu1 %v1015_v0  ;;  %vm688_vm3 = vcmp.eq.s32.totalorder %v1201_v36, %v686_v23 }
  0x4e   :  { %947 = vmatpush1.bf16.msra.mxu0 %v946_v30 }
  0x4f   :  { %949 = vmatprep.subr.bf16.mxu0 %v948_v32 }
  0x50   :  { %230 = vmatmul.mubr.f32.gmra.mrb[10].mxu1 %v127_v28 }
  0x51   :  { %783 = vmatprep.mubr.f32.mxu1 %v1015_v0 }
  0x52   :  { %951 = vmatpush1.bf16.msra.mxu0 %v950_v38 }
  0x55   :  { %453 = vmatmul.mubr.f32.vlgmr.msra.gmra.mrb[0].mxu0 %v373_v40  ;;  %v1208_v40 = vadd.s32 22, %v686_v23 }
  0x56   :  { %458 = vmatprep.mubr.f32.mxu0 %v1015_v0 }
  0x57   :  { %vm696_vm2 = vcmp.eq.s32.totalorder %v1201_v36, %v1208_v40 }
  0x59   :  { %459 = vmatmul.mubr.f32.gmra.mrb[2].mxu0 %v375_v41 }
  0x5a   :  { %464 = vmatprep.mubr.f32.mxu0 %v1015_v0 }
  0x5d   :  { %465 = vmatmul.mubr.f32.gmra.mrb[4].mxu0 %v377_v43 }
  0x5e   :  { %470 = vmatprep.mubr.f32.mxu0 %v1015_v0 }
  0x61   :  { %471 = vmatmul.mubr.f32.gmra.mrb[6].mxu0 %v379_v45 }
  0x62   :  { %476 = vmatprep.mubr.f32.mxu0 %v1015_v0 }
  0x65   :  { %477 = vmatmul.mubr.f32.gmra.mrb[8].mxu0 %v381_v46 }
  0x66   :  { %482 = vmatprep.mubr.f32.mxu0 %v1015_v0 }
  0x69   :  { %483 = vmatmul.mubr.f32.gmra.mrb[10].mxu0 %v380_v44 }
 0x10f   :  { %v201_v47 = vpop.f32.mrb[0].mxu1 }
 0x110   :  { %v203_v48 = vpop.f32.mrb[1].mxu1 }
 0x113   :  { %v207_v49 = vpop.f32.mrb[2].mxu1 }
 0x114   :  { %v209_v50 = vpop.f32.mrb[3].mxu1 }
 0x117   :  { %v213_v52 = vpop.f32.mrb[4].mxu1 }
 0x118   :  { %v215_v53 = vpop.f32.mrb[5].mxu1 }
 0x11b   :  { %v219_v55 = vpop.f32.mrb[6].mxu1 }
 0x11c   :  { %v221_v56 = vpop.f32.mrb[7].mxu1 }
 0x11f   :  { %v1145_v58 = vpop.f32.mrb[8].mxu1 }
 0x120   :  { %v1153_v61 = vpop.f32.mrb[9].mxu1 }
 0x123   :  { %v1161_v1 = vpop.f32.mrb[10].mxu1 }
 0x124   :  { %v1169_v5 = vpop.f32.mrb[11].mxu1 }
 0x128   :  { %v454_v2 = vpop.f32.mrb[0].mxu0 }
 0x129   :  { %v960_v6 = vadd.f32 %v454_v2, %v201_v47  ;;  %v456_v8 = vpop.f32.mrb[1].mxu0 }
 0x12a   :  { %v961_v9 = vadd.f32 %v456_v8, %v203_v48 }
 0x12b   :  { %v513_v11 = vadd.f32 %v960_v6, %v1159_v63 }
 0x12c   :  { %v514_v13 = vadd.f32 %v961_v9, %v1167_v4  ;;  %v460_v15 = vpop.f32.mrb[2].mxu0 }
 0x12d   :  { %v537_v16 = vmul.f32 %v1172_v7, %v513_v11  ;;  %v962_v17 = vadd.f32 %v460_v15, %v207_v49  ;;  %v462_v18 = vpop.f32.mrb[3].mxu0 }
 0x12e   :  { %v538_v19 = vmul.f32 %v1175_v10, %v514_v13  ;;  %v963_v20 = vadd.f32 %v462_v18, %v209_v50 }
 0x12f   :  { %v561_v21 = vadd.f32 %v1179_v12, %v537_v16  ;;  %v515_v22 = vadd.f32 %v962_v17, %v1159_v63 }
 0x130   :  { %v562_v25 = vadd.f32 %v1183_v14, %v538_v19  ;;  %v516_v26 = vadd.f32 %v963_v20, %v1167_v4  ;;  %v466_v27 = vpop.f32.mrb[4].mxu0 }
 0x131   :  { %v1195_v28 = vmax.f32 %v561_v21, 0.0  ;;  %v539_v29 = vmul.f32 %v1172_v7, %v515_v22  ;;  %v964_v30 = vadd.f32 %v466_v27, %v213_v52  ;;  %v468_v32 = vpop.f32.mrb[5].mxu0 }
 0x132   :  { %v1198_v33 = vmax.f32 %v562_v25, 0.0  ;;  %v540_v34 = vmul.f32 %v1175_v10, %v516_v26  ;;  %v965_v35 = vadd.f32 %v468_v32, %v215_v53 }
 0x133   :  { %v563_v37 = vadd.f32 %v1179_v12, %v539_v29  ;;  %v517_v38 = vadd.f32 %v964_v30, %v1159_v63  ;;  %v597_v31 = vrot.slane %v1195_v28, 1  ;;  %v639_v41 = vrot.slane %v1195_v28, 2 }
 0x134   :  { %v564_v42 = vadd.f32 %v1183_v14, %v540_v34  ;;  %v518_v43 = vadd.f32 %v965_v35, %v1167_v4  ;;  %v472_v44 = vpop.f32.mrb[6].mxu0  ;;  %v600_v45 = vrot.slane %v1198_v33, 1  ;;  %v642_v53 = vrot.slane %v1198_v33, 2 }
 0x135   :  { %v1215_v46 = vmax.f32 %v563_v37, 0.0  ;;  %v541_v47 = vmul.f32 %v1172_v7, %v517_v38  ;;  %v966_v48 = vadd.f32 %v472_v44, %v219_v55  ;;  %v474_v49 = vpop.f32.mrb[7].mxu0 }
 0x136   :  { %v1218_v50 = vmax.f32 %v564_v42, 0.0  ;;  %v542_v51 = vmul.f32 %v1175_v10, %v518_v43  ;;  %v967_v52 = vadd.f32 %v474_v49, %v221_v56 }
 0x137   :  { %v598_v59 = vrot.slane %v1215_v46, 1  ;;  %v640_v62 = vrot.slane %v1215_v46, 2  ;;  %v565_v2 = vadd.f32 %v1179_v12, %v541_v47  ;;  %v519_v3 = vadd.f32 %v966_v48, %v1159_v63 }
 0x138   :  { %v601_v6 = vrot.slane %v1218_v50, 1  ;;  %v566_v55 = vadd.f32 %v1183_v14, %v542_v51  ;;  %v520_v8 = vadd.f32 %v967_v52, %v1167_v4  ;;  %v478_v9 = vpop.f32.mrb[8].mxu0  ;;  %v643_v11 = vrot.slane %v1218_v50, 2 }
 0x139   :  { %v1230_v56 = vmax.f32 %v565_v2, 0.0  ;;  %v543_v13 = vmul.f32 %v1172_v7, %v519_v3  ;;  %v968_v15 = vadd.f32 %v478_v9, %v1145_v58  ;;  %v480_v16 = vpop.f32.mrb[9].mxu0  ;;  %v599_v17 = vsel %vm117_vm0, %v597_v31, %v598_v59 }
 0x13a   :  { %v1235_v18 = vmax.f32 %v566_v55, 0.0  ;;  %v544_v19 = vmul.f32 %v1175_v10, %v520_v8  ;;  %v969_v20 = vadd.f32 %v480_v16, %v1153_v61  ;;  %v602_v21 = vsel %vm117_vm0, %v600_v45, %v601_v6 }
 0x13b   :  { %v603_v22 = vrot.slane %v1230_v56, 1  ;;  %v645_v25 = vrot.slane %v1230_v56, 2  ;;  %v567_v26 = vadd.f32 %v1179_v12, %v543_v13  ;;  %v521_v27 = vadd.f32 %v968_v15, %v1159_v63 }
 0x13c   :  { %v605_v58 = vrot.slane %v1235_v18, 1  ;;  %v568_v29 = vadd.f32 %v1183_v14, %v544_v19  ;;  %v522_v30 = vadd.f32 %v969_v20, %v1167_v4  ;;  %v484_v32 = vpop.f32.mrb[10].mxu0  ;;  %v630_v34 = vmax.f32 %v1198_v33, %v602_v21 }
 0x13d   :  { %v1248_v61 = vmax.f32 %v567_v26, 0.0  ;;  %v545_v35 = vmul.f32 %v1172_v7, %v521_v27  ;;  %v970_v37 = vadd.f32 %v484_v32, %v1161_v1  ;;  %v486_v38 = vpop.f32.mrb[11].mxu0  ;;  %v644_v31 = vsel %vm370_vm1, %v642_v53, %v643_v11 }
 0x13e   :  { %v580_v42 = vmax.f32 %v568_v29, 0.0  ;;  %v546_v43 = vmul.f32 %v1175_v10, %v522_v30  ;;  %v971_v44 = vadd.f32 %v486_v38, %v1169_v5  ;;  %v606_v45 = vsel %vm117_vm0, %v601_v6, %v605_v58 }
 0x13f   :  { %v607_v47 = vrot.slane %v1248_v61, 1  ;;  %v649_v33 = vrot.slane %v1248_v61, 2  ;;  %v569_v48 = vadd.f32 %v1179_v12, %v545_v35  ;;  %v523_v49 = vadd.f32 %v970_v37, %v1159_v63 }
 0x140   :  { %v609_v51 = vrot.slane %v580_v42, 1  ;;  %v570_v1 = vadd.f32 %v1183_v14, %v546_v43  ;;  %v524_v52 = vadd.f32 %v971_v44, %v1167_v4  ;;  %v632_v53 = vmax.f32 %v1218_v50, %v606_v45 }
 0x141   :  { %v581_v2 = vmax.f32 %v569_v48, 0.0  ;;  %v547_v5 = vmul.f32 %v1172_v7, %v523_v49  ;;  %v647_v3 = vrot.slane %v1235_v18, 2  ;;  %v672_v6 = vmax.f32 %v630_v34, %v644_v31 }
 0x142   :  { %v582_v55 = vmax.f32 %v570_v1, 0.0  ;;  %v548_v8 = vmul.f32 %v1175_v10, %v524_v52  ;;  %v604_v63 = vsel %vm117_vm0, %v598_v59, %v603_v22  ;;  %v629_v9 = vmax.f32 %v1195_v28, %v599_v17 }
 0x143   :  { %v611_v13 = vrot.slane %v581_v2, 1  ;;  %v653_v15 = vrot.slane %v581_v2, 2  ;;  %v571_v4 = vadd.f32 %v1179_v12, %v547_v5  ;;  %v648_v50 = vsel %vm370_vm1, %v643_v11, %v647_v3 }
 0x144   :  { %v613_v16 = vrot.slane %v582_v55, 1  ;;  %v572_v7 = vadd.f32 %v1183_v14, %v548_v8  ;;  %v674_v19 = vmax.f32 %v632_v53, %v648_v50  ;;  %v631_v20 = vmax.f32 %v1215_v46, %v604_v63  ;;  %v820_v8 = vld [vmem:[%s1353_s6] sm:$0x3] }
 0x145   :  { %v583_v21 = vmax.f32 %v571_v4, 0.0  ;;  %v641_v10 = vsel %vm370_vm1, %v639_v41, %v640_v62  ;;  %v646_v59 = vsel %vm370_vm1, %v640_v62, %v645_v25  ;;  %v610_v17 = vsel %vm117_vm0, %v605_v58, %v609_v51 }
 0x146   :  { %v584_v12 = vmax.f32 %v572_v7, 0.0  ;;  %v952_v11 = vpack.c.bf16 %v674_v19, %v672_v6  ;;  %v671_v14 = vmax.f32 %v629_v9, %v641_v10  ;;  %v673_v26 = vmax.f32 %v631_v20, %v646_v59 }
 0x147   :  { %v615_v27 = vrot.slane %v583_v21, 1  ;;  %v657_v46 = vrot.slane %v583_v21, 2  ;;  %v614_v29 = vsel %vm117_vm0, %v609_v51, %v613_v16  ;;  %v634_v28 = vmax.f32 %v1235_v18, %v610_v17 }
 0x148   :  { %v617_v41 = vrot.slane %v584_v12, 1  ;;  %v659_v30 = vrot.slane %v584_v12, 2  ;;  %953 = vmatprep.subr.bf16.mxu1 %v952_v11  ;;  %v954_v32 = vpack.c.bf16 %v673_v26, %v671_v14  ;;  %v636_v62 = vmax.f32 %v580_v42, %v614_v29 }
 0x149   :  { %v651_v34 = vrot.slane %v580_v42, 2  ;;  %v655_v58 = vrot.slane %v582_v55, 2  ;;  %v608_v35 = vsel %vm117_vm0, %v603_v22, %v607_v47  ;;  %v612_v37 = vsel %vm117_vm0, %v607_v47, %v611_v13 }
 0x14a   :  { %955 = vmatpush1.bf16.msra.mxu1 %v954_v32  ;;  %v633_v38 = vmax.f32 %v1230_v56, %v608_v35  ;;  %v635_v31 = vmax.f32 %v1248_v61, %v612_v37  ;;  %v650_v18 = vsel %vm370_vm1, %v645_v25, %v649_v33  ;;  %v654_v43 = vsel %vm370_vm1, %v649_v33, %v653_v15 }
 0x14b   :  { %v652_v42 = vsel %vm370_vm1, %v647_v3, %v651_v34  ;;  %v656_v44 = vsel %vm370_vm1, %v651_v34, %v655_v58  ;;  %v618_v45 = vsel %vm117_vm0, %v613_v16, %v617_v41  ;;  %v660_v22 = vsel %vm370_vm1, %v655_v58, %v659_v30 }
 0x14c   :  { %v676_v47 = vmax.f32 %v634_v28, %v652_v42  ;;  %v678_v48 = vmax.f32 %v636_v62, %v656_v44  ;;  %v675_v49 = vmax.f32 %v633_v38, %v650_v18  ;;  %v677_v51 = vmax.f32 %v635_v31, %v654_v43 }
 0x14d   :  { %v638_v1 = vmax.f32 %v582_v55, %v618_v45  ;;  %v616_v61 = vsel %vm117_vm0, %v611_v13, %v615_v27  ;;  %v658_v56 = vsel %vm370_vm1, %v653_v15, %v657_v46  ;;  %v695_v25 = vadd.s32 22, %v687_v39  ;;  %v802_v39 = vld [vmem:[%s1352_s5] sm:$0x3] }
 0x14e   :  { %v956_v33 = vpack.c.bf16 %v678_v48, %v676_v47  ;;  %v958_v52 = vpack.c.bf16 %v677_v51, %v675_v49  ;;  %v637_v53 = vmax.f32 %v581_v2, %v616_v61  ;;  %v851_v6 = vsel %vm696_vm2, 1.0, %v1015_v0 }
 0x14f   :  { %v680_v5 = vmax.f32 %v638_v1, %v660_v22  ;;  %vm697_vm5 = vcmp.eq.s32.totalorder %v1201_v36, %v695_v25  ;;  %v849_v2 = vsel %vm688_vm3, 1.0, %v1015_v0  ;;  %v705_v55 = vrot.slane %v851_v6, 7 }
 0x150   :  { %957 = vmatprep.subr.bf16.mxu1 %v956_v33  ;;  %v679_v3 = vmax.f32 %v637_v53, %v658_v56  ;;  %v852_v23 = vsel %vm697_vm5, 1.0, %v1015_v0  ;;  %v807_v63 = vrot.slane %v802_v39, %v1143_v57  ;;  %v811_v9 = vrot.slane %v802_v39, %v1151_v60 }
 0x151   :  { %959 = vmatpush1.bf16.msra.mxu1 %v958_v52  ;;  %v709_v40 = vsel %vm704_vm7, %v850_v54, %v705_v55  ;;  %v706_v24 = vrot.slane %v852_v23, 7  ;;  %v825_v13 = vrot.slane %v820_v8, %v1143_v57  ;;  %v829_v4 = vrot.slane %v820_v8, %v1151_v60 }
 0x152   :  { %727 = vmatprep.subr.mxu1 %v680_v5 }
 0x153   :  { %v707_v36 = vsel %vm704_vm7, %v705_v55, %v706_v24 }
 0x155   :  { %728 = vmatpush1.msra.mxu1 %v679_v3 }
 0x156   :  { %853 = vmatmul.mubr.msk.f32.vlgmr.msra.gmra.mrb[12].mxu1 %vm710_vm6, %v849_v2 }
 0x157   :  { %789 = vmatprep.mubr.f32.mxu1 %v1015_v0 }
 0x15a   :  { %854 = vmatmul.mubr.msk.f32.gmra.mrb[14].mxu1 %vm710_vm6, %v709_v40 }
 0x15b   :  { %795 = vmatprep.mubr.f32.mxu1 %v1015_v0 }
 0x15e   :  { %855 = vmatmul.mubr.msk.f32.gmra.mrb[16].mxu1 %vm710_vm6, %v707_v36 }
 0x229   :  { %v785_v15 = vpop.f32.mrb[12].mxu1 }
 0x22a   :  { %v814_v0 = vmul.f32 %v807_v63, %v785_v15  ;;  %v787_v50 = vpop.f32.mrb[13].mxu1 }
 0x22b   :  { %v815_v16 = vmul.f32 %v811_v9, %v787_v50 }
 0x22c   :  { %v832_v7 = vadd.f32 %v825_v13, %v814_v0 }
 0x22d   :  { %v833_v19 = vadd.f32 %v829_v4, %v815_v16  ;;  %v791_v20 = vpop.f32.mrb[14].mxu1 }
 0x22e   :  { %838 = vst [vmem:[%s1354_s7] sm:$0xff] %v832_v7  ;;  %v816_v21 = vmul.f32 %v807_v63, %v791_v20  ;;  %v793_v10 = vpop.f32.mrb[15].mxu1 }
 0x22f   :  { %839 = vst [vmem:[%s1354_s7 + $0x8] sm:$0xff] %v833_v19  ;;  %v817_v57 = vmul.f32 %v811_v9, %v793_v10 }
 0x230   :  { %v834_v59 = vadd.f32 %v825_v13, %v816_v21 }
 0x231   :  { %v835_v17 = vadd.f32 %v829_v4, %v817_v57  ;;  %v797_v60 = vpop.f32.mrb[16].mxu1 }
 0x232   :  { %840 = vst [vmem:[%s1354_s7 + $0x10] sm:$0xff] %v834_v59  ;;  %v818_v12 = vmul.f32 %v807_v63, %v797_v60  ;;  %v799_v11 = vpop.f32.mrb[17].mxu1 }
 0x233   :  { %841 = vst [vmem:[%s1354_s7 + $0x18] sm:$0xff] %v835_v17  ;;  %v819_v14 = vmul.f32 %v811_v9, %v799_v11 }
 0x234   :  { %v836_v26 = vadd.f32 %v825_v13, %v818_v12 }
 0x235   :  { %v837_v27 = vadd.f32 %v829_v4, %v819_v14 }
 0x236   :  { %842 = vst [vmem:[%s1354_s7 + $0x20] sm:$0x3] %v836_v26 }
 0x237   :  { %843 = vst [vmem:[%s1354_s7 + $0x28] sm:$0x3] %v837_v27 }
 0x238   :  { %848 = vsyncpa [#allocation3], 1 }

// kernel: conformer_forward.7
= control target key start
LH: loop header
LB: loop body
LE: loop exit
PB: predicated region body
PF: predicated region fallthrough
CT: control target
= control target key end

     0   :  { %12 = vsyncpa [#allocation3], 0  ;;  %s1359_s24 = smov [#allocation2]   ;;  %s1719_s0 = inlined_call_operand.vmem [shape: f32[96,64], index: 0, kind: input, shape index: {}]   ;;  %s1720_s1 = inlined_call_operand.hbm [shape: f32[3,64,128], index: 1, kind: input, shape index: {}]   ;;  %s1721_s2 = inlined_call_operand.vmem [shape: f32[1,128], index: 2, kind: input, shape index: {}]   ;;  %s1722_s3 = inlined_call_operand.vmem [shape: f32[1,128], index: 3, kind: input, shape index: {}]   ;;  %s1723_s4 = inlined_call_operand.vmem [shape: f32[1,128], index: 4, kind: input, shape index: {}]   ;;  %s1724_s5 = inlined_call_operand.vmem [shape: f32[1,128], index: 5, kind: input, shape index: {}]   ;;  %s1725_s6 = inlined_call_operand.vmem [shape: f32[1,128], index: 6, kind: input, shape index: {}]   ;;  %s1726_s7 = inlined_call_operand.vmem [shape: f32[44,128], index: 7, kind: output, shape index: {}]  }
   0x1   :  { %s20_s25 = sshll.u32 %s1359_s24, 4  ;;  %s1335_s28 = scalar_lea.hbm %s1720_s1, 3072  ;;  %s21_s25 = int_to_ptr.vmem [resolvable:$true] %s20_s25 }
   0x2   :  { %p1336_p0 = scmp.ne.s32.totalorder %s1720_s1, %s1335_s28  ;;  %p1339_p1 = scmp.lt.u32.totalorder %s1335_s28, %s1720_s1 }
   0x4   :  { %p1341_p2 = pnand %p1339_p1, %p1336_p0 }
   0x6   :  { %1344 = shalt.err (!%p1341_p2)
}
   0x7   :  { %s1345_s10 = scalar_lea.vmem %s21_s25, 3072  ;;  %p1350_p4 = scmp.lt.s32.totalorder %s21_s25, %s21_s25 }
   0x8   :  { %p1346_p3 = scmp.ne.s32.totalorder %s21_s25, %s1345_s10  ;;  %p1351_p5 = scmp.lt.s32.totalorder %s1345_s10, %s1345_s10 }
   0xa   :  { %p1352_p6 = por %p1351_p5, %p1350_p4 }
   0xc   :  { %p1353_p7 = pnand %p1352_p6, %p1346_p3 }
   0xe   :  { %1356 = shalt.err (!%p1353_p7)
}
   0xf   :  { %s1360_s11 = smov 128   ;;  %s1361_s12 = smov 8  }
  0x10   :  { %26 = dma.hbm_to_vmem [thread:$0]  %s1720_s1, 3072, %s21_s25, [#allocation3], %s1360_s11, %s1360_s11, %s1361_s12  }
  0x11   :  { %1357 = dma.done.wait [#allocation3], 3072  }
  0x12   :  { %1358 = vsyncadd [#allocation3], 4294964224  ;;  %v52_v0 = vld [vmem:[#allocation2] sm:$0xff]  ;;  %v53_v1 = vld [vmem:[#allocation2 + $0x8] sm:$0xff]  ;;  %vm105_vm0 = vcmask 523264   ;;  %vm81_vm1 = vcmask 1046528  }
  0x13   :  { %v54_v2 = vld [vmem:[#allocation2 + $0x10] sm:$0xff]  ;;  %v1248_v3 = vpack.c.bf16 %v53_v1, %v52_v0  ;;  %v55_v4 = vld [vmem:[#allocation2 + $0x18] sm:$0xff]  ;;  %v56_v6 = vld [vmem:[#allocation2 + $0x20] sm:$0xff]  ;;  %vm413_vm2 = vcmask 1045504   ;;  %vm813_vm3 = vcmask 752640   ;;  %vm829_vm10 = vcmask 1043456  }
  0x14   :  { %v1252_v5 = vpack.c.bf16 %v55_v4, %v54_v2  ;;  %v57_v7 = vld [vmem:[#allocation2 + $0x28] sm:$0xff]  ;;  %v1419_v8 = vld [vmem:[%s1719_s0] sm:$0xff]  ;;  %v58_v14 = vld [vmem:[#allocation2 + $0x30] sm:$0xff]  ;;  %vm1363_vm11 = vmmov 1  }
  0x15   :  { %1249 = vmatprep.subr.bf16.mxu0 %v1248_v3  ;;  %v82_v9 = vrot.slane %v1419_v8, 1  ;;  %1147 = vmatprep.mubr.msk.f32.mxu0 %vm105_vm0, %v1419_v8  ;;  %v1427_v10 = vld [vmem:[%s1719_s0 + $0x8] sm:$0xff]  ;;  %v1256_v12 = vpack.c.bf16 %v57_v7, %v56_v6  ;;  %v61_v13 = vld [vmem:[#allocation2 + $0x40] sm:$0xff]  ;;  %v59_v15 = vld [vmem:[#allocation2 + $0x38] sm:$0xff]  ;;  %v414_v63 = vrot.slane %v1419_v8, 2 }
  0x16   :  { %1251 = vmatpush3.bf16.msra.mxu0 %v1248_v3  ;;  %v83_v11 = vrot.slane %v1427_v10, 1  ;;  %v62_v16 = vld [vmem:[#allocation2 + $0x48] sm:$0xff]  ;;  %v63_v19 = vld [vmem:[#allocation2 + $0x50] sm:$0xff]  ;;  %v64_v20 = vld [vmem:[#allocation2 + $0x58] sm:$0xff]  ;;  %v1260_v22 = vpack.c.bf16 %v59_v15, %v58_v14  ;;  %v415_v0 = vrot.slane %v1427_v10, 2 }
  0x17   :  { %1253 = vmatprep.subr.bf16.mxu0 %v1252_v5  ;;  %v1232_v18 = vpack.c.bf16 %v62_v16, %v61_v13  ;;  %v1236_v21 = vpack.c.bf16 %v64_v20, %v63_v19  ;;  %v65_v23 = vld [vmem:[#allocation2 + $0x60] sm:$0xff]  ;;  %v66_v24 = vld [vmem:[#allocation2 + $0x68] sm:$0xff]  ;;  %v67_v28 = vld [vmem:[#allocation2 + $0x70] sm:$0xff] }
  0x18   :  { %v84_v17 = vsel %vm81_vm1, %v82_v9, %v83_v11  ;;  %v405_v25 = vld [vmem:[#allocation2 + $0x80] sm:$0xff]  ;;  %v406_v26 = vld [vmem:[#allocation2 + $0x88] sm:$0xff]  ;;  %v1240_v27 = vpack.c.bf16 %v66_v24, %v65_v23  ;;  %v68_v29 = vld [vmem:[#allocation2 + $0x78] sm:$0xff]  ;;  %v416_v9 = vsel %vm413_vm2, %v414_v63, %v415_v0 }
  0x19   :  { %1113 = vmatprep.mubr.msk.f32.mxu1 %vm105_vm0, %v84_v17  ;;  %1233 = vmatprep.subr.bf16.mxu1 %v1232_v18  ;;  %v1264_v30 = vpack.c.bf16 %v406_v26, %v405_v25  ;;  %v407_v31 = vld [vmem:[#allocation2 + $0x90] sm:$0xff]  ;;  %v408_v32 = vld [vmem:[#allocation2 + $0x98] sm:$0xff]  ;;  %v1244_v33 = vpack.c.bf16 %v68_v29, %v67_v28  ;;  %v409_v38 = vld [vmem:[#allocation2 + $0xa0] sm:$0xff] }
  0x1a   :  { %1255 = vmatpush3.bf16.msra.mxu0 %v1252_v5  ;;  %1235 = vmatpush3.bf16.msra.mxu1 %v1232_v18  ;;  %v1435_v34 = vld [vmem:[%s1719_s0 + $0x10] sm:$0xff]  ;;  %v1268_v35 = vpack.c.bf16 %v408_v32, %v407_v31  ;;  %v1441_v37 = vld [vmem:[%s1719_s0 + $0x18] sm:$0xff]  ;;  %v410_v39 = vld [vmem:[#allocation2 + $0xa8] sm:$0xff] }
  0x1b   :  { %1257 = vmatprep.subr.bf16.mxu0 %v1256_v12  ;;  %1237 = vmatprep.subr.bf16.mxu1 %v1236_v21  ;;  %v85_v36 = vrot.slane %v1435_v34, 1  ;;  %v87_v40 = vrot.slane %v1441_v37, 1  ;;  %v1451_v41 = vld [vmem:[%s1719_s0 + $0x20] sm:$0xff]  ;;  %v1272_v42 = vpack.c.bf16 %v410_v39, %v409_v38  ;;  %v1457_v44 = vld [vmem:[%s1719_s0 + $0x28] sm:$0xff]  ;;  %v411_v45 = vld [vmem:[#allocation2 + $0xb0] sm:$0xff]  ;;  %v417_v7 = vrot.slane %v1435_v34, 2 }
  0x1c   :  { %v89_v43 = vrot.slane %v1451_v41, 1  ;;  %v412_v46 = vld [vmem:[#allocation2 + $0xb8] sm:$0xff]  ;;  %v91_v48 = vrot.slane %v1457_v44, 1  ;;  %v1469_v50 = vld [vmem:[%s1719_s0 + $0x30] sm:$0xff]  ;;  %v48_v57 = vld [vmem:[%s1719_s0 + $0x40] sm:$0xff]  ;;  %v419_v8 = vrot.slane %v1441_v37, 2 }
  0x1d   :  { %v86_v47 = vsel %vm81_vm1, %v83_v11, %v85_v36  ;;  %v88_v49 = vsel %vm81_vm1, %v85_v36, %v87_v40  ;;  %v1276_v51 = vpack.c.bf16 %v412_v46, %v411_v45  ;;  %v93_v52 = vrot.slane %v1469_v50, 1  ;;  %v1476_v53 = vld [vmem:[%s1719_s0 + $0x38] sm:$0xff]  ;;  %v49_v59 = vld [vmem:[%s1719_s0 + $0x48] sm:$0xff]  ;;  %v50_v1 = vld [vmem:[%s1719_s0 + $0x50] sm:$0xff] }
  0x1e   :  { %1259 = vmatpush3.bf16.msra.mxu0 %v1256_v12  ;;  %1239 = vmatpush3.bf16.msra.mxu1 %v1236_v21  ;;  %v90_v54 = vsel %vm81_vm1, %v87_v40, %v89_v43  ;;  %v95_v55 = vrot.slane %v1476_v53, 1  ;;  %v92_v56 = vsel %vm81_vm1, %v89_v43, %v91_v48  ;;  %v97_v58 = vrot.slane %v48_v57, 1  ;;  %v51_v3 = vld [vmem:[%s1719_s0 + $0x58] sm:$0xff]  ;;  %vm1301_vm12 = vmpackc.low %vm829_vm10, %vm1363_vm11 }
  0x1f   :  { %1261 = vmatprep.subr.bf16.mxu0 %v1260_v22  ;;  %1241 = vmatprep.subr.bf16.mxu1 %v1240_v27  ;;  %v94_v60 = vsel %vm81_vm1, %v91_v48, %v93_v52  ;;  %v99_v61 = vrot.slane %v49_v59, 1  ;;  %v101_v2 = vrot.slane %v50_v1, 1  ;;  %v103_v5 = vrot.slane %v51_v3, 1 }
  0x20   :  { %v96_v62 = vsel %vm81_vm1, %v93_v52, %v95_v55  ;;  %v98_v4 = vsel %vm81_vm1, %v95_v55, %v97_v58  ;;  %v421_v12 = vrot.slane %v1451_v41, 2  ;;  %v418_v13 = vsel %vm413_vm2, %v415_v0, %v417_v7 }
  0x21   :  { %v100_v6 = vsel %vm81_vm1, %v97_v58, %v99_v61  ;;  %v104_v11 = vsel %vm81_vm1, %v101_v2, %v103_v5  ;;  %v423_v14 = vrot.slane %v1457_v44, 2  ;;  %v420_v15 = vsel %vm413_vm2, %v417_v7, %v419_v8 }
  0x22   :  { %1263 = vmatpush3.bf16.msra.mxu0 %v1260_v22  ;;  %1243 = vmatpush3.bf16.msra.mxu1 %v1240_v27  ;;  %v425_v16 = vrot.slane %v1469_v50, 2  ;;  %v422_v17 = vsel %vm413_vm2, %v419_v8, %v421_v12  ;;  %v427_v18 = vrot.slane %v1476_v53, 2  ;;  %v429_v20 = vrot.slane %v48_v57, 2 }
  0x23   :  { %1265 = vmatprep.subr.bf16.mxu0 %v1264_v30  ;;  %1245 = vmatprep.subr.bf16.mxu1 %v1244_v33  ;;  %v424_v19 = vsel %vm413_vm2, %v421_v12, %v423_v14  ;;  %v431_v22 = vrot.slane %v49_v59, 2  ;;  %v433_v24 = vrot.slane %v50_v1, 2  ;;  %v435_v26 = vrot.slane %v51_v3, 2 }
  0x24   :  { %v426_v21 = vsel %vm413_vm2, %v423_v14, %v425_v16  ;;  %v428_v23 = vsel %vm413_vm2, %v425_v16, %v427_v18  ;;  %v430_v25 = vsel %vm413_vm2, %v427_v18, %v429_v20  ;;  %v1362_v38 = vmov 0.0  }
  0x25   :  { %1148 = vmatmul.mubr.msk.f32.vlgmr.msra.gmra.mrb[0].mxu0 %vm105_vm0, %v1427_v10  ;;  %v102_v10 = vsel %vm81_vm1, %v99_v61, %v101_v2  ;;  %v432_v27 = vsel %vm413_vm2, %v429_v20, %v431_v22  ;;  %v434_v28 = vsel %vm413_vm2, %v431_v22, %v433_v24  ;;  %v436_v29 = vsel %vm413_vm2, %v433_v24, %v435_v26 }
  0x26   :  { %1267 = vmatpush3.bf16.msra.mxu0 %v1264_v30  ;;  %1150 = vmatprep.mubr.msk.f32.mxu0 %vm105_vm0, %v1435_v34  ;;  %v773_v30 = vlaneseq }
  0x27   :  { %1269 = vmatprep.subr.bf16.mxu0 %v1268_v35  ;;  %1247 = vmatpush3.bf16.msra.mxu1 %v1244_v33 }
  0x28   :  { %v774_v31 = vshrl.u32 %v773_v30, 7  ;;  %v778_v32 = vand.u32 127, %v773_v30 }
  0x29   :  { %1151 = vmatmul.mubr.msk.f32.gmra.mrb[2].mxu0 %vm105_vm0, %v1441_v37 }
  0x2a   :  { %1153 = vmatprep.mubr.msk.f32.mxu0 %vm105_vm0, %v1451_v41  ;;  %1271 = vmatpush3.bf16.msra.mxu0 %v1268_v35  ;;  %v779_v33 = vmul.u32 2, %v774_v31  ;;  %v775_v34 = vadd.s32 8, %v774_v31  ;;  %v776_v35 = vadd.s32 16, %v774_v31 }
  0x2b   :  { %1273 = vmatprep.subr.bf16.mxu0 %v1272_v42  ;;  %1114 = vmatmul.mubr.msk.f32.vlgmr.msra.gmra.mrb[0].mxu1 %vm105_vm0, %v86_v47 }
  0x2c   :  { %1116 = vmatprep.mubr.msk.f32.mxu1 %vm105_vm0, %v88_v49  ;;  %vm782_vm4 = vcmp.eq.s32.totalorder %v778_v32, %v779_v33  ;;  %v791_v36 = vadd.s32 48, %v779_v33  ;;  %v780_v37 = vmul.u32 2, %v775_v34  ;;  %v781_v40 = vmul.u32 2, %v776_v35 }
  0x2d   :  { %1154 = vmatmul.mubr.msk.f32.gmra.mrb[4].mxu0 %vm105_vm0, %v1457_v44  ;;  %v1004_v39 = vsel %vm782_vm4, 1.0, %v1362_v38 }
  0x2e   :  { %1156 = vmatprep.mubr.msk.f32.mxu0 %vm105_vm0, %v1469_v50  ;;  %1275 = vmatpush3.bf16.msra.mxu0 %v1272_v42  ;;  %vm783_vm5 = vcmp.eq.s32.totalorder %v778_v32, %v780_v37  ;;  %vm794_vm6 = vcmp.eq.s32.totalorder %v778_v32, %v791_v36  ;;  %v792_v41 = vadd.s32 48, %v780_v37  ;;  %vm784_vm7 = vcmp.eq.s32.totalorder %v778_v32, %v781_v40 }
  0x2f   :  { %1277 = vmatprep.subr.bf16.mxu0 %v1276_v51  ;;  %1117 = vmatmul.mubr.msk.f32.gmra.mrb[2].mxu1 %vm105_vm0, %v90_v54  ;;  %v1551_v42 = vsel %vm783_vm5, 1.0, %v1362_v38  ;;  %v793_v43 = vadd.s32 48, %v781_v40  ;;  %v1007_v44 = vsel %vm794_vm6, 1.0, %v1362_v38  ;;  %v1006_v45 = vsel %vm784_vm7, 1.0, %v1362_v38 }
  0x30   :  { %1119 = vmatprep.mubr.msk.f32.mxu1 %vm105_vm0, %v92_v56  ;;  %v806_v46 = vrot.slane %v1007_v44, 2  ;;  %vm795_vm8 = vcmp.eq.s32.totalorder %v778_v32, %v792_v41 }
  0x31   :  { %1157 = vmatmul.mubr.msk.f32.gmra.mrb[6].mxu0 %vm105_vm0, %v1476_v53  ;;  %v1008_v47 = vsel %vm795_vm8, 1.0, %v1362_v38  ;;  %vm796_vm9 = vcmp.eq.s32.totalorder %v778_v32, %v793_v43 }
  0x32   :  { %1159 = vmatprep.mubr.msk.f32.mxu0 %vm105_vm0, %v48_v57  ;;  %1279 = vmatpush3.bf16.msra.mxu0 %v1276_v51  ;;  %v1554_v48 = vsel %vm413_vm2, %v1006_v45, %v806_v46  ;;  %v807_v49 = vrot.slane %v1008_v47, 2  ;;  %v1556_v50 = vsel %vm796_vm9, 1.0, %v1362_v38 }
  0x33   :  { %1120 = vmatmul.mubr.msk.f32.gmra.mrb[4].mxu1 %vm105_vm0, %v94_v60  ;;  %v809_v51 = vrot.slane %v1556_v50, 2 }
  0x34   :  { %1122 = vmatprep.mubr.msk.f32.mxu1 %vm105_vm0, %v96_v62  ;;  %v1560_v52 = vsel %vm413_vm2, %v806_v46, %v807_v49 }
  0x35   :  { %1160 = vmatmul.mubr.msk.f32.gmra.mrb[8].mxu0 %vm105_vm0, %v49_v59  ;;  %v1565_v53 = vsel %vm413_vm2, %v807_v49, %v809_v51 }
  0x36   :  { %1162 = vmatprep.mubr.msk.f32.mxu0 %vm105_vm0, %v50_v1  ;;  %v1572_v1 = vld [vmem:[%s1721_s2] ss:$0 sm:$0xff] }
  0x37   :  { %1123 = vmatmul.mubr.msk.f32.gmra.mrb[6].mxu1 %vm105_vm0, %v98_v4  ;;  %v1577_v4 = vld [vmem:[%s1722_s3] ss:$0 sm:$0xff] }
  0x38   :  { %1125 = vmatprep.mubr.msk.f32.mxu1 %vm105_vm0, %v100_v6 }
  0x39   :  { %1163 = vmatmul.mubr.msk.f32.gmra.mrb[10].mxu0 %vm105_vm0, %v51_v3 }
  0x3a   :  { %1181 = vmatprep.mubr.msk.f32.mxu0 %vm105_vm0, %v416_v9  ;;  %v1587_v9 = vld [vmem:[%s1723_s4] ss:$0 sm:$0xff] }
  0x3b   :  { %1126 = vmatmul.mubr.msk.f32.gmra.mrb[8].mxu1 %vm105_vm0, %v102_v10 }
  0x3c   :  { %1128 = vmatprep.mubr.msk.f32.mxu1 %vm105_vm0, %v104_v11 }
  0x3d   :  { %1182 = vmatmul.mubr.msk.f32.vlgmr.msra.gmra.mrb[0].mxu0 %vm105_vm0, %v418_v13 }
  0x3e   :  { %1184 = vmatprep.mubr.msk.f32.mxu0 %vm105_vm0, %v420_v15 }
  0x3f   :  { %1129 = vmatmul.mubr.msk.f32.gmra.mrb[10].mxu1 %vm105_vm0, %v103_v5 }
  0x40   :  { %1223 = vmatprep.mubr.msk.f32.mxu1 %vm813_vm3, %v1004_v39 }
  0x41   :  { %1185 = vmatmul.mubr.msk.f32.gmra.mrb[2].mxu0 %vm105_vm0, %v422_v17 }
  0x42   :  { %1187 = vmatprep.mubr.msk.f32.mxu0 %vm105_vm0, %v424_v19 }
  0x45   :  { %1188 = vmatmul.mubr.msk.f32.gmra.mrb[4].mxu0 %vm105_vm0, %v426_v21 }
  0x46   :  { %1190 = vmatprep.mubr.msk.f32.mxu0 %vm105_vm0, %v428_v23 }
  0x49   :  { %1191 = vmatmul.mubr.msk.f32.gmra.mrb[6].mxu0 %vm105_vm0, %v430_v25 }
  0x4a   :  { %1193 = vmatprep.mubr.msk.f32.mxu0 %vm105_vm0, %v432_v27 }
  0x4d   :  { %1194 = vmatmul.mubr.msk.f32.gmra.mrb[8].mxu0 %vm105_vm0, %v434_v28 }
  0x4e   :  { %1196 = vmatprep.mubr.msk.f32.mxu0 %vm105_vm0, %v436_v29 }
  0x51   :  { %1197 = vmatmul.mubr.msk.f32.gmra.mrb[10].mxu0 %vm105_vm0, %v435_v26 }
  0xfe   :  { %v1115_v54 = vpop.f32.mrb[0].mxu1 }
  0xff   :  { %v196_v55 = vpop.f32.mrb[1].mxu1 }
 0x102   :  { %v1118_v56 = vpop.f32.mrb[2].mxu1 }
 0x103   :  { %v206_v57 = vpop.f32.mrb[3].mxu1 }
 0x106   :  { %v1121_v58 = vpop.f32.mrb[4].mxu1 }
 0x107   :  { %v216_v59 = vpop.f32.mrb[5].mxu1 }
 0x10a   :  { %v1124_v60 = vpop.f32.mrb[6].mxu1 }
 0x10b   :  { %v226_v61 = vpop.f32.mrb[7].mxu1 }
 0x10e   :  { %v1127_v62 = vpop.f32.mrb[8].mxu1 }
 0x10f   :  { %v1567_v63 = vpop.f32.mrb[9].mxu1 }
 0x110   :  { %v1183_v0 = vpop.f32.mrb[0].mxu0 }
 0x111   :  { %v1306_v2 = vadd.f32 %v1183_v0, %v1115_v54  ;;  %v527_v3 = vpop.f32.mrb[1].mxu0 }
 0x112   :  { %v1307_v5 = vadd.f32 %v527_v3, %v196_v55  ;;  %v1579_v6 = vpop.f32.mrb[10].mxu1 }
 0x113   :  { %v606_v7 = vadd.f32 %v1306_v2, %v1572_v1  ;;  %v1582_v8 = vpop.f32.mrb[11].mxu1 }
 0x114   :  { %v605_v10 = vadd.f32 %v1307_v5, %v1572_v1  ;;  %v1186_v11 = vpop.f32.mrb[2].mxu0 }
 0x115   :  { %v625_v12 = vmul.f32 %v1577_v4, %v606_v7  ;;  %v1308_v13 = vadd.f32 %v1186_v11, %v1118_v56  ;;  %v537_v14 = vpop.f32.mrb[3].mxu0 }
 0x116   :  { %v624_v15 = vmul.f32 %v1577_v4, %v605_v10  ;;  %v1309_v16 = vadd.f32 %v537_v14, %v206_v57 }
 0x117   :  { %v644_v17 = vadd.f32 %v1587_v9, %v625_v12  ;;  %v608_v18 = vadd.f32 %v1308_v13, %v1572_v1 }
 0x118   :  { %v643_v19 = vadd.f32 %v1587_v9, %v624_v15  ;;  %v607_v20 = vadd.f32 %v1309_v16, %v1572_v1  ;;  %v1189_v21 = vpop.f32.mrb[4].mxu0 }
 0x119   :  { %v656_v22 = vmax.f32 %v644_v17, 0.0  ;;  %v627_v23 = vmul.f32 %v1577_v4, %v608_v18  ;;  %v1310_v24 = vadd.f32 %v1189_v21, %v1121_v58  ;;  %v547_v25 = vpop.f32.mrb[5].mxu0 }
 0x11a   :  { %v655_v26 = vmax.f32 %v643_v19, 0.0  ;;  %v626_v27 = vmul.f32 %v1577_v4, %v607_v20  ;;  %v1311_v28 = vadd.f32 %v547_v25, %v216_v59 }
 0x11b   :  { %v680_v29 = vrot.slane %v656_v22, 1  ;;  %v646_v30 = vadd.f32 %v1587_v9, %v627_v23  ;;  %v610_v31 = vadd.f32 %v1310_v24, %v1572_v1  ;;  %v727_v32 = vrot.slane %v656_v22, 2 }
 0x11c   :  { %v679_v33 = vrot.slane %v655_v26, 1  ;;  %v645_v34 = vadd.f32 %v1587_v9, %v626_v27  ;;  %v609_v35 = vadd.f32 %v1311_v28, %v1572_v1  ;;  %v1192_v36 = vpop.f32.mrb[6].mxu0  ;;  %v726_v37 = vrot.slane %v655_v26, 2 }
 0x11d   :  { %v1602_v38 = vmax.f32 %v646_v30, 0.0  ;;  %v629_v39 = vmul.f32 %v1577_v4, %v610_v31  ;;  %v1312_v40 = vadd.f32 %v1192_v36, %v1124_v60  ;;  %v557_v41 = vpop.f32.mrb[7].mxu0 }
 0x11e   :  { %v1605_v43 = vmax.f32 %v645_v34, 0.0  ;;  %v628_v44 = vmul.f32 %v1577_v4, %v609_v35  ;;  %v1313_v45 = vadd.f32 %v557_v41, %v226_v61  ;;  %v681_v46 = vsel %vm81_vm1, %v679_v33, %v680_v29 }
 0x11f   :  { %v684_v47 = vrot.slane %v1602_v38, 1  ;;  %v648_v49 = vadd.f32 %v1587_v9, %v629_v39  ;;  %v612_v54 = vadd.f32 %v1312_v40, %v1572_v1  ;;  %v714_v55 = vmax.f32 %v655_v26, %v681_v46 }
 0x120   :  { %v682_v56 = vrot.slane %v1605_v43, 1  ;;  %v647_v57 = vadd.f32 %v1587_v9, %v628_v44  ;;  %v611_v58 = vadd.f32 %v1313_v45, %v1572_v1  ;;  %v1195_v59 = vpop.f32.mrb[8].mxu0  ;;  %v728_v60 = vsel %vm413_vm2, %v726_v37, %v727_v32 }
 0x121   :  { %v1616_v0 = vmax.f32 %v648_v49, 0.0  ;;  %v631_v61 = vmul.f32 %v1577_v4, %v612_v54  ;;  %v1314_v2 = vadd.f32 %v1195_v59, %v1127_v62  ;;  %v567_v3 = vpop.f32.mrb[9].mxu0  ;;  %v729_v5 = vrot.slane %v1605_v43, 2 }
 0x122   :  { %v1620_v7 = vmax.f32 %v647_v57, 0.0  ;;  %v630_v10 = vmul.f32 %v1577_v4, %v611_v58  ;;  %v1315_v11 = vadd.f32 %v567_v3, %v1567_v63  ;;  %v683_v12 = vsel %vm81_vm1, %v680_v29, %v682_v56 }
 0x123   :  { %v688_v13 = vrot.slane %v1616_v0, 1  ;;  %v650_v14 = vadd.f32 %v1587_v9, %v631_v61  ;;  %v614_v15 = vadd.f32 %v1314_v2, %v1572_v1  ;;  %v715_v16 = vmax.f32 %v656_v22, %v683_v12 }
 0x124   :  { %v686_v62 = vrot.slane %v1620_v7, 1  ;;  %v649_v17 = vadd.f32 %v1587_v9, %v630_v10  ;;  %v613_v18 = vadd.f32 %v1315_v11, %v1572_v1  ;;  %v1198_v19 = vpop.f32.mrb[10].mxu0  ;;  %v730_v20 = vsel %vm413_vm2, %v727_v32, %v729_v5 }
 0x125   :  { %v1632_v21 = vmax.f32 %v650_v14, 0.0  ;;  %v633_v63 = vmul.f32 %v1577_v4, %v614_v15  ;;  %v1316_v23 = vadd.f32 %v1198_v19, %v1579_v6  ;;  %v577_v24 = vpop.f32.mrb[11].mxu0  ;;  %v761_v25 = vmax.f32 %v714_v55, %v728_v60 }
 0x126   :  { %v1636_v26 = vmax.f32 %v649_v17, 0.0  ;;  %v632_v22 = vmul.f32 %v1577_v4, %v613_v18  ;;  %v1317_v27 = vadd.f32 %v577_v24, %v1582_v8  ;;  %v762_v28 = vmax.f32 %v715_v16, %v730_v20 }
 0x127   :  { %v692_v29 = vrot.slane %v1632_v21, 1  ;;  %v652_v30 = vadd.f32 %v1587_v9, %v633_v63  ;;  %v616_v31 = vadd.f32 %v1316_v23, %v1572_v1  ;;  %v685_v32 = vsel %vm81_vm1, %v682_v56, %v684_v47 }
 0x128   :  { %v690_v33 = vrot.slane %v1636_v26, 1  ;;  %v651_v6 = vadd.f32 %v1587_v9, %v632_v22  ;;  %v615_v34 = vadd.f32 %v1317_v27, %v1572_v1  ;;  %v1280_v35 = vpack.c.bf16 %v762_v28, %v761_v25 }
 0x129   :  { %v1647_v36 = vmax.f32 %v652_v30, 0.0  ;;  %v635_v8 = vmul.f32 %v1577_v4, %v616_v31  ;;  %v687_v37 = vsel %vm81_vm1, %v684_v47, %v686_v62  ;;  %v716_v39 = vmax.f32 %v1605_v43, %v685_v32 }
 0x12a   :  { %v663_v40 = vmax.f32 %v651_v6, 0.0  ;;  %v634_v41 = vmul.f32 %v1577_v4, %v615_v34  ;;  %1281 = vmatprep.subr.bf16.mxu1 %v1280_v35  ;;  %v717_v44 = vmax.f32 %v1602_v38, %v687_v37  ;;  %v731_v45 = vrot.slane %v1602_v38, 2 }
 0x12b   :  { %v696_v46 = vrot.slane %v1647_v36, 1  ;;  %v654_v1 = vadd.f32 %v1587_v9, %v635_v8  ;;  %1283 = vmatpush3.bf16.msra.mxu1 %v1280_v35  ;;  %v733_v49 = vrot.slane %v1620_v7, 2  ;;  %v689_v54 = vsel %vm81_vm1, %v686_v62, %v688_v13 }
 0x12c   :  { %v694_v47 = vrot.slane %v663_v40, 1  ;;  %v653_v43 = vadd.f32 %v1587_v9, %v634_v41  ;;  %v732_v55 = vsel %vm413_vm2, %v729_v5, %v731_v45  ;;  %v691_v4 = vsel %vm81_vm1, %v688_v13, %v690_v33  ;;  %v1017_v41 = vld [vmem:[%s1724_s5] ss:$0 sm:$0xff] }
 0x12d   :  { %v666_v56 = vmax.f32 %v654_v1, 0.0  ;;  %v734_v57 = vsel %vm413_vm2, %v731_v45, %v733_v49  ;;  %v763_v38 = vmax.f32 %v716_v39, %v732_v55  ;;  %v718_v58 = vmax.f32 %v1620_v7, %v689_v54 }
 0x12e   :  { %v665_v59 = vmax.f32 %v653_v43, 0.0  ;;  %v764_v60 = vmax.f32 %v717_v44, %v734_v57  ;;  %v719_v61 = vmax.f32 %v1616_v0, %v691_v4  ;;  %v735_v2 = vrot.slane %v1616_v0, 2 }
 0x12f   :  { %v700_v3 = vrot.slane %v666_v56, 1  ;;  %v737_v10 = vrot.slane %v1636_v26, 2  ;;  %v693_v9 = vsel %vm81_vm1, %v690_v33, %v692_v29  ;;  %v695_v5 = vsel %vm81_vm1, %v692_v29, %v694_v47 }
 0x130   :  { %v698_v11 = vrot.slane %v665_v59, 1  ;;  %v1284_v12 = vpack.c.bf16 %v764_v60, %v763_v38  ;;  %v736_v13 = vsel %vm413_vm2, %v733_v49, %v735_v2  ;;  %v720_v14 = vmax.f32 %v1636_v26, %v693_v9 }
 0x131   :  { %v738_v7 = vsel %vm413_vm2, %v735_v2, %v737_v10  ;;  %v765_v15 = vmax.f32 %v718_v58, %v736_v13  ;;  %v721_v16 = vmax.f32 %v1632_v21, %v695_v5  ;;  %v739_v0 = vrot.slane %v1632_v21, 2 }
 0x132   :  { %1285 = vmatprep.subr.bf16.mxu1 %v1284_v12  ;;  %v766_v62 = vmax.f32 %v719_v61, %v738_v7  ;;  %v741_v17 = vrot.slane %v663_v40, 2  ;;  %v697_v18 = vsel %vm81_vm1, %v694_v47, %v696_v46  ;;  %v699_v19 = vsel %vm81_vm1, %v696_v46, %v698_v11 }
 0x133   :  { %1287 = vmatpush3.bf16.msra.mxu1 %v1284_v12  ;;  %v740_v20 = vsel %vm413_vm2, %v737_v10, %v739_v0  ;;  %v722_v63 = vmax.f32 %v663_v40, %v697_v18  ;;  %v723_v23 = vmax.f32 %v1647_v36, %v699_v19  ;;  %v743_v24 = vrot.slane %v1647_v36, 2 }
 0x134   :  { %v1288_v25 = vpack.c.bf16 %v766_v62, %v765_v15  ;;  %v742_v26 = vsel %vm413_vm2, %v739_v0, %v741_v17  ;;  %v767_v22 = vmax.f32 %v720_v14, %v740_v20  ;;  %v745_v21 = vrot.slane %v665_v59, 2 }
 0x135   :  { %v768_v27 = vmax.f32 %v721_v16, %v742_v26  ;;  %v744_v28 = vsel %vm413_vm2, %v741_v17, %v743_v24  ;;  %v701_v29 = vsel %vm81_vm1, %v698_v11, %v700_v3  ;;  %v725_v30 = vmax.f32 %v666_v56, %v700_v3 }
 0x136   :  { %1289 = vmatprep.subr.bf16.mxu1 %v1288_v25  ;;  %v746_v31 = vsel %vm413_vm2, %v743_v24, %v745_v21  ;;  %v769_v32 = vmax.f32 %v722_v63, %v744_v28  ;;  %v724_v33 = vmax.f32 %v665_v59, %v701_v29  ;;  %v747_v6 = vrot.slane %v666_v56, 2 }
 0x137   :  { %1291 = vmatpush3.bf16.msra.mxu1 %v1288_v25  ;;  %v1292_v34 = vpack.c.bf16 %v768_v27, %v767_v22  ;;  %v770_v35 = vmax.f32 %v723_v23, %v746_v31 }
 0x138   :  { %v748_v36 = vsel %vm413_vm2, %v745_v21, %v747_v6  ;;  %v772_v39 = vmax.f32 %v725_v30, %v747_v6 }
 0x139   :  { %1293 = vmatprep.subr.bf16.mxu1 %v1292_v34  ;;  %v1296_v8 = vpack.c.bf16 %v770_v35, %v769_v32  ;;  %v771_v37 = vmax.f32 %v724_v33, %v748_v36 }
 0x13b   :  { %1295 = vmatpush3.bf16.msra.mxu1 %v1292_v34  ;;  %v1300_v40 = vpack.c.bf16 %v772_v39, %v771_v37 }
 0x13c   :  { %1297 = vmatprep.subr.bf16.mxu1 %v1296_v8 }
 0x13f   :  { %1299 = vmatpush3.bf16.msra.mxu1 %v1296_v8 }
 0x140   :  { %1302 = vmatprep.subr.msk.bf16.mxu1 %vm1301_vm12, %v1300_v40 }
 0x143   :  { %1305 = vmatpush3.bf16.msk.msra.mxu1 %vm1301_vm12, %v1300_v40 }
 0x146   :  { %1224 = vmatmul.mubr.msk.f32.vlgmr.msra.gmra.mrb[12].mxu1 %vm813_vm3, %v1551_v42  ;;  %v1018_v42 = vld [vmem:[%s1725_s6] ss:$0 sm:$0xff] }
 0x147   :  { %1226 = vmatprep.mubr.msk.f32.mxu1 %vm813_vm3, %v1554_v48 }
 0x14a   :  { %1227 = vmatmul.mubr.msk.f32.gmra.mrb[14].mxu1 %vm813_vm3, %v1560_v52 }
 0x14b   :  { %1229 = vmatprep.mubr.msk.f32.mxu1 %vm813_vm3, %v1565_v53 }
 0x14e   :  { %1230 = vmatmul.mubr.msk.f32.gmra.mrb[16].mxu1 %vm813_vm3, %v809_v51 }
 0x219   :  { %v1225_v44 = vpop.f32.mrb[12].mxu1 }
 0x21a   :  { %v936_v48 = vmul.f32 %v1225_v44, %v1017_v41  ;;  %v899_v45 = vpop.f32.mrb[13].mxu1 }
 0x21b   :  { %v935_v46 = vmul.f32 %v1017_v41, %v899_v45 }
 0x21c   :  { %v949_v52 = vadd.f32 %v1018_v42, %v936_v48 }
 0x21d   :  { %v948_v1 = vadd.f32 %v1018_v42, %v935_v46  ;;  %v1228_v49 = vpop.f32.mrb[14].mxu1 }
 0x21e   :  { %955 = vst [vmem:[%s1726_s7 + $0x8] sm:$0xff] %v949_v52  ;;  %v938_v50 = vmul.f32 %v1228_v49, %v1017_v41  ;;  %v909_v51 = vpop.f32.mrb[15].mxu1 }
 0x21f   :  { %954 = vst [vmem:[%s1726_s7] sm:$0xff] %v948_v1  ;;  %v937_v53 = vmul.f32 %v1017_v41, %v909_v51 }
 0x220   :  { %v951_v54 = vadd.f32 %v1018_v42, %v938_v50 }
 0x221   :  { %v950_v47 = vadd.f32 %v1018_v42, %v937_v53  ;;  %v1231_v43 = vpop.f32.mrb[16].mxu1 }
 0x222   :  { %957 = vst [vmem:[%s1726_s7 + $0x18] sm:$0xff] %v951_v54  ;;  %v940_v55 = vmul.f32 %v1231_v43, %v1017_v41  ;;  %v919_v4 = vpop.f32.mrb[17].mxu1 }
 0x223   :  { %956 = vst [vmem:[%s1726_s7 + $0x10] sm:$0xff] %v950_v47  ;;  %v939_v56 = vmul.f32 %v1017_v41, %v919_v4 }
 0x224   :  { %v953_v57 = vadd.f32 %v1018_v42, %v940_v55 }
 0x225   :  { %v952_v38 = vadd.f32 %v1018_v42, %v939_v56 }
 0x226   :  { %959 = vst [vmem:[%s1726_s7 + $0x28] sm:$0xf] %v953_v57 }
 0x227   :  { %958 = vst [vmem:[%s1726_s7 + $0x20] sm:$0xff] %v952_v38 }
 0x228   :  { %964 = vsyncpa [#allocation3], 1 }

// kernel: conformer_forward.9
= control target key start
LH: loop header
LB: loop body
LE: loop exit
PB: predicated region body
PF: predicated region fallthrough
CT: control target
= control target key end

     0   :  { %vm167_vm0 = vcmask 1046528   ;;  %vm401_vm1 = vcmask 1045504   ;;  %vm1055_vm4 = vmmov 1   ;;  %vm596_vm6 = vcmask 1042432   ;;  %s1783_s1 = inlined_call_operand.vmem [shape: f32[3,256,256], index: 1, kind: input, shape index: {}]   ;;  %s1784_s0 = inlined_call_operand.vmem [shape: f32[18,256], index: 0, kind: input, shape index: {}]   ;;  %s1785_s2 = inlined_call_operand.vmem [shape: f32[1,256], index: 2, kind: input, shape index: {}]   ;;  %s1786_s3 = inlined_call_operand.vmem [shape: f32[1,256], index: 3, kind: input, shape index: {}]   ;;  %s1787_s4 = inlined_call_operand.vmem [shape: f32[1,256], index: 4, kind: input, shape index: {}]   ;;  %s1788_s5 = inlined_call_operand.vmem [shape: f32[1,256], index: 5, kind: input, shape index: {}]   ;;  %s1789_s6 = inlined_call_operand.vmem [shape: f32[1,256], index: 6, kind: input, shape index: {}]   ;;  %s1790_s7 = inlined_call_operand.vmem [shape: f32[6,256], index: 7, kind: output, shape index: {}]  }
   0x1   :  { %v33_v0 = vld [vmem:[%s1783_s1 + $0x8] sm:$0xff]  ;;  %v35_v1 = vld [vmem:[%s1783_s1 + $0x18] sm:$0xff]  ;;  %v32_v2 = vld [vmem:[%s1783_s1] sm:$0xff]  ;;  %vm598_vm7 = vcmask 113664  }
   0x2   :  { %v910_v3 = vpack.c.bf16 %v35_v1, %v33_v0  ;;  %v34_v4 = vld [vmem:[%s1783_s1 + $0x10] sm:$0xff]  ;;  %v37_v5 = vld [vmem:[%s1783_s1 + $0x28] sm:$0xff]  ;;  %v39_v6 = vld [vmem:[%s1783_s1 + $0x38] sm:$0xff] }
   0x3   :  { %v912_v7 = vpack.c.bf16 %v34_v4, %v32_v2  ;;  %v914_v8 = vpack.c.bf16 %v39_v6, %v37_v5  ;;  %v36_v9 = vld [vmem:[%s1783_s1 + $0x20] sm:$0xff]  ;;  %v38_v10 = vld [vmem:[%s1783_s1 + $0x30] sm:$0xff]  ;;  %v41_v11 = vld [vmem:[%s1783_s1 + $0x48] sm:$0xff] }
   0x4   :  { %911 = vmatprep.subr.bf16.mxu0 %v910_v3  ;;  %v43_v12 = vld [vmem:[%s1783_s1 + $0x58] sm:$0xff]  ;;  %v916_v13 = vpack.c.bf16 %v38_v10, %v36_v9  ;;  %v40_v15 = vld [vmem:[%s1783_s1 + $0x40] sm:$0xff]  ;;  %v42_v16 = vld [vmem:[%s1783_s1 + $0x50] sm:$0xff] }
   0x5   :  { %913 = vmatpush1.bf16.msra.mxu0 %v912_v7  ;;  %v918_v14 = vpack.c.bf16 %v43_v12, %v41_v11  ;;  %v45_v17 = vld [vmem:[%s1783_s1 + $0x68] sm:$0xff]  ;;  %v47_v18 = vld [vmem:[%s1783_s1 + $0x78] sm:$0xff]  ;;  %v920_v19 = vpack.c.bf16 %v42_v16, %v40_v15  ;;  %v44_v21 = vld [vmem:[%s1783_s1 + $0x60] sm:$0xff] }
   0x6   :  { %915 = vmatprep.subr.bf16.mxu0 %v914_v8  ;;  %v922_v20 = vpack.c.bf16 %v47_v18, %v45_v17  ;;  %v46_v22 = vld [vmem:[%s1783_s1 + $0x70] sm:$0xff]  ;;  %v49_v23 = vld [vmem:[%s1783_s1 + $0x88] sm:$0xff]  ;;  %v51_v24 = vld [vmem:[%s1783_s1 + $0x98] sm:$0xff] }
   0x7   :  { %v924_v25 = vpack.c.bf16 %v46_v22, %v44_v21  ;;  %v926_v26 = vpack.c.bf16 %v51_v24, %v49_v23  ;;  %v48_v27 = vld [vmem:[%s1783_s1 + $0x80] sm:$0xff]  ;;  %v50_v28 = vld [vmem:[%s1783_s1 + $0x90] sm:$0xff]  ;;  %v53_v29 = vld [vmem:[%s1783_s1 + $0xa8] sm:$0xff] }
   0x8   :  { %v55_v30 = vld [vmem:[%s1783_s1 + $0xb8] sm:$0xff]  ;;  %v928_v31 = vpack.c.bf16 %v50_v28, %v48_v27  ;;  %v52_v33 = vld [vmem:[%s1783_s1 + $0xa0] sm:$0xff]  ;;  %v54_v34 = vld [vmem:[%s1783_s1 + $0xb0] sm:$0xff] }
   0x9   :  { %917 = vmatpush1.bf16.msra.mxu0 %v916_v13  ;;  %v930_v32 = vpack.c.bf16 %v55_v30, %v53_v29  ;;  %v57_v35 = vld [vmem:[%s1783_s1 + $0xc8] sm:$0xff]  ;;  %v59_v36 = vld [vmem:[%s1783_s1 + $0xd8] sm:$0xff]  ;;  %v932_v37 = vpack.c.bf16 %v54_v34, %v52_v33  ;;  %v56_v38 = vld [vmem:[%s1783_s1 + $0xc0] sm:$0xff] }
   0xa   :  { %919 = vmatprep.subr.bf16.mxu0 %v918_v14  ;;  %v58_v39 = vld [vmem:[%s1783_s1 + $0xd0] sm:$0xff]  ;;  %v61_v40 = vld [vmem:[%s1783_s1 + $0xe8] sm:$0xff]  ;;  %v934_v41 = vpack.c.bf16 %v59_v36, %v57_v35  ;;  %v63_v42 = vld [vmem:[%s1783_s1 + $0xf8] sm:$0xff] }
   0xb   :  { %v714_v43 = vld [vmem:[%s1783_s1 + $0x208] sm:$0xff]  ;;  %v716_v44 = vld [vmem:[%s1783_s1 + $0x218] sm:$0xff]  ;;  %v713_v46 = vld [vmem:[%s1783_s1 + $0x200] sm:$0xff]  ;;  %v936_v50 = vpack.c.bf16 %v58_v39, %v56_v38  ;;  %v938_v54 = vpack.c.bf16 %v63_v42, %v61_v40 }
   0xc   :  { %v846_v45 = vpack.c.bf16 %v716_v44, %v714_v43  ;;  %v715_v47 = vld [vmem:[%s1783_s1 + $0x210] sm:$0xff]  ;;  %v1201_v48 = vld [vmem:[%s1784_s0 + $0x8] sm:$0xff]  ;;  %v60_v51 = vld [vmem:[%s1783_s1 + $0xe0] sm:$0xff] }
   0xd   :  { %921 = vmatpush1.bf16.msra.mxu0 %v920_v19  ;;  %v848_v49 = vpack.c.bf16 %v715_v47, %v713_v46  ;;  %323 = vmatprep.mubr.f32.mxu0 %v1201_v48  ;;  %v62_v52 = vld [vmem:[%s1783_s1 + $0xf0] sm:$0xff]  ;;  %v718_v53 = vld [vmem:[%s1783_s1 + $0x228] sm:$0xff]  ;;  %v720_v55 = vld [vmem:[%s1783_s1 + $0x238] sm:$0xff] }
   0xe   :  { %923 = vmatprep.subr.bf16.mxu0 %v922_v20  ;;  %847 = vmatprep.subr.bf16.mxu1 %v846_v45  ;;  %v717_v56 = vld [vmem:[%s1783_s1 + $0x220] sm:$0xff]  ;;  %v719_v57 = vld [vmem:[%s1783_s1 + $0x230] sm:$0xff]  ;;  %v65_v58 = vld [vmem:[%s1783_s1 + $0x108] sm:$0xff]  ;;  %v850_v60 = vpack.c.bf16 %v720_v55, %v718_v53  ;;  %v940_v0 = vpack.c.bf16 %v62_v52, %v60_v51 }
   0xf   :  { %849 = vmatpush1.bf16.msra.mxu1 %v848_v49  ;;  %v67_v59 = vld [vmem:[%s1783_s1 + $0x118] sm:$0xff]  ;;  %v852_v61 = vpack.c.bf16 %v719_v57, %v717_v56  ;;  %v722_v62 = vld [vmem:[%s1783_s1 + $0x248] sm:$0xff]  ;;  %v64_v1 = vld [vmem:[%s1783_s1 + $0x100] sm:$0xff] }
  0x10   :  { %v724_v63 = vld [vmem:[%s1783_s1 + $0x258] sm:$0xff]  ;;  %851 = vmatprep.subr.bf16.mxu1 %v850_v60  ;;  %v721_v3 = vld [vmem:[%s1783_s1 + $0x240] sm:$0xff]  ;;  %v723_v4 = vld [vmem:[%s1783_s1 + $0x250] sm:$0xff]  ;;  %v942_v5 = vpack.c.bf16 %v67_v59, %v65_v58 }
  0x11   :  { %925 = vmatpush1.bf16.msra.mxu0 %v924_v25  ;;  %v854_v2 = vpack.c.bf16 %v724_v63, %v722_v62  ;;  %v66_v6 = vld [vmem:[%s1783_s1 + $0x110] sm:$0xff]  ;;  %v69_v7 = vld [vmem:[%s1783_s1 + $0x128] sm:$0xff]  ;;  %v71_v8 = vld [vmem:[%s1783_s1 + $0x138] sm:$0xff]  ;;  %v856_v9 = vpack.c.bf16 %v723_v4, %v721_v3 }
  0x12   :  { %927 = vmatprep.subr.bf16.mxu0 %v926_v26  ;;  %v726_v10 = vld [vmem:[%s1783_s1 + $0x268] sm:$0xff]  ;;  %v728_v11 = vld [vmem:[%s1783_s1 + $0x278] sm:$0xff]  ;;  %v725_v12 = vld [vmem:[%s1783_s1 + $0x260] sm:$0xff]  ;;  %v944_v15 = vpack.c.bf16 %v66_v6, %v64_v1  ;;  %v946_v18 = vpack.c.bf16 %v71_v8, %v69_v7 }
  0x13   :  { %853 = vmatpush1.bf16.msra.mxu1 %v852_v61  ;;  %v858_v13 = vpack.c.bf16 %v728_v11, %v726_v10  ;;  %v727_v14 = vld [vmem:[%s1783_s1 + $0x270] sm:$0xff]  ;;  %v68_v16 = vld [vmem:[%s1783_s1 + $0x120] sm:$0xff]  ;;  %v730_v17 = vld [vmem:[%s1783_s1 + $0x288] sm:$0xff] }
  0x14   :  { %855 = vmatprep.subr.bf16.mxu1 %v854_v2  ;;  %v70_v19 = vld [vmem:[%s1783_s1 + $0x130] sm:$0xff]  ;;  %v73_v20 = vld [vmem:[%s1783_s1 + $0x148] sm:$0xff]  ;;  %v860_v21 = vpack.c.bf16 %v727_v14, %v725_v12  ;;  %v732_v22 = vld [vmem:[%s1783_s1 + $0x298] sm:$0xff] }
  0x15   :  { %929 = vmatpush1.bf16.msra.mxu0 %v928_v31  ;;  %v75_v23 = vld [vmem:[%s1783_s1 + $0x158] sm:$0xff]  ;;  %v862_v24 = vpack.c.bf16 %v732_v22, %v730_v17  ;;  %v729_v25 = vld [vmem:[%s1783_s1 + $0x280] sm:$0xff]  ;;  %v731_v26 = vld [vmem:[%s1783_s1 + $0x290] sm:$0xff]  ;;  %v948_v29 = vpack.c.bf16 %v70_v19, %v68_v16 }
  0x16   :  { %931 = vmatprep.subr.bf16.mxu0 %v930_v32  ;;  %v734_v27 = vld [vmem:[%s1783_s1 + $0x2a8] sm:$0xff]  ;;  %v736_v28 = vld [vmem:[%s1783_s1 + $0x2b8] sm:$0xff]  ;;  %v950_v30 = vpack.c.bf16 %v75_v23, %v73_v20  ;;  %v72_v31 = vld [vmem:[%s1783_s1 + $0x140] sm:$0xff]  ;;  %v864_v34 = vpack.c.bf16 %v731_v26, %v729_v25 }
  0x17   :  { %857 = vmatpush1.bf16.msra.mxu1 %v856_v9  ;;  %v74_v32 = vld [vmem:[%s1783_s1 + $0x150] sm:$0xff]  ;;  %v77_v33 = vld [vmem:[%s1783_s1 + $0x168] sm:$0xff]  ;;  %v79_v35 = vld [vmem:[%s1783_s1 + $0x178] sm:$0xff]  ;;  %v866_v36 = vpack.c.bf16 %v736_v28, %v734_v27 }
  0x18   :  { %859 = vmatprep.subr.bf16.mxu1 %v858_v13  ;;  %v735_v38 = vld [vmem:[%s1783_s1 + $0x2b0] sm:$0xff]  ;;  %v738_v39 = vld [vmem:[%s1783_s1 + $0x2c8] sm:$0xff]  ;;  %v740_v40 = vld [vmem:[%s1783_s1 + $0x2d8] sm:$0xff]  ;;  %v954_v42 = vpack.c.bf16 %v79_v35, %v77_v33 }
  0x19   :  { %933 = vmatpush1.bf16.msra.mxu0 %v932_v37  ;;  %v733_v37 = vld [vmem:[%s1783_s1 + $0x2a0] sm:$0xff]  ;;  %v78_v44 = vld [vmem:[%s1783_s1 + $0x170] sm:$0xff]  ;;  %v81_v45 = vld [vmem:[%s1783_s1 + $0x188] sm:$0xff]  ;;  %v870_v49 = vpack.c.bf16 %v740_v40, %v738_v39  ;;  %v171_v40 = vrot.slane %v1201_v48, 1 }
  0x1a   :  { %935 = vmatprep.subr.bf16.mxu0 %v934_v41  ;;  %v952_v41 = vpack.c.bf16 %v74_v32, %v72_v31  ;;  %v76_v43 = vld [vmem:[%s1783_s1 + $0x160] sm:$0xff]  ;;  %v868_v46 = vpack.c.bf16 %v735_v38, %v733_v37  ;;  %v83_v47 = vld [vmem:[%s1783_s1 + $0x198] sm:$0xff]  ;;  %v739_v51 = vld [vmem:[%s1783_s1 + $0x2d0] sm:$0xff] }
  0x1b   :  { %861 = vmatpush1.bf16.msra.mxu1 %v860_v21  ;;  %v742_v52 = vld [vmem:[%s1783_s1 + $0x2e8] sm:$0xff]  ;;  %v744_v53 = vld [vmem:[%s1783_s1 + $0x2f8] sm:$0xff]  ;;  %v958_v55 = vpack.c.bf16 %v83_v47, %v81_v45  ;;  %v80_v56 = vld [vmem:[%s1783_s1 + $0x180] sm:$0xff] }
  0x1c   :  { %863 = vmatprep.subr.bf16.mxu1 %v862_v24  ;;  %v82_v57 = vld [vmem:[%s1783_s1 + $0x190] sm:$0xff]  ;;  %v85_v58 = vld [vmem:[%s1783_s1 + $0x1a8] sm:$0xff]  ;;  %v87_v60 = vld [vmem:[%s1783_s1 + $0x1b8] sm:$0xff]  ;;  %v874_v61 = vpack.c.bf16 %v744_v53, %v742_v52 }
  0x1d   :  { %937 = vmatpush1.bf16.msra.mxu0 %v936_v50  ;;  %v737_v50 = vld [vmem:[%s1783_s1 + $0x2c0] sm:$0xff]  ;;  %v743_v63 = vld [vmem:[%s1783_s1 + $0x2f0] sm:$0xff]  ;;  %v748_v1 = vld [vmem:[%s1783_s1 + $0x318] sm:$0xff]  ;;  %v960_v2 = vpack.c.bf16 %v82_v57, %v80_v56  ;;  %v962_v3 = vpack.c.bf16 %v87_v60, %v85_v58 }
  0x1e   :  { %939 = vmatprep.subr.bf16.mxu0 %v938_v54  ;;  %v956_v54 = vpack.c.bf16 %v78_v44, %v76_v43  ;;  %v872_v59 = vpack.c.bf16 %v739_v51, %v737_v50  ;;  %v741_v62 = vld [vmem:[%s1783_s1 + $0x2e0] sm:$0xff]  ;;  %v89_v6 = vld [vmem:[%s1783_s1 + $0x1c8] sm:$0xff]  ;;  %v91_v8 = vld [vmem:[%s1783_s1 + $0x1d8] sm:$0xff] }
  0x1f   :  { %865 = vmatpush1.bf16.msra.mxu1 %v864_v34  ;;  %v84_v4 = vld [vmem:[%s1783_s1 + $0x1a0] sm:$0xff]  ;;  %v876_v7 = vpack.c.bf16 %v743_v63, %v741_v62  ;;  %v747_v11 = vld [vmem:[%s1783_s1 + $0x310] sm:$0xff]  ;;  %v750_v12 = vld [vmem:[%s1783_s1 + $0x328] sm:$0xff] }
  0x20   :  { %867 = vmatprep.subr.bf16.mxu1 %v866_v36  ;;  %v745_v10 = vld [vmem:[%s1783_s1 + $0x300] sm:$0xff]  ;;  %v752_v13 = vld [vmem:[%s1783_s1 + $0x338] sm:$0xff]  ;;  %v90_v17 = vld [vmem:[%s1783_s1 + $0x1d0] sm:$0xff] }
  0x21   :  { %941 = vmatpush1.bf16.msra.mxu0 %v940_v0  ;;  %v746_v0 = vld [vmem:[%s1783_s1 + $0x308] sm:$0xff]  ;;  %v88_v16 = vld [vmem:[%s1783_s1 + $0x1c0] sm:$0xff]  ;;  %v880_v19 = vpack.c.bf16 %v747_v11, %v745_v10  ;;  %v95_v20 = vld [vmem:[%s1783_s1 + $0x1f8] sm:$0xff]  ;;  %v882_v21 = vpack.c.bf16 %v752_v13, %v750_v12 }
  0x22   :  { %943 = vmatprep.subr.bf16.mxu0 %v942_v5  ;;  %v86_v5 = vld [vmem:[%s1783_s1 + $0x1b0] sm:$0xff]  ;;  %v878_v9 = vpack.c.bf16 %v748_v1, %v746_v0  ;;  %v749_v22 = vld [vmem:[%s1783_s1 + $0x320] sm:$0xff]  ;;  %v754_v24 = vld [vmem:[%s1783_s1 + $0x348] sm:$0xff]  ;;  %v968_v26 = vpack.c.bf16 %v90_v17, %v88_v16 }
  0x23   :  { %869 = vmatpush1.bf16.msra.mxu1 %v868_v46  ;;  %v964_v14 = vpack.c.bf16 %v86_v5, %v84_v4  ;;  %v751_v23 = vld [vmem:[%s1783_s1 + $0x330] sm:$0xff]  ;;  %v756_v25 = vld [vmem:[%s1783_s1 + $0x358] sm:$0xff]  ;;  %v92_v28 = vld [vmem:[%s1783_s1 + $0x1e0] sm:$0xff] }
  0x24   :  { %871 = vmatprep.subr.bf16.mxu1 %v870_v49  ;;  %v884_v31 = vpack.c.bf16 %v751_v23, %v749_v22  ;;  %v780_v32 = vld [vmem:[%s1783_s1 + $0x418] sm:$0xff]  ;;  %v886_v33 = vpack.c.bf16 %v756_v25, %v754_v24  ;;  %v753_v34 = vld [vmem:[%s1783_s1 + $0x340] sm:$0xff]  ;;  %v755_v35 = vld [vmem:[%s1783_s1 + $0x350] sm:$0xff] }
  0x25   :  { %945 = vmatpush1.bf16.msra.mxu0 %v944_v15  ;;  %v966_v15 = vpack.c.bf16 %v91_v8, %v89_v6  ;;  %v758_v36 = vld [vmem:[%s1783_s1 + $0x368] sm:$0xff]  ;;  %v760_v37 = vld [vmem:[%s1783_s1 + $0x378] sm:$0xff]  ;;  %v777_v39 = vld [vmem:[%s1783_s1 + $0x400] sm:$0xff]  ;;  %v888_v45 = vpack.c.bf16 %v755_v35, %v753_v34 }
  0x26   :  { %947 = vmatprep.subr.bf16.mxu0 %v946_v18  ;;  %v93_v18 = vld [vmem:[%s1783_s1 + $0x1e8] sm:$0xff]  ;;  %v784_v44 = vld [vmem:[%s1783_s1 + $0x438] sm:$0xff]  ;;  %v890_v46 = vpack.c.bf16 %v760_v37, %v758_v36  ;;  %v757_v47 = vld [vmem:[%s1783_s1 + $0x360] sm:$0xff] }
  0x27   :  { %873 = vmatpush1.bf16.msra.mxu1 %v872_v59  ;;  %v970_v27 = vpack.c.bf16 %v95_v20, %v93_v18  ;;  %v782_v43 = vld [vmem:[%s1783_s1 + $0x428] sm:$0xff]  ;;  %v759_v49 = vld [vmem:[%s1783_s1 + $0x370] sm:$0xff]  ;;  %v1460_v50 = vld [vmem:[%s1784_s0 + $0x18] sm:$0xff] }
  0x28   :  { %875 = vmatprep.subr.bf16.mxu1 %v874_v61  ;;  %v762_v51 = vld [vmem:[%s1783_s1 + $0x388] sm:$0xff]  ;;  %v764_v52 = vld [vmem:[%s1783_s1 + $0x398] sm:$0xff]  ;;  %v172_v53 = vrot.slane %v1460_v50, 1  ;;  %v978_v57 = vpack.c.bf16 %v784_v44, %v782_v43  ;;  %v781_v58 = vld [vmem:[%s1783_s1 + $0x420] sm:$0xff]  ;;  %v892_v60 = vpack.c.bf16 %v759_v49, %v757_v47  ;;  %v406_v61 = vrot.slane %v1460_v50, 2 }
  0x29   :  { %949 = vmatpush1.bf16.msra.mxu0 %v948_v29  ;;  %v94_v29 = vld [vmem:[%s1783_s1 + $0x1f0] sm:$0xff]  ;;  %v788_v63 = vld [vmem:[%s1783_s1 + $0x458] sm:$0xff]  ;;  %v894_v0 = vpack.c.bf16 %v764_v52, %v762_v51  ;;  %v761_v1 = vld [vmem:[%s1783_s1 + $0x380] sm:$0xff] }
  0x2a   :  { %951 = vmatprep.subr.bf16.mxu0 %v950_v30  ;;  %v778_v30 = vld [vmem:[%s1783_s1 + $0x408] sm:$0xff]  ;;  %v972_v38 = vpack.c.bf16 %v94_v29, %v92_v28  ;;  %v783_v59 = vld [vmem:[%s1783_s1 + $0x430] sm:$0xff]  ;;  %v173_v62 = vsel %vm167_vm0, %v171_v40, %v172_v53  ;;  %v768_v4 = vld [vmem:[%s1783_s1 + $0x3b8] sm:$0xff] }
  0x2b   :  { %877 = vmatpush1.bf16.msra.mxu1 %v876_v7  ;;  %246 = vmatprep.mubr.f32.mxu1 %v173_v62  ;;  %v980_v5 = vpack.c.bf16 %v783_v59, %v781_v58  ;;  %v1508_v6 = vld [vmem:[%s1784_s0 + $0x10] sm:$0xff]  ;;  %v785_v8 = vld [vmem:[%s1783_s1 + $0x440] sm:$0xff]  ;;  %v790_v10 = vld [vmem:[%s1783_s1 + $0x468] sm:$0xff] }
  0x2c   :  { %879 = vmatprep.subr.bf16.mxu1 %v878_v9  ;;  %v787_v9 = vld [vmem:[%s1783_s1 + $0x450] sm:$0xff]  ;;  %v792_v13 = vld [vmem:[%s1783_s1 + $0x478] sm:$0xff]  ;;  %v770_v17 = vld [vmem:[%s1783_s1 + $0x3c8] sm:$0xff]  ;;  %v169_v49 = vrot.slane %v1508_v6, 1 }
  0x2d   :  { %953 = vmatpush1.bf16.msra.mxu0 %v952_v41  ;;  %v974_v41 = vpack.c.bf16 %v780_v32, %v778_v30  ;;  %v767_v16 = vld [vmem:[%s1783_s1 + $0x3b0] sm:$0xff]  ;;  %v772_v18 = vld [vmem:[%s1783_s1 + $0x3d8] sm:$0xff]  ;;  %v986_v20 = vpack.c.bf16 %v792_v13, %v790_v10  ;;  %v794_v23 = vld [vmem:[%s1783_s1 + $0x488] sm:$0xff] }
  0x2e   :  { %955 = vmatprep.subr.bf16.mxu0 %v954_v42  ;;  %v779_v42 = vld [vmem:[%s1783_s1 + $0x410] sm:$0xff]  ;;  %v796_v25 = vld [vmem:[%s1783_s1 + $0x498] sm:$0xff]  ;;  %v774_v29 = vld [vmem:[%s1783_s1 + $0x3e8] sm:$0xff] }
  0x2f   :  { %881 = vmatpush1.bf16.msra.mxu1 %v880_v19  ;;  %v976_v56 = vpack.c.bf16 %v779_v42, %v777_v39  ;;  %v984_v19 = vpack.c.bf16 %v787_v9, %v785_v8  ;;  %v791_v22 = vld [vmem:[%s1783_s1 + $0x470] sm:$0xff]  ;;  %v776_v30 = vld [vmem:[%s1783_s1 + $0x3f8] sm:$0xff]  ;;  %v990_v32 = vpack.c.bf16 %v796_v25, %v794_v23  ;;  %v798_v35 = vld [vmem:[%s1783_s1 + $0x4a8] sm:$0xff] }
  0x30   :  { %883 = vmatprep.subr.bf16.mxu1 %v882_v21  ;;  %v789_v21 = vld [vmem:[%s1783_s1 + $0x460] sm:$0xff]  ;;  %v771_v28 = vld [vmem:[%s1783_s1 + $0x3d0] sm:$0xff]  ;;  %v800_v37 = vld [vmem:[%s1783_s1 + $0x4b8] sm:$0xff] }
  0x31   :  { %957 = vmatpush1.bf16.msra.mxu0 %v956_v54  ;;  %v405_v54 = vrot.slane %v1201_v48, 2  ;;  %v786_v48 = vld [vmem:[%s1783_s1 + $0x448] sm:$0xff]  ;;  %v795_v34 = vld [vmem:[%s1783_s1 + $0x490] sm:$0xff]  ;;  %v773_v39 = vld [vmem:[%s1783_s1 + $0x3e0] sm:$0xff]  ;;  %v994_v44 = vpack.c.bf16 %v800_v37, %v798_v35 }
  0x32   :  { %959 = vmatprep.subr.bf16.mxu0 %v958_v55  ;;  %v1473_v55 = vld [vmem:[%s1784_s0] sm:$0xff]  ;;  %v982_v7 = vpack.c.bf16 %v788_v63, %v786_v48  ;;  %v775_v40 = vld [vmem:[%s1783_s1 + $0x3f0] sm:$0xff]  ;;  %v802_v51 = vld [vmem:[%s1783_s1 + $0x4c8] sm:$0xff] }
  0x33   :  { %885 = vmatpush1.bf16.msra.mxu1 %v884_v31  ;;  %v407_v12 = vsel %vm401_vm1, %v405_v54, %v406_v61  ;;  %v988_v31 = vpack.c.bf16 %v791_v22, %v789_v21  ;;  %v168_v43 = vrot.slane %v1473_v55, 1  ;;  %v908_v47 = vpack.c.bf16 %v775_v40, %v773_v39  ;;  %v804_v52 = vld [vmem:[%s1783_s1 + $0x4d8] sm:$0xff]  ;;  %v801_v59 = vld [vmem:[%s1783_s1 + $0x4c0] sm:$0xff]  ;;  %v803_v48 = vld [vmem:[%s1783_s1 + $0x4d0] sm:$0xff] }
  0x34   :  { %887 = vmatprep.subr.bf16.mxu1 %v886_v33  ;;  %v793_v33 = vld [vmem:[%s1783_s1 + $0x480] sm:$0xff]  ;;  %v998_v58 = vpack.c.bf16 %v804_v52, %v802_v51  ;;  %v806_v63 = vld [vmem:[%s1783_s1 + $0x4e8] sm:$0xff]  ;;  %v812_v8 = vld [vmem:[%s1783_s1 + $0x518] sm:$0xff] }
  0x35   :  { %961 = vmatpush1.bf16.msra.mxu0 %v960_v2  ;;  %v763_v2 = vld [vmem:[%s1783_s1 + $0x390] sm:$0xff]  ;;  %v992_v42 = vpack.c.bf16 %v795_v34, %v793_v33  ;;  %v814_v13 = vld [vmem:[%s1783_s1 + $0x528] sm:$0xff]  ;;  %v817_v23 = vld [vmem:[%s1783_s1 + $0x540] sm:$0xff] }
  0x36   :  { %963 = vmatprep.subr.bf16.mxu0 %v962_v3  ;;  %v766_v3 = vld [vmem:[%s1783_s1 + $0x3a8] sm:$0xff]  ;;  %v896_v11 = vpack.c.bf16 %v763_v2, %v761_v1  ;;  %v1000_v2 = vpack.c.bf16 %v803_v48, %v801_v59  ;;  %v825_v35 = vld [vmem:[%s1783_s1 + $0x580] sm:$0xff]  ;;  %v835_v51 = vld [vmem:[%s1783_s1 + $0x5d0] sm:$0xff] }
  0x37   :  { %889 = vmatpush1.bf16.msra.mxu1 %v888_v45  ;;  %v797_v45 = vld [vmem:[%s1783_s1 + $0x4a0] sm:$0xff]  ;;  %v822_v25 = vld [vmem:[%s1783_s1 + $0x568] sm:$0xff]  ;;  %v839_v48 = vld [vmem:[%s1783_s1 + $0x5f0] sm:$0xff] }
  0x38   :  { %891 = vmatprep.subr.bf16.mxu1 %v890_v46  ;;  %v799_v46 = vld [vmem:[%s1783_s1 + $0x4b0] sm:$0xff]  ;;  %v830_v37 = vld [vmem:[%s1783_s1 + $0x5a8] sm:$0xff]  ;;  %v837_v59 = vld [vmem:[%s1783_s1 + $0x5e0] sm:$0xff] }
  0x39   :  { %965 = vmatpush1.bf16.msra.mxu0 %v964_v14  ;;  %v898_v14 = vpack.c.bf16 %v768_v4, %v766_v3  ;;  %v805_v4 = vld [vmem:[%s1783_s1 + $0x4e0] sm:$0xff]  ;;  %v838_v52 = vld [vmem:[%s1783_s1 + $0x5e8] sm:$0xff]  ;;  %vm1039_vm5 = vmpackc.low %vm401_vm1, %vm1055_vm4 }
  0x3a   :  { %967 = vmatprep.subr.bf16.mxu0 %v966_v15  ;;  %v765_v15 = vld [vmem:[%s1783_s1 + $0x3a0] sm:$0xff] }
  0x3b   :  { %893 = vmatpush1.bf16.msra.mxu1 %v892_v60  ;;  %v900_v24 = vpack.c.bf16 %v767_v16, %v765_v15  ;;  %v170_v60 = vsel %vm167_vm0, %v168_v43, %v169_v49  ;;  %v831_v43 = vld [vmem:[%s1783_s1 + $0x5b0] sm:$0xff] }
  0x3c   :  { %895 = vmatprep.subr.bf16.mxu1 %v894_v0  ;;  %v808_v0 = vld [vmem:[%s1783_s1 + $0x4f8] sm:$0xff] }
  0x3d   :  { %969 = vmatpush1.bf16.msra.mxu0 %v968_v26  ;;  %v902_v26 = vpack.c.bf16 %v772_v18, %v770_v17  ;;  %v1002_v3 = vpack.c.bf16 %v808_v0, %v806_v63  ;;  %v813_v17 = vld [vmem:[%s1783_s1 + $0x520] sm:$0xff]  ;;  %v815_v18 = vld [vmem:[%s1783_s1 + $0x530] sm:$0xff]  ;;  %v1036_v63 = vpack.c.bf16 %v839_v48, %v837_v59 }
  0x3e   :  { %971 = vmatprep.subr.bf16.mxu0 %v970_v27  ;;  %v769_v27 = vld [vmem:[%s1783_s1 + $0x3c0] sm:$0xff]  ;;  %v1012_v21 = vpack.c.bf16 %v815_v18, %v813_v17 }
  0x3f   :  { %897 = vmatpush1.bf16.msra.mxu1 %v896_v11  ;;  %v904_v36 = vpack.c.bf16 %v771_v28, %v769_v27  ;;  %v809_v11 = vld [vmem:[%s1783_s1 + $0x500] sm:$0xff] }
  0x40   :  { %899 = vmatprep.subr.bf16.mxu1 %v898_v14  ;;  %v816_v14 = vld [vmem:[%s1783_s1 + $0x538] sm:$0xff] }
  0x41   :  { %973 = vmatpush1.bf16.msra.mxu0 %v972_v38  ;;  %v906_v38 = vpack.c.bf16 %v776_v30, %v774_v29  ;;  %v1010_v16 = vpack.c.bf16 %v816_v14, %v814_v13  ;;  %v821_v29 = vld [vmem:[%s1783_s1 + $0x560] sm:$0xff]  ;;  %v823_v30 = vld [vmem:[%s1783_s1 + $0x570] sm:$0xff] }
  0x42   :  { %975 = vmatprep.subr.bf16.mxu0 %v974_v41  ;;  %v1583_v41 = vld [vmem:[%s1784_s0 + $0x28] sm:$0x3]  ;;  %v1020_v33 = vpack.c.bf16 %v823_v30, %v821_v29 }
  0x43   :  { %901 = vmatpush1.bf16.msra.mxu1 %v900_v24  ;;  %v176_v54 = vrot.slane %v1583_v41, 1  ;;  %v819_v24 = vld [vmem:[%s1783_s1 + $0x550] sm:$0xff]  ;;  %v410_v0 = vrot.slane %v1583_v41, 2 }
  0x44   :  { %324 = vmatmul.mubr.f32.vlgmr.msra.gmra.mrb[0].mxu0 %v1473_v55  ;;  %903 = vmatprep.subr.bf16.mxu1 %v902_v26  ;;  %v824_v26 = vld [vmem:[%s1783_s1 + $0x578] sm:$0xff]  ;;  %v1016_v27 = vpack.c.bf16 %v819_v24, %v817_v23 }
  0x45   :  { %977 = vmatpush1.bf16.msra.mxu0 %v976_v56  ;;  %329 = vmatprep.mubr.f32.mxu0 %v1460_v50  ;;  %v1603_v56 = vld [vmem:[%s1784_s0 + $0x20] sm:$0x3]  ;;  %v177_v1 = vsel %vm167_vm0, %v172_v53, %v176_v54  ;;  %v810_v53 = vld [vmem:[%s1783_s1 + $0x508] sm:$0xff]  ;;  %v1018_v28 = vpack.c.bf16 %v824_v26, %v822_v25  ;;  %v840_v54 = vld [vmem:[%s1783_s1 + $0x5f8] sm:$0xff] }
  0x46   :  { %979 = vmatprep.subr.bf16.mxu0 %v978_v57  ;;  %v996_v57 = vpack.c.bf16 %v799_v46, %v797_v45  ;;  %v174_v62 = vrot.slane %v1603_v56, 1  ;;  %v1006_v10 = vpack.c.bf16 %v812_v8, %v810_v53  ;;  %v836_v45 = vld [vmem:[%s1783_s1 + $0x5d8] sm:$0xff]  ;;  %v499_v53 = vlaneseq  ;;  %v497_v50 = vld [vmem:[%s1785_s2] sm:$0x3] }
  0x47   :  { %905 = vmatpush1.bf16.msra.mxu1 %v904_v36  ;;  %v827_v36 = vld [vmem:[%s1783_s1 + $0x590] sm:$0xff] }
  0x48   :  { %330 = vmatmul.mubr.f32.gmra.mrb[2].mxu0 %v1508_v6  ;;  %907 = vmatprep.subr.bf16.mxu1 %v906_v38  ;;  %v832_v38 = vld [vmem:[%s1783_s1 + $0x5b8] sm:$0xff]  ;;  %v1024_v39 = vpack.c.bf16 %v827_v36, %v825_v35  ;;  %v1735_v8 = vshrl.u32 %v499_v53, 7  ;;  %v584_v36 = vand.u32 127, %v499_v53 }
  0x49   :  { %981 = vmatpush1.bf16.msra.mxu0 %v980_v5  ;;  %480 = vmatprep.mubr.f32.mxu0 %v407_v12  ;;  %v807_v5 = vld [vmem:[%s1783_s1 + $0x4f0] sm:$0xff]  ;;  %v1026_v40 = vpack.c.bf16 %v832_v38, %v830_v37 }
  0x4a   :  { %983 = vmatprep.subr.bf16.mxu0 %v982_v7  ;;  %v175_v7 = vsel %vm167_vm0, %v169_v49, %v174_v62  ;;  %v1004_v9 = vpack.c.bf16 %v807_v5, %v805_v4  ;;  %v811_v12 = vld [vmem:[%s1783_s1 + $0x510] sm:$0xff]  ;;  %v833_v49 = vld [vmem:[%s1783_s1 + $0x5c0] sm:$0xff]  ;;  %v403_v62 = vrot.slane %v1508_v6, 2  ;;  %v1054_v4 = vmov 0.0  }
  0x4b   :  { %909 = vmatpush1.bf16.msra.mxu1 %v908_v47  ;;  %v1008_v15 = vpack.c.bf16 %v811_v12, %v809_v11  ;;  %v529_v12 = vld [vmem:[%s1787_s4] sm:$0x3]  ;;  %v585_v29 = vmul.u32 2, %v1735_v8 }
  0x4d   :  { %985 = vmatpush1.bf16.msra.mxu0 %v984_v19  ;;  %v818_v19 = vld [vmem:[%s1783_s1 + $0x548] sm:$0xff]  ;;  %v589_v37 = vadd.s32 9, %v585_v29  ;;  %vm586_vm3 = vcmp.eq.s32.totalorder %v584_v36, %v585_v29 }
  0x4e   :  { %987 = vmatprep.subr.bf16.mxu0 %v986_v20  ;;  %247 = vmatmul.mubr.f32.vlgmr.msra.gmra.mrb[0].mxu1 %v170_v60  ;;  %v820_v20 = vld [vmem:[%s1783_s1 + $0x558] sm:$0xff]  ;;  %v402_v60 = vrot.slane %v1473_v55, 2 }
  0x4f   :  { %252 = vmatprep.mubr.f32.mxu1 %v177_v1  ;;  %v1014_v22 = vpack.c.bf16 %v820_v20, %v818_v19  ;;  %vm590_vm2 = vcmp.eq.s32.totalorder %v584_v36, %v589_v37 }
  0x50   :  { %v404_v1 = vsel %vm401_vm1, %v402_v60, %v403_v62 }
  0x51   :  { %989 = vmatpush1.bf16.msra.mxu0 %v988_v31  ;;  %v826_v31 = vld [vmem:[%s1783_s1 + $0x588] sm:$0xff] }
  0x52   :  { %991 = vmatprep.subr.bf16.mxu0 %v990_v32  ;;  %253 = vmatmul.mubr.f32.gmra.mrb[2].mxu1 %v175_v7  ;;  %v828_v32 = vld [vmem:[%s1783_s1 + $0x598] sm:$0xff] }
  0x53   :  { %v1022_v34 = vpack.c.bf16 %v828_v32, %v826_v31  ;;  %672 = vmatprep.mubr.f32.mxu1 %v1054_v4 }
  0x55   :  { %993 = vmatpush1.bf16.msra.mxu0 %v992_v42  ;;  %v829_v42 = vld [vmem:[%s1783_s1 + $0x5a0] sm:$0xff] }
  0x56   :  { %995 = vmatprep.subr.bf16.mxu0 %v994_v44  ;;  %v834_v44 = vld [vmem:[%s1783_s1 + $0x5c8] sm:$0xff]  ;;  %v1028_v46 = vpack.c.bf16 %v831_v43, %v829_v42 }
  0x57   :  { %v1030_v47 = vpack.c.bf16 %v836_v45, %v834_v44 }
  0x59   :  { %997 = vmatpush1.bf16.msra.mxu0 %v996_v57  ;;  %v1032_v57 = vpack.c.bf16 %v835_v51, %v833_v49 }
  0x5a   :  { %999 = vmatprep.subr.bf16.mxu0 %v998_v58  ;;  %v1034_v58 = vpack.c.bf16 %v840_v54, %v838_v52 }
  0x5d   :  { %1001 = vmatpush1.bf16.msra.mxu0 %v1000_v2  ;;  %v408_v2 = vrot.slane %v1603_v56, 2  ;;  %v1738_v56 = vsub.s32 0, %v1735_v8 }
  0x5e   :  { %1003 = vmatprep.subr.bf16.mxu0 %v1002_v3  ;;  %v411_v3 = vsel %vm401_vm1, %v406_v61, %v410_v0  ;;  %v1744_v61 = vsub.s32 1, %v1735_v8  ;;  %v841_v8 = vsel %vm586_vm3, 1.0, %v1054_v4 }
  0x5f   :  { %v409_v55 = vsel %vm401_vm1, %v403_v62, %v408_v2  ;;  %v534_v20 = vrot.slane %v529_v12, %v1738_v56 }
  0x60   :  { %v506_v13 = vrot.slane %v497_v50, %v1744_v61 }
  0x61   :  { %1005 = vmatpush1.bf16.msra.mxu0 %v1004_v9  ;;  %v513_v9 = vld [vmem:[%s1786_s3] sm:$0x3] }
  0x62   :  { %1007 = vmatprep.subr.bf16.mxu0 %v1006_v10  ;;  %v502_v10 = vrot.slane %v497_v50, %v1738_v56  ;;  %v522_v18 = vrot.slane %v513_v9, %v1744_v61 }
  0x65   :  { %1009 = vmatpush1.bf16.msra.mxu0 %v1008_v15  ;;  %v518_v15 = vrot.slane %v513_v9, %v1738_v56  ;;  %v679_v9 = vld [vmem:[%s1788_s5] sm:$0x3] }
  0x66   :  { %1011 = vmatprep.subr.bf16.mxu0 %v1010_v16 }
  0x69   :  { %1013 = vmatpush1.bf16.msra.mxu0 %v1012_v21 }
  0x6a   :  { %1015 = vmatprep.subr.bf16.mxu0 %v1014_v22  ;;  %v538_v22 = vrot.slane %v529_v12, %v1744_v61  ;;  %v688_v12 = vrot.slane %v679_v9, %v1744_v61 }
  0x6d   :  { %1017 = vmatpush1.bf16.msra.mxu0 %v1016_v27 }
  0x6e   :  { %1019 = vmatprep.subr.bf16.mxu0 %v1018_v28 }
  0x71   :  { %1021 = vmatpush1.bf16.msra.mxu0 %v1020_v33 }
  0x72   :  { %1023 = vmatprep.subr.bf16.mxu0 %v1022_v34 }
  0x75   :  { %1025 = vmatpush1.bf16.msra.mxu0 %v1024_v39 }
  0x76   :  { %1027 = vmatprep.subr.bf16.mxu0 %v1026_v40 }
  0x79   :  { %1029 = vmatpush1.bf16.msra.mxu0 %v1028_v46 }
  0x7a   :  { %1031 = vmatprep.subr.bf16.mxu0 %v1030_v47 }
  0x7d   :  { %1033 = vmatpush1.bf16.msra.mxu0 %v1032_v57 }
  0x7e   :  { %1035 = vmatprep.subr.bf16.mxu0 %v1034_v58 }
  0x81   :  { %1037 = vmatpush1.bf16.msra.mxu0 %v1036_v63 }
  0x84   :  { %481 = vmatmul.mubr.f32.vlgmr.msra.gmra.mrb[0].mxu0 %v404_v1 }
  0x85   :  { %486 = vmatprep.mubr.f32.mxu0 %v411_v3  ;;  %v842_v3 = vsel %vm590_vm2, 1.0, %v1054_v4 }
  0x88   :  { %487 = vmatmul.mubr.f32.gmra.mrb[2].mxu0 %v409_v55 }
 0x121   :  { %v248_v6 = vpop.f32.mrb[0].mxu1 }
 0x122   :  { %v250_v5 = vpop.f32.mrb[1].mxu1 }
 0x125   :  { %v254_v41 = vpop.f32.mrb[2].mxu1 }
 0x126   :  { %v256_v7 = vpop.f32.mrb[3].mxu1 }
 0x157   :  { %v482_v11 = vpop.f32.mrb[0].mxu0 }
 0x158   :  { %v1044_v14 = vadd.f32 %v482_v11, %v248_v6  ;;  %v484_v16 = vpop.f32.mrb[1].mxu0  ;;  %v684_v11 = vrot.slane %v679_v9, %v1738_v56 }
 0x159   :  { %v1045_v17 = vadd.f32 %v484_v16, %v250_v5 }
 0x15a   :  { %v509_v19 = vadd.f32 %v1044_v14, %v502_v10 }
 0x15b   :  { %v510_v21 = vadd.f32 %v1045_v17, %v506_v13  ;;  %v488_v23 = vpop.f32.mrb[2].mxu0 }
 0x15c   :  { %v525_v24 = vmul.f32 %v518_v15, %v509_v19  ;;  %v1046_v25 = vadd.f32 %v488_v23, %v254_v41  ;;  %v490_v26 = vpop.f32.mrb[3].mxu0 }
 0x15d   :  { %v526_v27 = vmul.f32 %v522_v18, %v510_v21  ;;  %v1047_v28 = vadd.f32 %v490_v26, %v256_v7  ;;  %v594_v7 = vrot.slane %v842_v3, 5 }
 0x15e   :  { %v541_v30 = vadd.f32 %v534_v20, %v525_v24  ;;  %v511_v31 = vadd.f32 %v1046_v25, %v502_v10  ;;  %v693_v10 = vld [vmem:[%s1789_s6] sm:$0x3] }
 0x15f   :  { %v542_v32 = vadd.f32 %v538_v22, %v526_v27  ;;  %v512_v33 = vadd.f32 %v1047_v28, %v506_v13  ;;  %v597_v50 = vsel %vm596_vm6, %v841_v8, %v594_v7  ;;  %v698_v4 = vrot.slane %v693_v10, %v1738_v56 }
 0x160   :  { %v527_v34 = vmul.f32 %v518_v15, %v511_v31  ;;  %v545_v38 = vmax.f32 %v541_v30, 0.0  ;;  %v702_v14 = vrot.slane %v693_v10, %v1744_v61 }
 0x161   :  { %v528_v35 = vmul.f32 %v522_v18, %v512_v33  ;;  %v546_v40 = vmax.f32 %v542_v32, 0.0 }
 0x162   :  { %v543_v39 = vadd.f32 %v534_v20, %v527_v34  ;;  %v553_v45 = vrot.slane %v545_v38, 1  ;;  %v567_v46 = vrot.slane %v545_v38, 2 }
 0x163   :  { %v544_v42 = vadd.f32 %v538_v22, %v528_v35  ;;  %v556_v51 = vrot.slane %v546_v40, 1  ;;  %v570_v52 = vrot.slane %v546_v40, 2 }
 0x164   :  { %v547_v43 = vmax.f32 %v543_v39, 0.0 }
 0x165   :  { %v548_v44 = vmax.f32 %v544_v42, 0.0 }
 0x166   :  { %v554_v47 = vrot.slane %v547_v43, 1  ;;  %v568_v49 = vrot.slane %v547_v43, 2 }
 0x167   :  { %v557_v54 = vrot.slane %v548_v44, 1  ;;  %v571_v57 = vrot.slane %v548_v44, 2 }
 0x168   :  { %v555_v58 = vsel %vm167_vm0, %v553_v45, %v554_v47  ;;  %v565_v59 = vmax.f32 %v547_v43, %v554_v47  ;;  %v569_v48 = vsel %vm401_vm1, %v567_v46, %v568_v49 }
 0x169   :  { %v558_v60 = vsel %vm167_vm0, %v556_v51, %v557_v54  ;;  %v566_v62 = vmax.f32 %v548_v44, %v557_v54  ;;  %v572_v63 = vsel %vm401_vm1, %v570_v52, %v571_v57  ;;  %v563_v0 = vmax.f32 %v545_v38, %v555_v58 }
 0x16a   :  { %v579_v1 = vmax.f32 %v565_v59, %v568_v49  ;;  %v564_v2 = vmax.f32 %v546_v40, %v558_v60 }
 0x16b   :  { %v580_v55 = vmax.f32 %v566_v62, %v571_v57  ;;  %v577_v6 = vmax.f32 %v563_v0, %v569_v48 }
 0x16c   :  { %v578_v5 = vmax.f32 %v564_v2, %v572_v63 }
 0x16d   :  { %v1041_v41 = vpack.c.bf16 %v579_v1, %v577_v6 }
 0x16e   :  { %v1038_v53 = vpack.c.bf16 %v580_v55, %v578_v5 }
 0x170   :  { %1040 = vmatprep.subr.msk.bf16.mxu1 %vm1039_vm5, %v1038_v53 }
 0x171   :  { %1043 = vmatpush1.bf16.msk.msra.mxu1 %vm1039_vm5, %v1041_v41 }
 0x174   :  { %845 = vmatmul.mubr.msk.f32.vlgmr.msra.gmra.mrb[4].mxu1 %vm598_vm7, %v597_v50 }
 0x247   :  { %v674_v13 = vpop.f32.mrb[4].mxu1 }
 0x248   :  { %v691_v15 = vmul.f32 %v684_v11, %v674_v13  ;;  %v676_v16 = vpop.f32.mrb[5].mxu1 }
 0x249   :  { %v692_v17 = vmul.f32 %v688_v12, %v676_v16 }
 0x24a   :  { %v705_v18 = vadd.f32 %v698_v4, %v691_v15 }
 0x24b   :  { %v706_v19 = vadd.f32 %v702_v14, %v692_v17 }
 0x24c   :  { %707 = vst [vmem:[%s1790_s7] sm:$0x3f] %v705_v18 }
 0x24d   :  { %708 = vst [vmem:[%s1790_s7 + $0x8] sm:$0x3f] %v706_v19 }

// kernel: conformer_forward.6
= control target key start
LH: loop header
LB: loop body
LE: loop exit
PB: predicated region body
PF: predicated region fallthrough
CT: control target
= control target key end

     0   :  { %12 = vsyncpa [#allocation3], 0  ;;  %s5972_s0 = inlined_call_operand.vmem [shape: f32[200,384], index: 0, kind: input, shape index: {}]   ;;  %s5973_s1 = inlined_call_operand.vmem [shape: f32[3,384,64], index: 1, kind: input, shape index: {}]   ;;  %s5974_s2 = inlined_call_operand.hbm [shape: f32[1,64], index: 2, kind: input, shape index: {}]   ;;  %s5975_s3 = inlined_call_operand.hbm [shape: f32[1,64], index: 3, kind: input, shape index: {}]   ;;  %s5976_s4 = inlined_call_operand.hbm [shape: f32[1,64], index: 4, kind: input, shape index: {}]   ;;  %s5977_s5 = inlined_call_operand.hbm [shape: f32[1,64], index: 5, kind: input, shape index: {}]   ;;  %s5978_s6 = inlined_call_operand.hbm [shape: f32[1,64], index: 6, kind: input, shape index: {}]   ;;  %s5979_s7 = inlined_call_operand.vmem [shape: f32[96,64], index: 7, kind: output, shape index: {}]  }
   0x1   :  { %13 = vsyncpa [#allocation5], 0 }
   0x2   :  { %14 = vsyncpa [#allocation8], 0  ;;  %s3690_s24 = smov [#allocation4]   ;;  %s3691_s26 = smov [#allocation7]  }
   0x3   :  { %s35_s25 = sshll.u32 %s3690_s24, 4  ;;  %s55_s27 = sshll.u32 %s3691_s26, 4  ;;  %s36_s25 = int_to_ptr.vmem [resolvable:$true] %s35_s25  ;;  %s56_s27 = int_to_ptr.vmem [resolvable:$true] %s55_s27 }
   0x4   :  { %s3574_s30 = scalar_lea.hbm %s5975_s3, 16 }
   0x5   :  { %p3575_p0 = scmp.ne.s32.totalorder %s5975_s3, %s3574_s30  ;;  %p3578_p1 = scmp.lt.u32.totalorder %s3574_s30, %s5975_s3 }
   0x7   :  { %p3580_p2 = pnand %p3578_p1, %p3575_p0 }
   0x9   :  { %3583 = shalt.err (!%p3580_p2)
}
   0xa   :  { %s3584_s12 = scalar_lea.vmem %s36_s25, 16  ;;  %s3588_s13 = scalar_lea.vmem %s36_s25, 32 }
   0xb   :  { %p3585_p3 = scmp.ne.s32.totalorder %s36_s25, %s3584_s12  ;;  %p3589_p4 = scmp.lt.s32.totalorder %s36_s25, %s36_s25 }
   0xc   :  { %p3590_p5 = scmp.lt.s32.totalorder %s3588_s13, %s3584_s12 }
   0xe   :  { %p3591_p6 = por %p3590_p5, %p3589_p4 }
  0x10   :  { %p3592_p7 = pnand %p3591_p6, %p3585_p3 }
  0x12   :  { %3595 = shalt.err (!%p3592_p7)
}
  0x13   :  { %38 = dma.hbm_to_vmem [thread:$0]  %s5975_s3, 16, %s36_s25, [#allocation5]  }
  0x14   :  { %s3596_s18 = scalar_lea.hbm %s5977_s5, 16 }
  0x15   :  { %p3597_p8 = scmp.ne.s32.totalorder %s5977_s5, %s3596_s18  ;;  %p3600_p9 = scmp.lt.u32.totalorder %s3596_s18, %s5977_s5 }
  0x17   :  { %p3602_p10 = pnand %p3600_p9, %p3597_p8 }
  0x19   :  { %3605 = shalt.err (!%p3602_p10)
}
  0x1a   :  { %s3606_s23 = scalar_lea.vmem %s56_s27, 16  ;;  %s3610_s24 = scalar_lea.vmem %s56_s27, 32 }
  0x1b   :  { %p3607_p11 = scmp.ne.s32.totalorder %s56_s27, %s3606_s23  ;;  %p3611_p12 = scmp.lt.s32.totalorder %s56_s27, %s56_s27 }
  0x1c   :  { %p3612_p13 = scmp.lt.s32.totalorder %s3610_s24, %s3606_s23 }
  0x1e   :  { %p3613_p0 = por %p3612_p13, %p3611_p12 }
  0x20   :  { %p3614_p1 = pnand %p3613_p0, %p3607_p11 }
  0x22   :  { %3617 = shalt.err (!%p3614_p1)
}
  0x23   :  { %58 = dma.hbm_to_vmem [thread:$0]  %s5977_s5, 16, %s56_s27, [#allocation8]  }
  0x24   :  { %s3692_s26 = smov [#allocation2]   ;;  %s3693_s29 = smov [#allocation6]  }
  0x25   :  { %s25_s28 = sshll.u32 %s3692_s26, 4  ;;  %s45_s30 = sshll.u32 %s3693_s29, 4  ;;  %s26_s28 = int_to_ptr.vmem [resolvable:$true] %s25_s28  ;;  %s46_s30 = int_to_ptr.vmem [resolvable:$true] %s45_s30 }
  0x26   :  { %s3618_s10 = scalar_lea.hbm %s5974_s2, 16 }
  0x27   :  { %p3619_p2 = scmp.ne.s32.totalorder %s5974_s2, %s3618_s10  ;;  %p3622_p3 = scmp.lt.u32.totalorder %s3618_s10, %s5974_s2 }
  0x29   :  { %p3624_p4 = pnand %p3622_p3, %p3619_p2 }
  0x2b   :  { %3627 = shalt.err (!%p3624_p4)
}
  0x2c   :  { %s3628_s5 = scalar_lea.vmem %s26_s28, 16  ;;  %s3632_s27 = scalar_lea.vmem %s26_s28, 32 }
  0x2d   :  { %p3629_p5 = scmp.ne.s32.totalorder %s26_s28, %s3628_s5  ;;  %p3633_p6 = scmp.lt.s32.totalorder %s26_s28, %s26_s28 }
  0x2e   :  { %p3634_p7 = scmp.lt.s32.totalorder %s3632_s27, %s3628_s5 }
  0x30   :  { %p3635_p8 = por %p3634_p7, %p3633_p6 }
  0x32   :  { %p3636_p9 = pnand %p3635_p8, %p3629_p5 }
  0x34   :  { %3639 = shalt.err (!%p3636_p9)
}
  0x35   :  { %28 = dma.hbm_to_vmem [thread:$0]  %s5974_s2, 16, %s26_s28, [#allocation3]  }
  0x36   :  { %s3640_s19 = scalar_lea.hbm %s5976_s4, 16 }
  0x37   :  { %p3641_p10 = scmp.ne.s32.totalorder %s5976_s4, %s3640_s19  ;;  %p3644_p11 = scmp.lt.u32.totalorder %s3640_s19, %s5976_s4 }
  0x39   :  { %p3646_p12 = pnand %p3644_p11, %p3641_p10 }
  0x3b   :  { %3649 = shalt.err (!%p3646_p12)
}
  0x3c   :  { %s3650_s24 = scalar_lea.vmem %s46_s30, 16  ;;  %s3654_s3 = scalar_lea.vmem %s46_s30, 32 }
  0x3d   :  { %p3651_p13 = scmp.ne.s32.totalorder %s46_s30, %s3650_s24  ;;  %p3655_p0 = scmp.lt.s32.totalorder %s46_s30, %s46_s30 }
  0x3e   :  { %p3656_p1 = scmp.lt.s32.totalorder %s3654_s3, %s3650_s24 }
  0x40   :  { %p3657_p2 = por %p3656_p1, %p3655_p0 }
  0x42   :  { %p3658_p3 = pnand %p3657_p2, %p3651_p13 }
  0x44   :  { %3661 = shalt.err (!%p3658_p3)
}
  0x45   :  { %48 = dma.hbm_to_vmem [thread:$0]  %s5976_s4, 16, %s46_s30, [#allocation5]  }
  0x46   :  { %s3694_s26 = smov [#allocation9]   ;;  %s3662_s9 = scalar_lea.hbm %s5978_s6, 16 }
  0x47   :  { %s65_s28 = sshll.u32 %s3694_s26, 4  ;;  %p3663_p4 = scmp.ne.s32.totalorder %s5978_s6, %s3662_s9  ;;  %s66_s28 = int_to_ptr.vmem [resolvable:$true] %s65_s28 }
  0x48   :  { %p3666_p5 = scmp.lt.u32.totalorder %s3662_s9, %s5978_s6 }
  0x4a   :  { %p3668_p6 = pnand %p3666_p5, %p3663_p4 }
  0x4c   :  { %3671 = shalt.err (!%p3668_p6)
}
  0x4d   :  { %s3672_s14 = scalar_lea.vmem %s66_s28, 16  ;;  %s3676_s4 = scalar_lea.vmem %s66_s28, 32 }
  0x4e   :  { %p3673_p7 = scmp.ne.s32.totalorder %s66_s28, %s3672_s14  ;;  %p3677_p8 = scmp.lt.s32.totalorder %s66_s28, %s66_s28 }
  0x4f   :  { %p3678_p9 = scmp.lt.s32.totalorder %s3676_s4, %s3672_s14 }
  0x51   :  { %p3679_p10 = por %p3678_p9, %p3677_p8 }
  0x53   :  { %p3680_p11 = pnand %p3679_p10, %p3673_p7 }
  0x55   :  { %3683 = shalt.err (!%p3680_p11)
}
  0x56   :  { %68 = dma.hbm_to_vmem [thread:$0]  %s5978_s6, 16, %s66_s28, [#allocation8]  }
  0x57   :  { %3684 = dma.done.wait [#allocation3], 16  }
  0x58   :  { %3685 = vsyncadd [#allocation3], 4294967280 }
  0x59   :  { %3686 = dma.done.wait [#allocation5], 32  }
  0x5a   :  { %3687 = vsyncadd [#allocation5], 4294967264 }
  0x5b   :  { %3688 = dma.done.wait [#allocation8], 32  }
  0x5c   :  { %3689 = vsyncadd [#allocation8], 4294967264  ;;  %v5980_v0 = vmov 0.0|0.0   ;;  %vm3696_vm0 = vmmov 0   ;;  %v5984_v1 = vmov 0.0   ;;  %v2653_v2 = vld [vmem:[%s5973_s1 + $0x180] sm:$0xff] }
  0x5d   :  { %3247 = vmatprep.subr.bf16.mxu0 %v5980_v0  ;;  %3295 = vmatprep.subr.bf16.mxu1 %v5980_v0  ;;  %v2654_v3 = vld [vmem:[%s5973_s1 + $0x188] sm:$0xff]  ;;  %v2685_v4 = vld [vmem:[%s5973_s1 + $0x280] sm:$0xff]  ;;  %v2655_v7 = vld [vmem:[%s5973_s1 + $0x190] sm:$0xff]  ;;  %vm331_vm1 = vcmask 1046528   ;;  %vm1363_vm2 = vcmask 1045504   ;;  %vm2429_vm4 = vcmask 556032  }
  0x5e   :  { %2958 = vmatprep.mubr.msk.f32.mxu1 %vm3696_vm0, %v5984_v1  ;;  %v3248_v5 = vpack.c.bf16 %v2654_v3, %v2653_v2  ;;  %v2686_v6 = vld [vmem:[%s5973_s1 + $0x288] sm:$0xff]  ;;  %v2656_v8 = vld [vmem:[%s5973_s1 + $0x198] sm:$0xff]  ;;  %v2687_v10 = vld [vmem:[%s5973_s1 + $0x290] sm:$0xff]  ;;  %vm2466_vm13 = vcmask 1043456  }
  0x5f   :  { %v3296_v9 = vpack.c.bf16 %v2686_v6, %v2685_v4  ;;  %v2688_v11 = vld [vmem:[%s5973_s1 + $0x298] sm:$0xff]  ;;  %v3251_v12 = vpack.c.bf16 %v2656_v8, %v2655_v7  ;;  %v2657_v14 = vld [vmem:[%s5973_s1 + $0x1a0] sm:$0xff]  ;;  %v2658_v15 = vld [vmem:[%s5973_s1 + $0x1a8] sm:$0xff] }
  0x60   :  { %3249 = vmatpush1.bf16.msra.mxu0 %v3248_v5  ;;  %v3299_v13 = vpack.c.bf16 %v2688_v11, %v2687_v10  ;;  %v2689_v16 = vld [vmem:[%s5973_s1 + $0x2a0] sm:$0xff]  ;;  %v2690_v17 = vld [vmem:[%s5973_s1 + $0x2a8] sm:$0xff]  ;;  %v3254_v18 = vpack.c.bf16 %v2658_v15, %v2657_v14  ;;  %v2659_v20 = vld [vmem:[%s5973_s1 + $0x1b0] sm:$0xff] }
  0x61   :  { %3297 = vmatpush3.bf16.msra.mxu1 %v3296_v9  ;;  %3250 = vmatprep.subr.bf16.mxu0 %v5980_v0  ;;  %v3302_v19 = vpack.c.bf16 %v2690_v17, %v2689_v16  ;;  %v2660_v21 = vld [vmem:[%s5973_s1 + $0x1b8] sm:$0xff]  ;;  %v2691_v22 = vld [vmem:[%s5973_s1 + $0x2b0] sm:$0xff]  ;;  %v2661_v26 = vld [vmem:[%s5973_s1 + $0x1c0] sm:$0xff] }
  0x62   :  { %3298 = vmatprep.subr.bf16.mxu1 %v5980_v0  ;;  %v2692_v23 = vld [vmem:[%s5973_s1 + $0x2b8] sm:$0xff]  ;;  %v3257_v24 = vpack.c.bf16 %v2660_v21, %v2659_v20  ;;  %v2662_v27 = vld [vmem:[%s5973_s1 + $0x1c8] sm:$0xff]  ;;  %v2693_v28 = vld [vmem:[%s5973_s1 + $0x2c0] sm:$0xff] }
  0x63   :  { %v3305_v25 = vpack.c.bf16 %v2692_v23, %v2691_v22  ;;  %v2694_v29 = vld [vmem:[%s5973_s1 + $0x2c8] sm:$0xff]  ;;  %v3260_v30 = vpack.c.bf16 %v2662_v27, %v2661_v26  ;;  %v2663_v32 = vld [vmem:[%s5973_s1 + $0x1d0] sm:$0xff]  ;;  %v2664_v33 = vld [vmem:[%s5973_s1 + $0x1d8] sm:$0xff] }
  0x64   :  { %3252 = vmatpush1.bf16.msra.mxu0 %v3251_v12  ;;  %v3308_v31 = vpack.c.bf16 %v2694_v29, %v2693_v28  ;;  %v2695_v34 = vld [vmem:[%s5973_s1 + $0x2d0] sm:$0xff]  ;;  %v2696_v35 = vld [vmem:[%s5973_s1 + $0x2d8] sm:$0xff]  ;;  %v3263_v36 = vpack.c.bf16 %v2664_v33, %v2663_v32  ;;  %v3886_v37 = vld [vmem:[%s5972_s0 + $0x8] sm:$0xff] }
  0x65   :  { %3300 = vmatpush3.bf16.msra.mxu1 %v3299_v13  ;;  %3253 = vmatprep.subr.bf16.mxu0 %v5980_v0  ;;  %v3891_v38 = vld [vmem:[%s5972_s0 + $0x20] sm:$0xff]  ;;  %v3311_v39 = vpack.c.bf16 %v2696_v35, %v2695_v34  ;;  %v2666_v41 = vld [vmem:[%s5973_s1 + $0x1e8] sm:$0xff]  ;;  %v335_v42 = vrot.slane %v3886_v37, 1  ;;  %v2667_v49 = vld [vmem:[%s5973_s1 + $0x1f0] sm:$0xff] }
  0x66   :  { %3301 = vmatprep.subr.bf16.mxu1 %v5980_v0  ;;  %v2665_v40 = vld [vmem:[%s5973_s1 + $0x1e0] sm:$0xff]  ;;  %v336_v43 = vrot.slane %v3891_v38, 1  ;;  %v2698_v45 = vld [vmem:[%s5973_s1 + $0x2e8] sm:$0xff]  ;;  %v2668_v50 = vld [vmem:[%s5973_s1 + $0x1f8] sm:$0xff] }
  0x67   :  { %v2697_v44 = vld [vmem:[%s5973_s1 + $0x2e0] sm:$0xff]  ;;  %v3266_v47 = vpack.c.bf16 %v2666_v41, %v2665_v40  ;;  %v2699_v51 = vld [vmem:[%s5973_s1 + $0x2f0] sm:$0xff]  ;;  %v2700_v52 = vld [vmem:[%s5973_s1 + $0x2f8] sm:$0xff]  ;;  %v3269_v55 = vpack.c.bf16 %v2668_v50, %v2667_v49 }
  0x68   :  { %3255 = vmatpush1.bf16.msra.mxu0 %v3254_v18  ;;  %v337_v46 = vsel %vm331_vm1, %v335_v42, %v336_v43  ;;  %v3314_v48 = vpack.c.bf16 %v2698_v45, %v2697_v44  ;;  %v86_v53 = vld [vmem:[%s5972_s0 + $0x10] sm:$0xff]  ;;  %v89_v54 = vld [vmem:[%s5972_s0 + $0x28] sm:$0xff]  ;;  %v3317_v56 = vpack.c.bf16 %v2700_v52, %v2699_v51  ;;  %v2669_v59 = vld [vmem:[%s5973_s1 + $0x200] sm:$0xff] }
  0x69   :  { %3303 = vmatpush3.bf16.msra.mxu1 %v3302_v19  ;;  %3256 = vmatprep.subr.bf16.mxu0 %v5980_v0  ;;  %v338_v57 = vrot.slane %v86_v53, 1  ;;  %v339_v58 = vrot.slane %v89_v54, 1  ;;  %v2670_v60 = vld [vmem:[%s5973_s1 + $0x208] sm:$0xff]  ;;  %v92_v61 = vld [vmem:[%s5972_s0 + $0x40] sm:$0xff]  ;;  %v2671_v5 = vld [vmem:[%s5973_s1 + $0x210] sm:$0xff] }
  0x6a   :  { %3304 = vmatprep.subr.bf16.mxu1 %v5980_v0  ;;  %618 = vmatprep.mubr.f32.mxu0 %v337_v46  ;;  %v159_v62 = vld [vmem:[%s5973_s1] sm:$0xff]  ;;  %v160_v63 = vld [vmem:[%s5973_s1 + $0x8] sm:$0xff]  ;;  %v3272_v2 = vpack.c.bf16 %v2670_v60, %v2669_v59  ;;  %v345_v4 = vrot.slane %v92_v61, 1  ;;  %v2672_v6 = vld [vmem:[%s5973_s1 + $0x218] sm:$0xff] }
  0x6b   :  { %v340_v3 = vsel %vm331_vm1, %v338_v57, %v339_v58  ;;  %v95_v7 = vld [vmem:[%s5972_s0 + $0x58] sm:$0xff]  ;;  %v3320_v8 = vpack.c.bf16 %v160_v63, %v159_v62  ;;  %v161_v9 = vld [vmem:[%s5973_s1 + $0x10] sm:$0xff]  ;;  %v3275_v11 = vpack.c.bf16 %v2672_v6, %v2671_v5  ;;  %v2673_v14 = vld [vmem:[%s5973_s1 + $0x220] sm:$0xff] }
  0x6c   :  { %3258 = vmatpush1.bf16.msra.mxu0 %v3257_v24  ;;  %v162_v10 = vld [vmem:[%s5973_s1 + $0x18] sm:$0xff]  ;;  %v346_v12 = vsel %vm331_vm1, %v339_v58, %v345_v4  ;;  %v351_v13 = vrot.slane %v95_v7, 1  ;;  %v2674_v15 = vld [vmem:[%s5973_s1 + $0x228] sm:$0xff]  ;;  %v98_v16 = vld [vmem:[%s5972_s0 + $0x70] sm:$0xff] }
  0x6d   :  { %3306 = vmatpush3.bf16.msra.mxu1 %v3305_v25  ;;  %3259 = vmatprep.subr.bf16.mxu0 %v5980_v0  ;;  %v3323_v17 = vpack.c.bf16 %v162_v10, %v161_v9  ;;  %v163_v18 = vld [vmem:[%s5973_s1 + $0x20] sm:$0xff]  ;;  %v164_v19 = vld [vmem:[%s5973_s1 + $0x28] sm:$0xff]  ;;  %v3278_v20 = vpack.c.bf16 %v2674_v15, %v2673_v14  ;;  %v357_v22 = vrot.slane %v98_v16, 1  ;;  %v2675_v23 = vld [vmem:[%s5973_s1 + $0x230] sm:$0xff] }
  0x6e   :  { %3307 = vmatprep.subr.bf16.mxu1 %v5980_v0  ;;  %v352_v21 = vsel %vm331_vm1, %v345_v4, %v351_v13  ;;  %v2676_v24 = vld [vmem:[%s5973_s1 + $0x238] sm:$0xff]  ;;  %v101_v25 = vld [vmem:[%s5972_s0 + $0x88] sm:$0xff]  ;;  %v3326_v26 = vpack.c.bf16 %v164_v19, %v163_v18  ;;  %v165_v27 = vld [vmem:[%s5973_s1 + $0x30] sm:$0xff] }
  0x6f   :  { %v166_v28 = vld [vmem:[%s5973_s1 + $0x38] sm:$0xff]  ;;  %v3281_v29 = vpack.c.bf16 %v2676_v24, %v2675_v23  ;;  %v2677_v32 = vld [vmem:[%s5973_s1 + $0x240] sm:$0xff]  ;;  %v2678_v33 = vld [vmem:[%s5973_s1 + $0x248] sm:$0xff] }
  0x70   :  { %3261 = vmatpush1.bf16.msra.mxu0 %v3260_v30  ;;  %v358_v30 = vsel %vm331_vm1, %v351_v13, %v357_v22  ;;  %v104_v34 = vld [vmem:[%s5972_s0 + $0xa0] sm:$0xff]  ;;  %v3329_v35 = vpack.c.bf16 %v166_v28, %v165_v27  ;;  %v3284_v40 = vpack.c.bf16 %v2678_v33, %v2677_v32  ;;  %v2679_v44 = vld [vmem:[%s5973_s1 + $0x250] sm:$0xff]  ;;  %v2680_v45 = vld [vmem:[%s5973_s1 + $0x258] sm:$0xff] }
  0x71   :  { %3309 = vmatpush3.bf16.msra.mxu1 %v3308_v31  ;;  %3262 = vmatprep.subr.bf16.mxu0 %v5980_v0  ;;  %v363_v31 = vrot.slane %v101_v25, 1  ;;  %v369_v42 = vrot.slane %v104_v34, 1  ;;  %v107_v46 = vld [vmem:[%s5972_s0 + $0xb8] sm:$0xff]  ;;  %v3287_v50 = vpack.c.bf16 %v2680_v45, %v2679_v44  ;;  %v2681_v53 = vld [vmem:[%s5973_s1 + $0x260] sm:$0xff]  ;;  %v2682_v54 = vld [vmem:[%s5973_s1 + $0x268] sm:$0xff] }
  0x72   :  { %3310 = vmatprep.subr.bf16.mxu1 %v5980_v0  ;;  %v170_v49 = vld [vmem:[%s5973_s1 + $0x58] sm:$0xff]  ;;  %v375_v52 = vrot.slane %v107_v46, 1  ;;  %v171_v57 = vld [vmem:[%s5973_s1 + $0x60] sm:$0xff]  ;;  %v172_v58 = vld [vmem:[%s5973_s1 + $0x68] sm:$0xff]  ;;  %v3290_v59 = vpack.c.bf16 %v2682_v54, %v2681_v53 }
  0x73   :  { %v364_v41 = vsel %vm331_vm1, %v357_v22, %v363_v31  ;;  %v370_v51 = vsel %vm331_vm1, %v363_v31, %v369_v42  ;;  %v2683_v60 = vld [vmem:[%s5973_s1 + $0x270] sm:$0xff]  ;;  %v2684_v63 = vld [vmem:[%s5973_s1 + $0x278] sm:$0xff]  ;;  %v113_v4 = vld [vmem:[%s5972_s0 + $0xe8] sm:$0xff]  ;;  %v3338_v6 = vpack.c.bf16 %v172_v58, %v171_v57 }
  0x74   :  { %3264 = vmatpush1.bf16.msra.mxu0 %v3263_v36  ;;  %v167_v36 = vld [vmem:[%s5973_s1 + $0x40] sm:$0xff]  ;;  %v376_v61 = vsel %vm331_vm1, %v369_v42, %v375_v52  ;;  %v4093_v5 = vld [vmem:[%s5972_s0 + $0x38] sm:$0xff]  ;;  %v173_v7 = vld [vmem:[%s5973_s1 + $0x70] sm:$0xff]  ;;  %v3293_v9 = vpack.c.bf16 %v2684_v63, %v2683_v60  ;;  %v387_v13 = vrot.slane %v113_v4, 1 }
  0x75   :  { %3312 = vmatpush3.bf16.msra.mxu1 %v3311_v39  ;;  %3265 = vmatprep.subr.bf16.mxu0 %v5980_v0  ;;  %v168_v39 = vld [vmem:[%s5973_s1 + $0x48] sm:$0xff]  ;;  %v343_v14 = vrot.slane %v4093_v5, 1  ;;  %v4112_v15 = vld [vmem:[%s5972_s0 + $0x30] sm:$0xff]  ;;  %v116_v16 = vld [vmem:[%s5972_s0 + $0x100] sm:$0xff] }
  0x76   :  { %3313 = vmatprep.subr.bf16.mxu1 %v5980_v0  ;;  %v191_v18 = vld [vmem:[%s5973_s1 + $0x100] sm:$0xff]  ;;  %v192_v19 = vld [vmem:[%s5973_s1 + $0x108] sm:$0xff]  ;;  %v341_v24 = vrot.slane %v4112_v15, 1  ;;  %v393_v25 = vrot.slane %v116_v16, 1  ;;  %v194_v33 = vld [vmem:[%s5973_s1 + $0x118] sm:$0xff] }
  0x77   :  { %v176_v22 = vld [vmem:[%s5973_s1 + $0x88] sm:$0xff]  ;;  %v344_v27 = vsel %vm331_vm1, %v336_v43, %v343_v14  ;;  %v3368_v31 = vpack.c.bf16 %v192_v19, %v191_v18  ;;  %v193_v43 = vld [vmem:[%s5973_s1 + $0x110] sm:$0xff]  ;;  %v4184_v46 = vld [vmem:[%s5972_s0 + $0x60] sm:$0xff] }
  0x78   :  { %3267 = vmatpush1.bf16.msra.mxu0 %v3266_v47  ;;  %v3332_v47 = vpack.c.bf16 %v168_v39, %v167_v36  ;;  %v4158_v32 = vld [vmem:[%s5972_s0 + $0x68] sm:$0xff]  ;;  %v178_v36 = vld [vmem:[%s5973_s1 + $0x98] sm:$0xff]  ;;  %v179_v53 = vld [vmem:[%s5973_s1 + $0xa0] sm:$0xff] }
  0x79   :  { %3315 = vmatpush3.bf16.msra.mxu1 %v3314_v48  ;;  %3268 = vmatprep.subr.bf16.mxu0 %v5980_v0  ;;  %v169_v48 = vld [vmem:[%s5973_s1 + $0x50] sm:$0xff]  ;;  %v355_v45 = vrot.slane %v4158_v32, 1  ;;  %v180_v54 = vld [vmem:[%s5973_s1 + $0xa8] sm:$0xff]  ;;  %v4231_v4 = vld [vmem:[%s5972_s0 + $0x98] sm:$0xff] }
  0x7a   :  { %3316 = vmatprep.subr.bf16.mxu1 %v5980_v0  ;;  %v367_v18 = vrot.slane %v4231_v4, 1  ;;  %v4258_v19 = vld [vmem:[%s5972_s0 + $0x90] sm:$0xff] }
  0x7c   :  { %3270 = vmatpush1.bf16.msra.mxu0 %v3269_v55  ;;  %v110_v55 = vld [vmem:[%s5972_s0 + $0xd0] sm:$0xff] }
  0x7d   :  { %3318 = vmatpush3.bf16.msra.mxu1 %v3317_v56  ;;  %3271 = vmatprep.subr.bf16.mxu0 %v5980_v0  ;;  %v3335_v56 = vpack.c.bf16 %v170_v49, %v169_v48  ;;  %v381_v62 = vrot.slane %v110_v55, 1  ;;  %v3371_v48 = vpack.c.bf16 %v194_v33, %v193_v43  ;;  %v4194_v49 = vld [vmem:[%s5972_s0 + $0x80] sm:$0xff] }
  0x7e   :  { %3319 = vmatprep.subr.bf16.mxu1 %v5980_v0  ;;  %v361_v60 = vrot.slane %v4194_v49, 1 }
  0x80   :  { %2959 = vmatmul.mubr.f32.vlgmr.msra.gmra.mrb[0].mxu1 %v340_v3  ;;  %3273 = vmatpush1.bf16.msra.mxu0 %v3272_v2  ;;  %v4080_v2 = vld [vmem:[%s5972_s0] sm:$0xff]  ;;  %v4085_v3 = vld [vmem:[%s5972_s0 + $0x18] sm:$0xff]  ;;  %v362_v16 = vsel %vm331_vm1, %v355_v45, %v361_v60  ;;  %v368_v43 = vsel %vm331_vm1, %v361_v60, %v367_v18 }
  0x81   :  { %2961 = vmatprep.mubr.msk.f32.mxu1 %vm3696_vm0, %v5984_v1  ;;  %3274 = vmatprep.subr.bf16.mxu0 %v5980_v0  ;;  %v332_v10 = vrot.slane %v4080_v2, 1 }
  0x82   :  { %3321 = vmatpush1.bf16.msra.mxu1 %v3320_v8  ;;  %v174_v8 = vld [vmem:[%s5973_s1 + $0x78] sm:$0xff] }
  0x83   :  { %3322 = vmatprep.subr.bf16.mxu1 %v5980_v0 }
  0x84   :  { %2962 = vmatmul.mubr.f32.gmra.mrb[2].mxu1 %v346_v12  ;;  %3276 = vmatpush1.bf16.msra.mxu0 %v3275_v11  ;;  %v333_v11 = vrot.slane %v4085_v3, 1  ;;  %v382_v12 = vsel %vm331_vm1, %v375_v52, %v381_v62 }
  0x85   :  { %2964 = vmatprep.mubr.msk.f32.mxu1 %vm3696_vm0, %v5984_v1  ;;  %3277 = vmatprep.subr.bf16.mxu0 %v5980_v0 }
  0x86   :  { %3324 = vmatpush1.bf16.msra.mxu1 %v3323_v17  ;;  %v4120_v17 = vld [vmem:[%s5972_s0 + $0x50] sm:$0xff]  ;;  %v334_v23 = vsel %vm331_vm1, %v332_v10, %v333_v11  ;;  %v342_v39 = vsel %vm331_vm1, %v333_v11, %v341_v24  ;;  %v182_v10 = vld [vmem:[%s5973_s1 + $0xb8] sm:$0xff] }
  0x87   :  { %3325 = vmatprep.subr.bf16.mxu1 %v5980_v0  ;;  %v349_v28 = vrot.slane %v4120_v17, 1 }
  0x88   :  { %2965 = vmatmul.mubr.f32.gmra.mrb[4].mxu1 %v352_v21  ;;  %3279 = vmatpush1.bf16.msra.mxu0 %v3278_v20  ;;  %v3341_v20 = vpack.c.bf16 %v174_v8, %v173_v7  ;;  %v175_v21 = vld [vmem:[%s5973_s1 + $0x80] sm:$0xff]  ;;  %v197_v7 = vld [vmem:[%s5973_s1 + $0x130] sm:$0xff]  ;;  %v198_v8 = vld [vmem:[%s5973_s1 + $0x138] sm:$0xff] }
  0x89   :  { %2967 = vmatprep.mubr.msk.f32.mxu1 %vm3696_vm0, %v5984_v1  ;;  %3280 = vmatprep.subr.bf16.mxu0 %v5980_v0  ;;  %v3344_v34 = vpack.c.bf16 %v176_v22, %v175_v21  ;;  %v350_v42 = vsel %vm331_vm1, %v343_v14, %v349_v28  ;;  %v3377_v21 = vpack.c.bf16 %v198_v8, %v197_v7  ;;  %v4268_v22 = vld [vmem:[%s5972_s0 + $0xb0] sm:$0xff]  ;;  %v187_v7 = vld [vmem:[%s5973_s1 + $0xe0] sm:$0xff]  ;;  %v188_v8 = vld [vmem:[%s5973_s1 + $0xe8] sm:$0xff] }
  0x8a   :  { %3327 = vmatpush1.bf16.msra.mxu1 %v3326_v26  ;;  %v388_v26 = vsel %vm331_vm1, %v381_v62, %v387_v13  ;;  %v4226_v62 = vld [vmem:[%s5972_s0 + $0x148] sm:$0xff] }
  0x8b   :  { %3328 = vmatprep.subr.bf16.mxu1 %v5980_v0 }
  0x8c   :  { %2968 = vmatmul.mubr.f32.gmra.mrb[6].mxu1 %v358_v30  ;;  %3282 = vmatpush1.bf16.msra.mxu0 %v3281_v29  ;;  %v4147_v29 = vld [vmem:[%s5972_s0 + $0x48] sm:$0xff]  ;;  %v4152_v30 = vld [vmem:[%s5972_s0 + $0x118] sm:$0xff] }
  0x8d   :  { %2970 = vmatprep.mubr.msk.f32.mxu1 %vm3696_vm0, %v5984_v1  ;;  %3283 = vmatprep.subr.bf16.mxu0 %v5980_v0  ;;  %v399_v44 = vrot.slane %v4152_v30, 1 }
  0x8e   :  { %3330 = vmatpush1.bf16.msra.mxu1 %v3329_v35  ;;  %v177_v35 = vld [vmem:[%s5973_s1 + $0x90] sm:$0xff] }
  0x8f   :  { %3331 = vmatprep.subr.bf16.mxu1 %v5980_v0  ;;  %v3347_v52 = vpack.c.bf16 %v178_v36, %v177_v35  ;;  %v400_v58 = vsel %vm331_vm1, %v393_v25, %v399_v44  ;;  %v4295_v35 = vld [vmem:[%s5972_s0 + $0xa8] sm:$0xff]  ;;  %v4300_v36 = vld [vmem:[%s5972_s0 + $0x178] sm:$0xff] }
  0x90   :  { %2971 = vmatmul.mubr.f32.gmra.mrb[8].mxu1 %v364_v41  ;;  %3285 = vmatpush1.bf16.msra.mxu0 %v3284_v40  ;;  %v394_v40 = vsel %vm331_vm1, %v387_v13, %v393_v25  ;;  %v347_v41 = vrot.slane %v4147_v29, 1  ;;  %v411_v13 = vrot.slane %v4226_v62, 1  ;;  %v200_v25 = vld [vmem:[%s5973_s1 + $0x148] sm:$0xff] }
  0x91   :  { %2973 = vmatprep.mubr.msk.f32.mxu1 %vm3696_vm0, %v5984_v1  ;;  %3286 = vmatprep.subr.bf16.mxu0 %v5980_v0 }
  0x92   :  { %3333 = vmatpush1.bf16.msra.mxu1 %v3332_v47  ;;  %v4189_v47 = vld [vmem:[%s5972_s0 + $0x130] sm:$0xff]  ;;  %v348_v55 = vsel %vm331_vm1, %v341_v24, %v347_v41  ;;  %v199_v24 = vld [vmem:[%s5973_s1 + $0x140] sm:$0xff] }
  0x93   :  { %3334 = vmatprep.subr.bf16.mxu1 %v5980_v0  ;;  %v405_v57 = vrot.slane %v4189_v47, 1 }
  0x94   :  { %2974 = vmatmul.mubr.f32.gmra.mrb[10].mxu1 %v370_v51  ;;  %3288 = vmatpush1.bf16.msra.mxu0 %v3287_v50  ;;  %v195_v50 = vld [vmem:[%s5973_s1 + $0x120] sm:$0xff]  ;;  %v196_v51 = vld [vmem:[%s5973_s1 + $0x128] sm:$0xff] }
  0x95   :  { %2976 = vmatprep.mubr.msk.f32.mxu1 %vm3696_vm0, %v5984_v1  ;;  %3289 = vmatprep.subr.bf16.mxu0 %v5980_v0  ;;  %v3374_v63 = vpack.c.bf16 %v196_v51, %v195_v50  ;;  %v406_v14 = vsel %vm331_vm1, %v399_v44, %v405_v57  ;;  %v412_v30 = vsel %vm331_vm1, %v405_v57, %v411_v13  ;;  %v202_v44 = vld [vmem:[%s5973_s1 + $0x158] sm:$0xff]  ;;  %v371_v51 = vrot.slane %v4295_v35, 1  ;;  %v4337_v57 = vld [vmem:[%s5972_s0 + $0x190] sm:$0xff] }
  0x96   :  { %3336 = vmatpush1.bf16.msra.mxu1 %v3335_v56  ;;  %v353_v56 = vrot.slane %v4184_v46, 1 }
  0x97   :  { %3337 = vmatprep.subr.bf16.mxu1 %v5980_v0 }
  0x98   :  { %2977 = vmatmul.mubr.f32.gmra.mrb[12].mxu1 %v376_v61  ;;  %3291 = vmatpush1.bf16.msra.mxu0 %v3290_v59  ;;  %v356_v59 = vsel %vm331_vm1, %v349_v28, %v355_v45  ;;  %v4221_v61 = vld [vmem:[%s5972_s0 + $0x78] sm:$0xff]  ;;  %v354_v11 = vsel %vm331_vm1, %v347_v41, %v353_v56  ;;  %v185_v45 = vld [vmem:[%s5973_s1 + $0xd0] sm:$0xff] }
  0x99   :  { %2979 = vmatprep.mubr.msk.f32.mxu1 %vm3696_vm0, %v5984_v1  ;;  %3292 = vmatprep.subr.bf16.mxu0 %v5980_v0 }
  0x9a   :  { %3339 = vmatpush1.bf16.msra.mxu1 %v3338_v6  ;;  %v3350_v6 = vpack.c.bf16 %v180_v54, %v179_v53 }
  0x9b   :  { %3340 = vmatprep.subr.bf16.mxu1 %v5980_v0 }
  0x9c   :  { %2980 = vmatmul.mubr.f32.gmra.mrb[14].mxu1 %v382_v12  ;;  %3294 = vmatpush1.bf16.msra.mxu0 %v3293_v9  ;;  %v181_v9 = vld [vmem:[%s5973_s1 + $0xb0] sm:$0xff]  ;;  %v359_v12 = vrot.slane %v4221_v61, 1 }
  0x9d   :  { %2982 = vmatprep.mubr.msk.f32.mxu1 %vm3696_vm0, %v5984_v1  ;;  %3367 = vmatprep.subr.bf16.mxu0 %v5980_v0 }
  0x9e   :  { %3342 = vmatpush1.bf16.msra.mxu1 %v3341_v20  ;;  %v4263_v20 = vld [vmem:[%s5972_s0 + $0x160] sm:$0xff]  ;;  %v360_v28 = vsel %vm331_vm1, %v353_v56, %v359_v12 }
  0x9f   :  { %619 = vmatmul.mubr.f32.vlgmr.msra.gmra.mrb[0].mxu0 %v334_v23  ;;  %3343 = vmatprep.subr.bf16.mxu1 %v5980_v0  ;;  %v3353_v23 = vpack.c.bf16 %v182_v10, %v181_v9  ;;  %v417_v33 = vrot.slane %v4263_v20, 1  ;;  %v4332_v56 = vld [vmem:[%s5972_s0 + $0xc0] sm:$0xff] }
  0xa0   :  { %2983 = vmatmul.mubr.f32.gmra.mrb[16].mxu1 %v388_v26  ;;  %623 = vmatprep.mubr.f32.mxu0 %v344_v27  ;;  %v183_v26 = vld [vmem:[%s5973_s1 + $0xc0] sm:$0xff]  ;;  %v184_v27 = vld [vmem:[%s5973_s1 + $0xc8] sm:$0xff] }
  0xa1   :  { %2985 = vmatprep.mubr.msk.f32.mxu1 %vm3696_vm0, %v5984_v1  ;;  %3369 = vmatpush3.bf16.msra.mxu0 %v3368_v31  ;;  %v365_v31 = vrot.slane %v4258_v19, 1  ;;  %v3356_v41 = vpack.c.bf16 %v184_v27, %v183_v26  ;;  %v418_v53 = vsel %vm331_vm1, %v411_v13, %v417_v33  ;;  %v429_v13 = vrot.slane %v4337_v57, 1  ;;  %v206_v26 = vld [vmem:[%s5973_s1 + $0x178] sm:$0xff]  ;;  %v189_v27 = vld [vmem:[%s5973_s1 + $0xf0] sm:$0xff] }
  0xa2   :  { %3370 = vmatprep.subr.bf16.mxu0 %v5980_v0  ;;  %3345 = vmatpush1.bf16.msra.mxu1 %v3344_v34  ;;  %v373_v34 = vrot.slane %v4268_v22, 1 }
  0xa3   :  { %624 = vmatmul.mubr.f32.gmra.mrb[2].mxu0 %v342_v39  ;;  %3346 = vmatprep.subr.bf16.mxu1 %v5980_v0  ;;  %v3380_v39 = vpack.c.bf16 %v200_v25, %v199_v24  ;;  %v366_v50 = vsel %vm331_vm1, %v359_v12, %v365_v31  ;;  %v372_v9 = vsel %vm331_vm1, %v365_v31, %v371_v51  ;;  %v205_v25 = vld [vmem:[%s5973_s1 + $0x170] sm:$0xff] }
  0xa4   :  { %2986 = vmatmul.mubr.f32.gmra.mrb[18].mxu1 %v394_v40  ;;  %628 = vmatprep.mubr.f32.mxu0 %v350_v42  ;;  %v4305_v40 = vld [vmem:[%s5972_s0 + $0xc8] sm:$0xff]  ;;  %v201_v42 = vld [vmem:[%s5973_s1 + $0x150] sm:$0xff]  ;;  %v374_v54 = vsel %vm331_vm1, %v367_v18, %v373_v34  ;;  %v3362_v24 = vpack.c.bf16 %v188_v8, %v187_v7 }
  0xa5   :  { %2988 = vmatprep.mubr.msk.f32.mxu1 %vm3696_vm0, %v5984_v1  ;;  %3372 = vmatpush3.bf16.msra.mxu0 %v3371_v48  ;;  %v186_v48 = vld [vmem:[%s5973_s1 + $0xd8] sm:$0xff]  ;;  %v4374_v18 = vld [vmem:[%s5972_s0 + $0x1a8] sm:$0xff] }
  0xa6   :  { %3373 = vmatprep.subr.bf16.mxu0 %v5980_v0  ;;  %3348 = vmatpush1.bf16.msra.mxu1 %v3347_v52  ;;  %v423_v52 = vrot.slane %v4300_v36, 1  ;;  %v3359_v60 = vpack.c.bf16 %v186_v48, %v185_v45  ;;  %v4416_v45 = vld [vmem:[%s5972_s0 + $0x110] sm:$0xff] }
  0xa7   :  { %629 = vmatmul.mubr.f32.gmra.mrb[4].mxu0 %v348_v55  ;;  %3349 = vmatprep.subr.bf16.mxu1 %v5980_v0  ;;  %v379_v55 = vrot.slane %v4305_v40, 1 }
  0xa8   :  { %2989 = vmatmul.mubr.f32.gmra.mrb[20].mxu1 %v400_v58  ;;  %633 = vmatprep.mubr.f32.mxu0 %v356_v59  ;;  %v3383_v58 = vpack.c.bf16 %v202_v44, %v201_v42  ;;  %v4342_v59 = vld [vmem:[%s5972_s0 + $0xe0] sm:$0xff]  ;;  %v424_v10 = vsel %vm331_vm1, %v417_v33, %v423_v52  ;;  %v430_v33 = vsel %vm331_vm1, %v423_v52, %v429_v13 }
  0xa9   :  { %2991 = vmatprep.mubr.msk.f32.mxu1 %vm3696_vm0, %v5984_v1  ;;  %3375 = vmatpush3.bf16.msra.mxu0 %v3374_v63  ;;  %v203_v63 = vld [vmem:[%s5973_s1 + $0x160] sm:$0xff]  ;;  %v380_v12 = vsel %vm331_vm1, %v373_v34, %v379_v55  ;;  %v3389_v42 = vpack.c.bf16 %v206_v26, %v205_v25 }
  0xaa   :  { %3351 = vmatpush1.bf16.msra.mxu1 %v3350_v6  ;;  %3376 = vmatprep.subr.bf16.mxu0 %v5980_v0  ;;  %v204_v6 = vld [vmem:[%s5973_s1 + $0x168] sm:$0xff]  ;;  %v4411_v44 = vld [vmem:[%s5972_s0 + $0x1c0] sm:$0xff] }
  0xab   :  { %634 = vmatmul.mubr.f32.gmra.mrb[6].mxu0 %v354_v11  ;;  %3352 = vmatprep.subr.bf16.mxu1 %v5980_v0  ;;  %v377_v11 = vrot.slane %v4332_v56, 1 }
  0xac   :  { %2992 = vmatmul.mubr.f32.gmra.mrb[22].mxu1 %v406_v14  ;;  %638 = vmatprep.mubr.f32.mxu0 %v362_v16  ;;  %v385_v14 = vrot.slane %v4342_v59, 1  ;;  %v4369_v16 = vld [vmem:[%s5972_s0 + $0xd8] sm:$0xff] }
  0xad   :  { %2994 = vmatprep.mubr.msk.f32.mxu1 %vm3696_vm0, %v5984_v1  ;;  %3378 = vmatpush3.bf16.msra.mxu0 %v3377_v21  ;;  %v3386_v21 = vpack.c.bf16 %v204_v6, %v203_v63  ;;  %v383_v31 = vrot.slane %v4369_v16, 1  ;;  %v4441_v63 = vld [vmem:[%s5972_s0 + $0x128] sm:$0xff] }
  0xae   :  { %3354 = vmatpush1.bf16.msra.mxu1 %v3353_v23  ;;  %3379 = vmatprep.subr.bf16.mxu0 %v5980_v0  ;;  %v4379_v23 = vld [vmem:[%s5972_s0 + $0xf8] sm:$0xff]  ;;  %v386_v34 = vsel %vm331_vm1, %v379_v55, %v385_v14  ;;  %v397_v55 = vrot.slane %v4416_v45, 1 }
  0xaf   :  { %639 = vmatmul.mubr.f32.gmra.mrb[8].mxu0 %v360_v28  ;;  %3355 = vmatprep.subr.bf16.mxu1 %v5980_v0  ;;  %v190_v28 = vld [vmem:[%s5973_s1 + $0xf8] sm:$0xff] }
  0xb0   :  { %2995 = vmatmul.mubr.f32.gmra.mrb[24].mxu1 %v412_v30  ;;  %643 = vmatprep.mubr.f32.mxu0 %v368_v43  ;;  %v378_v30 = vsel %vm331_vm1, %v371_v51, %v377_v11  ;;  %v435_v43 = vrot.slane %v4374_v18, 1  ;;  %v3365_v48 = vpack.c.bf16 %v190_v28, %v189_v27 }
  0xb1   :  { %2997 = vmatprep.mubr.msk.f32.mxu1 %vm3696_vm0, %v5984_v1  ;;  %3381 = vmatpush3.bf16.msra.mxu0 %v3380_v39  ;;  %v391_v39 = vrot.slane %v4379_v23, 1 }
  0xb2   :  { %3357 = vmatpush1.bf16.msra.mxu1 %v3356_v41  ;;  %3382 = vmatprep.subr.bf16.mxu0 %v5980_v0  ;;  %v4406_v41 = vld [vmem:[%s5972_s0 + $0xf0] sm:$0xff]  ;;  %v436_v52 = vsel %vm331_vm1, %v429_v13, %v435_v43 }
  0xb3   :  { %644 = vmatmul.mubr.f32.gmra.mrb[10].mxu0 %v366_v50  ;;  %3358 = vmatprep.subr.bf16.mxu1 %v5980_v0  ;;  %v384_v50 = vsel %vm331_vm1, %v377_v11, %v383_v31  ;;  %v389_v51 = vrot.slane %v4406_v41, 1  ;;  %v403_v11 = vrot.slane %v4441_v63, 1  ;;  %v4461_v13 = vld [vmem:[%s5972_s0 + $0x1f0] sm:$0xff] }
  0xb4   :  { %2998 = vmatmul.mubr.f32.gmra.mrb[26].mxu1 %v418_v53  ;;  %648 = vmatprep.mubr.f32.mxu0 %v374_v54  ;;  %v392_v53 = vsel %vm331_vm1, %v385_v14, %v391_v39  ;;  %v441_v54 = vrot.slane %v4411_v44, 1  ;;  %6000 = vst [vmem:[#allocation14_spill] sm:$0xff] %v4461_v13  ;;  %v4466_v14 = vld [vmem:[%s5972_s0 + $0x140] sm:$0xff]  ;;  %v453_v27 = vrot.slane %v4461_v13, 1 }
  0xb5   :  { %3000 = vmatprep.mubr.msk.f32.mxu1 %vm3696_vm0, %v5984_v1  ;;  %3384 = vmatpush3.bf16.msra.mxu0 %v3383_v58  ;;  %v4431_v58 = vld [vmem:[%s5972_s0 + $0x108] sm:$0xff]  ;;  %v390_v6 = vsel %vm331_vm1, %v383_v31, %v389_v51  ;;  %v404_v26 = vsel %vm331_vm1, %v397_v55, %v403_v11  ;;  %v409_v28 = vrot.slane %v4466_v14, 1 }
  0xb6   :  { %3360 = vmatpush1.bf16.msra.mxu1 %v3359_v60  ;;  %3385 = vmatprep.subr.bf16.mxu0 %v5980_v0  ;;  %v4436_v60 = vld [vmem:[%s5972_s0 + $0x1d8] sm:$0xff]  ;;  %v395_v7 = vrot.slane %v4431_v58, 1  ;;  %v442_v8 = vsel %vm331_vm1, %v435_v43, %v441_v54  ;;  %v4484_v31 = vld [vmem:[%s5972_s0 + $0x208] sm:$0xff] }
  0xb7   :  { %649 = vmatmul.mubr.f32.gmra.mrb[12].mxu0 %v372_v9  ;;  %3361 = vmatprep.subr.bf16.mxu1 %v5980_v0  ;;  %5999 = vst [vmem:[#allocation13_spill] sm:$0xff] %v4436_v60  ;;  %v398_v9 = vsel %vm331_vm1, %v391_v39, %v397_v55  ;;  %6001 = vst [vmem:[#allocation15_spill] sm:$0xff] %v4484_v31  ;;  %v4489_v43 = vld [vmem:[%s5972_s0 + $0x158] sm:$0xff] }
  0xb8   :  { %3001 = vmatmul.mubr.f32.gmra.mrb[28].mxu1 %v424_v10  ;;  %653 = vmatprep.mubr.f32.mxu0 %v380_v12  ;;  %v447_v10 = vrot.slane %v4436_v60, 1  ;;  %v4456_v12 = vld [vmem:[%s5972_s0 + $0x120] sm:$0xff]  ;;  %v4670_v60 = vld [vmem:[%s5972_s0 + $0x210] sm:$0xff] }
  0xb9   :  { %3003 = vmatprep.mubr.msk.f32.mxu1 %vm3696_vm0, %v5984_v1  ;;  %3387 = vmatpush3.bf16.msra.mxu0 %v3386_v21  ;;  %v396_v21 = vsel %vm331_vm1, %v389_v51, %v395_v7  ;;  %v4502_v51 = vld [vmem:[%s5972_s0 + $0x150] sm:$0xff] }
  0xba   :  { %3363 = vmatpush1.bf16.msra.mxu1 %v3362_v24  ;;  %3388 = vmatprep.subr.bf16.mxu0 %v5980_v0  ;;  %v401_v24 = vrot.slane %v4456_v12, 1  ;;  %v448_v25 = vsel %vm331_vm1, %v441_v54, %v447_v10  ;;  %v454_v39 = vsel %vm331_vm1, %v447_v10, %v453_v27  ;;  %v413_v55 = vrot.slane %v4502_v51, 1  ;;  %v4525_v10 = vld [vmem:[%s5972_s0 + $0x168] sm:$0xff] }
  0xbb   :  { %654 = vmatmul.mubr.f32.gmra.mrb[14].mxu0 %v378_v30  ;;  %3364 = vmatprep.subr.bf16.mxu1 %v5980_v0  ;;  %v4479_v30 = vld [vmem:[%s5972_s0 + $0x138] sm:$0xff] }
  0xbc   :  { %3004 = vmatmul.mubr.f32.gmra.mrb[30].mxu1 %v430_v33  ;;  %658 = vmatprep.mubr.f32.mxu0 %v386_v34  ;;  %v402_v33 = vsel %vm331_vm1, %v395_v7, %v401_v24  ;;  %v407_v34 = vrot.slane %v4479_v30, 1 }
  0xbd   :  { %3006 = vmatprep.mubr.msk.f32.mxu1 %vm3696_vm0, %v5984_v1  ;;  %3390 = vmatpush3.bf16.msra.mxu0 %v3389_v42  ;;  %v410_v42 = vsel %vm331_vm1, %v403_v11, %v409_v28  ;;  %v4530_v11 = vld [vmem:[%s5972_s0 + $0x238] sm:$0xff] }
  0xbe   :  { %3366 = vmatpush1.bf16.msra.mxu1 %v3365_v48  ;;  %3439 = vmatprep.subr.bf16.mxu0 %v5980_v0  ;;  %v459_v48 = vrot.slane %v4484_v31, 1  ;;  %v408_v54 = vsel %vm331_vm1, %v401_v24, %v407_v34  ;;  %6003 = vst [vmem:[#allocation17_spill] sm:$0xff] %v4530_v11  ;;  %v414_v24 = vsel %vm331_vm1, %v407_v34, %v413_v55  ;;  %v4553_v34 = vld [vmem:[%s5972_s0 + $0x250] sm:$0xff]  ;;  %v4625_v31 = vld [vmem:[%s5972_s0 + $0x1e0] sm:$0xff] }
  0xbf   :  { %659 = vmatmul.mubr.f32.gmra.mrb[16].mxu0 %v384_v50  ;;  %3391 = vmatprep.subr.bf16.mxu1 %v5980_v0  ;;  %v415_v50 = vrot.slane %v4489_v43, 1  ;;  %6004 = vst [vmem:[#allocation18_spill] sm:$0xff] %v4553_v34 }
  0xc0   :  { %3007 = vmatmul.mubr.f32.gmra.mrb[32].mxu1 %v436_v52  ;;  %663 = vmatprep.mubr.f32.mxu0 %v392_v53  ;;  %v4507_v52 = vld [vmem:[%s5972_s0 + $0x220] sm:$0xff]  ;;  %v4512_v53 = vld [vmem:[%s5972_s0 + $0x170] sm:$0xff] }
  0xc1   :  { %3009 = vmatprep.mubr.msk.f32.mxu1 %vm3696_vm0, %v5984_v1  ;;  %6002 = vst [vmem:[#allocation16_spill] sm:$0xff] %v4507_v52  ;;  %v416_v7 = vsel %vm331_vm1, %v409_v28, %v415_v50  ;;  %v471_v28 = vrot.slane %v4530_v11, 1  ;;  %v4588_v11 = vld [vmem:[%s5972_s0 + $0x1b0] sm:$0xff] }
  0xc3   :  { %664 = vmatmul.mubr.f32.gmra.mrb[18].mxu0 %v390_v6  ;;  %v460_v6 = vsel %vm331_vm1, %v453_v27, %v459_v48 }
  0xc4   :  { %3010 = vmatmul.mubr.f32.gmra.mrb[34].mxu1 %v442_v8  ;;  %668 = vmatprep.mubr.f32.mxu0 %v398_v9  ;;  %v465_v8 = vrot.slane %v4507_v52, 1  ;;  %v421_v9 = vrot.slane %v4512_v53, 1 }
  0xc5   :  { %3012 = vmatprep.mubr.msk.f32.mxu1 %vm3696_vm0, %v5984_v1 }
  0xc6   :  { %v422_v27 = vsel %vm331_vm1, %v415_v50, %v421_v9 }
  0xc7   :  { %669 = vmatmul.mubr.f32.gmra.mrb[20].mxu0 %v396_v21  ;;  %v4535_v21 = vld [vmem:[%s5972_s0 + $0x188] sm:$0xff] }
  0xc8   :  { %3013 = vmatmul.mubr.f32.gmra.mrb[36].mxu1 %v448_v25  ;;  %673 = vmatprep.mubr.f32.mxu0 %v404_v26  ;;  %v419_v25 = vrot.slane %v4525_v10, 1  ;;  %v466_v26 = vsel %vm331_vm1, %v459_v48, %v465_v8 }
  0xc9   :  { %3015 = vmatprep.mubr.msk.f32.mxu1 %vm3696_vm0, %v5984_v1 }
  0xca   :  { %v420_v48 = vsel %vm331_vm1, %v413_v55, %v419_v25  ;;  %v4576_v55 = vld [vmem:[%s5972_s0 + $0x1b8] sm:$0xff] }
  0xcb   :  { %674 = vmatmul.mubr.f32.gmra.mrb[22].mxu0 %v402_v33  ;;  %v427_v33 = vrot.slane %v4535_v21, 1 }
  0xcc   :  { %3016 = vmatmul.mubr.f32.gmra.mrb[38].mxu1 %v454_v39  ;;  %678 = vmatprep.mubr.f32.mxu0 %v410_v42  ;;  %v4548_v39 = vld [vmem:[%s5972_s0 + $0x180] sm:$0xff] }
  0xcd   :  { %3018 = vmatprep.mubr.msk.f32.mxu1 %vm3696_vm0, %v5984_v1  ;;  %v4558_v42 = vld [vmem:[%s5972_s0 + $0x1a0] sm:$0xff]  ;;  %v425_v50 = vrot.slane %v4548_v39, 1 }
  0xce   :  { %v433_v0 = vrot.slane %v4558_v42, 1 }
  0xcf   :  { %679 = vmatmul.mubr.f32.gmra.mrb[24].mxu0 %v408_v54  ;;  %v472_v54 = vsel %vm331_vm1, %v465_v8, %v471_v28  ;;  %v426_v8 = vsel %vm331_vm1, %v419_v25, %v425_v50  ;;  %v4593_v25 = vld [vmem:[%s5972_s0 + $0x1d0] sm:$0xff] }
  0xd0   :  { %3019 = vmatmul.mubr.f32.gmra.mrb[40].mxu1 %v460_v6  ;;  %683 = vmatprep.mubr.f32.mxu0 %v416_v7  ;;  %v428_v6 = vsel %vm331_vm1, %v421_v9, %v427_v33  ;;  %v477_v7 = vrot.slane %v4553_v34, 1  ;;  %v439_v34 = vrot.slane %v4576_v55, 1 }
  0xd1   :  { %3021 = vmatprep.mubr.msk.f32.mxu1 %vm3696_vm0, %v5984_v1 }
  0xd3   :  { %684 = vmatmul.mubr.f32.gmra.mrb[26].mxu0 %v414_v24  ;;  %v4571_v24 = vld [vmem:[%s5972_s0 + $0x198] sm:$0xff] }
  0xd4   :  { %3022 = vmatmul.mubr.f32.gmra.mrb[42].mxu1 %v466_v26  ;;  %688 = vmatprep.mubr.f32.mxu0 %v422_v27  ;;  %v431_v9 = vrot.slane %v4571_v24, 1  ;;  %v478_v26 = vsel %vm331_vm1, %v471_v28, %v477_v7  ;;  %v434_v27 = vsel %vm331_vm1, %v427_v33, %v433_v0  ;;  %v437_v28 = vrot.slane %v4588_v11, 1 }
  0xd5   :  { %3024 = vmatprep.mubr.msk.f32.mxu1 %vm3696_vm0, %v5984_v1  ;;  %v440_v33 = vsel %vm331_vm1, %v433_v0, %v439_v34  ;;  %v2702_v0 = vld [vmem:[%s5973_s1 + $0x308] sm:$0xff] }
  0xd7   :  { %689 = vmatmul.mubr.f32.gmra.mrb[28].mxu0 %v420_v48  ;;  %v432_v48 = vsel %vm331_vm1, %v425_v50, %v431_v9  ;;  %v2701_v50 = vld [vmem:[%s5973_s1 + $0x300] sm:$0xff] }
  0xd8   :  { %3025 = vmatmul.mubr.f32.gmra.mrb[44].mxu1 %v472_v54  ;;  %693 = vmatprep.mubr.f32.mxu0 %v428_v6  ;;  %v445_v54 = vrot.slane %v4593_v25, 1  ;;  %v4604_v6 = vld [vmem:[%s5972_s0 + $0x1c8] sm:$0xff]  ;;  %v3392_v13 = vpack.c.bf16 %v2702_v0, %v2701_v50  ;;  %v4647_v0 = vld [vmem:[%s5972_s0 + $0x1f8] sm:$0xff] }
  0xd9   :  { %3027 = vmatprep.mubr.msk.f32.mxu1 %vm3696_vm0, %v5984_v1 }
  0xdb   :  { %694 = vmatmul.mubr.f32.gmra.mrb[30].mxu0 %v426_v8  ;;  %v4609_v8 = vld [vmem:[%s5972_s0 + $0x1e8] sm:$0xff] }
  0xdc   :  { %3028 = vmatmul.mubr.f32.gmra.mrb[46].mxu1 %v478_v26  ;;  %698 = vmatprep.mubr.f32.mxu0 %v434_v27  ;;  %v438_v26 = vsel %vm331_vm1, %v431_v9, %v437_v28  ;;  %v443_v27 = vrot.slane %v4604_v6, 1  ;;  %v451_v52 = vrot.slane %v4609_v8, 1  ;;  %v2703_v9 = vld [vmem:[%s5973_s1 + $0x310] sm:$0xff] }
  0xdd   :  { %3030 = vmatprep.mubr.msk.f32.mxu1 %vm3696_vm0, %v5984_v1  ;;  %v446_v1 = vsel %vm331_vm1, %v439_v34, %v445_v54 }
  0xde   :  { %v444_v34 = vsel %vm331_vm1, %v437_v28, %v443_v27  ;;  %v2706_v28 = vld [vmem:[%s5973_s1 + $0x328] sm:$0xff] }
  0xdf   :  { %699 = vmatmul.mubr.f32.gmra.mrb[32].mxu0 %v432_v48  ;;  %v449_v48 = vrot.slane %v4625_v31, 1 }
  0xe0   :  { %3031 = vmatmul.mubr.f32.gmra.mrb[48].mxu1 %v477_v7  ;;  %703 = vmatprep.mubr.f32.mxu0 %v440_v33  ;;  %v4630_v7 = vld [vmem:[%s5972_s0 + $0x200] sm:$0xff]  ;;  %v452_v33 = vsel %vm331_vm1, %v445_v54, %v451_v52  ;;  %v455_v54 = vrot.slane %v4647_v0, 1 }
  0xe1   :  { %998 = vmatprep.mubr.f32.mxu1 %v3886_v37  ;;  %v2704_v37 = vld [vmem:[%s5973_s1 + $0x318] sm:$0xff]  ;;  %v457_v50 = vrot.slane %v4630_v7, 1 }
  0xe3   :  { %704 = vmatmul.mubr.f32.gmra.mrb[34].mxu0 %v438_v26  ;;  %v3395_v26 = vpack.c.bf16 %v2704_v37, %v2703_v9  ;;  %v458_v9 = vsel %vm331_vm1, %v451_v52, %v457_v50  ;;  %v2708_v52 = vld [vmem:[%s5973_s1 + $0x338] sm:$0xff] }
  0xe4   :  { %999 = vmatmul.mubr.f32.vlgmr.msra.gmra.mrb[50].mxu1 %v4080_v2  ;;  %708 = vmatprep.mubr.f32.mxu0 %v446_v1  ;;  %v4652_v1 = vld [vmem:[%s5972_s0 + $0x218] sm:$0xff]  ;;  %v6005_v2 = vmov 0.0|0.0  }
  0xe5   :  { %1003 = vmatprep.mubr.f32.mxu1 %v3891_v38  ;;  %3393 = vmatpush1.bf16.msra.mxu1 %v3392_v13  ;;  %v2705_v38 = vld [vmem:[%s5973_s1 + $0x320] sm:$0xff]  ;;  %v450_v13 = vsel %vm331_vm1, %v443_v27, %v449_v48  ;;  %v463_v37 = vrot.slane %v4652_v1, 1  ;;  %v456_v27 = vsel %vm331_vm1, %v449_v48, %v455_v54  ;;  %v2710_v48 = vld [vmem:[%s5973_s1 + $0x348] sm:$0xff] }
  0xe6   :  { %3394 = vmatprep.subr.bf16.mxu1 %v6005_v2 }
  0xe7   :  { %709 = vmatmul.mubr.f32.gmra.mrb[36].mxu0 %v444_v34  ;;  %v3398_v34 = vpack.c.bf16 %v2706_v28, %v2705_v38  ;;  %v4693_v28 = vld [vmem:[%s5972_s0 + $0x228] sm:$0xff] }
  0xe8   :  { %1004 = vmatmul.mubr.f32.gmra.mrb[52].mxu1 %v4085_v3  ;;  %713 = vmatprep.mubr.f32.mxu0 %v452_v33  ;;  %v4675_v3 = vld [vmem:[%s5972_s0 + $0x230] sm:$0xff]  ;;  %v461_v33 = vrot.slane %v4670_v60, 1 }
  0xe9   :  { %1008 = vmatprep.mubr.f32.mxu1 %v4093_v5  ;;  %3396 = vmatpush1.bf16.msra.mxu1 %v3395_v26  ;;  %v2707_v5 = vld [vmem:[%s5973_s1 + $0x330] sm:$0xff]  ;;  %v464_v26 = vsel %vm331_vm1, %v457_v50, %v463_v37  ;;  %v469_v38 = vrot.slane %v4675_v3, 1 }
  0xea   :  { %3397 = vmatprep.subr.bf16.mxu1 %v6005_v2  ;;  %v462_v50 = vsel %vm331_vm1, %v455_v54, %v461_v33 }
  0xeb   :  { %714 = vmatmul.mubr.f32.gmra.mrb[38].mxu0 %v450_v13  ;;  %v3401_v13 = vpack.c.bf16 %v2708_v52, %v2707_v5  ;;  %v4716_v52 = vld [vmem:[%s5972_s0 + $0x240] sm:$0xff] }
  0xec   :  { %1009 = vmatmul.mubr.f32.gmra.mrb[54].mxu1 %v4112_v15  ;;  %718 = vmatprep.mubr.f32.mxu0 %v458_v9  ;;  %v4698_v15 = vld [vmem:[%s5972_s0 + $0x248] sm:$0xff]  ;;  %v467_v9 = vrot.slane %v4693_v28, 1 }
  0xed   :  { %1013 = vmatprep.mubr.f32.mxu1 %v4120_v17  ;;  %3399 = vmatpush1.bf16.msra.mxu1 %v3398_v34  ;;  %v2709_v17 = vld [vmem:[%s5973_s1 + $0x340] sm:$0xff]  ;;  %v470_v34 = vsel %vm331_vm1, %v463_v37, %v469_v38  ;;  %v475_v5 = vrot.slane %v4698_v15, 1  ;;  %v473_v37 = vrot.slane %v4716_v52, 1 }
  0xee   :  { %3400 = vmatprep.subr.bf16.mxu1 %v6005_v2  ;;  %v468_v54 = vsel %vm331_vm1, %v461_v33, %v467_v9 }
  0xef   :  { %719 = vmatmul.mubr.f32.gmra.mrb[40].mxu0 %v456_v27  ;;  %v3404_v27 = vpack.c.bf16 %v2710_v48, %v2709_v17  ;;  %v2713_v17 = vld [vmem:[%s5973_s1 + $0x360] sm:$0xff]  ;;  %v2716_v48 = vld [vmem:[%s5973_s1 + $0x378] sm:$0xff] }
  0xf0   :  { %1014 = vmatmul.mubr.f32.gmra.mrb[56].mxu1 %v4147_v29  ;;  %723 = vmatprep.mubr.f32.mxu0 %v464_v26  ;;  %v2711_v29 = vld [vmem:[%s5973_s1 + $0x350] sm:$0xff]  ;;  %v476_v26 = vsel %vm331_vm1, %v469_v38, %v475_v5 }
  0xf1   :  { %1018 = vmatprep.mubr.f32.mxu1 %v4158_v32  ;;  %3402 = vmatpush1.bf16.msra.mxu1 %v3401_v13  ;;  %v2712_v32 = vld [vmem:[%s5973_s1 + $0x358] sm:$0xff]  ;;  %v2715_v38 = vld [vmem:[%s5973_s1 + $0x370] sm:$0xff] }
  0xf2   :  { %3403 = vmatprep.subr.bf16.mxu1 %v6005_v2  ;;  %v3407_v13 = vpack.c.bf16 %v2712_v32, %v2711_v29  ;;  %v4776_v32 = vld [vmem:[%s5972_s0 + $0x10] sm:$0xff] }
  0xf3   :  { %724 = vmatmul.mubr.f32.gmra.mrb[42].mxu0 %v462_v50  ;;  %v2734_v50 = vld [vmem:[%s5973_s1 + $0x408] sm:$0xff] }
  0xf4   :  { %1019 = vmatmul.mubr.f32.gmra.mrb[58].mxu1 %v4184_v46  ;;  %728 = vmatprep.mubr.f32.mxu0 %v470_v34  ;;  %v2714_v46 = vld [vmem:[%s5973_s1 + $0x368] sm:$0xff] }
  0xf5   :  { %1023 = vmatprep.mubr.f32.mxu1 %v4194_v49  ;;  %3405 = vmatpush1.bf16.msra.mxu1 %v3404_v27  ;;  %v474_v49 = vsel %vm331_vm1, %v467_v9, %v473_v37  ;;  %v3410_v33 = vpack.c.bf16 %v2714_v46, %v2713_v17  ;;  %v6006_v9 = vmov 0.0   ;;  %v2736_v27 = vld [vmem:[%s5973_s1 + $0x418] sm:$0xff]  ;;  %v2738_v17 = vld [vmem:[%s5973_s1 + $0x428] sm:$0xff] }
  0xf6   :  { %3406 = vmatprep.subr.bf16.mxu1 %v6005_v2 }
  0xf7   :  { %729 = vmatmul.mubr.f32.gmra.mrb[44].mxu0 %v468_v54  ;;  %v2719_v54 = vld [vmem:[%s5973_s1 + $0x390] sm:$0xff] }
  0xf8   :  { %1024 = vmatmul.mubr.f32.gmra.mrb[60].mxu1 %v4221_v61  ;;  %733 = vmatprep.mubr.f32.mxu0 %v476_v26  ;;  %v3413_v61 = vpack.c.bf16 %v2716_v48, %v2715_v38  ;;  %v2722_v38 = vld [vmem:[%s5973_s1 + $0x3a8] sm:$0xff] }
  0xf9   :  { %1028 = vmatprep.mubr.f32.mxu1 %v4231_v4  ;;  %3408 = vmatpush1.bf16.msra.mxu1 %v3407_v13  ;;  %v2733_v4 = vld [vmem:[%s5973_s1 + $0x400] sm:$0xff] }
  0xfa   :  { %3409 = vmatprep.subr.bf16.mxu1 %v6005_v2  ;;  %v3440_v34 = vpack.c.bf16 %v2734_v50, %v2733_v4  ;;  %v2737_v13 = vld [vmem:[%s5973_s1 + $0x420] sm:$0xff]  ;;  %v2740_v4 = vld [vmem:[%s5973_s1 + $0x438] sm:$0xff] }
  0xfb   :  { %734 = vmatmul.mubr.f32.gmra.mrb[46].mxu0 %v474_v49  ;;  %v4799_v49 = vld [vmem:[%s5972_s0 + $0x28] sm:$0xff]  ;;  %v3446_v48 = vpack.c.bf16 %v2738_v17, %v2737_v13 }
  0xfc   :  { %1029 = vmatmul.mubr.f32.gmra.mrb[62].mxu1 %v4258_v19  ;;  %738 = vmatprep.mubr.f32.mxu0 %v475_v5  ;;  %v2717_v19 = vld [vmem:[%s5973_s1 + $0x380] sm:$0xff]  ;;  %v2735_v5 = vld [vmem:[%s5973_s1 + $0x410] sm:$0xff]  ;;  %v2726_v13 = vld [vmem:[%s5973_s1 + $0x3c8] sm:$0xff] }
  0xfd   :  { %1033 = vmatprep.mubr.f32.mxu1 %v4268_v22  ;;  %3411 = vmatpush1.bf16.msra.mxu1 %v3410_v33  ;;  %v2718_v22 = vld [vmem:[%s5973_s1 + $0x388] sm:$0xff]  ;;  %v3443_v26 = vpack.c.bf16 %v2736_v27, %v2735_v5  ;;  %v2721_v33 = vld [vmem:[%s5973_s1 + $0x3a0] sm:$0xff] }
  0xfe   :  { %3412 = vmatprep.subr.bf16.mxu1 %v6005_v2  ;;  %v3416_v29 = vpack.c.bf16 %v2718_v22, %v2717_v19  ;;  %v3422_v50 = vpack.c.bf16 %v2722_v38, %v2721_v33  ;;  %v4823_v19 = vld [vmem:[%s5972_s0 + $0x40] sm:$0xff]  ;;  %v2723_v22 = vld [vmem:[%s5973_s1 + $0x3b0] sm:$0xff]  ;;  %v2744_v33 = vld [vmem:[%s5973_s1 + $0x458] sm:$0xff] }
  0xff   :  { %739 = vmatmul.mubr.f32.gmra.mrb[48].mxu0 %v473_v37  ;;  %v2720_v37 = vld [vmem:[%s5973_s1 + $0x398] sm:$0xff]  ;;  %v2741_v27 = vld [vmem:[%s5973_s1 + $0x440] sm:$0xff] }
 0x100   :  { %1034 = vmatmul.mubr.f32.gmra.mrb[64].mxu1 %v4295_v35  ;;  %3065 = vmatprep.mubr.msk.f32.mxu0 %vm3696_vm0, %v6006_v9  ;;  %v3419_v46 = vpack.c.bf16 %v2720_v37, %v2719_v54  ;;  %v4847_v37 = vld [vmem:[%s5972_s0 + $0x58] sm:$0xff] }
 0x101   :  { %1038 = vmatprep.mubr.f32.mxu1 %v4305_v40  ;;  %3414 = vmatpush1.bf16.msra.mxu1 %v3413_v61  ;;  %v2739_v61 = vld [vmem:[%s5973_s1 + $0x430] sm:$0xff] }
 0x102   :  { %3415 = vmatprep.subr.bf16.mxu1 %v6005_v2  ;;  %v3449_v5 = vpack.c.bf16 %v2740_v4, %v2739_v61  ;;  %v2727_v61 = vld [vmem:[%s5973_s1 + $0x3d0] sm:$0xff]  ;;  %v2728_v4 = vld [vmem:[%s5973_s1 + $0x3d8] sm:$0xff] }
 0x103   :  { %3066 = vmatmul.mubr.f32.vlgmr.msra.gmra.mrb[50].mxu0 %v4776_v32 }
 0x104   :  { %1039 = vmatmul.mubr.f32.gmra.mrb[66].mxu1 %v4332_v56  ;;  %3068 = vmatprep.mubr.msk.f32.mxu0 %vm3696_vm0, %v6006_v9 }
 0x105   :  { %1043 = vmatprep.mubr.f32.mxu1 %v4342_v59  ;;  %3441 = vmatpush3.bf16.msra.mxu0 %v3440_v34  ;;  %v2724_v34 = vld [vmem:[%s5973_s1 + $0x3b8] sm:$0xff] }
 0x106   :  { %3442 = vmatprep.subr.bf16.mxu0 %v6005_v2  ;;  %3417 = vmatpush1.bf16.msra.mxu1 %v3416_v29  ;;  %v2742_v29 = vld [vmem:[%s5973_s1 + $0x448] sm:$0xff]  ;;  %v3425_v54 = vpack.c.bf16 %v2724_v34, %v2723_v22  ;;  %v2745_v22 = vld [vmem:[%s5973_s1 + $0x460] sm:$0xff] }
 0x107   :  { %3069 = vmatmul.mubr.f32.gmra.mrb[52].mxu0 %v4799_v49  ;;  %3418 = vmatprep.subr.bf16.mxu1 %v6005_v2  ;;  %v3452_v17 = vpack.c.bf16 %v2742_v29, %v2741_v27  ;;  %v2746_v34 = vld [vmem:[%s5973_s1 + $0x468] sm:$0xff]  ;;  %v2729_v29 = vld [vmem:[%s5973_s1 + $0x3e0] sm:$0xff] }
 0x108   :  { %1044 = vmatmul.mubr.f32.gmra.mrb[68].mxu1 %v4369_v16  ;;  %3071 = vmatprep.mubr.msk.f32.mxu0 %vm3696_vm0, %v6006_v9  ;;  %v4895_v27 = vld [vmem:[%s5972_s0 + $0x88] sm:$0xff] }
 0x109   :  { %1048 = vmatprep.mubr.f32.mxu1 %v4379_v23  ;;  %3444 = vmatpush3.bf16.msra.mxu0 %v3443_v26  ;;  %v2725_v26 = vld [vmem:[%s5973_s1 + $0x3c0] sm:$0xff] }
 0x10a   :  { %3445 = vmatprep.subr.bf16.mxu0 %v6005_v2  ;;  %3420 = vmatpush1.bf16.msra.mxu1 %v3419_v46  ;;  %v2743_v46 = vld [vmem:[%s5973_s1 + $0x450] sm:$0xff]  ;;  %v3428_v38 = vpack.c.bf16 %v2726_v13, %v2725_v26  ;;  %v3458_v26 = vpack.c.bf16 %v2746_v34, %v2745_v22  ;;  %v4937_v22 = vld [vmem:[%s5972_s0 + $0xb8] sm:$0xff] }
 0x10b   :  { %3072 = vmatmul.mubr.f32.gmra.mrb[54].mxu0 %v4823_v19  ;;  %3421 = vmatprep.subr.bf16.mxu1 %v6005_v2  ;;  %v4949_v34 = vld [vmem:[%s5972_s0 + $0xd0] sm:$0xff] }
 0x10c   :  { %1049 = vmatmul.mubr.f32.gmra.mrb[70].mxu1 %v4406_v41  ;;  %3074 = vmatprep.mubr.msk.f32.mxu0 %vm3696_vm0, %v6006_v9 }
 0x10d   :  { %1053 = vmatprep.mubr.f32.mxu1 %v4416_v45  ;;  %3447 = vmatpush3.bf16.msra.mxu0 %v3446_v48  ;;  %v4871_v48 = vld [vmem:[%s5972_s0 + $0x70] sm:$0xff] }
 0x10e   :  { %3448 = vmatprep.subr.bf16.mxu0 %v6005_v2  ;;  %3423 = vmatpush1.bf16.msra.mxu1 %v3422_v50  ;;  %v3455_v50 = vpack.c.bf16 %v2744_v33, %v2743_v46  ;;  %v2748_v46 = vld [vmem:[%s5973_s1 + $0x478] sm:$0xff]  ;;  %v4919_v33 = vld [vmem:[%s5972_s0 + $0xa0] sm:$0xff] }
 0x10f   :  { %3075 = vmatmul.mubr.f32.gmra.mrb[56].mxu0 %v4847_v37  ;;  %3424 = vmatprep.subr.bf16.mxu1 %v6005_v2 }
 0x110   :  { %1054 = vmatmul.mubr.f32.gmra.mrb[72].mxu1 %v4431_v58  ;;  %3077 = vmatprep.mubr.msk.f32.mxu0 %vm3696_vm0, %v6006_v9 }
 0x111   :  { %1058 = vmatprep.mubr.f32.mxu1 %v4441_v63  ;;  %3450 = vmatpush3.bf16.msra.mxu0 %v3449_v5  ;;  %v3431_v5 = vpack.c.bf16 %v2728_v4, %v2727_v61  ;;  %v2732_v61 = vld [vmem:[%s5973_s1 + $0x3f8] sm:$0xff] }
 0x112   :  { %3451 = vmatprep.subr.bf16.mxu0 %v6005_v2  ;;  %3426 = vmatpush1.bf16.msra.mxu1 %v3425_v54  ;;  %v2730_v54 = vld [vmem:[%s5973_s1 + $0x3e8] sm:$0xff] }
 0x113   :  { %3078 = vmatmul.mubr.f32.gmra.mrb[58].mxu0 %v4871_v48  ;;  %3427 = vmatprep.subr.bf16.mxu1 %v6005_v2  ;;  %v3434_v13 = vpack.c.bf16 %v2730_v54, %v2729_v29  ;;  %v4970_v29 = vld [vmem:[%s5972_s0 + $0x100] sm:$0xff]  ;;  %v4980_v54 = vld [vmem:[%s5972_s0 + $0x118] sm:$0xff] }
 0x114   :  { %1059 = vmatmul.mubr.f32.gmra.mrb[74].mxu1 %v4456_v12  ;;  %3080 = vmatprep.mubr.msk.f32.mxu0 %vm3696_vm0, %v6006_v9 }
 0x115   :  { %1063 = vmatprep.mubr.f32.mxu1 %v4466_v14  ;;  %3453 = vmatpush3.bf16.msra.mxu0 %v3452_v17  ;;  %v2747_v17 = vld [vmem:[%s5973_s1 + $0x470] sm:$0xff] }
 0x116   :  { %3454 = vmatprep.subr.bf16.mxu0 %v6005_v2  ;;  %3429 = vmatpush1.bf16.msra.mxu1 %v3428_v38  ;;  %v2731_v38 = vld [vmem:[%s5973_s1 + $0x3f0] sm:$0xff]  ;;  %v3461_v4 = vpack.c.bf16 %v2748_v46, %v2747_v17  ;;  %v3549_v46 = vld [vmem:[%s5972_s0 + $0x18] sm:$0xff] }
 0x117   :  { %3081 = vmatmul.mubr.f32.gmra.mrb[60].mxu0 %v4895_v27  ;;  %3430 = vmatprep.subr.bf16.mxu1 %v6005_v2 }
 0x118   :  { %1064 = vmatmul.mubr.f32.gmra.mrb[76].mxu1 %v4479_v30  ;;  %3083 = vmatprep.mubr.msk.f32.mxu0 %vm3696_vm0, %v6006_v9 }
 0x119   :  { %1068 = vmatprep.mubr.f32.mxu1 %v4489_v43  ;;  %3456 = vmatpush3.bf16.msra.mxu0 %v3455_v50  ;;  %v3437_v50 = vpack.c.bf16 %v2732_v61, %v2731_v38  ;;  %v1365_v38 = vrot.slane %v3549_v46, 2  ;;  %v3550_v61 = vld [vmem:[%s5972_s0 + $0x38] sm:$0xff]  ;;  %v3553_v46 = vld [vmem:[%s5972_s0 + $0x48] sm:$0xff] }
 0x11a   :  { %3457 = vmatprep.subr.bf16.mxu0 %v6005_v2  ;;  %3432 = vmatpush1.bf16.msra.mxu1 %v3431_v5  ;;  %v4960_v5 = vld [vmem:[%s5972_s0 + $0xe8] sm:$0xff] }
 0x11b   :  { %3084 = vmatmul.mubr.f32.gmra.mrb[62].mxu0 %v4919_v33  ;;  %3433 = vmatprep.subr.bf16.mxu1 %v6005_v2 }
 0x11c   :  { %1069 = vmatmul.mubr.f32.gmra.mrb[78].mxu1 %v4502_v51  ;;  %3086 = vmatprep.mubr.msk.f32.mxu0 %vm3696_vm0, %v6006_v9 }
 0x11d   :  { %1073 = vmatprep.mubr.f32.mxu1 %v4512_v53  ;;  %3459 = vmatpush3.bf16.msra.mxu0 %v3458_v26  ;;  %v3547_v26 = vld [vmem:[%s5972_s0 + $0x20] sm:$0xff] }
 0x11e   :  { %3435 = vmatpush1.bf16.msra.mxu1 %v3434_v13  ;;  %3460 = vmatprep.subr.bf16.mxu0 %v6005_v2  ;;  %v1368_v13 = vrot.slane %v3547_v26, 2 }
 0x11f   :  { %3087 = vmatmul.mubr.f32.gmra.mrb[64].mxu0 %v4937_v22  ;;  %3436 = vmatprep.subr.bf16.mxu1 %v6005_v2 }
 0x120   :  { %1074 = vmatmul.mubr.f32.gmra.mrb[80].mxu1 %v4525_v10  ;;  %3089 = vmatprep.mubr.msk.f32.mxu0 %vm3696_vm0, %v6006_v9 }
 0x121   :  { %1078 = vmatprep.mubr.f32.mxu1 %v4535_v21  ;;  %3462 = vmatpush3.bf16.msra.mxu0 %v3461_v4  ;;  %v1375_v4 = vrot.slane %v3550_v61, 2  ;;  %v3554_v61 = vld [vmem:[%s5972_s0 + $0x68] sm:$0xff] }
 0x122   :  { %3438 = vmatpush1.bf16.msra.mxu1 %v3437_v50  ;;  %3463 = vmatprep.subr.bf16.mxu0 %v6005_v2 }
 0x123   :  { %3090 = vmatmul.mubr.f32.gmra.mrb[66].mxu0 %v4949_v34  ;;  %3499 = vmatprep.subr.bf16.mxu1 %v6005_v2  ;;  %v1376_v26 = vsel %vm1363_vm2, %v1368_v13, %v1375_v4 }
 0x124   :  { %1079 = vmatmul.mubr.f32.gmra.mrb[82].mxu1 %v4548_v39  ;;  %3092 = vmatprep.mubr.msk.f32.mxu0 %vm3696_vm0, %v6006_v9 }
 0x125   :  { %1083 = vmatprep.mubr.f32.mxu1 %v4558_v42 }
 0x127   :  { %3093 = vmatmul.mubr.f32.gmra.mrb[68].mxu0 %v4960_v5 }
 0x128   :  { %1084 = vmatmul.mubr.f32.gmra.mrb[84].mxu1 %v4571_v24  ;;  %3095 = vmatprep.mubr.msk.f32.mxu0 %vm3696_vm0, %v6006_v9 }
 0x129   :  { %1088 = vmatprep.mubr.f32.mxu1 %v4576_v55 }
 0x12b   :  { %3096 = vmatmul.mubr.f32.gmra.mrb[70].mxu0 %v4970_v29 }
 0x12c   :  { %1089 = vmatmul.mubr.f32.gmra.mrb[86].mxu1 %v4588_v11  ;;  %3098 = vmatprep.mubr.msk.f32.mxu0 %vm3696_vm0, %v6006_v9 }
 0x12d   :  { %1093 = vmatprep.mubr.f32.mxu1 %v4593_v25 }
 0x12f   :  { %3099 = vmatmul.mubr.f32.gmra.mrb[72].mxu0 %v4980_v54 }
 0x130   :  { %1094 = vmatmul.mubr.f32.gmra.mrb[88].mxu1 %v4604_v6  ;;  %3101 = vmatprep.mubr.msk.f32.mxu0 %vm3696_vm0, %v6006_v9 }
 0x131   :  { %1098 = vmatprep.mubr.f32.mxu1 %v4609_v8 }
 0x133   :  { %3102 = vmatmul.mubr.f32.gmra.mrb[74].mxu0 %v4189_v47  ;;  %v3546_v47 = vld [vmem:[%s5972_s0 + $0x8] sm:$0xff] }
 0x134   :  { %1099 = vmatmul.mubr.f32.gmra.mrb[90].mxu1 %v4625_v31  ;;  %3104 = vmatprep.mubr.msk.f32.mxu0 %vm3696_vm0, %v6006_v9 }
 0x135   :  { %1103 = vmatprep.mubr.f32.mxu1 %v4630_v7 }
 0x137   :  { %3105 = vmatmul.mubr.f32.gmra.mrb[76].mxu0 %v4226_v62  ;;  %v1367_v62 = vrot.slane %v3546_v47, 2  ;;  %v3551_v47 = vld [vmem:[%s5972_s0 + $0x30] sm:$0xff] }
 0x138   :  { %1104 = vmatmul.mubr.f32.gmra.mrb[92].mxu1 %v4647_v0  ;;  %3107 = vmatprep.mubr.msk.f32.mxu0 %vm3696_vm0, %v6006_v9 }
 0x139   :  { %1108 = vmatprep.mubr.f32.mxu1 %v4652_v1 }
 0x13b   :  { %3108 = vmatmul.mubr.f32.gmra.mrb[78].mxu0 %v4263_v20  ;;  %v3548_v20 = vld [vmem:[%s5972_s0] sm:$0xff] }
 0x13c   :  { %1109 = vmatmul.mubr.f32.gmra.mrb[94].mxu1 %v4670_v60  ;;  %3110 = vmatprep.mubr.msk.f32.mxu0 %vm3696_vm0, %v6006_v9  ;;  %v1364_v17 = vrot.slane %v3548_v20, 2  ;;  %v3552_v20 = vld [vmem:[%s5972_s0 + $0x50] sm:$0xff] }
 0x13d   :  { %1113 = vmatprep.mubr.f32.mxu1 %v4675_v3 }
 0x13e   :  { %v1366_v50 = vsel %vm1363_vm2, %v1364_v17, %v1365_v38 }
 0x13f   :  { %3111 = vmatmul.mubr.f32.gmra.mrb[80].mxu0 %v4300_v36  ;;  %v1369_v36 = vsel %vm1363_vm2, %v1367_v62, %v1368_v13  ;;  %v1373_v62 = vrot.slane %v3551_v47, 2  ;;  %v1387_v47 = vrot.slane %v3554_v61, 2 }
 0x140   :  { %1114 = vmatmul.mubr.f32.gmra.mrb[96].mxu1 %v4693_v28  ;;  %3113 = vmatprep.mubr.msk.f32.mxu0 %vm3696_vm0, %v6006_v9 }
 0x141   :  { %1118 = vmatprep.mubr.f32.mxu1 %v4698_v15  ;;  %v1374_v17 = vsel %vm1363_vm2, %v1365_v38, %v1373_v62  ;;  %v3555_v38 = vld [vmem:[%s5972_s0 + $0x60] sm:$0xff] }
 0x143   :  { %3114 = vmatmul.mubr.f32.gmra.mrb[82].mxu0 %v4337_v57  ;;  %v1381_v57 = vrot.slane %v3552_v20, 2 }
 0x144   :  { %1119 = vmatmul.mubr.f32.gmra.mrb[98].mxu1 %v4716_v52  ;;  %3116 = vmatprep.mubr.msk.f32.mxu0 %vm3696_vm0, %v6006_v9 }
 0x145   :  { %1650 = vmatprep.mubr.f32.mxu1 %v1369_v36  ;;  %v1379_v36 = vrot.slane %v3553_v46, 2  ;;  %v1382_v13 = vsel %vm1363_vm2, %v1375_v4, %v1381_v57  ;;  %v1388_v4 = vsel %vm1363_vm2, %v1381_v57, %v1387_v47 }
 0x147   :  { %3117 = vmatmul.mubr.f32.gmra.mrb[84].mxu0 %v4374_v18  ;;  %v1380_v18 = vsel %vm1363_vm2, %v1373_v62, %v1379_v36 }
 0x148   :  { %3119 = vmatprep.mubr.msk.f32.mxu0 %vm3696_vm0, %v6006_v9  ;;  %1651 = vmatmul.mubr.f32.vlgmr.msra.gmra.mrb[100].mxu1 %v1366_v50  ;;  %v1385_v50 = vrot.slane %v3555_v38, 2  ;;  %v6008_v38 = vld [vmem:[#allocation14_spill] sm:$0xff] }
 0x149   :  { %1655 = vmatprep.mubr.f32.mxu1 %v1376_v26  ;;  %v3556_v26 = vld [vmem:[%s5972_s0 + $0x80] sm:$0xff] }
 0x14a   :  { %v1393_v20 = vrot.slane %v3556_v26, 2  ;;  %v1386_v62 = vsel %vm1363_vm2, %v1379_v36, %v1385_v50 }
 0x14b   :  { %3120 = vmatmul.mubr.f32.gmra.mrb[86].mxu0 %v4411_v44  ;;  %v6007_v44 = vld [vmem:[#allocation13_spill] sm:$0xff] }
 0x14c   :  { %3122 = vmatprep.mubr.msk.f32.mxu0 %vm3696_vm0, %v6006_v9  ;;  %1656 = vmatmul.mubr.f32.gmra.mrb[102].mxu1 %v1374_v17  ;;  %v3557_v17 = vld [vmem:[%s5972_s0 + $0x78] sm:$0xff]  ;;  %v1394_v57 = vsel %vm1363_vm2, %v1387_v47, %v1393_v20  ;;  %v3559_v47 = vld [vmem:[%s5972_s0 + $0x90] sm:$0xff] }
 0x14d   :  { %1660 = vmatprep.mubr.f32.mxu1 %v1382_v13  ;;  %v1391_v46 = vrot.slane %v3557_v17, 2  ;;  %v3558_v13 = vld [vmem:[%s5972_s0 + $0x98] sm:$0xff]  ;;  %v3560_v17 = vld [vmem:[%s5972_s0 + $0xb0] sm:$0xff] }
 0x14e   :  { %v1399_v61 = vrot.slane %v3558_v13, 2  ;;  %v1405_v13 = vrot.slane %v3560_v17, 2 }
 0x14f   :  { %3123 = vmatmul.mubr.f32.gmra.mrb[88].mxu0 %v6007_v44 }
 0x150   :  { %3125 = vmatprep.mubr.msk.f32.mxu0 %vm3696_vm0, %v6006_v9  ;;  %1661 = vmatmul.mubr.f32.gmra.mrb[104].mxu1 %v1380_v18  ;;  %v1392_v18 = vsel %vm1363_vm2, %v1385_v50, %v1391_v46  ;;  %v1400_v44 = vsel %vm1363_vm2, %v1393_v20, %v1399_v61  ;;  %v1406_v20 = vsel %vm1363_vm2, %v1399_v61, %v1405_v13  ;;  %v1417_v61 = vrot.slane %v4342_v59, 2 }
 0x151   :  { %1665 = vmatprep.mubr.f32.mxu1 %v1388_v4  ;;  %v1397_v4 = vrot.slane %v3559_v47, 2  ;;  %v6010_v47 = vld [vmem:[#allocation16_spill] sm:$0xff] }
 0x153   :  { %3126 = vmatmul.mubr.f32.gmra.mrb[90].mxu0 %v6008_v38  ;;  %v5069_v26 = vpop.f32.mrb[0].mxu1  ;;  %v6009_v38 = vld [vmem:[#allocation15_spill] sm:$0xff] }
 0x154   :  { %3128 = vmatprep.mubr.msk.f32.mxu0 %vm3696_vm0, %v6006_v9  ;;  %v2960_v36 = vpop.f32.mrb[1].mxu1  ;;  %1666 = vmatmul.mubr.f32.gmra.mrb[106].mxu1 %v1386_v62  ;;  %v1398_v62 = vsel %vm1363_vm2, %v1391_v46, %v1397_v4  ;;  %v1409_v46 = vrot.slane %v4332_v56, 2 }
 0x155   :  { %1670 = vmatprep.mubr.f32.mxu1 %v1394_v57  ;;  %v1403_v57 = vrot.slane %v4295_v35, 2  ;;  %v1411_v36 = vrot.slane %v4305_v40, 2 }
 0x157   :  { %3129 = vmatmul.mubr.f32.gmra.mrb[92].mxu0 %v6009_v38  ;;  %v5082_v2 = vpop.f32.mrb[2].mxu1  ;;  %v1412_v35 = vsel %vm1363_vm2, %v1405_v13, %v1411_v36  ;;  %v1410_v56 = vsel %vm1363_vm2, %v1403_v57, %v1409_v46  ;;  %v1418_v59 = vsel %vm1363_vm2, %v1411_v36, %v1417_v61  ;;  %v1423_v13 = vrot.slane %v4379_v23, 2 }
 0x158   :  { %3131 = vmatprep.mubr.msk.f32.mxu0 %vm3696_vm0, %v6006_v9  ;;  %v2963_v50 = vpop.f32.mrb[3].mxu1  ;;  %1671 = vmatmul.mubr.f32.gmra.mrb[108].mxu1 %v1392_v18  ;;  %v1404_v18 = vsel %vm1363_vm2, %v1397_v4, %v1403_v57  ;;  %v1415_v4 = vrot.slane %v4369_v16, 2  ;;  %v1421_v57 = vrot.slane %v4406_v41, 2  ;;  %v1429_v36 = vrot.slane %v4416_v45, 2 }
 0x159   :  { %1675 = vmatprep.mubr.f32.mxu1 %v1400_v44  ;;  %v6011_v44 = vld [vmem:[#allocation17_spill] sm:$0xff]  ;;  %v1370_v50 = vrot.slane %v4776_v32, 2  ;;  %v1424_v23 = vsel %vm1363_vm2, %v1417_v61, %v1423_v13  ;;  %v1427_v41 = vrot.slane %v4431_v58, 2  ;;  %v1435_v45 = vrot.slane %v4441_v63, 2 }
 0x15a   :  { %v1416_v16 = vsel %vm1363_vm2, %v1409_v46, %v1415_v4  ;;  %v1422_v46 = vsel %vm1363_vm2, %v1415_v4, %v1421_v57  ;;  %v1430_v61 = vsel %vm1363_vm2, %v1423_v13, %v1429_v36  ;;  %v1433_v58 = vrot.slane %v4456_v12, 2 }
 0x15b   :  { %3132 = vmatmul.mubr.f32.gmra.mrb[94].mxu0 %v6010_v47  ;;  %v5091_v17 = vpop.f32.mrb[4].mxu1  ;;  %v6012_v47 = vld [vmem:[#allocation18_spill] sm:$0xff]  ;;  %v1428_v4 = vsel %vm1363_vm2, %v1421_v57, %v1427_v41  ;;  %v1441_v63 = vrot.slane %v4466_v14, 2  ;;  %v1439_v12 = vrot.slane %v4479_v30, 2 }
 0x15c   :  { %3134 = vmatprep.mubr.msk.f32.mxu0 %vm3696_vm0, %v6006_v9  ;;  %v2966_v38 = vpop.f32.mrb[5].mxu1  ;;  %1676 = vmatmul.mubr.f32.gmra.mrb[110].mxu1 %v1398_v62  ;;  %v1371_v62 = vrot.slane %v4799_v49, 2  ;;  %v1377_v49 = vrot.slane %v4823_v19, 2  ;;  %v1383_v19 = vrot.slane %v4847_v37, 2  ;;  %v1389_v37 = vrot.slane %v4871_v48, 2 }
 0x15d   :  { %1680 = vmatprep.mubr.f32.mxu1 %v1406_v20  ;;  %v1395_v48 = vrot.slane %v4895_v27, 2  ;;  %v1442_v14 = vsel %vm1363_vm2, %v1435_v45, %v1441_v63 }
 0x15e   :  { %v1372_v32 = vsel %vm1363_vm2, %v1370_v50, %v1371_v62 }
 0x15f   :  { %3135 = vmatmul.mubr.f32.gmra.mrb[96].mxu0 %v6011_v44  ;;  %v5100_v40 = vpop.f32.mrb[6].mxu1  ;;  %v1378_v44 = vsel %vm1363_vm2, %v1371_v62, %v1377_v49  ;;  %v1384_v62 = vsel %vm1363_vm2, %v1377_v49, %v1383_v19  ;;  %v1434_v49 = vsel %vm1363_vm2, %v1427_v41, %v1433_v58  ;;  %v1396_v27 = vsel %vm1363_vm2, %v1389_v37, %v1395_v48 }
 0x160   :  { %3137 = vmatprep.mubr.msk.f32.mxu0 %vm3696_vm0, %v6006_v9  ;;  %v2969_v20 = vpop.f32.mrb[7].mxu1  ;;  %1681 = vmatmul.mubr.f32.gmra.mrb[112].mxu1 %v1404_v18 }
 0x161   :  { %1685 = vmatprep.mubr.f32.mxu1 %v1412_v35 }
 0x163   :  { %3138 = vmatmul.mubr.f32.gmra.mrb[98].mxu0 %v6012_v47  ;;  %v5111_v38 = vpop.f32.mrb[8].mxu1  ;;  %v1390_v47 = vsel %vm1363_vm2, %v1383_v19, %v1389_v37  ;;  %v1440_v19 = vsel %vm1363_vm2, %v1433_v58, %v1439_v12 }
 0x164   :  { %3172 = vmatprep.mubr.msk.f32.mxu0 %vm3696_vm0, %v6006_v9  ;;  %v2972_v18 = vpop.f32.mrb[9].mxu1  ;;  %1686 = vmatmul.mubr.f32.gmra.mrb[114].mxu1 %v1410_v56 }
 0x165   :  { %1690 = vmatprep.mubr.f32.mxu1 %v1418_v59  ;;  %v1436_v59 = vsel %vm1363_vm2, %v1429_v36, %v1435_v45 }
 0x167   :  { %3173 = vmatmul.mubr.f32.vlgmr.msra.gmra.mrb[100].mxu0 %v1372_v32  ;;  %v5121_v35 = vpop.f32.mrb[10].mxu1 }
 0x168   :  { %3175 = vmatprep.mubr.msk.f32.mxu0 %vm3696_vm0, %v6006_v9  ;;  %v2975_v50 = vpop.f32.mrb[11].mxu1  ;;  %1691 = vmatmul.mubr.f32.gmra.mrb[116].mxu1 %v1416_v16  ;;  %v1447_v16 = vrot.slane %v4489_v43, 2  ;;  %v1445_v43 = vrot.slane %v4502_v51, 2 }
 0x169   :  { %1695 = vmatprep.mubr.f32.mxu1 %v1424_v23 }
 0x16a   :  { %v1448_v50 = vsel %vm1363_vm2, %v1441_v63, %v1447_v16  ;;  %v1446_v37 = vsel %vm1363_vm2, %v1439_v12, %v1445_v43 }
 0x16b   :  { %3176 = vmatmul.mubr.f32.gmra.mrb[102].mxu0 %v1378_v44  ;;  %v5131_v20 = vpop.f32.mrb[12].mxu1  ;;  %v1401_v44 = vrot.slane %v4919_v33, 2 }
 0x16c   :  { %3178 = vmatprep.mubr.msk.f32.mxu0 %vm3696_vm0, %v6006_v9  ;;  %v2978_v56 = vpop.f32.mrb[13].mxu1  ;;  %1696 = vmatmul.mubr.f32.gmra.mrb[118].mxu1 %v1422_v46  ;;  %v1453_v46 = vrot.slane %v4512_v53, 2  ;;  %v1451_v53 = vrot.slane %v4525_v10, 2 }
 0x16d   :  { %1700 = vmatprep.mubr.f32.mxu1 %v1430_v61  ;;  %v1402_v33 = vsel %vm1363_vm2, %v1395_v48, %v1401_v44 }
 0x16e   :  { %v1454_v56 = vsel %vm1363_vm2, %v1447_v16, %v1453_v46  ;;  %v1452_v48 = vsel %vm1363_vm2, %v1445_v43, %v1451_v53  ;;  %v1419_v16 = vrot.slane %v4960_v5, 2 }
 0x16f   :  { %3179 = vmatmul.mubr.f32.gmra.mrb[104].mxu0 %v1384_v62  ;;  %v5141_v13 = vpop.f32.mrb[14].mxu1  ;;  %v1407_v62 = vrot.slane %v4937_v22, 2 }
 0x170   :  { %3181 = vmatprep.mubr.msk.f32.mxu0 %vm3696_vm0, %v6006_v9  ;;  %v2981_v32 = vpop.f32.mrb[15].mxu1  ;;  %1701 = vmatmul.mubr.f32.gmra.mrb[120].mxu1 %v1428_v4  ;;  %v1459_v4 = vrot.slane %v4535_v21, 2  ;;  %v1457_v21 = vrot.slane %v4548_v39, 2 }
 0x171   :  { %1705 = vmatprep.mubr.f32.mxu1 %v1436_v59  ;;  %v1408_v22 = vsel %vm1363_vm2, %v1401_v44, %v1407_v62  ;;  %v1471_v44 = vrot.slane %v4576_v55, 2  ;;  %v1469_v55 = vrot.slane %v4588_v11, 2 }
 0x172   :  { %v620_v18 = vpop.f32.mrb[0].mxu0  ;;  %v1460_v32 = vsel %vm1363_vm2, %v1453_v46, %v1459_v4 }
 0x173   :  { %v5152_v57 = vadd.f32 %v5069_v26, %v620_v18  ;;  %v622_v23 = vpop.f32.mrb[1].mxu0  ;;  %3182 = vmatmul.mubr.f32.gmra.mrb[106].mxu0 %v1390_v47  ;;  %v5154_v36 = vpop.f32.mrb[16].mxu1  ;;  %v1413_v47 = vrot.slane %v4949_v34, 2 }
 0x174   :  { %3184 = vmatprep.mubr.msk.f32.mxu0 %vm3696_vm0, %v6006_v9  ;;  %v2984_v30 = vpop.f32.mrb[17].mxu1  ;;  %1706 = vmatmul.mubr.f32.gmra.mrb[122].mxu1 %v1434_v49  ;;  %v1465_v49 = vrot.slane %v4558_v42, 2  ;;  %v1458_v23 = vsel %vm1363_vm2, %v1451_v53, %v1457_v21  ;;  %v1463_v42 = vrot.slane %v4571_v24, 2 }
 0x175   :  { %1710 = vmatprep.mubr.f32.mxu1 %v1442_v14  ;;  %v1414_v34 = vsel %vm1363_vm2, %v1407_v62, %v1413_v47  ;;  %v1420_v5 = vsel %vm1363_vm2, %v1413_v47, %v1419_v16 }
 0x176   :  { %v625_v26 = vpop.f32.mrb[2].mxu0  ;;  %v1472_v46 = vsel %vm1363_vm2, %v1465_v49, %v1471_v44  ;;  %v1470_v53 = vsel %vm1363_vm2, %v1463_v42, %v1469_v55 }
 0x177   :  { %v5165_v41 = vadd.f32 %v5082_v2, %v625_v26  ;;  %v627_v61 = vpop.f32.mrb[3].mxu0  ;;  %3185 = vmatmul.mubr.f32.gmra.mrb[108].mxu0 %v1396_v27  ;;  %v5167_v45 = vpop.f32.mrb[18].mxu1  ;;  %v1466_v27 = vsel %vm1363_vm2, %v1459_v4, %v1465_v49  ;;  %v1425_v26 = vrot.slane %v4970_v29, 2 }
 0x178   :  { %3187 = vmatprep.mubr.msk.f32.mxu0 %vm3696_vm0, %v6006_v9  ;;  %v2987_v51 = vpop.f32.mrb[19].mxu1  ;;  %1711 = vmatmul.mubr.f32.gmra.mrb[124].mxu1 %v1440_v19  ;;  %v1477_v61 = vrot.slane %v4593_v25, 2  ;;  %v1475_v25 = vrot.slane %v4604_v6, 2  ;;  %v3561_v6 = vld [vmem:[%s5972_s0 + $0x130] sm:$0xff] }
 0x179   :  { %1715 = vmatprep.mubr.f32.mxu1 %v1448_v50  ;;  %v1464_v50 = vsel %vm1363_vm2, %v1457_v21, %v1463_v42  ;;  %v1426_v29 = vsel %vm1363_vm2, %v1419_v16, %v1425_v26  ;;  %v1437_v47 = vrot.slane %v3561_v6, 2 }
 0x17a   :  { %v630_v2 = vpop.f32.mrb[4].mxu0 }
 0x17b   :  { %v5178_v58 = vadd.f32 %v5091_v17, %v630_v2  ;;  %v632_v59 = vpop.f32.mrb[5].mxu0  ;;  %3188 = vmatmul.mubr.f32.gmra.mrb[110].mxu0 %v1402_v33  ;;  %v5180_v63 = vpop.f32.mrb[20].mxu1  ;;  %v1478_v2 = vsel %vm1363_vm2, %v1471_v44, %v1477_v61 }
 0x17c   :  { %3190 = vmatprep.mubr.msk.f32.mxu0 %vm3696_vm0, %v6006_v9  ;;  %v2990_v10 = vpop.f32.mrb[21].mxu1  ;;  %1716 = vmatmul.mubr.f32.gmra.mrb[126].mxu1 %v1446_v37  ;;  %v1431_v37 = vrot.slane %v4980_v54, 2 }
 0x17d   :  { %1720 = vmatprep.mubr.f32.mxu1 %v1454_v56  ;;  %v1483_v56 = vrot.slane %v4609_v8, 2  ;;  %v1476_v8 = vsel %vm1363_vm2, %v1469_v55, %v1475_v25 }
 0x17e   :  { %v635_v17 = vpop.f32.mrb[6].mxu0  ;;  %v1432_v54 = vsel %vm1363_vm2, %v1425_v26, %v1431_v37 }
 0x17f   :  { %v5191_v12 = vadd.f32 %v5100_v40, %v635_v17  ;;  %v637_v18 = vpop.f32.mrb[7].mxu0  ;;  %3191 = vmatmul.mubr.f32.gmra.mrb[112].mxu0 %v1408_v22  ;;  %v5193_v14 = vpop.f32.mrb[22].mxu1  ;;  %v1484_v21 = vsel %vm1363_vm2, %v1477_v61, %v1483_v56  ;;  %v1489_v17 = vrot.slane %v4630_v7, 2 }
 0x180   :  { %3193 = vmatprep.mubr.msk.f32.mxu0 %vm3696_vm0, %v6006_v9  ;;  %v2993_v39 = vpop.f32.mrb[23].mxu1  ;;  %1721 = vmatmul.mubr.f32.gmra.mrb[128].mxu1 %v1452_v48 }
 0x181   :  { %1725 = vmatprep.mubr.f32.mxu1 %v1460_v32  ;;  %v1490_v42 = vsel %vm1363_vm2, %v1483_v56, %v1489_v17 }
 0x182   :  { %v640_v40 = vpop.f32.mrb[8].mxu0 }
 0x183   :  { %v5204_v30 = vadd.f32 %v5111_v38, %v640_v40  ;;  %v642_v19 = vpop.f32.mrb[9].mxu0  ;;  %3194 = vmatmul.mubr.f32.gmra.mrb[114].mxu0 %v1414_v34  ;;  %v5206_v43 = vpop.f32.mrb[24].mxu1  ;;  %v1438_v34 = vsel %vm1363_vm2, %v1431_v37, %v1437_v47  ;;  %v1495_v40 = vrot.slane %v4652_v1, 2 }
 0x184   :  { %3196 = vmatprep.mubr.msk.f32.mxu0 %vm3696_vm0, %v6006_v9  ;;  %v2996_v24 = vpop.f32.mrb[25].mxu1  ;;  %1726 = vmatmul.mubr.f32.gmra.mrb[130].mxu1 %v1458_v23 }
 0x185   :  { %1730 = vmatprep.mubr.f32.mxu1 %v1466_v27  ;;  %v1496_v55 = vsel %vm1363_vm2, %v1489_v17, %v1495_v40 }
 0x186   :  { %v645_v38 = vpop.f32.mrb[10].mxu0 }
 0x187   :  { %v5217_v33 = vadd.f32 %v5121_v35, %v645_v38  ;;  %v647_v62 = vpop.f32.mrb[11].mxu0  ;;  %3197 = vmatmul.mubr.f32.gmra.mrb[116].mxu0 %v1420_v5  ;;  %v5219_v51 = vpop.f32.mrb[26].mxu1  ;;  %v1501_v38 = vrot.slane %v4675_v3, 2 }
 0x188   :  { %3199 = vmatprep.mubr.msk.f32.mxu0 %vm3696_vm0, %v6006_v9  ;;  %v2999_v11 = vpop.f32.mrb[27].mxu1  ;;  %1731 = vmatmul.mubr.f32.gmra.mrb[132].mxu1 %v1464_v50 }
 0x189   :  { %1735 = vmatprep.mubr.f32.mxu1 %v1472_v46 }
 0x18a   :  { %v650_v35 = vpop.f32.mrb[12].mxu0 }
 0x18b   :  { %v5230_v4 = vadd.f32 %v5131_v20, %v650_v35  ;;  %v652_v59 = vpop.f32.mrb[13].mxu0  ;;  %3200 = vmatmul.mubr.f32.gmra.mrb[118].mxu0 %v1426_v29  ;;  %v5232_v22 = vpop.f32.mrb[28].mxu1  ;;  %v1481_v20 = vrot.slane %v4625_v31, 2  ;;  %v3562_v31 = vld [vmem:[%s5972_s0 + $0x148] sm:$0xff]  ;;  %v1507_v35 = vrot.slane %v4698_v15, 2 }
 0x18c   :  { %3202 = vmatprep.mubr.msk.f32.mxu0 %vm3696_vm0, %v6006_v9  ;;  %v3002_v10 = vpop.f32.mrb[29].mxu1  ;;  %1736 = vmatmul.mubr.f32.gmra.mrb[134].mxu1 %v1470_v53  ;;  %v1443_v16 = vrot.slane %v3562_v31, 2 }
 0x18d   :  { %1740 = vmatprep.mubr.f32.mxu1 %v1478_v2  ;;  %v1482_v7 = vsel %vm1363_vm2, %v1475_v25, %v1481_v20  ;;  %v1502_v25 = vsel %vm1363_vm2, %v1495_v40, %v1501_v38 }
 0x18e   :  { %v655_v48 = vpop.f32.mrb[14].mxu0  ;;  %v1444_v5 = vsel %vm1363_vm2, %v1437_v47, %v1443_v16 }
 0x18f   :  { %v5245_v32 = vadd.f32 %v5141_v13, %v655_v48  ;;  %v657_v49 = vpop.f32.mrb[15].mxu0  ;;  %3203 = vmatmul.mubr.f32.gmra.mrb[120].mxu0 %v1432_v54  ;;  %v5247_v18 = vpop.f32.mrb[30].mxu1  ;;  %v1487_v13 = vrot.slane %v4647_v0, 2  ;;  %v3563_v0 = vld [vmem:[%s5972_s0 + $0x160] sm:$0xff] }
 0x190   :  { %3205 = vmatprep.mubr.msk.f32.mxu0 %vm3696_vm0, %v6006_v9  ;;  %v3005_v39 = vpop.f32.mrb[31].mxu1  ;;  %1741 = vmatmul.mubr.f32.gmra.mrb[136].mxu1 %v1476_v8  ;;  %v1449_v26 = vrot.slane %v3563_v0, 2  ;;  %v1508_v8 = vsel %vm1363_vm2, %v1501_v38, %v1507_v35  ;;  %v3566_v49 = vld [vmem:[%s5972_s0 + $0x1a8] sm:$0xff] }
 0x191   :  { %1745 = vmatprep.mubr.f32.mxu1 %v1484_v21  ;;  %v1488_v1 = vsel %vm1363_vm2, %v1481_v20, %v1487_v13 }
 0x192   :  { %v660_v23 = vpop.f32.mrb[16].mxu0  ;;  %v1450_v29 = vsel %vm1363_vm2, %v1443_v16, %v1449_v26 }
 0x193   :  { %v5260_v27 = vadd.f32 %v5154_v36, %v660_v23  ;;  %v662_v44 = vpop.f32.mrb[17].mxu0  ;;  %3206 = vmatmul.mubr.f32.gmra.mrb[122].mxu0 %v1438_v34  ;;  %v5262_v19 = vpop.f32.mrb[32].mxu1  ;;  %v1493_v36 = vrot.slane %v4670_v60, 2  ;;  %v3564_v60 = vld [vmem:[%s5972_s0 + $0x178] sm:$0xff]  ;;  %v3567_v23 = vld [vmem:[%s5972_s0 + $0x1c0] sm:$0xff] }
 0x194   :  { %3208 = vmatprep.mubr.msk.f32.mxu0 %vm3696_vm0, %v6006_v9  ;;  %v3008_v24 = vpop.f32.mrb[33].mxu1  ;;  %1746 = vmatmul.mubr.f32.gmra.mrb[138].mxu1 %v1482_v7  ;;  %v1455_v37 = vrot.slane %v3564_v60, 2  ;;  %v3569_v60 = vld [vmem:[%s5972_s0 + $0x1f0] sm:$0xff] }
 0x195   :  { %1750 = vmatprep.mubr.f32.mxu1 %v1490_v42  ;;  %v1494_v3 = vsel %vm1363_vm2, %v1487_v13, %v1493_v36  ;;  %v1473_v42 = vrot.slane %v3567_v23, 2 }
 0x196   :  { %v665_v50 = vpop.f32.mrb[18].mxu0  ;;  %v1456_v54 = vsel %vm1363_vm2, %v1449_v26, %v1455_v37 }
 0x197   :  { %v5275_v46 = vadd.f32 %v5167_v45, %v665_v50  ;;  %v667_v61 = vpop.f32.mrb[19].mxu0  ;;  %3209 = vmatmul.mubr.f32.gmra.mrb[124].mxu0 %v1444_v5  ;;  %v5277_v62 = vpop.f32.mrb[34].mxu1  ;;  %v1499_v45 = vrot.slane %v4693_v28, 2  ;;  %v3565_v28 = vld [vmem:[%s5972_s0 + $0x190] sm:$0xff] }
 0x198   :  { %3211 = vmatprep.mubr.msk.f32.mxu0 %vm3696_vm0, %v6006_v9  ;;  %v3011_v11 = vpop.f32.mrb[35].mxu1  ;;  %1751 = vmatmul.mubr.f32.gmra.mrb[140].mxu1 %v1488_v1  ;;  %v1461_v6 = vrot.slane %v3565_v28, 2  ;;  %v3568_v1 = vld [vmem:[%s5972_s0 + $0x1d8] sm:$0xff] }
 0x199   :  { %1755 = vmatprep.mubr.f32.mxu1 %v1496_v55  ;;  %v1500_v15 = vsel %vm1363_vm2, %v1493_v36, %v1499_v45  ;;  %v1479_v36 = vrot.slane %v3568_v1, 2 }
 0x19a   :  { %v670_v53 = vpop.f32.mrb[20].mxu0  ;;  %v1462_v17 = vsel %vm1363_vm2, %v1455_v37, %v1461_v6  ;;  %v1485_v37 = vrot.slane %v3569_v60, 2 }
 0x19b   :  { %v5290_v2 = vadd.f32 %v5180_v63, %v670_v53  ;;  %v672_v56 = vpop.f32.mrb[21].mxu0  ;;  %3212 = vmatmul.mubr.f32.gmra.mrb[126].mxu0 %v1450_v29  ;;  %v5292_v59 = vpop.f32.mrb[36].mxu1  ;;  %v1505_v63 = vrot.slane %v4716_v52, 2  ;;  %v1467_v52 = vrot.slane %v3566_v49, 2  ;;  %v1480_v61 = vsel %vm1363_vm2, %v1473_v42, %v1479_v36 }
 0x19c   :  { %3214 = vmatprep.mubr.msk.f32.mxu0 %vm3696_vm0, %v6006_v9  ;;  %v3014_v47 = vpop.f32.mrb[37].mxu1  ;;  %1756 = vmatmul.mubr.f32.gmra.mrb[142].mxu1 %v1494_v3 }
 0x19d   :  { %1760 = vmatprep.mubr.f32.mxu1 %v1502_v25  ;;  %v1468_v13 = vsel %vm1363_vm2, %v1461_v6, %v1467_v52  ;;  %v1474_v26 = vsel %vm1363_vm2, %v1467_v52, %v1473_v42  ;;  %v1486_v25 = vsel %vm1363_vm2, %v1479_v36, %v1485_v37 }
 0x19e   :  { %v675_v10 = vpop.f32.mrb[22].mxu0 }
 0x19f   :  { %v5304_v20 = vadd.f32 %v5193_v14, %v675_v10  ;;  %v677_v48 = vpop.f32.mrb[23].mxu0  ;;  %3215 = vmatmul.mubr.f32.gmra.mrb[128].mxu0 %v1456_v54  ;;  %v5306_v21 = vpop.f32.mrb[38].mxu1  ;;  %v1506_v14 = vsel %vm1363_vm2, %v1499_v45, %v1505_v63 }
 0x1a0   :  { %3217 = vmatprep.mubr.msk.f32.mxu0 %vm3696_vm0, %v6006_v9  ;;  %v3017_v34 = vpop.f32.mrb[39].mxu1  ;;  %1761 = vmatmul.mubr.f32.gmra.mrb[144].mxu1 %v1500_v15 }
 0x1a1   :  { %1765 = vmatprep.mubr.f32.mxu1 %v1508_v8 }
 0x1a2   :  { %v680_v31 = vpop.f32.mrb[24].mxu0 }
 0x1a3   :  { %v5316_v16 = vadd.f32 %v5206_v43, %v680_v31  ;;  %v682_v39 = vpop.f32.mrb[25].mxu0  ;;  %3218 = vmatmul.mubr.f32.gmra.mrb[130].mxu0 %v1462_v17  ;;  %v5318_v7 = vpop.f32.mrb[40].mxu1 }
 0x1a4   :  { %3220 = vmatprep.mubr.msk.f32.mxu0 %vm3696_vm0, %v6006_v9  ;;  %v3020_v40 = vpop.f32.mrb[41].mxu1  ;;  %1766 = vmatmul.mubr.f32.gmra.mrb[146].mxu1 %v1506_v14  ;;  %v3572_v14 = vld [vmem:[%s5972_s0 + $0x238] sm:$0xff] }
 0x1a5   :  { %1770 = vmatprep.mubr.f32.mxu1 %v1507_v35  ;;  %v3570_v35 = vld [vmem:[%s5972_s0 + $0x208] sm:$0xff]  ;;  %v1503_v31 = vrot.slane %v3572_v14, 2 }
 0x1a6   :  { %v685_v44 = vpop.f32.mrb[26].mxu0  ;;  %v1491_v56 = vrot.slane %v3570_v35, 2 }
 0x1a7   :  { %v5327_v43 = vadd.f32 %v5219_v51, %v685_v44  ;;  %v687_v5 = vpop.f32.mrb[27].mxu0  ;;  %3221 = vmatmul.mubr.f32.gmra.mrb[132].mxu0 %v1468_v13  ;;  %v5329_v0 = vpop.f32.mrb[42].mxu1  ;;  %v3573_v44 = vld [vmem:[%s5972_s0 + $0x250] sm:$0xff] }
 0x1a8   :  { %3223 = vmatprep.mubr.msk.f32.mxu0 %vm3696_vm0, %v6006_v9  ;;  %v3023_v24 = vpop.f32.mrb[43].mxu1  ;;  %1771 = vmatmul.mubr.f32.gmra.mrb[148].mxu1 %v1505_v63  ;;  %v1492_v15 = vsel %vm1363_vm2, %v1485_v37, %v1491_v56  ;;  %v3571_v63 = vld [vmem:[%s5972_s0 + $0x220] sm:$0xff]  ;;  %v1509_v5 = vrot.slane %v3573_v44, 2 }
 0x1a9   :  { %v1497_v10 = vrot.slane %v3571_v63, 2 }
 0x1aa   :  { %v690_v50 = vpop.f32.mrb[28].mxu0 }
 0x1ab   :  { %v5338_v51 = vadd.f32 %v5232_v22, %v690_v50  ;;  %v692_v55 = vpop.f32.mrb[29].mxu0  ;;  %3224 = vmatmul.mubr.f32.gmra.mrb[134].mxu0 %v1474_v26  ;;  %v5340_v38 = vpop.f32.mrb[44].mxu1  ;;  %v1498_v34 = vsel %vm1363_vm2, %v1491_v56, %v1497_v10  ;;  %v1504_v40 = vsel %vm1363_vm2, %v1497_v10, %v1503_v31  ;;  %v1510_v50 = vsel %vm1363_vm2, %v1503_v31, %v1509_v5 }
 0x1ac   :  { %3226 = vmatprep.mubr.msk.f32.mxu0 %vm3696_vm0, %v6006_v9  ;;  %v3026_v29 = vpop.f32.mrb[45].mxu1 }
 0x1ae   :  { %v695_v11 = vpop.f32.mrb[30].mxu0 }
 0x1af   :  { %v5349_v3 = vadd.f32 %v5247_v18, %v695_v11  ;;  %v697_v22 = vpop.f32.mrb[31].mxu0  ;;  %3227 = vmatmul.mubr.f32.gmra.mrb[136].mxu0 %v1480_v61  ;;  %v5351_v45 = vpop.f32.mrb[46].mxu1 }
 0x1b0   :  { %3229 = vmatprep.mubr.msk.f32.mxu0 %vm3696_vm0, %v6006_v9  ;;  %v3029_v53 = vpop.f32.mrb[47].mxu1 }
 0x1b2   :  { %v700_v54 = vpop.f32.mrb[32].mxu0 }
 0x1b3   :  { %v5360_v28 = vadd.f32 %v5262_v19, %v700_v54  ;;  %v702_v18 = vpop.f32.mrb[33].mxu0  ;;  %3230 = vmatmul.mubr.f32.gmra.mrb[138].mxu0 %v1486_v25  ;;  %v5362_v6 = vpop.f32.mrb[48].mxu1 }
 0x1b4   :  { %v3032_v47 = vpop.f32.mrb[49].mxu1  ;;  %3232 = vmatprep.mubr.msk.f32.mxu0 %vm3696_vm0, %v6006_v9 }
 0x1b6   :  { %v705_v8 = vpop.f32.mrb[34].mxu0 }
 0x1b7   :  { %v5371_v48 = vadd.f32 %v5277_v62, %v705_v8  ;;  %v1000_v19 = vpop.f32.mrb[50].mxu1  ;;  %v707_v17 = vpop.f32.mrb[35].mxu0  ;;  %3233 = vmatmul.mubr.f32.gmra.mrb[140].mxu0 %v1492_v15 }
 0x1b8   :  { %v1001_v49 = vadd.f32 %v1000_v19, %v5152_v57  ;;  %v1002_v52 = vpop.f32.mrb[51].mxu1  ;;  %3235 = vmatprep.mubr.msk.f32.mxu0 %vm3696_vm0, %v6006_v9 }
 0x1ba   :  { %v710_v39 = vpop.f32.mrb[36].mxu0 }
 0x1bb   :  { %v5381_v62 = vadd.f32 %v5292_v59, %v710_v39  ;;  %v1005_v13 = vpop.f32.mrb[52].mxu1  ;;  %v712_v23 = vpop.f32.mrb[37].mxu0  ;;  %3236 = vmatmul.mubr.f32.gmra.mrb[142].mxu0 %v1498_v34 }
 0x1bc   :  { %v1006_v57 = vadd.f32 %v1005_v13, %v5165_v41  ;;  %v1007_v42 = vpop.f32.mrb[53].mxu1  ;;  %3238 = vmatprep.mubr.msk.f32.mxu0 %vm3696_vm0, %v6006_v9 }
 0x1be   :  { %v715_v26 = vpop.f32.mrb[38].mxu0 }
 0x1bf   :  { %v5391_v59 = vadd.f32 %v5306_v21, %v715_v26  ;;  %v1010_v24 = vpop.f32.mrb[54].mxu1  ;;  %v717_v1 = vpop.f32.mrb[39].mxu0  ;;  %3239 = vmatmul.mubr.f32.gmra.mrb[144].mxu0 %v1504_v40 }
 0x1c0   :  { %v1011_v41 = vadd.f32 %v1010_v24, %v5178_v58  ;;  %v1012_v36 = vpop.f32.mrb[55].mxu1  ;;  %3241 = vmatprep.mubr.msk.f32.mxu0 %vm3696_vm0, %v6006_v9 }
 0x1c2   :  { %v720_v55 = vpop.f32.mrb[40].mxu0 }
 0x1c3   :  { %v5398_v61 = vadd.f32 %v5318_v7, %v720_v55  ;;  %v1015_v29 = vpop.f32.mrb[56].mxu1  ;;  %v722_v60 = vpop.f32.mrb[41].mxu0  ;;  %3242 = vmatmul.mubr.f32.gmra.mrb[146].mxu0 %v1510_v50 }
 0x1c4   :  { %v1016_v21 = vadd.f32 %v1015_v29, %v5191_v12  ;;  %v1017_v37 = vpop.f32.mrb[57].mxu1  ;;  %3244 = vmatprep.mubr.msk.f32.mxu0 %vm3696_vm0, %v6006_v9 }
 0x1c6   :  { %v725_v58 = vpop.f32.mrb[42].mxu0 }
 0x1c7   :  { %v5404_v11 = vadd.f32 %v5329_v0, %v725_v58  ;;  %v1020_v22 = vpop.f32.mrb[58].mxu1  ;;  %v727_v53 = vpop.f32.mrb[43].mxu0  ;;  %3245 = vmatmul.mubr.f32.gmra.mrb[148].mxu0 %v1509_v5 }
 0x1c8   :  { %v1021_v25 = vadd.f32 %v1020_v22, %v5204_v30  ;;  %v1022_v7 = vpop.f32.mrb[59].mxu1 }
 0x1ca   :  { %v730_v35 = vpop.f32.mrb[44].mxu0 }
 0x1cb   :  { %v5408_v56 = vadd.f32 %v5340_v38, %v730_v35  ;;  %v1025_v54 = vpop.f32.mrb[60].mxu1  ;;  %v732_v12 = vpop.f32.mrb[45].mxu0 }
 0x1cc   :  { %v1026_v18 = vadd.f32 %v1025_v54, %v5217_v33  ;;  %v1027_v47 = vpop.f32.mrb[61].mxu1 }
 0x1ce   :  { %v735_v15 = vpop.f32.mrb[46].mxu0 }
 0x1cf   :  { %v5412_v63 = vadd.f32 %v5351_v45, %v735_v15  ;;  %v1030_v0 = vpop.f32.mrb[62].mxu1  ;;  %v737_v10 = vpop.f32.mrb[47].mxu0 }
 0x1d0   :  { %v1031_v8 = vadd.f32 %v1030_v0, %v5230_v4  ;;  %v1032_v19 = vpop.f32.mrb[63].mxu1 }
 0x1d2   :  { %v740_v30 = vpop.f32.mrb[48].mxu0 }
 0x1d3   :  { %v5416_v17 = vadd.f32 %v5362_v6, %v740_v30  ;;  %v1035_v38 = vpop.f32.mrb[64].mxu1  ;;  %v742_v52 = vpop.f32.mrb[49].mxu0 }
 0x1d4   :  { %v1036_v34 = vadd.f32 %v1035_v38, %v5245_v32  ;;  %v1037_v14 = vpop.f32.mrb[65].mxu1 }
 0x1d6   :  { %v1190_v33 = vpop.f32.mrb[50].mxu0 }
 0x1d7   :  { %v1040_v31 = vpop.f32.mrb[66].mxu1  ;;  %v5419_v39 = vadd.f32 %v1190_v33, %v1001_v49  ;;  %v3067_v45 = vpop.f32.mrb[51].mxu0 }
 0x1d8   :  { %v1041_v13 = vadd.f32 %v1040_v31, %v5260_v27  ;;  %v1042_v23 = vpop.f32.mrb[67].mxu1 }
 0x1da   :  { %v1195_v42 = vpop.f32.mrb[52].mxu0 }
 0x1db   :  { %v1045_v4 = vpop.f32.mrb[68].mxu1  ;;  %v5422_v40 = vadd.f32 %v1195_v42, %v1006_v57  ;;  %v3070_v44 = vpop.f32.mrb[53].mxu0 }
 0x1dc   :  { %v1046_v6 = vadd.f32 %v1045_v4, %v5275_v46  ;;  %v1047_v5 = vpop.f32.mrb[69].mxu1 }
 0x1de   :  { %v1200_v26 = vpop.f32.mrb[54].mxu0 }
 0x1df   :  { %v1050_v24 = vpop.f32.mrb[70].mxu1  ;;  %v5425_v32 = vadd.f32 %v1200_v26, %v1011_v41  ;;  %v3073_v1 = vpop.f32.mrb[55].mxu0 }
 0x1e0   :  { %v1051_v49 = vadd.f32 %v1050_v24, %v5290_v2  ;;  %v1052_v36 = vpop.f32.mrb[71].mxu1 }
 0x1e2   :  { %v1205_v50 = vpop.f32.mrb[56].mxu0 }
 0x1e3   :  { %v1055_v55 = vpop.f32.mrb[72].mxu1  ;;  %v5428_v27 = vadd.f32 %v1205_v50, %v1016_v21  ;;  %v3076_v29 = vpop.f32.mrb[57].mxu0 }
 0x1e4   :  { %v1056_v57 = vadd.f32 %v1055_v55, %v5304_v20  ;;  %v1057_v60 = vpop.f32.mrb[73].mxu1 }
 0x1e6   :  { %v1210_v37 = vpop.f32.mrb[58].mxu0 }
 0x1e7   :  { %v1060_v58 = vpop.f32.mrb[74].mxu1  ;;  %v5431_v46 = vadd.f32 %v1210_v37, %v1021_v25  ;;  %v3079_v22 = vpop.f32.mrb[59].mxu0 }
 0x1e8   :  { %v1061_v41 = vadd.f32 %v1060_v58, %v5316_v16  ;;  %v1062_v53 = vpop.f32.mrb[75].mxu1 }
 0x1ea   :  { %v1215_v7 = vpop.f32.mrb[60].mxu0 }
 0x1eb   :  { %v1065_v35 = vpop.f32.mrb[76].mxu1  ;;  %v5434_v2 = vadd.f32 %v1215_v7, %v1026_v18  ;;  %v3082_v54 = vpop.f32.mrb[61].mxu0 }
 0x1ec   :  { %v1066_v21 = vadd.f32 %v1065_v35, %v5327_v43  ;;  %v1067_v12 = vpop.f32.mrb[77].mxu1 }
 0x1ee   :  { %v1220_v47 = vpop.f32.mrb[62].mxu0 }
 0x1ef   :  { %v1070_v15 = vpop.f32.mrb[78].mxu1  ;;  %v5437_v20 = vadd.f32 %v1220_v47, %v1031_v8  ;;  %v3085_v0 = vpop.f32.mrb[63].mxu0 }
 0x1f0   :  { %v1071_v25 = vadd.f32 %v1070_v15, %v5338_v51  ;;  %v1072_v10 = vpop.f32.mrb[79].mxu1 }
 0x1f2   :  { %v1225_v19 = vpop.f32.mrb[64].mxu0 }
 0x1f3   :  { %v1075_v30 = vpop.f32.mrb[80].mxu1  ;;  %v5440_v16 = vadd.f32 %v1225_v19, %v1036_v34  ;;  %v3088_v38 = vpop.f32.mrb[65].mxu0 }
 0x1f4   :  { %v1076_v18 = vadd.f32 %v1075_v30, %v5349_v3  ;;  %v1077_v52 = vpop.f32.mrb[81].mxu1 }
 0x1f6   :  { %v1230_v14 = vpop.f32.mrb[66].mxu0 }
 0x1f7   :  { %v1080_v33 = vpop.f32.mrb[82].mxu1  ;;  %v5443_v43 = vadd.f32 %v1230_v14, %v1041_v13  ;;  %v3091_v31 = vpop.f32.mrb[67].mxu0 }
 0x1f8   :  { %v1081_v8 = vadd.f32 %v1080_v33, %v5360_v28  ;;  %v1082_v45 = vpop.f32.mrb[83].mxu1 }
 0x1fa   :  { %v1235_v23 = vpop.f32.mrb[68].mxu0 }
 0x1fb   :  { %v1085_v42 = vpop.f32.mrb[84].mxu1  ;;  %v5446_v51 = vadd.f32 %v1235_v23, %v1046_v6  ;;  %v3094_v4 = vpop.f32.mrb[69].mxu0 }
 0x1fc   :  { %v1086_v34 = vadd.f32 %v1085_v42, %v5371_v48  ;;  %v1087_v44 = vpop.f32.mrb[85].mxu1 }
 0x1fe   :  { %v1240_v5 = vpop.f32.mrb[70].mxu0 }
 0x1ff   :  { %v1090_v26 = vpop.f32.mrb[86].mxu1  ;;  %v5449_v3 = vadd.f32 %v1240_v5, %v1051_v49  ;;  %v3097_v24 = vpop.f32.mrb[71].mxu0 }
 0x200   :  { %v1091_v13 = vadd.f32 %v1090_v26, %v5381_v62  ;;  %v1092_v1 = vpop.f32.mrb[87].mxu1 }
 0x202   :  { %v1245_v36 = vpop.f32.mrb[72].mxu0 }
 0x203   :  { %v1095_v50 = vpop.f32.mrb[88].mxu1  ;;  %v5452_v28 = vadd.f32 %v1245_v36, %v1056_v57  ;;  %v3100_v55 = vpop.f32.mrb[73].mxu0 }
 0x204   :  { %v1096_v6 = vadd.f32 %v1095_v50, %v5391_v59  ;;  %v1097_v29 = vpop.f32.mrb[89].mxu1 }
 0x206   :  { %v1250_v60 = vpop.f32.mrb[74].mxu0 }
 0x207   :  { %v1100_v37 = vpop.f32.mrb[90].mxu1  ;;  %v5455_v48 = vadd.f32 %v1250_v60, %v1061_v41  ;;  %v3103_v58 = vpop.f32.mrb[75].mxu0 }
 0x208   :  { %v1101_v49 = vadd.f32 %v1100_v37, %v5398_v61  ;;  %v1102_v22 = vpop.f32.mrb[91].mxu1 }
 0x20a   :  { %v1255_v53 = vpop.f32.mrb[76].mxu0 }
 0x20b   :  { %v1105_v7 = vpop.f32.mrb[92].mxu1  ;;  %v5458_v62 = vadd.f32 %v1255_v53, %v1066_v21  ;;  %v3106_v35 = vpop.f32.mrb[77].mxu0 }
 0x20c   :  { %v1106_v57 = vadd.f32 %v1105_v7, %v5404_v11  ;;  %v1107_v54 = vpop.f32.mrb[93].mxu1 }
 0x20e   :  { %v1260_v12 = vpop.f32.mrb[78].mxu0 }
 0x20f   :  { %v1110_v47 = vpop.f32.mrb[94].mxu1  ;;  %v5461_v59 = vadd.f32 %v1260_v12, %v1071_v25  ;;  %v3109_v15 = vpop.f32.mrb[79].mxu0 }
 0x210   :  { %v1111_v41 = vadd.f32 %v1110_v47, %v5408_v56  ;;  %v1112_v0 = vpop.f32.mrb[95].mxu1 }
 0x212   :  { %v1265_v10 = vpop.f32.mrb[80].mxu0 }
 0x213   :  { %v1115_v19 = vpop.f32.mrb[96].mxu1  ;;  %v5464_v61 = vadd.f32 %v1265_v10, %v1076_v18  ;;  %v3112_v30 = vpop.f32.mrb[81].mxu0 }
 0x214   :  { %v1116_v21 = vadd.f32 %v1115_v19, %v5412_v63  ;;  %v1117_v38 = vpop.f32.mrb[97].mxu1 }
 0x216   :  { %v1270_v52 = vpop.f32.mrb[82].mxu0 }
 0x217   :  { %v1120_v14 = vpop.f32.mrb[98].mxu1  ;;  %v5467_v11 = vadd.f32 %v1270_v52, %v1081_v8  ;;  %v3115_v33 = vpop.f32.mrb[83].mxu0 }
 0x218   :  { %v1121_v25 = vadd.f32 %v1120_v14, %v5416_v17  ;;  %v1122_v31 = vpop.f32.mrb[99].mxu1 }
 0x21a   :  { %v1275_v45 = vpop.f32.mrb[84].mxu0 }
 0x21b   :  { %v5470_v23 = vadd.f32 %v1275_v45, %v1086_v34  ;;  %v3118_v56 = vpop.f32.mrb[85].mxu0  ;;  %v1652_v42 = vpop.f32.mrb[100].mxu1 }
 0x21c   :  { %v1654_v4 = vpop.f32.mrb[101].mxu1 }
 0x21e   :  { %v1280_v18 = vpop.f32.mrb[86].mxu0 }
 0x21f   :  { %v5472_v44 = vadd.f32 %v1280_v18, %v1091_v13  ;;  %v3121_v5 = vpop.f32.mrb[87].mxu0  ;;  %v5474_v63 = vpop.f32.mrb[102].mxu1 }
 0x220   :  { %v1659_v26 = vpop.f32.mrb[103].mxu1 }
 0x222   :  { %v1285_v24 = vpop.f32.mrb[88].mxu0 }
 0x223   :  { %v5476_v8 = vadd.f32 %v1285_v24, %v1096_v6  ;;  %v3124_v1 = vpop.f32.mrb[89].mxu0  ;;  %v5478_v36 = vpop.f32.mrb[104].mxu1  ;;  %v2335_v6 = vlaneseq }
 0x224   :  { %v1664_v17 = vpop.f32.mrb[105].mxu1 }
 0x225   :  { %v2336_v35 = vshrl.u32 %v2335_v6, 7  ;;  %v5492_v0 = vand.u32 127, %v2335_v6 }
 0x226   :  { %v1290_v50 = vpop.f32.mrb[90].mxu0 }
 0x227   :  { %v5480_v34 = vadd.f32 %v1290_v50, %v1101_v49  ;;  %v3127_v55 = vpop.f32.mrb[91].mxu0  ;;  %v5482_v29 = vpop.f32.mrb[106].mxu1  ;;  %v2338_v15 = vadd.s32 16, %v2336_v35  ;;  %v2339_v33 = vadd.s32 24, %v2336_v35  ;;  %v2340_v5 = vadd.s32 32, %v2336_v35 }
 0x228   :  { %v1669_v60 = vpop.f32.mrb[107].mxu1  ;;  %v5523_v50 = vld [vmem:[#allocation2] ss:$0 sm:$0xff] }
 0x229   :  { %v5497_v19 = vmul.u32 2, %v2338_v15  ;;  %v5513_v4 = vmul.u32 2, %v2339_v33  ;;  %v2341_v60 = vadd.s32 40, %v2336_v35  ;;  %v5538_v15 = vld [vmem:[#allocation6] ss:$0 sm:$0xff]  ;;  %v2337_v33 = vadd.s32 8, %v2336_v35 }
 0x22a   :  { %v1295_v13 = vpop.f32.mrb[92].mxu0  ;;  %v5519_v24 = vmul.u32 2, %v2340_v5 }
 0x22b   :  { %v5484_v37 = vadd.f32 %v1295_v13, %v1106_v57  ;;  %v3130_v58 = vpop.f32.mrb[93].mxu0  ;;  %v5486_v22 = vpop.f32.mrb[108].mxu1  ;;  %v5495_v57 = vadd.s32 128, %v5492_v0  ;;  %vm2355_vm5 = vcmp.eq.s32.totalorder %v5492_v0, %v5497_v19  ;;  %vm2357_vm7 = vcmp.eq.s32.totalorder %v5492_v0, %v5513_v4 }
 0x22c   :  { %v1674_v53 = vpop.f32.mrb[109].mxu1  ;;  %vm2359_vm9 = vcmp.eq.s32.totalorder %v5492_v0, %v5519_v24  ;;  %v5530_v58 = vld [vmem:[#allocation4] ss:$0 sm:$0xff]  ;;  %v5532_v6 = vmul.u32 2, %v2341_v60 }
 0x22d   :  { %vm2356_vm3 = vcmp.eq.s32.totalorder %v5495_v57, %v5497_v19  ;;  %vm2358_vm6 = vcmp.eq.s32.totalorder %v5495_v57, %v5513_v4  ;;  %vm2360_vm8 = vcmp.eq.s32.totalorder %v5495_v57, %v5519_v24 }
 0x22e   :  { %v1300_v7 = vpop.f32.mrb[94].mxu0  ;;  %v2757_v14 = vsel %vm2356_vm3, 1.0, %v6006_v9  ;;  %vm2362_vm10 = vcmp.eq.s32.totalorder %v5495_v57, %v5532_v6  ;;  %vm2361_vm11 = vcmp.eq.s32.totalorder %v5492_v0, %v5532_v6 }
 0x22f   :  { %v5488_v54 = vadd.f32 %v1300_v7, %v1111_v41  ;;  %v3133_v12 = vpop.f32.mrb[95].mxu0  ;;  %v5490_v47 = vpop.f32.mrb[110].mxu1  ;;  %2781 = vmatprep.mubr.msk.f32.mxu1 %vm2429_vm4, %v2757_v14 }
 0x230   :  { %v1679_v49 = vpop.f32.mrb[111].mxu1 }
 0x232   :  { %v1305_v10 = vpop.f32.mrb[96].mxu0 }
 0x233   :  { %v5499_v30 = vadd.f32 %v1305_v10, %v1116_v21  ;;  %v3136_v38 = vpop.f32.mrb[97].mxu0  ;;  %v5501_v52 = vpop.f32.mrb[112].mxu1 }
 0x234   :  { %v1684_v41 = vpop.f32.mrb[113].mxu1 }
 0x236   :  { %v1310_v31 = vpop.f32.mrb[98].mxu0 }
 0x237   :  { %v5509_v45 = vadd.f32 %v1310_v31, %v1121_v25  ;;  %v3139_v21 = vpop.f32.mrb[99].mxu0  ;;  %v5511_v56 = vpop.f32.mrb[114].mxu1 }
 0x238   :  { %v1689_v18 = vpop.f32.mrb[115].mxu1 }
 0x23a   :  { %v1842_v26 = vpop.f32.mrb[100].mxu0 }
 0x23b   :  { %v1843_v1 = vadd.f32 %v1842_v26, %v1652_v42  ;;  %v3174_v17 = vpop.f32.mrb[101].mxu0  ;;  %v5521_v25 = vpop.f32.mrb[116].mxu1 }
 0x23c   :  { %v1694_v55 = vpop.f32.mrb[117].mxu1 }
 0x23d   :  { %v1966_v13 = vadd.f32 %v1843_v1, %v5419_v39  ;;  %v5544_v39 = vmul.u32 2, %v2336_v35 }
 0x23e   :  { %v1847_v53 = vpop.f32.mrb[102].mxu0 }
 0x23f   :  { %v1998_v42 = vadd.f32 %v5523_v50, %v1966_v13  ;;  %v1848_v7 = vadd.f32 %v1847_v53, %v5474_v63  ;;  %v3177_v12 = vpop.f32.mrb[103].mxu0  ;;  %v5536_v49 = vpop.f32.mrb[118].mxu1  ;;  %v5549_v63 = vadd.s32 100, %v5544_v39  ;;  %vm2352_vm0 = vcmp.eq.s32.totalorder %v5495_v57, %v5544_v39 }
 0x240   :  { %v1699_v10 = vpop.f32.mrb[119].mxu1  ;;  %vm2351_vm15 = vcmp.eq.s32.totalorder %v5492_v0, %v5544_v39 }
 0x241   :  { %v2030_v38 = vmul.f32 %v5530_v58, %v1998_v42  ;;  %v1967_v41 = vadd.f32 %v1848_v7, %v5422_v40  ;;  %vm2394_vm12 = vcmp.eq.s32.totalorder %v5495_v57, %v5549_v63  ;;  %v5560_v40 = vmul.u32 2, %v2337_v33 }
 0x242   :  { %v1852_v14 = vpop.f32.mrb[104].mxu0 }
 0x243   :  { %v2062_v31 = vadd.f32 %v5538_v15, %v2030_v38  ;;  %v1999_v21 = vadd.f32 %v5523_v50, %v1967_v41  ;;  %v1853_v18 = vadd.f32 %v1852_v14, %v5478_v36  ;;  %v3180_v5 = vpop.f32.mrb[105].mxu0  ;;  %v5554_v26 = vpop.f32.mrb[120].mxu1  ;;  %v5565_v36 = vadd.s32 100, %v5560_v40 }
 0x244   :  { %v1704_v1 = vpop.f32.mrb[121].mxu1  ;;  %v5578_v41 = vadd.s32 100, %v5497_v19  ;;  %vm2353_vm3 = vcmp.eq.s32.totalorder %v5492_v0, %v5560_v40  ;;  %v2763_v19 = vsel %vm2362_vm10, 1.0, %v6006_v9 }
 0x245   :  { %v2031_v35 = vmul.f32 %v5530_v58, %v1999_v21  ;;  %v1968_v17 = vadd.f32 %v1853_v18, %v5425_v32  ;;  %v2087_v55 = vmax.f32 %v2062_v31, 0.0  ;;  %6013 = vst [vmem:[#allocation13_spill] sm:$0xff] %v5565_v36  ;;  %vm2396_vm14 = vcmp.eq.s32.totalorder %v5495_v57, %v5565_v36 }
 0x246   :  { %v1857_v60 = vpop.f32.mrb[106].mxu0  ;;  %6014 = vst [vmem:[#allocation14_spill] sm:$0xff] %v5578_v41 }
 0x247   :  { %v2063_v13 = vadd.f32 %v5538_v15, %v2031_v35  ;;  %v2000_v53 = vadd.f32 %v5523_v50, %v1968_v17  ;;  %v3183_v42 = vpop.f32.mrb[107].mxu0  ;;  %v5569_v7 = vpop.f32.mrb[122].mxu1  ;;  %v1858_v12 = vadd.f32 %v1857_v60, %v5482_v29  ;;  %v2137_v14 = vrot.slane %v2087_v55, 1 }
 0x248   :  { %v1709_v10 = vpop.f32.mrb[123].mxu1  ;;  %v2236_v33 = vrot.slane %v2087_v55, 2 }
 0x249   :  { %v2088_v32 = vmax.f32 %v2063_v13, 0.0  ;;  %v2032_v38 = vmul.f32 %v5530_v58, %v2000_v53  ;;  %v1969_v31 = vadd.f32 %v1858_v12, %v5428_v27 }
 0x24a   :  { %v1862_v21 = vpop.f32.mrb[108].mxu0 }
 0x24b   :  { %v2138_v18 = vrot.slane %v2088_v32, 1  ;;  %v2237_v29 = vrot.slane %v2088_v32, 2  ;;  %v2064_v5 = vadd.f32 %v5538_v15, %v2032_v38  ;;  %v1863_v1 = vadd.f32 %v1862_v21, %v5486_v22  ;;  %v3186_v35 = vpop.f32.mrb[109].mxu0  ;;  %v5583_v17 = vpop.f32.mrb[124].mxu1 }
 0x24c   :  { %v2001_v60 = vadd.f32 %v5523_v50, %v1969_v31  ;;  %v1714_v13 = vpop.f32.mrb[125].mxu1  ;;  %v5597_v31 = vadd.s32 100, %v5513_v4  ;;  %v2765_v4 = vsel %vm2394_vm12, 1.0, %v6006_v9  ;;  %v6018_v39 = vld [vmem:[#allocation13_spill] sm:$0xff] }
 0x24d   :  { %v5590_v27 = vmax.f32 %v2064_v5, 0.0  ;;  %v1970_v53 = vadd.f32 %v1863_v1, %v5431_v46  ;;  %v2139_v42 = vsel %vm331_vm1, %v2137_v14, %v2138_v18  ;;  %v2238_v22 = vsel %vm1363_vm2, %v2236_v33, %v2237_v29 }
 0x24e   :  { %v2033_v12 = vmul.f32 %v5530_v58, %v2001_v60  ;;  %v1867_v10 = vpop.f32.mrb[110].mxu0  ;;  %v2211_v38 = vmax.f32 %v2087_v55, %v2139_v42  ;;  %6015 = vst [vmem:[#allocation15_spill] sm:$0xff] %v5597_v31  ;;  %v6017_v31 = vmov 0.0|0.0  }
 0x24f   :  { %v2140_v21 = vrot.slane %v5590_v27, 1  ;;  %v2239_v35 = vrot.slane %v5590_v27, 2  ;;  %v2002_v5 = vadd.f32 %v5523_v50, %v1970_v53  ;;  %v1868_v13 = vadd.f32 %v1867_v10, %v5490_v47  ;;  %v3189_v46 = vpop.f32.mrb[111].mxu0  ;;  %v5603_v1 = vpop.f32.mrb[126].mxu1 }
 0x250   :  { %v2065_v14 = vadd.f32 %v5538_v15, %v2033_v12  ;;  %v2310_v33 = vmax.f32 %v2211_v38, %v2238_v22  ;;  %v1719_v60 = vpop.f32.mrb[127].mxu1 }
 0x251   :  { %v2034_v55 = vmul.f32 %v5530_v58, %v2002_v5  ;;  %v1971_v42 = vadd.f32 %v1868_v13, %v5434_v2  ;;  %v2141_v53 = vsel %vm331_vm1, %v2138_v18, %v2140_v21  ;;  %v2240_v47 = vsel %vm1363_vm2, %v2237_v29, %v2239_v35 }
 0x252   :  { %v2090_v10 = vmax.f32 %v2065_v14, 0.0  ;;  %v1872_v46 = vpop.f32.mrb[112].mxu0  ;;  %v2212_v41 = vmax.f32 %v2088_v32, %v2141_v53  ;;  %v2753_v2 = vsel %vm2352_vm0, 1.0, %v6006_v9  ;;  %v5624_v32 = vadd.s32 100, %v5519_v24  ;;  %v6020_v24 = vld [vmem:[#allocation14_spill] sm:$0xff] }
 0x253   :  { %v2066_v22 = vadd.f32 %v5538_v15, %v2034_v55  ;;  %v2003_v12 = vadd.f32 %v5523_v50, %v1971_v42  ;;  %v1873_v38 = vadd.f32 %v1872_v46, %v5501_v52  ;;  %v3192_v60 = vpop.f32.mrb[113].mxu0  ;;  %v5619_v5 = vpop.f32.mrb[128].mxu1  ;;  %2777 = vmatprep.mubr.msk.f32.mxu0 %vm2429_vm4, %v2753_v2  ;;  %vm2354_vm0 = vcmp.eq.s32.totalorder %v5495_v57, %v5560_v40 }
 0x254   :  { %v2142_v18 = vrot.slane %v2090_v10, 1  ;;  %v2241_v13 = vrot.slane %v2090_v10, 2  ;;  %v2311_v29 = vmax.f32 %v2212_v41, %v2240_v47  ;;  %v1724_v14 = vpop.f32.mrb[129].mxu1  ;;  %6016 = vst [vmem:[#allocation16_spill] sm:$0xff] %v5624_v32  ;;  %v2767_v40 = vsel %vm2396_vm14, 1.0, %v6006_v9 }
 0x255   :  { %v2091_v53 = vmax.f32 %v2066_v22, 0.0  ;;  %v2035_v55 = vmul.f32 %v5530_v58, %v2003_v12  ;;  %v1972_v42 = vadd.f32 %v1873_v38, %v5437_v20 }
 0x256   :  { %v1877_v52 = vpop.f32.mrb[114].mxu0  ;;  %v3464_v46 = vpack.c.bf16 %v2311_v29, %v2310_v33  ;;  %v2143_v60 = vsel %vm331_vm1, %v2140_v21, %v2142_v18  ;;  %v2242_v41 = vsel %vm1363_vm2, %v2239_v35, %v2241_v13 }
 0x257   :  { %v2144_v47 = vrot.slane %v2091_v53, 1  ;;  %v2243_v2 = vrot.slane %v2091_v53, 2  ;;  %v2067_v22 = vadd.f32 %v5538_v15, %v2035_v55  ;;  %v2004_v12 = vadd.f32 %v5523_v50, %v1972_v42  ;;  %v3195_v14 = vpop.f32.mrb[115].mxu0  ;;  %v5636_v20 = vpop.f32.mrb[130].mxu1 }
 0x258   :  { %v1878_v38 = vadd.f32 %v1877_v52, %v5511_v56  ;;  %3465 = vmatpush1.bf16.msra.mxu0 %v3464_v46  ;;  %3512 = vmatpush1.bf16.msra.mxu1 %v3464_v46  ;;  %v2213_v21 = vmax.f32 %v5590_v27, %v2143_v60  ;;  %v1729_v33 = vpop.f32.mrb[131].mxu1 }
 0x259   :  { %v2092_v35 = vmax.f32 %v2067_v22, 0.0  ;;  %v2036_v29 = vmul.f32 %v5530_v58, %v2004_v12  ;;  %3466 = vmatprep.subr.bf16.mxu0 %v6017_v31  ;;  %3500 = vmatprep.subr.bf16.mxu1 %v6017_v31  ;;  %v2145_v55 = vsel %vm331_vm1, %v2142_v18, %v2144_v47  ;;  %v2244_v42 = vsel %vm1363_vm2, %v2241_v13, %v2243_v2 }
 0x25a   :  { %v1973_v56 = vadd.f32 %v1878_v38, %v5440_v16  ;;  %v1882_v52 = vpop.f32.mrb[116].mxu0  ;;  %v2214_v46 = vmax.f32 %v2090_v10, %v2145_v55  ;;  %v2312_v27 = vmax.f32 %v2213_v21, %v2242_v41  ;;  %v5656_v16 = vadd.s32 100, %v5532_v6  ;;  %v6023_v6 = vld [vmem:[#allocation15_spill] sm:$0xff] }
 0x25b   :  { %v2146_v60 = vrot.slane %v2092_v35, 1  ;;  %v2245_v22 = vrot.slane %v2092_v35, 2  ;;  %v2068_v12 = vadd.f32 %v5538_v15, %v2036_v29  ;;  %v1883_v14 = vadd.f32 %v1882_v52, %v5521_v25  ;;  %v3198_v33 = vpop.f32.mrb[117].mxu0  ;;  %v5652_v32 = vpop.f32.mrb[132].mxu1 }
 0x25c   :  { %v2005_v18 = vadd.f32 %v5523_v50, %v1973_v56  ;;  %v2313_v13 = vmax.f32 %v2214_v46, %v2244_v42  ;;  %v1734_v36 = vpop.f32.mrb[133].mxu1  ;;  %vm6029_vm10 = vcmp.eq.s32.totalorder %v5495_v57, %v5656_v16  ;;  %vm6031_vm12 = vcmp.eq.s32.totalorder %v5492_v0, %v5656_v16 }
 0x25d   :  { %v5658_v10 = vmax.f32 %v2068_v12, 0.0  ;;  %v1974_v41 = vadd.f32 %v1883_v14, %v5443_v43  ;;  %v2147_v38 = vsel %vm331_vm1, %v2144_v47, %v2146_v60  ;;  %v2246_v21 = vsel %vm1363_vm2, %v2243_v2, %v2245_v22 }
 0x25e   :  { %v2037_v25 = vmul.f32 %v5530_v58, %v2005_v18  ;;  %v1887_v29 = vpop.f32.mrb[118].mxu0  ;;  %v3467_v55 = vpack.c.bf16 %v2313_v13, %v2312_v27  ;;  %v2215_v52 = vmax.f32 %v2091_v53, %v2147_v38 }
 0x25f   :  { %v2148_v36 = vrot.slane %v5658_v10, 1  ;;  %v2247_v42 = vrot.slane %v5658_v10, 2  ;;  %v2006_v56 = vadd.f32 %v5523_v50, %v1974_v41  ;;  %v1888_v43 = vadd.f32 %v1887_v29, %v5536_v49  ;;  %v3201_v46 = vpop.f32.mrb[119].mxu0  ;;  %v5670_v47 = vpop.f32.mrb[134].mxu1 }
 0x260   :  { %v2069_v2 = vadd.f32 %v5538_v15, %v2037_v25  ;;  %3468 = vmatpush1.bf16.msra.mxu0 %v3467_v55  ;;  %3513 = vmatpush1.bf16.msra.mxu1 %v3467_v55  ;;  %v2314_v27 = vmax.f32 %v2215_v52, %v2246_v21  ;;  %v1739_v53 = vpop.f32.mrb[135].mxu1 }
 0x261   :  { %v2038_v12 = vmul.f32 %v5530_v58, %v2006_v56  ;;  %v1975_v14 = vadd.f32 %v1888_v43, %v5446_v51  ;;  %3469 = vmatprep.subr.bf16.mxu0 %v6017_v31  ;;  %3501 = vmatprep.subr.bf16.mxu1 %v6017_v31  ;;  %v2149_v49 = vsel %vm331_vm1, %v2146_v60, %v2148_v36 }
 0x262   :  { %v2094_v33 = vmax.f32 %v2069_v2, 0.0  ;;  %v1892_v18 = vpop.f32.mrb[120].mxu0  ;;  %v2216_v13 = vmax.f32 %v2092_v35, %v2149_v49  ;;  %v2248_v41 = vsel %vm1363_vm2, %v2245_v22, %v2247_v42 }
 0x263   :  { %v2070_v38 = vadd.f32 %v5538_v15, %v2038_v12  ;;  %v2007_v21 = vadd.f32 %v5523_v50, %v1975_v14  ;;  %v1893_v51 = vadd.f32 %v1892_v18, %v5554_v26  ;;  %v3204_v25 = vpop.f32.mrb[121].mxu0  ;;  %v5686_v29 = vpop.f32.mrb[136].mxu1 }
 0x264   :  { %v2150_v55 = vrot.slane %v2094_v33, 1  ;;  %v2249_v52 = vrot.slane %v2094_v33, 2  ;;  %v2315_v60 = vmax.f32 %v2216_v13, %v2248_v41  ;;  %v1744_v56 = vpop.f32.mrb[137].mxu1 }
 0x265   :  { %v2095_v43 = vmax.f32 %v2070_v38, 0.0  ;;  %v2039_v35 = vmul.f32 %v5530_v58, %v2007_v21  ;;  %v1976_v22 = vadd.f32 %v1893_v51, %v5449_v3 }
 0x266   :  { %v1897_v46 = vpop.f32.mrb[122].mxu0  ;;  %v3470_v2 = vpack.c.bf16 %v2315_v60, %v2314_v27  ;;  %v2151_v53 = vsel %vm331_vm1, %v2148_v36, %v2150_v55  ;;  %v2250_v12 = vsel %vm1363_vm2, %v2247_v42, %v2249_v52 }
 0x267   :  { %v2152_v14 = vrot.slane %v2095_v43, 1  ;;  %v2251_v26 = vrot.slane %v2095_v43, 2  ;;  %v2071_v49 = vadd.f32 %v5538_v15, %v2039_v35  ;;  %v2008_v18 = vadd.f32 %v5523_v50, %v1976_v22  ;;  %v3207_v25 = vpop.f32.mrb[123].mxu0  ;;  %v5694_v13 = vpop.f32.mrb[138].mxu1 }
 0x268   :  { %v1898_v41 = vadd.f32 %v1897_v46, %v5569_v7  ;;  %3471 = vmatpush1.bf16.msra.mxu0 %v3470_v2  ;;  %3514 = vmatpush1.bf16.msra.mxu1 %v3470_v2  ;;  %v2217_v3 = vmax.f32 %v5658_v10, %v2151_v53  ;;  %v1749_v27 = vpop.f32.mrb[139].mxu1 }
 0x269   :  { %v2096_v38 = vmax.f32 %v2071_v49, 0.0  ;;  %v2040_v36 = vmul.f32 %v5530_v58, %v2008_v18  ;;  %3472 = vmatprep.subr.bf16.mxu0 %v6017_v31  ;;  %3502 = vmatprep.subr.bf16.mxu1 %v6017_v31  ;;  %v2153_v42 = vsel %vm331_vm1, %v2150_v55, %v2152_v14  ;;  %v2252_v21 = vsel %vm1363_vm2, %v2249_v52, %v2251_v26 }
 0x26a   :  { %v1977_v51 = vadd.f32 %v1898_v41, %v5452_v28  ;;  %v1902_v60 = vpop.f32.mrb[124].mxu0  ;;  %v2218_v7 = vmax.f32 %v2094_v33, %v2153_v42  ;;  %v2316_v56 = vmax.f32 %v2217_v3, %v2250_v12 }
 0x26b   :  { %v2154_v35 = vrot.slane %v2096_v38, 1  ;;  %v2253_v22 = vrot.slane %v2096_v38, 2  ;;  %v2072_v10 = vadd.f32 %v5538_v15, %v2040_v36  ;;  %v1903_v46 = vadd.f32 %v1902_v60, %v5583_v17  ;;  %v3210_v2 = vpop.f32.mrb[125].mxu0  ;;  %v5706_v53 = vpop.f32.mrb[140].mxu1 }
 0x26c   :  { %v2009_v49 = vadd.f32 %v5523_v50, %v1977_v51  ;;  %v2317_v18 = vmax.f32 %v2218_v7, %v2252_v21  ;;  %v1754_v55 = vpop.f32.mrb[141].mxu1 }
 0x26d   :  { %v5709_v25 = vmax.f32 %v2072_v10, 0.0  ;;  %v1978_v28 = vadd.f32 %v1903_v46, %v5455_v48  ;;  %v2155_v33 = vsel %vm331_vm1, %v2152_v14, %v2154_v35  ;;  %v2254_v52 = vsel %vm1363_vm2, %v2251_v26, %v2253_v22 }
 0x26e   :  { %v2041_v12 = vmul.f32 %v5530_v58, %v2009_v49  ;;  %v1907_v41 = vpop.f32.mrb[126].mxu0  ;;  %v3473_v3 = vpack.c.bf16 %v2317_v18, %v2316_v56  ;;  %v2219_v17 = vmax.f32 %v2095_v43, %v2155_v33 }
 0x26f   :  { %v2156_v27 = vrot.slane %v5709_v25, 1  ;;  %v2255_v36 = vrot.slane %v5709_v25, 2  ;;  %v2010_v42 = vadd.f32 %v5523_v50, %v1978_v28  ;;  %v1908_v21 = vadd.f32 %v1907_v41, %v5603_v1  ;;  %v3213_v51 = vpop.f32.mrb[127].mxu0  ;;  %v5719_v60 = vpop.f32.mrb[142].mxu1 }
 0x270   :  { %v2073_v48 = vadd.f32 %v5538_v15, %v2041_v12  ;;  %3474 = vmatpush1.bf16.msra.mxu0 %v3473_v3  ;;  %3515 = vmatpush1.bf16.msra.mxu1 %v3473_v3  ;;  %v2318_v14 = vmax.f32 %v2219_v17, %v2254_v52  ;;  %v1759_v26 = vpop.f32.mrb[143].mxu1 }
 0x271   :  { %v2042_v7 = vmul.f32 %v5530_v58, %v2010_v42  ;;  %v1979_v43 = vadd.f32 %v1908_v21, %v5458_v62  ;;  %3475 = vmatprep.subr.bf16.mxu0 %v6017_v31  ;;  %3503 = vmatprep.subr.bf16.mxu1 %v6017_v31  ;;  %v2157_v56 = vsel %vm331_vm1, %v2154_v35, %v2156_v27 }
 0x272   :  { %v2098_v1 = vmax.f32 %v2073_v48, 0.0  ;;  %v1912_v10 = vpop.f32.mrb[128].mxu0  ;;  %v2220_v46 = vmax.f32 %v2096_v38, %v2157_v56  ;;  %v2256_v2 = vsel %vm1363_vm2, %v2253_v22, %v2255_v36 }
 0x273   :  { %v2074_v49 = vadd.f32 %v5538_v15, %v2042_v7  ;;  %v2011_v18 = vadd.f32 %v5523_v50, %v1979_v43  ;;  %v1913_v55 = vadd.f32 %v1912_v10, %v5619_v5  ;;  %v3216_v28 = vpop.f32.mrb[129].mxu0  ;;  %v5731_v33 = vpop.f32.mrb[144].mxu1 }
 0x274   :  { %v2158_v62 = vrot.slane %v2098_v1, 1  ;;  %v2257_v52 = vrot.slane %v2098_v1, 2  ;;  %v2319_v12 = vmax.f32 %v2220_v46, %v2256_v2  ;;  %v1764_v41 = vpop.f32.mrb[145].mxu1 }
 0x275   :  { %v2099_v3 = vmax.f32 %v2074_v49, 0.0  ;;  %v2043_v35 = vmul.f32 %v5530_v58, %v2011_v18  ;;  %v1980_v38 = vadd.f32 %v1913_v55, %v5461_v59 }
 0x276   :  { %v1917_v17 = vpop.f32.mrb[130].mxu0  ;;  %v3476_v22 = vpack.c.bf16 %v2319_v12, %v2318_v14  ;;  %v2159_v42 = vsel %vm331_vm1, %v2156_v27, %v2158_v62  ;;  %v2258_v21 = vsel %vm1363_vm2, %v2255_v36, %v2257_v52 }
 0x277   :  { %v2160_v51 = vrot.slane %v2099_v3, 1  ;;  %v2259_v5 = vrot.slane %v2099_v3, 2  ;;  %v2075_v48 = vadd.f32 %v5538_v15, %v2043_v35  ;;  %v2012_v26 = vadd.f32 %v5523_v50, %v1980_v38  ;;  %v3219_v7 = vpop.f32.mrb[131].mxu0  ;;  %v5739_v43 = vpop.f32.mrb[146].mxu1 }
 0x278   :  { %v1918_v56 = vadd.f32 %v1917_v17, %v5636_v20  ;;  %3477 = vmatpush1.bf16.msra.mxu0 %v3476_v22  ;;  %3516 = vmatpush1.bf16.msra.mxu1 %v3476_v22  ;;  %v2221_v59 = vmax.f32 %v5709_v25, %v2159_v42  ;;  %v1769_v14 = vpop.f32.mrb[147].mxu1 }
 0x279   :  { %v2100_v10 = vmax.f32 %v2075_v48, 0.0  ;;  %v2044_v27 = vmul.f32 %v5530_v58, %v2012_v26  ;;  %3478 = vmatprep.subr.bf16.mxu0 %v6017_v31  ;;  %3504 = vmatprep.subr.bf16.mxu1 %v6017_v31  ;;  %v2161_v36 = vsel %vm331_vm1, %v2158_v62, %v2160_v51  ;;  %v2260_v46 = vsel %vm1363_vm2, %v2257_v52, %v2259_v5 }
 0x27a   :  { %v1981_v2 = vadd.f32 %v1918_v56, %v5464_v61  ;;  %v1922_v49 = vpop.f32.mrb[132].mxu0  ;;  %v2222_v20 = vmax.f32 %v2098_v1, %v2161_v36  ;;  %v2320_v18 = vmax.f32 %v2221_v59, %v2258_v21 }
 0x27b   :  { %v2162_v55 = vrot.slane %v2100_v10, 1  ;;  %v2261_v28 = vrot.slane %v2100_v10, 2  ;;  %v2076_v25 = vadd.f32 %v5538_v15, %v2044_v27  ;;  %v1923_v12 = vadd.f32 %v1922_v49, %v5652_v32  ;;  %v3222_v41 = vpop.f32.mrb[133].mxu0  ;;  %v5751_v35 = vpop.f32.mrb[148].mxu1 }
 0x27c   :  { %v2013_v38 = vadd.f32 %v5523_v50, %v1981_v2  ;;  %v2321_v17 = vmax.f32 %v2222_v20, %v2260_v46  ;;  %v1774_v62 = vpop.f32.mrb[149].mxu1 }
 0x27d   :  { %v2101_v22 = vmax.f32 %v2076_v25, 0.0  ;;  %v1982_v52 = vadd.f32 %v1923_v12, %v5467_v11  ;;  %v2163_v61 = vsel %vm331_vm1, %v2160_v51, %v2162_v55  ;;  %v2262_v1 = vsel %vm1363_vm2, %v2259_v5, %v2261_v28 }
 0x27e   :  { %v2045_v42 = vmul.f32 %v5530_v58, %v2013_v38  ;;  %v1927_v21 = vpop.f32.mrb[134].mxu0  ;;  %v3479_v48 = vpack.c.bf16 %v2321_v17, %v2320_v18  ;;  %v2223_v26 = vmax.f32 %v2099_v3, %v2163_v61 }
 0x27f   :  { %v2164_v32 = vrot.slane %v2101_v22, 1  ;;  %v2263_v7 = vrot.slane %v2101_v22, 2  ;;  %v2014_v56 = vadd.f32 %v5523_v50, %v1982_v52  ;;  %v1928_v59 = vadd.f32 %v1927_v21, %v5670_v47  ;;  %v3225_v14 = vpop.f32.mrb[135].mxu0 }
 0x280   :  { %v2077_v27 = vadd.f32 %v5538_v15, %v2045_v42  ;;  %3480 = vmatpush1.bf16.msra.mxu0 %v3479_v48  ;;  %3517 = vmatpush1.bf16.msra.mxu1 %v3479_v48  ;;  %v2322_v11 = vmax.f32 %v2223_v26, %v2262_v1 }
 0x281   :  { %v2046_v51 = vmul.f32 %v5530_v58, %v2014_v56  ;;  %v1983_v5 = vadd.f32 %v1928_v59, %v5470_v23  ;;  %3481 = vmatprep.subr.bf16.mxu0 %v6017_v31  ;;  %3505 = vmatprep.subr.bf16.mxu1 %v6017_v31  ;;  %v2165_v3 = vsel %vm331_vm1, %v2162_v55, %v2164_v32 }
 0x282   :  { %v2102_v36 = vmax.f32 %v2077_v27, 0.0  ;;  %v1932_v46 = vpop.f32.mrb[136].mxu0  ;;  %v2224_v2 = vmax.f32 %v2100_v10, %v2165_v3  ;;  %v2264_v47 = vsel %vm1363_vm2, %v2261_v28, %v2263_v7 }
 0x283   :  { %v2078_v49 = vadd.f32 %v5538_v15, %v2046_v51  ;;  %v2015_v20 = vadd.f32 %v5523_v50, %v1983_v5  ;;  %v1933_v18 = vadd.f32 %v1932_v46, %v5686_v29  ;;  %v3228_v25 = vpop.f32.mrb[137].mxu0 }
 0x284   :  { %v2166_v12 = vrot.slane %v2102_v36, 1  ;;  %v2265_v23 = vrot.slane %v2102_v36, 2  ;;  %v2323_v41 = vmax.f32 %v2224_v2, %v2264_v47 }
 0x285   :  { %v2103_v38 = vmax.f32 %v2078_v49, 0.0  ;;  %v2047_v17 = vmul.f32 %v5530_v58, %v2015_v20  ;;  %v1984_v55 = vadd.f32 %v1933_v18, %v5472_v44 }
 0x286   :  { %v1937_v62 = vpop.f32.mrb[138].mxu0  ;;  %v3482_v52 = vpack.c.bf16 %v2323_v41, %v2322_v11  ;;  %v2167_v10 = vsel %vm331_vm1, %v2164_v32, %v2166_v12  ;;  %v2266_v28 = vsel %vm1363_vm2, %v2263_v7, %v2265_v23 }
 0x287   :  { %v2168_v61 = vrot.slane %v2103_v38, 1  ;;  %v2267_v1 = vrot.slane %v2103_v38, 2  ;;  %v2079_v42 = vadd.f32 %v5538_v15, %v2047_v17  ;;  %v2016_v29 = vadd.f32 %v5523_v50, %v1984_v55  ;;  %v3231_v21 = vpop.f32.mrb[139].mxu0 }
 0x288   :  { %v1938_v48 = vadd.f32 %v1937_v62, %v5694_v13  ;;  %3483 = vmatpush1.bf16.msra.mxu0 %v3482_v52  ;;  %3518 = vmatpush1.bf16.msra.mxu1 %v3482_v52  ;;  %v2225_v26 = vmax.f32 %v2101_v22, %v2167_v10 }
 0x289   :  { %v2104_v56 = vmax.f32 %v2079_v42, 0.0  ;;  %v2048_v44 = vmul.f32 %v5530_v58, %v2016_v29  ;;  %3484 = vmatprep.subr.bf16.mxu0 %v6017_v31  ;;  %3506 = vmatprep.subr.bf16.mxu1 %v6017_v31  ;;  %v2169_v32 = vsel %vm331_vm1, %v2166_v12, %v2168_v61  ;;  %v2268_v7 = vsel %vm1363_vm2, %v2265_v23, %v2267_v1 }
 0x28a   :  { %v1985_v59 = vadd.f32 %v1938_v48, %v5476_v8  ;;  %v1942_v14 = vpop.f32.mrb[140].mxu0  ;;  %v2226_v27 = vmax.f32 %v2102_v36, %v2169_v32  ;;  %v2324_v11 = vmax.f32 %v2225_v26, %v2266_v28 }
 0x28b   :  { %v2170_v13 = vrot.slane %v2104_v56, 1  ;;  %v2269_v51 = vrot.slane %v2104_v56, 2  ;;  %v2080_v22 = vadd.f32 %v5538_v15, %v2048_v44  ;;  %v1943_v5 = vadd.f32 %v1942_v14, %v5706_v53  ;;  %v3234_v3 = vpop.f32.mrb[141].mxu0 }
 0x28c   :  { %v2017_v46 = vadd.f32 %v5523_v50, %v1985_v59  ;;  %v2325_v2 = vmax.f32 %v2226_v27, %v2268_v7 }
 0x28d   :  { %v2105_v47 = vmax.f32 %v2080_v22, 0.0  ;;  %v1986_v49 = vadd.f32 %v1943_v5, %v5480_v34  ;;  %v2171_v20 = vsel %vm331_vm1, %v2168_v61, %v2170_v13  ;;  %v2270_v8 = vsel %vm1363_vm2, %v2267_v1, %v2269_v51 }
 0x28e   :  { %v2049_v36 = vmul.f32 %v5530_v58, %v2017_v46  ;;  %v1947_v18 = vpop.f32.mrb[142].mxu0  ;;  %v3485_v25 = vpack.c.bf16 %v2325_v2, %v2324_v11  ;;  %v2227_v12 = vmax.f32 %v2103_v38, %v2171_v20 }
 0x28f   :  { %v2172_v23 = vrot.slane %v2105_v47, 1  ;;  %v2271_v41 = vrot.slane %v2105_v47, 2  ;;  %v2018_v53 = vadd.f32 %v5523_v50, %v1986_v49  ;;  %v1948_v17 = vadd.f32 %v1947_v18, %v5719_v60  ;;  %v3237_v55 = vpop.f32.mrb[143].mxu0 }
 0x290   :  { %v2081_v62 = vadd.f32 %v5538_v15, %v2049_v36  ;;  %3486 = vmatpush1.bf16.msra.mxu0 %v3485_v25  ;;  %3519 = vmatpush1.bf16.msra.mxu1 %v3485_v25  ;;  %v2326_v34 = vmax.f32 %v2227_v12, %v2270_v8 }
 0x291   :  { %v2050_v52 = vmul.f32 %v5530_v58, %v2018_v53  ;;  %v1987_v10 = vadd.f32 %v1948_v17, %v5484_v37  ;;  %3487 = vmatprep.subr.bf16.mxu0 %v6017_v31  ;;  %3507 = vmatprep.subr.bf16.mxu1 %v6017_v31  ;;  %v2173_v38 = vsel %vm331_vm1, %v2170_v13, %v2172_v23 }
 0x292   :  { %v2106_v28 = vmax.f32 %v2081_v62, 0.0  ;;  %v1952_v61 = vpop.f32.mrb[144].mxu0  ;;  %v2228_v1 = vmax.f32 %v2104_v56, %v2173_v38  ;;  %v2272_v60 = vsel %vm1363_vm2, %v2269_v51, %v2271_v41 }
 0x293   :  { %v2082_v42 = vadd.f32 %v5538_v15, %v2050_v52  ;;  %v2019_v29 = vadd.f32 %v5523_v50, %v1987_v10  ;;  %v1953_v21 = vadd.f32 %v1952_v61, %v5731_v33  ;;  %v3240_v48 = vpop.f32.mrb[145].mxu0 }
 0x294   :  { %v2174_v26 = vrot.slane %v2106_v28, 1  ;;  %v2273_v37 = vrot.slane %v2106_v28, 2  ;;  %v2327_v44 = vmax.f32 %v2228_v1, %v2272_v60 }
 0x295   :  { %v2107_v32 = vmax.f32 %v2082_v42, 0.0  ;;  %v2051_v7 = vmul.f32 %v5530_v58, %v2019_v29  ;;  %v1988_v59 = vadd.f32 %v1953_v21, %v5488_v54 }
 0x296   :  { %v1957_v14 = vpop.f32.mrb[146].mxu0  ;;  %v3488_v27 = vpack.c.bf16 %v2327_v44, %v2326_v34  ;;  %v2175_v56 = vsel %vm331_vm1, %v2172_v23, %v2174_v26  ;;  %v2274_v11 = vsel %vm1363_vm2, %v2271_v41, %v2273_v37 }
 0x297   :  { %v2176_v13 = vrot.slane %v2107_v32, 1  ;;  %v2275_v51 = vrot.slane %v2107_v32, 2  ;;  %v2083_v22 = vadd.f32 %v5538_v15, %v2051_v7  ;;  %v2020_v33 = vadd.f32 %v5523_v50, %v1988_v59  ;;  %v3243_v5 = vpop.f32.mrb[147].mxu0 }
 0x298   :  { %v1958_v3 = vadd.f32 %v1957_v14, %v5739_v43  ;;  %3489 = vmatpush1.bf16.msra.mxu0 %v3488_v27  ;;  %3520 = vmatpush1.bf16.msra.mxu1 %v3488_v27  ;;  %v2229_v46 = vmax.f32 %v2105_v47, %v2175_v56 }
 0x299   :  { %v2108_v2 = vmax.f32 %v2083_v22, 0.0  ;;  %v2052_v54 = vmul.f32 %v5530_v58, %v2020_v33  ;;  %3490 = vmatprep.subr.bf16.mxu0 %v6017_v31  ;;  %3508 = vmatprep.subr.bf16.mxu1 %v6017_v31  ;;  %v2177_v49 = vsel %vm331_vm1, %v2174_v26, %v2176_v13  ;;  %v2276_v20 = vsel %vm1363_vm2, %v2273_v37, %v2275_v51 }
 0x29a   :  { %v1989_v8 = vadd.f32 %v1958_v3, %v5499_v30  ;;  %v1962_v36 = vpop.f32.mrb[148].mxu0  ;;  %v2230_v18 = vmax.f32 %v2106_v28, %v2177_v49  ;;  %v2328_v25 = vmax.f32 %v2229_v46, %v2274_v11  ;;  %v2755_v46 = vsel %vm2354_vm0, 1.0, %v6006_v9 }
 0x29b   :  { %v2178_v43 = vrot.slane %v2108_v2, 1  ;;  %v2277_v12 = vrot.slane %v2108_v2, 2  ;;  %v2084_v47 = vadd.f32 %v5538_v15, %v2052_v54  ;;  %v1963_v23 = vadd.f32 %v1962_v36, %v5751_v35  ;;  %v3246_v41 = vpop.f32.mrb[149].mxu0 }
 0x29c   :  { %v2021_v53 = vadd.f32 %v5523_v50, %v1989_v8  ;;  %v2329_v17 = vmax.f32 %v2230_v18, %v2276_v20  ;;  %v2761_v54 = vsel %vm2360_vm8, 1.0, %v6006_v9  ;;  %v2775_v36 = vsel %vm6029_vm10, 1.0, %v6006_v9  ;;  %v2801_v18 = vld [vmem:[#allocation7] ss:$0 sm:$0xff] }
 0x29d   :  { %v2109_v55 = vmax.f32 %v2084_v47, 0.0  ;;  %v1990_v62 = vadd.f32 %v1963_v23, %v5509_v45  ;;  %v2179_v34 = vsel %vm331_vm1, %v2176_v13, %v2178_v43  ;;  %v2278_v30 = vsel %vm1363_vm2, %v2275_v51, %v2277_v12 }
 0x29e   :  { %v2053_v52 = vmul.f32 %v5530_v58, %v2021_v53  ;;  %v3491_v10 = vpack.c.bf16 %v2329_v17, %v2328_v25  ;;  %v2231_v38 = vmax.f32 %v2107_v32, %v2179_v34 }
 0x29f   :  { %v2180_v28 = vrot.slane %v2109_v55, 1  ;;  %v2279_v61 = vrot.slane %v2109_v55, 2  ;;  %v2022_v1 = vadd.f32 %v5523_v50, %v1990_v62 }
 0x2a0   :  { %v2085_v35 = vadd.f32 %v5538_v15, %v2053_v52  ;;  %3492 = vmatpush1.bf16.msra.mxu0 %v3491_v10  ;;  %3521 = vmatpush1.bf16.msra.mxu1 %v3491_v10  ;;  %v2330_v60 = vmax.f32 %v2231_v38, %v2278_v30 }
 0x2a1   :  { %v2054_v42 = vmul.f32 %v5530_v58, %v2022_v1  ;;  %3493 = vmatprep.subr.bf16.mxu0 %v6017_v31  ;;  %3509 = vmatprep.subr.bf16.mxu1 %v6017_v31  ;;  %v2181_v45 = vsel %vm331_vm1, %v2178_v43, %v2180_v28  ;;  %v2280_v29 = vsel %vm1363_vm2, %v2277_v12, %v2279_v61  ;;  %v2802_v43 = vld [vmem:[#allocation9] ss:$0 sm:$0xff] }
 0x2a2   :  { %v2110_v21 = vmax.f32 %v2085_v35, 0.0  ;;  %v2232_v48 = vmax.f32 %v2108_v2, %v2181_v45  ;;  %v3698_v2 = vmov 1.0  }
 0x2a3   :  { %v2086_v26 = vadd.f32 %v5538_v15, %v2054_v42 }
 0x2a4   :  { %v2182_v50 = vrot.slane %v2110_v21, 1  ;;  %v2281_v37 = vrot.slane %v2110_v21, 2  ;;  %v2331_v44 = vmax.f32 %v2232_v48, %v2280_v29 }
 0x2a5   :  { %v2111_v32 = vmax.f32 %v2086_v26, 0.0 }
 0x2a6   :  { %v3494_v7 = vpack.c.bf16 %v2331_v44, %v2330_v60  ;;  %v2183_v59 = vsel %vm331_vm1, %v2180_v28, %v2182_v50  ;;  %v2282_v58 = vsel %vm1363_vm2, %v2279_v61, %v2281_v37 }
 0x2a7   :  { %v2184_v14 = vrot.slane %v2111_v32, 1  ;;  %v2283_v27 = vrot.slane %v2111_v32, 2  ;;  %v2233_v56 = vmax.f32 %v2109_v55, %v2183_v59 }
 0x2a8   :  { %3495 = vmatpush1.bf16.msra.mxu0 %v3494_v7  ;;  %3522 = vmatpush1.bf16.msra.mxu1 %v3494_v7 }
 0x2a9   :  { %3496 = vmatprep.subr.bf16.mxu0 %v6017_v31  ;;  %3510 = vmatprep.subr.bf16.mxu1 %v6017_v31  ;;  %v2185_v15 = vsel %vm331_vm1, %v2182_v50, %v2184_v14  ;;  %v2284_v11 = vsel %vm1363_vm2, %v2281_v37, %v2283_v27  ;;  %v2332_v51 = vmax.f32 %v2233_v56, %v2282_v58  ;;  %v2759_v31 = vsel %vm2358_vm6, 1.0, %v6006_v9 }
 0x2aa   :  { %v2234_v13 = vmax.f32 %v2110_v21, %v2185_v15  ;;  %v2235_v33 = vmax.f32 %v2111_v32, %v2184_v14  ;;  %vm6019_vm1 = vcmp.eq.s32.totalorder %v5492_v0, %v5549_v63  ;;  %vm6021_vm2 = vcmp.eq.s32.totalorder %v5495_v57, %v6020_v24  ;;  %v6026_v63 = vld [vmem:[#allocation16_spill] sm:$0xff] }
 0x2ab   :  { %v2769_v49 = vsel %vm6021_vm2, 1.0, %v6006_v9  ;;  %vm6024_vm6 = vcmp.eq.s32.totalorder %v5495_v57, %v6023_v6  ;;  %vm6027_vm8 = vcmp.eq.s32.totalorder %v5495_v57, %v6026_v63 }
 0x2ac   :  { %v2333_v22 = vmax.f32 %v2234_v13, %v2284_v11  ;;  %v2334_v3 = vmax.f32 %v2235_v33, %v2283_v27  ;;  %v2771_v20 = vsel %vm6024_vm6, 1.0, %v6006_v9  ;;  %v2773_v8 = vsel %vm6027_vm8, 1.0, %v6006_v9 }
 0x2ae   :  { %v3497_v5 = vpack.c.bf16 %v2333_v22, %v2332_v51 }
 0x2b0   :  { %3498 = vmatpush1.bf16.msra.mxu0 %v3497_v5  ;;  %3523 = vmatpush1.bf16.msra.mxu1 %v3497_v5 }
 0x2b1   :  { %2518 = vmatprep.subr.mxu0 %v6006_v9  ;;  %3511 = vmatprep.subr.mxu1 %v6006_v9 }
 0x2b4   :  { %2776 = vmatpush1.msk.msra.mxu0 %vm2466_vm13, %v2334_v3  ;;  %3524 = vmatpush1.msk.msra.mxu1 %vm2466_vm13, %v2334_v3  ;;  %vm2633_vm13 = vcmask 523264  }
 0x2b5   :  { %2782 = vmatmul.mubr.msk.f32.vlgmr.msra.gmra.mrb[150].mxu1 %vm2355_vm5, %v3698_v2  ;;  %2778 = vmatmul.mubr.msk.f32.vlgmr.msra.gmra.mrb[150].mxu0 %vm2351_vm15, %v3698_v2  ;;  %vm6022_vm5 = vcmp.eq.s32.totalorder %v5492_v0, %v6018_v39 }
 0x2b6   :  { %2783 = vmatprep.mubr.msk.f32.mxu1 %vm2429_vm4, %v2759_v31  ;;  %2779 = vmatprep.mubr.msk.f32.mxu0 %vm2429_vm4, %v2755_v46 }
 0x2b9   :  { %2784 = vmatmul.mubr.msk.f32.gmra.mrb[152].mxu1 %vm2357_vm7, %v3698_v2  ;;  %2780 = vmatmul.mubr.msk.f32.gmra.mrb[152].mxu0 %vm2353_vm3, %v3698_v2  ;;  %vm6025_vm7 = vcmp.eq.s32.totalorder %v5492_v0, %v6020_v24 }
 0x2ba   :  { %2785 = vmatprep.mubr.msk.f32.mxu1 %vm2429_vm4, %v2761_v54 }
 0x2bd   :  { %2786 = vmatmul.mubr.msk.f32.gmra.mrb[154].mxu1 %vm2359_vm9, %v3698_v2  ;;  %vm6028_vm9 = vcmp.eq.s32.totalorder %v5492_v0, %v6023_v6 }
 0x2be   :  { %2787 = vmatprep.mubr.msk.f32.mxu1 %vm2429_vm4, %v2763_v19 }
 0x2c1   :  { %2788 = vmatmul.mubr.msk.f32.gmra.mrb[156].mxu1 %vm2361_vm11, %v3698_v2  ;;  %vm6030_vm11 = vcmp.eq.s32.totalorder %v5492_v0, %v6026_v63 }
 0x2c2   :  { %2789 = vmatprep.mubr.msk.f32.mxu1 %vm2429_vm4, %v2765_v4 }
 0x2c5   :  { %2790 = vmatmul.mubr.msk.f32.gmra.mrb[158].mxu1 %vm6019_vm1, %v3698_v2 }
 0x2c6   :  { %2791 = vmatprep.mubr.msk.f32.mxu1 %vm2429_vm4, %v2767_v40 }
 0x2c9   :  { %2792 = vmatmul.mubr.msk.f32.gmra.mrb[160].mxu1 %vm6022_vm5, %v3698_v2 }
 0x2ca   :  { %2793 = vmatprep.mubr.msk.f32.mxu1 %vm2429_vm4, %v2769_v49 }
 0x2cd   :  { %2794 = vmatmul.mubr.msk.f32.gmra.mrb[162].mxu1 %vm6025_vm7, %v3698_v2 }
 0x2ce   :  { %2795 = vmatprep.mubr.msk.f32.mxu1 %vm2429_vm4, %v2771_v20 }
 0x2d1   :  { %2796 = vmatmul.mubr.msk.f32.gmra.mrb[164].mxu1 %vm6028_vm9, %v3698_v2 }
 0x2d2   :  { %2797 = vmatprep.mubr.msk.f32.mxu1 %vm2429_vm4, %v2773_v8 }
 0x2d5   :  { %2798 = vmatmul.mubr.msk.f32.gmra.mrb[166].mxu1 %vm6030_vm11, %v3698_v2 }
 0x2d6   :  { %2799 = vmatprep.mubr.msk.f32.mxu1 %vm2429_vm4, %v2775_v36 }
 0x2d9   :  { %2800 = vmatmul.mubr.msk.f32.gmra.mrb[168].mxu1 %vm6031_vm12, %v3698_v2 }
 0x388   :  { %v2546_v25 = vpop.f32.mrb[150].mxu1  ;;  %v2536_v12 = vpop.f32.mrb[150].mxu0 }
 0x389   :  { %v2604_v47 = vmul.f32 %v2801_v18, %v2546_v25  ;;  %v2548_v23 = vpop.f32.mrb[151].mxu1  ;;  %v2602_v41 = vmul.f32 %v2801_v18, %v2536_v12  ;;  %v2538_v53 = vpop.f32.mrb[151].mxu0 }
 0x38b   :  { %v2623_v9 = vadd.f32 %v2802_v43, %v2604_v47  ;;  %v2621_v57 = vadd.f32 %v2802_v43, %v2602_v41 }
 0x38c   :  { %v2551_v17 = vpop.f32.mrb[152].mxu1  ;;  %v2541_v55 = vpop.f32.mrb[152].mxu0 }
 0x38d   :  { %2636 = vst.msk [vmem:[%s5979_s7 + $0x10] sm:$0xff] %vm2633_vm13, %v2623_v9  ;;  %v2605_v0 = vmul.f32 %v2801_v18, %v2551_v17  ;;  %v2553_v16 = vpop.f32.mrb[153].mxu1  ;;  %2634 = vst.msk [vmem:[%s5979_s7] sm:$0xff] %vm2633_vm13, %v2621_v57  ;;  %v2603_v62 = vmul.f32 %v2801_v18, %v2541_v55  ;;  %v2543_v34 = vpop.f32.mrb[153].mxu0 }
 0x38f   :  { %v2624_v30 = vadd.f32 %v2802_v43, %v2605_v0  ;;  %v2622_v52 = vadd.f32 %v2802_v43, %v2603_v62 }
 0x390   :  { %v2556_v10 = vpop.f32.mrb[154].mxu1 }
 0x391   :  { %2637 = vst.msk [vmem:[%s5979_s7 + $0x18] sm:$0xff] %vm2633_vm13, %v2624_v30  ;;  %v2606_v38 = vmul.f32 %v2801_v18, %v2556_v10  ;;  %v2558_v28 = vpop.f32.mrb[155].mxu1  ;;  %2635 = vst.msk [vmem:[%s5979_s7 + $0x8] sm:$0xff] %vm2633_vm13, %v2622_v52 }
 0x393   :  { %v2625_v61 = vadd.f32 %v2802_v43, %v2606_v38 }
 0x394   :  { %v2561_v1 = vpop.f32.mrb[156].mxu1 }
 0x395   :  { %2638 = vst.msk [vmem:[%s5979_s7 + $0x20] sm:$0xff] %vm2633_vm13, %v2625_v61  ;;  %v2607_v35 = vmul.f32 %v2801_v18, %v2561_v1  ;;  %v2563_v60 = vpop.f32.mrb[157].mxu1 }
 0x397   :  { %v2626_v42 = vadd.f32 %v2802_v43, %v2607_v35 }
 0x398   :  { %v2566_v45 = vpop.f32.mrb[158].mxu1 }
 0x399   :  { %2639 = vst.msk [vmem:[%s5979_s7 + $0x28] sm:$0xff] %vm2633_vm13, %v2626_v42  ;;  %v2608_v29 = vmul.f32 %v2801_v18, %v2566_v45  ;;  %v2568_v21 = vpop.f32.mrb[159].mxu1 }
 0x39b   :  { %v2627_v48 = vadd.f32 %v2802_v43, %v2608_v29 }
 0x39c   :  { %v2571_v26 = vpop.f32.mrb[160].mxu1 }
 0x39d   :  { %2640 = vst.msk [vmem:[%s5979_s7 + $0x30] sm:$0xff] %vm2633_vm13, %v2627_v48  ;;  %v2609_v50 = vmul.f32 %v2801_v18, %v2571_v26  ;;  %v2573_v37 = vpop.f32.mrb[161].mxu1 }
 0x39f   :  { %v2628_v44 = vadd.f32 %v2802_v43, %v2609_v50 }
 0x3a0   :  { %v2576_v32 = vpop.f32.mrb[162].mxu1 }
 0x3a1   :  { %2641 = vst.msk [vmem:[%s5979_s7 + $0x38] sm:$0xff] %vm2633_vm13, %v2628_v44  ;;  %v2610_v7 = vmul.f32 %v2801_v18, %v2576_v32  ;;  %v2578_v59 = vpop.f32.mrb[163].mxu1 }
 0x3a3   :  { %v2629_v58 = vadd.f32 %v2802_v43, %v2610_v7 }
 0x3a4   :  { %v2581_v14 = vpop.f32.mrb[164].mxu1 }
 0x3a5   :  { %2642 = vst.msk [vmem:[%s5979_s7 + $0x40] sm:$0xff] %vm2633_vm13, %v2629_v58  ;;  %v2611_v27 = vmul.f32 %v2801_v18, %v2581_v14  ;;  %v2583_v56 = vpop.f32.mrb[165].mxu1 }
 0x3a7   :  { %v2630_v15 = vadd.f32 %v2802_v43, %v2611_v27 }
 0x3a8   :  { %v2586_v11 = vpop.f32.mrb[166].mxu1 }
 0x3a9   :  { %2643 = vst.msk [vmem:[%s5979_s7 + $0x48] sm:$0xff] %vm2633_vm13, %v2630_v15  ;;  %v2612_v13 = vmul.f32 %v2801_v18, %v2586_v11  ;;  %v2588_v51 = vpop.f32.mrb[167].mxu1 }
 0x3ab   :  { %v2631_v22 = vadd.f32 %v2802_v43, %v2612_v13 }
 0x3ac   :  { %v2591_v33 = vpop.f32.mrb[168].mxu1 }
 0x3ad   :  { %2644 = vst.msk [vmem:[%s5979_s7 + $0x50] sm:$0xff] %vm2633_vm13, %v2631_v22  ;;  %v2613_v5 = vmul.f32 %v2801_v18, %v2591_v33  ;;  %v2593_v3 = vpop.f32.mrb[169].mxu1 }
 0x3af   :  { %v2632_v31 = vadd.f32 %v2802_v43, %v2613_v5 }
 0x3b1   :  { %2645 = vst.msk [vmem:[%s5979_s7 + $0x58] sm:$0xff] %vm2633_vm13, %v2632_v31 }
 0x3b2   :  { %2650 = vsyncpa [#allocation3], 1 }
 0x3b3   :  { %2651 = vsyncpa [#allocation5], 1 }
 0x3b4   :  { %2652 = vsyncpa [#allocation8], 1 }

// kernel: conformer_forward.11
= control target key start
LH: loop header
LB: loop body
LE: loop exit
PB: predicated region body
PF: predicated region fallthrough
CT: control target
= control target key end

     0   :  { %11 = vsyncpa [#allocation4], 0  ;;  %s1160_s0 = inlined_call_operand.vmem [shape: f32[2,3,256], index: 0, kind: input, shape index: {}]   ;;  %s1161_s1 = inlined_call_operand.vmem [shape: s32[2], index: 1, kind: input, shape index: {}]   ;;  %s1162_s2 = inlined_call_operand.vmem [shape: f32[512,128], index: 2, kind: input, shape index: {}]   ;;  %s1163_s3 = inlined_call_operand.vmem [shape: f32[1,128], index: 3, kind: input, shape index: {}]   ;;  %s1164_s4 = inlined_call_operand.vmem [shape: f32[128,2], index: 4, kind: input, shape index: {}]   ;;  %s1165_s5 = inlined_call_operand.vmem [shape: f32[1,2], index: 5, kind: input, shape index: {}]   ;;  %s1166_s6 = inlined_call_operand.hbm [shape: f32[2,2], index: 6, kind: output, shape index: {}]  }
   0x1   :  { %12 = vsyncpa [#allocation3], 0  ;;  %s21_s23 = sshll.u32 %s1161_s1, 4  ;;  %s22_s23 = int_to_ptr.vmem [resolvable:$true] %s21_s23 }
   0x2   :  { %s746_s24 = scalar_lea.vmem %s22_s23, 16  ;;  %p751_p1 = scmp.lt.s32.totalorder %s22_s23, %s22_s23 }
   0x3   :  { %p747_p0 = scmp.ne.s32.totalorder %s22_s23, %s746_s24  ;;  %p752_p2 = scmp.lt.s32.totalorder %s746_s24, %s746_s24 }
   0x5   :  { %p753_p3 = por %p752_p2, %p751_p1 }
   0x7   :  { %p754_p4 = pnand %p753_p3, %p747_p0 }
   0x9   :  { %757 = shalt.err (!%p754_p4)
}
   0xa   :  { %s784_s25 = smov [#allocation2]  }
   0xb   :  { %24 = dma.vmem_to_smem %s22_s23, 16, %s784_s25, [#allocation4]  }
   0xc   :  { %780 = dma.done.wait [#allocation4], 16  }
   0xd   :  { %781 = vsyncadd [#allocation4], 4294967280 }
   0xe   :  { %36 = sfence }
   0xf   :  { %v208_v0 = vld [vmem:[%s1162_s2 + $0x80] sm:$0xff]  ;;  %v209_v1 = vld [vmem:[%s1162_s2 + $0x88] sm:$0xff]  ;;  %s838_s7 = sld [smem:[#allocation2]]  ;;  %v210_v9 = vld [vmem:[%s1162_s2 + $0x90] sm:$0xff]  ;;  %s858_s20 = sld [smem:[#allocation2 + $0x1]]  ;;  %v40_v16 = vlaneseq  ;;  %vm59_vm2 = vcmask 1042432  }
  0x10   :  { %v192_v2 = vld [vmem:[%s1162_s2] sm:$0xff]  ;;  %v643_v3 = vpack.c.bf16 %v209_v1, %v208_v0  ;;  %v193_v4 = vld [vmem:[%s1162_s2 + $0x8] sm:$0xff]  ;;  %v211_v10 = vld [vmem:[%s1162_s2 + $0x98] sm:$0xff]  ;;  %v785_v26 = vmov 839922192   ;;  %vm187_vm3 = vcmask 1040384  }
  0x11   :  { %v240_v5 = vld [vmem:[%s1162_s2 + $0x180] sm:$0xff]  ;;  %v241_v6 = vld [vmem:[%s1162_s2 + $0x188] sm:$0xff]  ;;  %v645_v7 = vpack.c.bf16 %v193_v4, %v192_v2  ;;  %v647_v12 = vpack.c.bf16 %v211_v10, %v210_v9  ;;  %v194_v14 = vld [vmem:[%s1162_s2 + $0x10] sm:$0xff]  ;;  %v48_v27 = vunpack.c.l.s4 %v785_v26  ;;  %v41_v36 = vshrl.u32 %v40_v16, 7  ;;  %s790_s8 = smov [#allocation5]  }
  0x12   :  { %v675_v8 = vpack.c.bf16 %v241_v6, %v240_v5  ;;  %v224_v11 = vld [vmem:[%s1162_s2 + $0x100] sm:$0xff]  ;;  %644 = vmatprep.subr.bf16.mxu0 %v643_v3  ;;  %v225_v13 = vld [vmem:[%s1162_s2 + $0x108] sm:$0xff]  ;;  %v195_v15 = vld [vmem:[%s1162_s2 + $0x18] sm:$0xff]  ;;  %v786_v3 = vmov 0.0   ;;  %vm789_vm4 = vmmov 0   ;;  %s504_s9 = sshll.u32 %s790_s8, 4  ;;  %s505_s9 = int_to_ptr.vmem [resolvable:$true] %s504_s9 }
  0x13   :  { %646 = vmatpush3.bf16.msra.mxu0 %v645_v7  ;;  %v677_v17 = vpack.c.bf16 %v225_v13, %v224_v11  ;;  %v649_v18 = vpack.c.bf16 %v195_v15, %v194_v14  ;;  %v242_v19 = vld [vmem:[%s1162_s2 + $0x190] sm:$0xff]  ;;  %v243_v20 = vld [vmem:[%s1162_s2 + $0x198] sm:$0xff]  ;;  %v212_v21 = vld [vmem:[%s1162_s2 + $0xa0] sm:$0xff]  ;;  %v49_v47 = vunpack.c.0.s8 %v48_v27  ;;  %vm496_vm5 = vcmask 9216   ;;  %s758_s10 = scalar_lea.vmem %s505_s9, 32  ;;  %p763_p6 = scmp.lt.s32.totalorder %s505_s9, %s505_s9 }
  0x14   :  { %676 = vmatprep.subr.bf16.mxu1 %v675_v8  ;;  %648 = vmatprep.subr.bf16.mxu0 %v647_v12  ;;  %v679_v22 = vpack.c.bf16 %v243_v20, %v242_v19  ;;  %v213_v23 = vld [vmem:[%s1162_s2 + $0xa8] sm:$0xff]  ;;  %v226_v24 = vld [vmem:[%s1162_s2 + $0x110] sm:$0xff]  ;;  %v227_v25 = vld [vmem:[%s1162_s2 + $0x118] sm:$0xff]  ;;  %p759_p5 = scmp.ne.s32.totalorder %s505_s9, %s758_s10  ;;  %p764_p7 = scmp.lt.s32.totalorder %s758_s10, %s758_s10 }
  0x15   :  { %678 = vmatpush3.bf16.msra.mxu1 %v677_v17  ;;  %v651_v28 = vpack.c.bf16 %v213_v23, %v212_v21  ;;  %v681_v29 = vpack.c.bf16 %v227_v25, %v226_v24  ;;  %v196_v30 = vld [vmem:[%s1162_s2 + $0x20] sm:$0xff]  ;;  %v197_v31 = vld [vmem:[%s1162_s2 + $0x28] sm:$0xff]  ;;  %v214_v34 = vld [vmem:[%s1162_s2 + $0xb0] sm:$0xff]  ;;  %v42_v42 = vstv %s838_s7  ;;  %v52_v63 = vsub.s32 %v49_v47, %v41_v36  ;;  %s38_s13 = scvt.s32.f32 %s838_s7  ;;  %s109_s18 = scvt.s32.f32 %s858_s20 }
  0x16   :  { %v244_v32 = vld [vmem:[%s1162_s2 + $0x1a0] sm:$0xff]  ;;  %680 = vmatprep.subr.bf16.mxu1 %v679_v22  ;;  %v245_v33 = vld [vmem:[%s1162_s2 + $0x1a8] sm:$0xff]  ;;  %v215_v35 = vld [vmem:[%s1162_s2 + $0xb8] sm:$0xff]  ;;  %v653_v37 = vpack.c.bf16 %v197_v31, %v196_v30  ;;  %v112_v48 = vstv %s858_s20  ;;  %vm937_vm0 = vcmp.lt.s32.totalorder %v41_v36, %v42_v42  ;;  %s788_s20 = smov 1.0   ;;  %p765_p8 = por %p764_p7, %p763_p6 }
  0x17   :  { %650 = vmatpush3.bf16.msra.mxu0 %v649_v18  ;;  %v683_v38 = vpack.c.bf16 %v245_v33, %v244_v32  ;;  %v228_v39 = vld [vmem:[%s1162_s2 + $0x120] sm:$0xff]  ;;  %v229_v40 = vld [vmem:[%s1162_s2 + $0x128] sm:$0xff]  ;;  %v198_v41 = vld [vmem:[%s1162_s2 + $0x30] sm:$0xff]  ;;  %v655_v43 = vpack.c.bf16 %v215_v35, %v214_v34  ;;  %vm941_vm1 = vcmp.lt.s32.totalorder %v41_v36, %v112_v48  ;;  %v513_v4 = vsel %vm937_vm0, 1.0, %v786_v3 }
  0x18   :  { %652 = vmatprep.subr.bf16.mxu0 %v651_v28  ;;  %v199_v44 = vld [vmem:[%s1162_s2 + $0x38] sm:$0xff]  ;;  %v246_v45 = vld [vmem:[%s1162_s2 + $0x1b0] sm:$0xff]  ;;  %v685_v49 = vpack.c.bf16 %v229_v40, %v228_v39  ;;  %v216_v50 = vld [vmem:[%s1162_s2 + $0xc0] sm:$0xff]  ;;  %v517_v5 = vsel %vm941_vm1, 1.0, %v786_v3  ;;  %v989_v15 = vrot.slane %v513_v4, %v52_v63  ;;  %v74_v21 = vstv %s38_s13  ;;  %p766_p9 = pnand %p765_p8, %p759_p5 }
  0x19   :  { %v247_v46 = vld [vmem:[%s1162_s2 + $0x1b8] sm:$0xff]  ;;  %682 = vmatpush3.bf16.msra.mxu1 %v681_v29  ;;  %v217_v51 = vld [vmem:[%s1162_s2 + $0xc8] sm:$0xff]  ;;  %v230_v53 = vld [vmem:[%s1162_s2 + $0x130] sm:$0xff]  ;;  %v657_v57 = vpack.c.bf16 %v199_v44, %v198_v41  ;;  %v991_v16 = vrot.slane %v517_v5, %v52_v63  ;;  %v143_v26 = vstv %s109_s18  ;;  %738 = vrcp.f32 %v74_v21 }
  0x1a   :  { %684 = vmatprep.subr.bf16.mxu1 %v683_v38  ;;  %v687_v52 = vpack.c.bf16 %v247_v46, %v246_v45  ;;  %v231_v54 = vld [vmem:[%s1162_s2 + $0x138] sm:$0xff]  ;;  %v248_v58 = vld [vmem:[%s1162_s2 + $0x1c0] sm:$0xff]  ;;  %v249_v59 = vld [vmem:[%s1162_s2 + $0x1c8] sm:$0xff]  ;;  %v659_v60 = vpack.c.bf16 %v217_v51, %v216_v50  ;;  %740 = vrcp.f32 %v143_v26 }
  0x1b   :  { %654 = vmatpush3.bf16.msra.mxu0 %v653_v37  ;;  %v200_v61 = vld [vmem:[%s1162_s2 + $0x40] sm:$0xff]  ;;  %v201_v62 = vld [vmem:[%s1162_s2 + $0x48] sm:$0xff]  ;;  %v689_v0 = vpack.c.bf16 %v231_v54, %v230_v53  ;;  %v218_v1 = vld [vmem:[%s1162_s2 + $0xd0] sm:$0xff]  ;;  %v691_v6 = vpack.c.bf16 %v249_v59, %v248_v58 }
  0x1c   :  { %656 = vmatprep.subr.bf16.mxu0 %v655_v43  ;;  %v219_v2 = vld [vmem:[%s1162_s2 + $0xd8] sm:$0xff]  ;;  %v232_v7 = vld [vmem:[%s1162_s2 + $0x140] sm:$0xff]  ;;  %v233_v8 = vld [vmem:[%s1162_s2 + $0x148] sm:$0xff]  ;;  %v661_v9 = vpack.c.bf16 %v201_v62, %v200_v61 }
  0x1d   :  { %686 = vmatpush3.bf16.msra.mxu1 %v685_v49  ;;  %v250_v10 = vld [vmem:[%s1162_s2 + $0x1d0] sm:$0xff]  ;;  %v251_v11 = vld [vmem:[%s1162_s2 + $0x1d8] sm:$0xff]  ;;  %v663_v12 = vpack.c.bf16 %v219_v2, %v218_v1  ;;  %v693_v17 = vpack.c.bf16 %v233_v8, %v232_v7  ;;  %v220_v18 = vld [vmem:[%s1162_s2 + $0xe0] sm:$0xff] }
  0x1e   :  { %688 = vmatprep.subr.bf16.mxu1 %v687_v52  ;;  %v202_v13 = vld [vmem:[%s1162_s2 + $0x50] sm:$0xff]  ;;  %v203_v14 = vld [vmem:[%s1162_s2 + $0x58] sm:$0xff]  ;;  %v221_v19 = vld [vmem:[%s1162_s2 + $0xe8] sm:$0xff]  ;;  %v695_v22 = vpack.c.bf16 %v251_v11, %v250_v10 }
  0x1f   :  { %658 = vmatpush3.bf16.msra.mxu0 %v657_v57  ;;  %v234_v20 = vld [vmem:[%s1162_s2 + $0x150] sm:$0xff]  ;;  %v235_v23 = vld [vmem:[%s1162_s2 + $0x158] sm:$0xff]  ;;  %v252_v24 = vld [vmem:[%s1162_s2 + $0x1e0] sm:$0xff]  ;;  %v665_v27 = vpack.c.bf16 %v203_v14, %v202_v13  ;;  %v667_v30 = vpack.c.bf16 %v221_v19, %v220_v18  ;;  %v787_v18 = vmov 0.0|0.0  }
  0x20   :  { %660 = vmatprep.subr.bf16.mxu0 %v659_v60  ;;  %v253_v25 = vld [vmem:[%s1162_s2 + $0x1e8] sm:$0xff]  ;;  %v1018_v28 = vld [vmem:[%s1160_s0] sm:$0x77]  ;;  %v222_v33 = vld [vmem:[%s1162_s2 + $0xf0] sm:$0xff]  ;;  %v697_v36 = vpack.c.bf16 %v235_v23, %v234_v20 }
  0x21   :  { %690 = vmatpush3.bf16.msra.mxu1 %v689_v0  ;;  %v1023_v29 = vld [vmem:[%s1160_s0 + $0x8] sm:$0x77]  ;;  %v204_v31 = vld [vmem:[%s1162_s2 + $0x60] sm:$0xff]  ;;  %v55_v34 = vmul.f32 %v989_v15, %v1018_v28  ;;  %v699_v37 = vpack.c.bf16 %v253_v25, %v252_v24  ;;  %v223_v38 = vld [vmem:[%s1162_s2 + $0xf8] sm:$0xff]  ;;  %s514_s0 = sadd.f32 -1.0, %s38_s13 }
  0x22   :  { %692 = vmatprep.subr.bf16.mxu1 %v691_v6  ;;  %v205_v32 = vld [vmem:[%s1162_s2 + $0x68] sm:$0xff]  ;;  %v125_v35 = vmul.f32 %v1023_v29, %v991_v16  ;;  %v236_v39 = vld [vmem:[%s1162_s2 + $0x160] sm:$0xff]  ;;  %v206_v41 = vld [vmem:[%s1162_s2 + $0x70] sm:$0xff]  ;;  %v671_v52 = vpack.c.bf16 %v223_v38, %v222_v33 }
  0x23   :  { %662 = vmatpush3.bf16.msra.mxu0 %v661_v9  ;;  %v237_v40 = vld [vmem:[%s1162_s2 + $0x168] sm:$0xff]  ;;  %v57_v42 = vcombine.high %v55_v34, %v55_v34  ;;  %v60_v43 = vsel %vm59_vm2, %v55_v34, 0.0  ;;  %v669_v46 = vpack.c.bf16 %v205_v32, %v204_v31  ;;  %v207_v47 = vld [vmem:[%s1162_s2 + $0x78] sm:$0xff]  ;;  %v254_v50 = vld [vmem:[%s1162_s2 + $0x1f0] sm:$0xff]  ;;  %v739_v10 = vpop.eup %738  ;;  %s85_s30 = smax.f32 %s788_s20, %s514_s0 }
  0x24   :  { %664 = vmatprep.subr.bf16.mxu0 %v663_v12  ;;  %v127_v44 = vcombine.high %v125_v35, %v125_v35  ;;  %v129_v45 = vsel %vm59_vm2, %v125_v35, 0.0  ;;  %v61_v48 = vrot.slane %v60_v43, 4  ;;  %v255_v51 = vld [vmem:[%s1162_s2 + $0x1f8] sm:$0xff]  ;;  %v701_v53 = vpack.c.bf16 %v237_v40, %v236_v39  ;;  %v238_v60 = vld [vmem:[%s1162_s2 + $0x170] sm:$0xff]  ;;  %v741_v11 = vpop.eup %740  ;;  %v403_v32 = vld [vmem:[%s1164_s4] sm:$0xff] }
  0x25   :  { %694 = vmatpush3.bf16.msra.mxu1 %v693_v17  ;;  %v130_v49 = vrot.slane %v129_v45, 4  ;;  %v67_v54 = vsel %vm59_vm2, %v57_v42, 0.0  ;;  %v239_v61 = vld [vmem:[%s1162_s2 + $0x178] sm:$0xff]  ;;  %v673_v62 = vpack.c.bf16 %v207_v47, %v206_v41  ;;  %v703_v63 = vpack.c.bf16 %v255_v51, %v254_v50  ;;  %s518_s2 = sadd.f32 -1.0, %s109_s18  ;;  %v404_v33 = vld [vmem:[%s1164_s4 + $0x8] sm:$0xff]  ;;  %v405_v42 = vld [vmem:[%s1164_s4 + $0x10] sm:$0xff] }
  0x26   :  { %696 = vmatprep.subr.bf16.mxu1 %v695_v22  ;;  %v136_v55 = vsel %vm59_vm2, %v127_v44, 0.0  ;;  %v62_v56 = vadd.f32 %v61_v48, %v60_v43  ;;  %v68_v57 = vrot.slane %v67_v54, 4  ;;  %v705_v5 = vpack.c.bf16 %v239_v61, %v238_v60  ;;  %v406_v43 = vld [vmem:[%s1164_s4 + $0x18] sm:$0xff]  ;;  %v408_v50 = vld [vmem:[%s1164_s4 + $0x28] sm:$0xff] }
  0x27   :  { %666 = vmatpush3.bf16.msra.mxu0 %v665_v27  ;;  %v131_v58 = vadd.f32 %v130_v49, %v129_v45  ;;  %v137_v59 = vrot.slane %v136_v55, 4  ;;  %s154_s18 = smax.f32 %s788_s20, %s518_s2  ;;  %v708_v38 = vpack.c.bf16 %v404_v33, %v403_v32  ;;  %v104_v48 = vstv %s85_s30  ;;  %v407_v49 = vld [vmem:[%s1164_s4 + $0x20] sm:$0xff] }
  0x28   :  { %668 = vmatprep.subr.bf16.mxu0 %v667_v30  ;;  %v63_v0 = vrot.slane %v62_v56, 2  ;;  %v69_v1 = vadd.f32 %v68_v57, %v67_v54  ;;  %v410_v57 = vld [vmem:[%s1164_s4 + $0x38] sm:$0xff] }
  0x29   :  { %698 = vmatpush3.bf16.msra.mxu1 %v697_v36  ;;  %v132_v2 = vrot.slane %v131_v58, 2  ;;  %v138_v4 = vadd.f32 %v137_v59, %v136_v55  ;;  %v714_v55 = vpack.c.bf16 %v408_v50, %v407_v49 }
  0x2a   :  { %700 = vmatprep.subr.bf16.mxu1 %v699_v37  ;;  %v64_v6 = vadd.f32 %v63_v0, %v62_v56  ;;  %v70_v7 = vrot.slane %v69_v1, 2  ;;  %v409_v56 = vld [vmem:[%s1164_s4 + $0x30] sm:$0xff] }
  0x2b   :  { %670 = vmatpush3.bf16.msra.mxu0 %v669_v46  ;;  %v133_v8 = vadd.f32 %v132_v2, %v131_v58  ;;  %v139_v9 = vrot.slane %v138_v4, 2  ;;  %v717_v0 = vpack.c.bf16 %v410_v57, %v409_v56 }
  0x2c   :  { %672 = vmatprep.subr.bf16.mxu0 %v671_v52  ;;  %v65_v12 = vrot.slane %v64_v6, 1  ;;  %v71_v13 = vadd.f32 %v70_v7, %v69_v1  ;;  %v412_v7 = vld [vmem:[%s1164_s4 + $0x48] sm:$0xff] }
  0x2d   :  { %702 = vmatpush3.bf16.msra.mxu1 %v701_v53  ;;  %v134_v14 = vrot.slane %v133_v8, 1  ;;  %v140_v17 = vadd.f32 %v139_v9, %v138_v4 }
  0x2e   :  { %704 = vmatprep.subr.bf16.mxu1 %v703_v63  ;;  %v66_v19 = vadd.f32 %v65_v12, %v64_v6  ;;  %v72_v20 = vrot.slane %v71_v13, 1  ;;  %v411_v6 = vld [vmem:[%s1164_s4 + $0x40] sm:$0xff] }
  0x2f   :  { %674 = vmatpush3.bf16.msra.mxu0 %v673_v62  ;;  %v135_v21 = vadd.f32 %v134_v14, %v133_v8  ;;  %v141_v22 = vrot.slane %v140_v17, 1  ;;  %v720_v12 = vpack.c.bf16 %v412_v7, %v411_v6 }
  0x30   :  { %707 = vmatprep.subr.bf16.mxu0 %v787_v18  ;;  %v73_v23 = vadd.f32 %v72_v20, %v71_v13  ;;  %v76_v24 = vmul.f32 %v739_v10, %v66_v19 }
  0x31   :  { %706 = vmatpush3.bf16.msra.mxu1 %v705_v5  ;;  %v142_v25 = vadd.f32 %v141_v22, %v140_v17  ;;  %v145_v26 = vmul.f32 %v741_v11, %v135_v21  ;;  %v413_v21 = vld [vmem:[%s1164_s4 + $0x50] sm:$0xff]  ;;  %v414_v22 = vld [vmem:[%s1164_s4 + $0x58] sm:$0xff] }
  0x32   :  { %v77_v27 = vmul.f32 %v739_v10, %v73_v23  ;;  %v723_v33 = vpack.c.bf16 %v414_v22, %v413_v21 }
  0x33   :  { %v146_v30 = vmul.f32 %v741_v11, %v142_v25  ;;  %v179_v31 = vrot.slane %v145_v26, 7 }
  0x34   :  { %v80_v34 = vcombine.low %v76_v24, %v77_v27 }
  0x35   :  { %v149_v35 = vcombine.low %v145_v26, %v146_v30  ;;  %v180_v36 = vrot.slane %v146_v30, 7  ;;  %v188_v37 = vsel %vm187_vm3, %v76_v24, %v179_v31 }
  0x36   :  { %v82_v39 = vsub.f32 %v1018_v28, %v80_v34  ;;  %v173_v28 = vstv %s154_s18 }
  0x37   :  { %v151_v40 = vsub.f32 %v1023_v29, %v149_v35  ;;  %v189_v41 = vsel %vm187_vm3, %v77_v27, %v180_v36  ;;  %v711_v29 = vpack.c.bf16 %v406_v43, %v405_v42  ;;  %742 = vrcp.f32 %v173_v28  ;;  %v416_v42 = vld [vmem:[%s1164_s4 + $0x68] sm:$0xff] }
  0x38   :  { %327 = vmatprep.mubr.f32.mxu0 %v189_v41  ;;  %v83_v44 = vmul.f32 %v82_v39, %v989_v15  ;;  %744 = vrcp.f32 %v104_v48  ;;  %v415_v41 = vld [vmem:[%s1164_s4 + $0x60] sm:$0xff] }
  0x39   :  { %v152_v45 = vmul.f32 %v151_v40, %v991_v16  ;;  %328 = vmatmul.mubr.f32.vlgmr.msra.gmra.mrb[0].mxu0 %v188_v37  ;;  %v726_v43 = vpack.c.bf16 %v416_v42, %v415_v41 }
  0x3a   :  { %709 = vmatpush3.bf16.msra.mxu0 %v708_v38  ;;  %v86_v46 = vmul.f32 %v83_v44, %v83_v44  ;;  %v417_v44 = vld [vmem:[%s1164_s4 + $0x70] sm:$0xff]  ;;  %640 = vmatprep.mubr.msk.f32.mxu0 %vm789_vm4, %v786_v3 }
  0x3b   :  { %v155_v47 = vmul.f32 %v152_v45, %v152_v45  ;;  %710 = vmatprep.subr.bf16.mxu0 %v787_v18  ;;  %v418_v45 = vld [vmem:[%s1164_s4 + $0x78] sm:$0xff] }
  0x3c   :  { %v88_v15 = vcombine.high %v86_v46, %v86_v46  ;;  %v90_v16 = vsel %vm59_vm2, %v86_v46, 0.0  ;;  %v729_v28 = vpack.c.bf16 %v418_v45, %v417_v44 }
  0x3d   :  { %v157_v51 = vcombine.high %v155_v47, %v155_v47  ;;  %v159_v52 = vsel %vm59_vm2, %v155_v47, 0.0  ;;  %v91_v53 = vrot.slane %v90_v16, 4 }
  0x3e   :  { %v160_v54 = vrot.slane %v159_v52, 4  ;;  %712 = vmatpush3.bf16.msra.mxu0 %v711_v29  ;;  %v97_v58 = vsel %vm59_vm2, %v88_v15, 0.0 }
  0x3f   :  { %v166_v59 = vsel %vm59_vm2, %v157_v51, 0.0  ;;  %713 = vmatprep.subr.bf16.mxu0 %v787_v18  ;;  %v98_v60 = vrot.slane %v97_v58, 4  ;;  %v92_v62 = vadd.f32 %v91_v53, %v90_v16  ;;  %v520_v51 = vld [vmem:[%s1165_s5] ss:$0 sm:$0xff] }
  0x40   :  { %v167_v61 = vrot.slane %v166_v59, 4  ;;  %v161_v63 = vadd.f32 %v160_v54, %v159_v52 }
  0x41   :  { %v99_v1 = vadd.f32 %v98_v60, %v97_v58  ;;  %v93_v4 = vrot.slane %v92_v62, 2  ;;  %v743_v13 = vpop.eup %742 }
  0x42   :  { %v168_v2 = vadd.f32 %v167_v61, %v166_v59  ;;  %v162_v5 = vrot.slane %v161_v63, 2  ;;  %715 = vmatpush3.bf16.msra.mxu0 %v714_v55  ;;  %v745_v23 = vpop.eup %744 }
  0x43   :  { %716 = vmatprep.subr.bf16.mxu0 %v787_v18  ;;  %v100_v8 = vrot.slane %v99_v1, 2  ;;  %v94_v10 = vadd.f32 %v93_v4, %v92_v62 }
  0x44   :  { %v169_v9 = vrot.slane %v168_v2, 2  ;;  %v163_v11 = vadd.f32 %v162_v5, %v161_v63 }
  0x45   :  { %v101_v14 = vadd.f32 %v100_v8, %v99_v1  ;;  %v95_v19 = vrot.slane %v94_v10, 1 }
  0x46   :  { %v170_v17 = vadd.f32 %v169_v9, %v168_v2  ;;  %v164_v20 = vrot.slane %v163_v11, 1  ;;  %718 = vmatpush3.bf16.msra.mxu0 %v717_v0 }
  0x47   :  { %719 = vmatprep.subr.bf16.mxu0 %v787_v18  ;;  %v102_v24 = vrot.slane %v101_v14, 1  ;;  %v96_v26 = vadd.f32 %v95_v19, %v94_v10 }
  0x48   :  { %v171_v25 = vrot.slane %v170_v17, 1  ;;  %v165_v27 = vadd.f32 %v164_v20, %v163_v11 }
  0x49   :  { %v103_v30 = vadd.f32 %v102_v24, %v101_v14  ;;  %v106_v34 = vmul.f32 %v745_v23, %v96_v26 }
  0x4a   :  { %v172_v31 = vadd.f32 %v171_v25, %v170_v17  ;;  %v175_v32 = vmul.f32 %v743_v13, %v165_v27  ;;  %721 = vmatpush3.bf16.msra.mxu0 %v720_v12 }
  0x4b   :  { %722 = vmatprep.subr.bf16.mxu0 %v787_v18  ;;  %v107_v35 = vmul.f32 %v745_v23, %v103_v30 }
  0x4c   :  { %v176_v36 = vmul.f32 %v743_v13, %v172_v31  ;;  %v181_v37 = vrot.slane %v175_v32, 7 }
  0x4e   :  { %v182_v38 = vrot.slane %v176_v36, 7  ;;  %724 = vmatpush3.bf16.msra.mxu0 %v723_v33  ;;  %v190_v39 = vsel %vm187_vm3, %v106_v34, %v181_v37 }
  0x4f   :  { %725 = vmatprep.subr.bf16.mxu0 %v787_v18 }
  0x50   :  { %v191_v40 = vsel %vm187_vm3, %v107_v35, %v182_v38 }
  0x51   :  { %397 = vmatprep.mubr.f32.mxu1 %v191_v40 }
  0x52   :  { %398 = vmatmul.mubr.f32.vlgmr.msra.gmra.mrb[0].mxu1 %v190_v39  ;;  %727 = vmatpush3.bf16.msra.mxu0 %v726_v43 }
  0x53   :  { %728 = vmatprep.subr.bf16.mxu0 %v787_v18  ;;  %v519_v18 = vld [vmem:[%s1163_s3] ss:$0 sm:$0xff] }
  0x56   :  { %730 = vmatpush3.bf16.msra.mxu0 %v729_v28 }
 0x10c   :  { %v553_v29 = vpop.f32.mrb[0].mxu0 }
 0x10d   :  { %v554_v46 = vpop.f32.mrb[1].mxu0 }
 0x10e   :  { %v555_v47 = vadd.f32 %v554_v46, %v553_v29 }
 0x110   :  { %v330_v48 = vadd.f32 %v555_v47, %v519_v18 }
 0x125   :  { %v588_v49 = vpop.f32.mrb[0].mxu1 }
 0x126   :  { %v589_v50 = vpop.f32.mrb[1].mxu1 }
 0x127   :  { %v590_v15 = vadd.f32 %v589_v50, %v588_v49 }
 0x129   :  { %v400_v16 = vadd.f32 %v590_v15, %v330_v48 }
 0x12b   :  { %641 = vmatmul.mubr.f32.vlgmr.msra.gmra.mrb[2].mxu0 %v400_v16 }
 0x1fe   :  { %v492_v3 = vpop.f32.mrb[2].mxu0 }
 0x1ff   :  { %v493_v52 = vadd.f32 %v520_v51, %v492_v3  ;;  %v642_v53 = vpop.f32.mrb[3].mxu0 }
 0x201   :  { %497 = vst.msk [vmem:[#allocation5] sm:$0x3] %vm496_vm5, %v493_v52 }
 0x202   :  { %769 = shalt.err (!%p766_p9)
}
 0x203   :  { %s770_s12 = scalar_lea.hbm %s1166_s6, 32 }
 0x204   :  { %p771_p10 = scmp.ne.s32.totalorder %s1166_s6, %s770_s12  ;;  %p774_p11 = scmp.lt.u32.totalorder %s770_s12, %s1166_s6 }
 0x206   :  { %p776_p12 = pnand %p774_p11, %p771_p10 }
 0x208   :  { %779 = shalt.err (!%p776_p12)
}
 0x209   :  { %507 = dma.vmem_to_hbm [thread:$0]  %s505_s9, 32, %s1166_s6, [#allocation3]  }
 0x20a   :  { %782 = dma.done.wait [#allocation3], 32  }
 0x20b   :  { %783 = vsyncadd [#allocation3], 4294967264 }
 0x20c   :  { %511 = vsyncpa [#allocation3], 1 }
 0x20d   :  { %512 = vsyncpa [#allocation4], 1 }

// kernel: conformer_forward.10
= control target key start
LH: loop header
LB: loop body
LE: loop exit
PB: predicated region body
PF: predicated region fallthrough
CT: control target
= control target key end

     0   :  { %s10149_s0 = inlined_call_operand.vmem [shape: f32[6,256], index: 0, kind: input, shape index: {}]   ;;  %s10150_s1 = inlined_call_operand.vmem [shape: f32[2,3], index: 1, kind: input, shape index: {}]   ;;  %s10151_s2 = inlined_call_operand.vmem [shape: bf16[3,256,768], index: 2, kind: input, shape index: {}]   ;;  %s10152_s3 = inlined_call_operand.vmem [shape: f32[3,1,768], index: 3, kind: input, shape index: {}]   ;;  %s10153_s4 = inlined_call_operand.hbm [shape: bf16[3,256,256], index: 4, kind: input, shape index: {}]   ;;  %s10154_s5 = inlined_call_operand.vmem [shape: f32[3,1,256], index: 5, kind: input, shape index: {}]   ;;  %s10155_s6 = inlined_call_operand.vmem [shape: f32[3,1,256], index: 6, kind: input, shape index: {}]   ;;  %s10156_s7 = inlined_call_operand.vmem [shape: f32[3,1,256], index: 7, kind: input, shape index: {}]   ;;  %s10157_s8 = inlined_call_operand.vmem [shape: bf16[3,256,2048], index: 8, kind: input, shape index: {}]   ;;  %s10158_s9 = inlined_call_operand.vmem [shape: f32[3,1,2048], index: 9, kind: input, shape index: {}]   ;;  %s10159_s10 = inlined_call_operand.hbm [shape: bf16[3,2048,256], index: 10, kind: input, shape index: {}]   ;;  %s10160_s11 = inlined_call_operand.vmem [shape: f32[3,1,256], index: 11, kind: input, shape index: {}]   ;;  %s10161_s12 = inlined_call_operand.vmem [shape: f32[3,1,256], index: 12, kind: input, shape index: {}]   ;;  %s10162_s13 = inlined_call_operand.vmem [shape: f32[3,1,256], index: 13, kind: input, shape index: {}]   ;;  %s10163_s14 = inlined_call_operand.vmem [shape: f32[6,256], index: 14, kind: output, shape index: {}]  }
   0x1   :  { %10173 = sst [smem:[#allocation14_spill]] %s10150_s1 }
   0x2   :  { %10174 = sst [smem:[#allocation15_spill]] %s10153_s4 }
   0x3   :  { %10175 = sst [smem:[#allocation16_spill]] %s10154_s5 }
   0x4   :  { %10176 = sst [smem:[#allocation17_spill]] %s10159_s10 }
   0x5   :  { %10177 = sst [smem:[#allocation18_spill]] %s10163_s14 }
   0x6   :  { %19 = vsyncpa [#allocation3], 0 }
   0x7   :  { %21 = vsyncpa [#allocation3 + $0x1], 0 }
   0x8   :  { %22 = vsyncpa [#allocation5], 0 }
   0x9   :  { %24 = vsyncpa [#allocation5 + $0x1], 0  ;;  %s8866_s29 = smov 0   ;;  %s8868_s30 = smov 0  }
   0xa   :  { %s8870_s15 = smov 0   ;;  %s8872_s16 = smov 0  }
   0xb LB: > { %10178 = sst [smem:[#allocation8_spill]] %s8774_s30  ;;  %s8885_s17 = sadd.s32 4294967295, %s8782_s16   ;;  %s8782_s16 = sphi %s8872_s16, %s10202_s16   ;;  %s8778_s15 = sphi %s8870_s15, %s10205_s15   ;;  %s8774_s30 = sphi %s8868_s30, %s10204_s30   ;;  %s8770_s29 = sphi %s8866_s29, %s10203_s29  }
   0xc   : > { %10179 = sst [smem:[#allocation9_spill]] %s8778_s15  ;;  %s8888_s18 = sadd.s32 1, %s8782_s16  }
   0xd   : > { %10180 = sst [smem:[#allocation10_spill]] %s8888_s18  ;;  %s128_s19 = ssub.s32 %s8782_s16, %s8888_s18 }
   0xe   : > { %s131_s20 = sadd.s32 1, %s8778_s15  ;;  %p129_p0 = scmp.eq.s32.totalorder %s128_s19, 0 }
   0xf   : > { %p138_p1 = scmp.ne.s32.totalorder %s8778_s15, %s8774_s30  ;;  %p139_p2 = scmp.eq.s32.totalorder %s8782_s16, 0 }
  0x10   : > { %p144_p3 = scmp.ne.s32.totalorder %s8774_s30, %s8770_s29  ;;  %p145_p5 = scmp.eq.s32.totalorder %s8885_s17, 0 }
  0x11   : > { %s8898_s21 = scalar_select %p129_p0, %s8778_s15, %s131_s20  }
  0x12   : > { %p140_p4 = por %p139_p2, %p138_p1  ;;  %p8022_p6 = scmp.lt.s32.totalorder %s8782_s16, 3 }
  0x13   : > { %10181 = sst [smem:[#allocation11_spill]] %s8898_s21  ;;  %p8902_p7 = por %p145_p5, %p144_p3 }
  0x14   : > { %s8907_s23 = sand.u32 1, %s8778_s15   ;;  %s7894_s25 = sshll.u32 %s8782_s16, 12 }
  0x15   : > { %s10182_s22 = scalar_select %p8902_p7, 1, 0 }
  0x16   : > { %s7200_s24 = sshll.u32 %s8907_s23, 8  ;;  %s10183_s4 = sld [smem:[#allocation15_spill]] }
  0x17   : > { %s448_s29 = scalar_lea.vmem [#allocation2], %s7200_s24  ;;  %p8918_p8 = pnand %p8022_p6, %p140_p4 }
  0x18   : > { %s455_s19 = sshll.u32 %s448_s29, 4  ;;  %s8916_s19 = int_to_ptr.vmem [resolvable:$true] %s455_s19 }
  0x19   : > { %p8686_p11 = pneg %p8918_p8 }
  0x1c   : > { %s8914_s28 = scalar_lea.hbm %s10183_s4, %s7894_s25  ;;  %s8689_s26 = scalar_lea.hbm %s10183_s4, 12288 }
  0x1d   : > { %s8684_s15 = scalar_lea.hbm %s8914_s28, 4096  ;;  %p8690_p0 = scmp.lt.u32.totalorder %s8914_s28, %s10183_s4 }
  0x1e   : > { %p8685_p10 = scmp.ne.s32.totalorder %s8914_s28, %s8684_s15  ;;  %p8691_p1 = scmp.lt.u32.totalorder %s8689_s26, %s8684_s15 }
  0x1f   : > { %p8693_p3 = scmp.lt.u32.totalorder %s8684_s15, %s8914_s28 }
  0x20   : > { %p8687_p12 = pnand %p8686_p11, %p8685_p10  ;;  %p8692_p2 = por %p8691_p1, %p8690_p0 }
  0x22   : > { %p8688_p13 = pneg %p8687_p12  ;;  %p8694_p4 = por %p8693_p3, %p8692_p2 }
  0x24   : > { %p8695_p5 = pnand %p8694_p4, %p8688_p13 }
  0x26   : > { %8698 = shalt.err (!%p8695_p5)
}
  0x27   : > { %s8699_s21 = scalar_lea.vmem %s8916_s19, 4096  ;;  %s8784_s24 = smov [#allocation2]  }
  0x28   : > { %p8700_p6 = scmp.ne.s32.totalorder %s8916_s19, %s8699_s21  ;;  %s8704_s25 = sshll.u32 %s8784_s24, 4  ;;  %s8705_s25 = int_to_ptr.vmem [resolvable:$false] %s8704_s25 }
  0x29   : > { %s8706_s27 = scalar_lea.vmem %s8705_s25, 8192  ;;  %p8707_p9 = scmp.lt.s32.totalorder %s8916_s19, %s8705_s25 }
  0x2a   : > { %p8702_p10 = pnand %p8700_p6, %p8686_p11  ;;  %p8708_p0 = scmp.lt.s32.totalorder %s8706_s27, %s8699_s21 }
  0x2c   : > { %p8703_p12 = pneg %p8702_p10  ;;  %p8709_p1 = por %p8708_p0, %p8707_p9 }
  0x2e   : > { %p8710_p2 = pnand %p8709_p1, %p8703_p12 }
  0x30   : > { %8713 = shalt.err (!%p8710_p2)
}
  0x31   : > { %s8785_s15 = smov 128   ;;  %s8786_s26 = smov 8  }
  0x32   : > { %s10185_s21 = scalar_lea.sflag [#allocation3], %s8907_s23  ;;  %p541_p9 = scmp.lt.s32.totalorder %s8782_s16, 4 }
  0x33   : > { %8018 = dma.hbm_to_vmem [thread:$0]  (!%p8918_p8), %s8914_s28, 4096, %s8916_s19, %s10185_s21, %s8785_s15, %s8785_s15, %s8786_s26  }
  0x34   : > { %s7203_s29 = sshll.u32 %s8907_s23, 11  ;;  %s7895_s24 = sshll.u32 %s8782_s16, 15 }
  0x35   : > { %p10186_p13 = scmp.ge.s32.totalorder %s8782_s16, 1  ;;  %s10188_s10 = sld [smem:[#allocation17_spill]] }
  0x36   : > { %s505_s1 = scalar_lea.vmem [#allocation4], %s7203_s29  ;;  %s502_s28 = scalar_lea.sflag [#allocation5], %s8907_s23 }
  0x37   : > { %p8959_p3 = pnand %p10186_p13, %p541_p9  ;;  %s512_s14 = sshll.u32 %s505_s1, 4  ;;  %s8968_s14 = int_to_ptr.vmem [resolvable:$true] %s512_s14 }
  0x3b   : > { %s8966_s18 = scalar_lea.hbm %s10188_s10, %s7895_s24  ;;  %s8719_s4 = scalar_lea.hbm %s10188_s10, 98304 }
  0x3c   : > { %s8714_s19 = scalar_lea.hbm %s8966_s18, 32768  ;;  %p8720_p10 = scmp.lt.u32.totalorder %s8966_s18, %s10188_s10 }
  0x3d   : > { %p8715_p4 = scmp.ne.s32.totalorder %s8966_s18, %s8714_s19  ;;  %p8721_p12 = scmp.lt.u32.totalorder %s8719_s4, %s8714_s19 }
  0x3e   : > { %p8723_p1 = scmp.lt.u32.totalorder %s8714_s19, %s8966_s18 }
  0x3f   : > { %p8717_p5 = pnand %p8715_p4, %p8686_p11  ;;  %p8722_p0 = por %p8721_p12, %p8720_p10 }
  0x41   : > { %p8718_p6 = pneg %p8717_p5  ;;  %p8724_p2 = por %p8723_p1, %p8722_p0 }
  0x43   : > { %p8725_p9 = pnand %p8724_p2, %p8718_p6 }
  0x45   : > { %8728 = shalt.err (!%p8725_p9)
}
  0x46   : > { %s8729_s1 = scalar_lea.vmem %s8968_s14, 32768  ;;  %s8787_s29 = smov [#allocation4]  }
  0x47   : > { %p8730_p13 = scmp.ne.s32.totalorder %s8968_s14, %s8729_s1  ;;  %s8734_s16 = sshll.u32 %s8787_s29, 4  ;;  %s8735_s16 = int_to_ptr.vmem [resolvable:$false] %s8734_s16 }
  0x48   : > { %s8736_s21 = scalar_lea.vmem %s8735_s16, 65536  ;;  %p8737_p7 = scmp.lt.s32.totalorder %s8968_s14, %s8735_s16 }
  0x49   : > { %p8732_p4 = pnand %p8730_p13, %p8686_p11  ;;  %p8738_p10 = scmp.lt.s32.totalorder %s8736_s21, %s8729_s1 }
  0x4b   : > { %p8733_p5 = pneg %p8732_p4  ;;  %p8739_p12 = por %p8738_p10, %p8737_p7 }
  0x4d   : > { %p8740_p0 = pnand %p8739_p12, %p8733_p5 }
  0x4f   : > { %8743 = shalt.err (!%p8740_p0)
}
  0x50   : > { %8021 = dma.hbm_to_vmem [thread:$0]  (!%p8918_p8), %s8966_s18, 32768, %s8968_s14, %s502_s28, %s8785_s15, %s8785_s15, %s8786_s26  }
  0x51   : > { %545 = sbr.rel (%p8959_p3) target bundleno = 6519 (0x1977), region = 76 }
  0x58   : > { %s547_s19 = sand.u32 1, %s8774_s30   ;;  %p10190_p7 = scmp.ne.s32.totalorder %s10182_s22, 0 }
  0x59   : > { %s7207_s4 = sshll.u32 %s547_s19, 8  ;;  %s548_s24 = scalar_lea.sflag [#allocation3], %s547_s19 }
  0x5a   : > { %s9002_s27 = scalar_lea.vmem [#allocation2], %s7207_s4 }
  0x5b   : > { %10189 = sst [smem:[#allocation12_spill]] %s9002_s27 }
  0x5c   : > { %8761 = dma.done.wait (%p10190_p7), %s548_s24, 4096  }
  0x5d   : > { %8763 = vsyncadd (%p10190_p7), %s548_s24, 4294963200  ;;  %s7208_s23 = sshll.u32 %s547_s19, 11  ;;  %s557_s20 = scalar_lea.sflag [#allocation5], %s547_s19 }
  0x5e   : > { %s9008_s1 = scalar_lea.vmem [#allocation4], %s7208_s23 }
  0x5f   : > { %10191 = sst [smem:[#allocation13_spill]] %s9008_s1 }
  0x60   : > { %8765 = dma.done.wait (%p10190_p7), %s557_s20, 32768  }
  0x61   : > { %8767 = vsyncadd (%p10190_p7), %s557_s20, 4294934528  ;;  %p647_p8 = scmp.lt.s32.totalorder %s8885_s17, 2  ;;  %p7219_p11 = scmp.ne.s32.totalorder %s8885_s17, 0 }
  0x62   : > { %v693_v0 = vld [vmem:[%s10149_s0] sm:$0x3f] (!%p7219_p11)  ;;  %v694_v1 = vld [vmem:[%s10149_s0 + $0x8] sm:$0x3f] (!%p7219_p11)  ;;  %s10193_s4 = sld [smem:[#allocation18_spill]] (!%p7219_p11) }
  0x63   : > { %s648_s14 = scalar_select %p647_p8, %s8885_s17, 2 }
  0x64   : > { %692 = sbr.rel (%p7219_p11) target bundleno = 107 (0x6b), region = 88 }
  0x65   : > { %s8009_s18 = smul.u32 768, %s648_s14  ;;  %s9016_s15 = sshll.u32 %s648_s14, 1 }
  0x66   : > { %s8010_s26 = smul.u32 6, %s648_s14  ;;  %s7896_s25 = sshll.u32 %s648_s14, 11 }
  0x67   : > { %s9025_s21 = scalar_lea.vmem %s10151_s2, %s8009_s18  ;;  %s7215_s28 = sshll.u32 %s648_s14, 4 }
  0x68   : > { %s9034_s10 = scalar_lea.vmem %s10152_s3, %s8010_s26  ;;  %s9043_s18 = scalar_lea.vmem %s10157_s8, %s7896_s25  ;;  %695 = vst [vmem:[%s10193_s4] sm:$0x3f] (!%p7219_p11), %v693_v0  ;;  %696 = vst [vmem:[%s10193_s4 + $0x8] sm:$0x3f] (!%p7219_p11), %v694_v1 }
  0x69   : > { %s9048_s19 = scalar_lea.vmem %s10158_s9, %s7215_s28  ;;  %s680_s26 = scalar_lea.vmem %s10160_s11, %s9016_s15 }
  0x6a   : > { %s684_s30 = scalar_lea.vmem %s10161_s12, %s9016_s15  ;;  %s688_s27 = scalar_lea.vmem %s10162_s13, %s9016_s15 }
  0x6b PF: > { %v8070_v2 = vld [vmem:[%s9025_s21 + $0xc] ss:$24 sps:$4 sm:$0xff]   ;;  %v8072_v3 = vld [vmem:[%s9025_s21 + $0x8] ss:$24 sps:$4 sm:$0xff]   ;;  %v8076_v6 = vld [vmem:[%s9025_s21 + $0x3c] ss:$24 sps:$4 sm:$0xff]   ;;  %s10199_s29 = scalar_lea.vmem %s10155_s6, %s9016_s15 }
  0x6c   : > { %1352 = vmatprep.subr.bf16.mxu1 %v8070_v2  ;;  %v8073_v4 = vld [vmem:[%s9025_s21 + $0x4] ss:$24 sps:$4 sm:$0xff]   ;;  %v8075_v5 = vld [vmem:[%s9025_s21] ss:$24 sps:$4 sm:$0xff]   ;;  %v8079_v8 = vld [vmem:[%s9025_s21 + $0x34] ss:$24 sps:$4 sm:$0xff]  }
  0x6d   : > { %1353 = vmatpush1.bf16.msra.mxu1 %v8072_v3  ;;  %v8078_v7 = vld [vmem:[%s9025_s21 + $0x38] ss:$24 sps:$4 sm:$0xff]   ;;  %1311 = vmatprep.subr.bf16.mxu0 %v8073_v4  ;;  %v8082_v10 = vld [vmem:[%s9025_s21 + $0x6c] ss:$24 sps:$4 sm:$0xff]   ;;  %v8084_v11 = vld [vmem:[%s9025_s21 + $0x68] ss:$24 sps:$4 sm:$0xff]  }
  0x6e   : > { %1312 = vmatpush1.bf16.msra.mxu0 %v8075_v5  ;;  %1354 = vmatprep.subr.bf16.mxu1 %v8076_v6  ;;  %v8081_v9 = vld [vmem:[%s9025_s21 + $0x30] ss:$24 sps:$4 sm:$0xff]   ;;  %v8085_v12 = vld [vmem:[%s9025_s21 + $0x64] ss:$24 sps:$4 sm:$0xff]   ;;  %v8087_v14 = vld [vmem:[%s9025_s21 + $0x60] ss:$24 sps:$4 sm:$0xff]  }
  0x6f   : > { %1313 = vmatprep.subr.bf16.mxu0 %v8079_v8  ;;  %v8088_v13 = vld [vmem:[%s9025_s21 + $0x9c] ss:$24 sps:$4 sm:$0xff]   ;;  %v8090_v16 = vld [vmem:[%s9025_s21 + $0x98] ss:$24 sps:$4 sm:$0xff]   ;;  %v8094_v17 = vld [vmem:[%s9025_s21 + $0xcc] ss:$24 sps:$4 sm:$0xff]  }
  0x70   : > { %v8091_v15 = vld [vmem:[%s9025_s21 + $0x94] ss:$24 sps:$4 sm:$0xff]   ;;  %v8093_v18 = vld [vmem:[%s9025_s21 + $0x90] ss:$24 sps:$4 sm:$0xff]   ;;  %v8097_v19 = vld [vmem:[%s9025_s21 + $0xc4] ss:$24 sps:$4 sm:$0xff]  }
  0x71   : > { %1355 = vmatpush1.bf16.msra.mxu1 %v8078_v7  ;;  %v8096_v20 = vld [vmem:[%s9025_s21 + $0xc8] ss:$24 sps:$4 sm:$0xff]   ;;  %v8100_v21 = vld [vmem:[%s9025_s21 + $0xfc] ss:$24 sps:$4 sm:$0xff]   ;;  %v8102_v24 = vld [vmem:[%s9025_s21 + $0xf8] ss:$24 sps:$4 sm:$0xff]   ;;  %v801_v7 = vlaneseq }
  0x72   : > { %1356 = vmatprep.subr.bf16.mxu1 %v8082_v10  ;;  %1314 = vmatpush1.bf16.msra.mxu0 %v8081_v9  ;;  %v8099_v22 = vld [vmem:[%s9025_s21 + $0xc0] ss:$24 sps:$4 sm:$0xff]   ;;  %v8103_v23 = vld [vmem:[%s9025_s21 + $0xf4] ss:$24 sps:$4 sm:$0xff]   ;;  %v8105_v26 = vld [vmem:[%s9025_s21 + $0xf0] ss:$24 sps:$4 sm:$0xff]  }
  0x73   : > { %1315 = vmatprep.subr.bf16.mxu0 %v8085_v12  ;;  %v8106_v25 = vld [vmem:[%s9025_s21 + $0x12c] ss:$24 sps:$4 sm:$0xff]   ;;  %v8108_v28 = vld [vmem:[%s9025_s21 + $0x128] ss:$24 sps:$4 sm:$0xff]   ;;  %v8112_v29 = vld [vmem:[%s9025_s21 + $0x15c] ss:$24 sps:$4 sm:$0xff]  }
  0x74   : > { %v8109_v27 = vld [vmem:[%s9025_s21 + $0x124] ss:$24 sps:$4 sm:$0xff]   ;;  %v8111_v30 = vld [vmem:[%s9025_s21 + $0x120] ss:$24 sps:$4 sm:$0xff]   ;;  %v8115_v31 = vld [vmem:[%s9025_s21 + $0x154] ss:$24 sps:$4 sm:$0xff]  }
  0x75   : > { %1357 = vmatpush1.bf16.msra.mxu1 %v8084_v11  ;;  %v8114_v32 = vld [vmem:[%s9025_s21 + $0x158] ss:$24 sps:$4 sm:$0xff]   ;;  %v8118_v33 = vld [vmem:[%s9025_s21 + $0x18c] ss:$24 sps:$4 sm:$0xff]   ;;  %v8120_v36 = vld [vmem:[%s9025_s21 + $0x188] ss:$24 sps:$4 sm:$0xff]  }
  0x76   : > { %1358 = vmatprep.subr.bf16.mxu1 %v8088_v13  ;;  %1316 = vmatpush1.bf16.msra.mxu0 %v8087_v14  ;;  %v8117_v34 = vld [vmem:[%s9025_s21 + $0x150] ss:$24 sps:$4 sm:$0xff]   ;;  %v8121_v35 = vld [vmem:[%s9025_s21 + $0x184] ss:$24 sps:$4 sm:$0xff]   ;;  %v8123_v38 = vld [vmem:[%s9025_s21 + $0x180] ss:$24 sps:$4 sm:$0xff]  }
  0x77   : > { %1317 = vmatprep.subr.bf16.mxu0 %v8091_v15  ;;  %v8124_v37 = vld [vmem:[%s9025_s21 + $0x1bc] ss:$24 sps:$4 sm:$0xff]   ;;  %v8126_v40 = vld [vmem:[%s9025_s21 + $0x1b8] ss:$24 sps:$4 sm:$0xff]   ;;  %v8130_v41 = vld [vmem:[%s9025_s21 + $0x1ec] ss:$24 sps:$4 sm:$0xff]  }
  0x78   : > { %v8127_v39 = vld [vmem:[%s9025_s21 + $0x1b4] ss:$24 sps:$4 sm:$0xff]   ;;  %v8129_v42 = vld [vmem:[%s9025_s21 + $0x1b0] ss:$24 sps:$4 sm:$0xff]   ;;  %v8133_v43 = vld [vmem:[%s9025_s21 + $0x1e4] ss:$24 sps:$4 sm:$0xff]  }
  0x79   : > { %1359 = vmatpush1.bf16.msra.mxu1 %v8090_v16  ;;  %v8132_v44 = vld [vmem:[%s9025_s21 + $0x1e8] ss:$24 sps:$4 sm:$0xff]   ;;  %v8136_v45 = vld [vmem:[%s9025_s21 + $0x21c] ss:$24 sps:$4 sm:$0xff]   ;;  %v8138_v47 = vld [vmem:[%s9025_s21 + $0x218] ss:$24 sps:$4 sm:$0xff]  }
  0x7a   : > { %1360 = vmatprep.subr.bf16.mxu1 %v8094_v17  ;;  %1318 = vmatpush1.bf16.msra.mxu0 %v8093_v18  ;;  %v8135_v46 = vld [vmem:[%s9025_s21 + $0x1e0] ss:$24 sps:$4 sm:$0xff]   ;;  %v8139_v48 = vld [vmem:[%s9025_s21 + $0x214] ss:$24 sps:$4 sm:$0xff]   ;;  %s10194_s1 = sld [smem:[#allocation18_spill]]  ;;  %v8788_v6 = vmov 0.0  }
  0x7b   : > { %1319 = vmatprep.subr.bf16.mxu0 %v8097_v19  ;;  %v8141_v50 = vld [vmem:[%s9025_s21 + $0x210] ss:$24 sps:$4 sm:$0xff]   ;;  %v8142_v51 = vld [vmem:[%s9025_s21 + $0x24c] ss:$24 sps:$4 sm:$0xff]   ;;  %v8148_v55 = vld [vmem:[%s9025_s21 + $0x27c] ss:$24 sps:$4 sm:$0xff]  }
  0x7c   : > { %v8145_v53 = vld [vmem:[%s9025_s21 + $0x244] ss:$24 sps:$4 sm:$0xff]   ;;  %v8144_v54 = vld [vmem:[%s9025_s21 + $0x248] ss:$24 sps:$4 sm:$0xff]   ;;  %v8151_v57 = vld [vmem:[%s9025_s21 + $0x274] ss:$24 sps:$4 sm:$0xff]  }
  0x7d   : > { %1361 = vmatpush1.bf16.msra.mxu1 %v8096_v20  ;;  %v8147_v56 = vld [vmem:[%s9025_s21 + $0x240] ss:$24 sps:$4 sm:$0xff]   ;;  %v8154_v59 = vld [vmem:[%s9025_s21 + $0x2ac] ss:$24 sps:$4 sm:$0xff]   ;;  %v8153_v60 = vld [vmem:[%s9025_s21 + $0x270] ss:$24 sps:$4 sm:$0xff]  }
  0x7e   : > { %1362 = vmatprep.subr.bf16.mxu1 %v8100_v21  ;;  %1320 = vmatpush1.bf16.msra.mxu0 %v8099_v22  ;;  %v8150_v58 = vld [vmem:[%s9025_s21 + $0x278] ss:$24 sps:$4 sm:$0xff]   ;;  %v8157_v61 = vld [vmem:[%s9025_s21 + $0x2a4] ss:$24 sps:$4 sm:$0xff]   ;;  %v8156_v62 = vld [vmem:[%s9025_s21 + $0x2a8] ss:$24 sps:$4 sm:$0xff]  }
  0x7f   : > { %1321 = vmatprep.subr.bf16.mxu0 %v8103_v23  ;;  %v8160_v63 = vld [vmem:[%s9025_s21 + $0x2dc] ss:$24 sps:$4 sm:$0xff]   ;;  %v8159_v0 = vld [vmem:[%s9025_s21 + $0x2a0] ss:$24 sps:$4 sm:$0xff]   ;;  %v8165_v4 = vld [vmem:[%s9025_s21 + $0x2d0] ss:$24 sps:$4 sm:$0xff]  }
  0x80   : > { %v698_v49 = vld [vmem:[%s10194_s1 + $0x8] sm:$0x3f]  ;;  %v8162_v2 = vld [vmem:[%s9025_s21 + $0x2d8] ss:$24 sps:$4 sm:$0xff]   ;;  %v697_v3 = vld [vmem:[%s10194_s1] sm:$0x3f] }
  0x81   : > { %1363 = vmatpush1.bf16.msra.mxu1 %v8102_v24  ;;  %v702_v52 = vpack.c.bf16 %v698_v49, %v698_v49  ;;  %v8163_v1 = vld [vmem:[%s9025_s21 + $0x2d4] ss:$24 sps:$4 sm:$0xff]   ;;  %v9145_v5 = vpack.c.bf16 %v697_v3, %v697_v3  ;;  %vm8789_vm0 = vmmov 0   ;;  %v9152_v8 = vshrl.u32 %v801_v7, 7  ;;  %v9158_v10 = vld [vmem:[%s9034_s10] sm:$0x3f] }
  0x82   : > { %1364 = vmatprep.subr.bf16.mxu1 %v8106_v25  ;;  %1322 = vmatpush1.bf16.msra.mxu0 %v8105_v26  ;;  %vm1434_vm1 = vcmask 523264   ;;  %s8790_s10 = smov 64   ;;  %v8166_v24 = vld [vmem:[%s9025_s21 + $0x10] ss:$24 sps:$4 sm:$0xff]   ;;  %v8168_v25 = vld [vmem:[%s9025_s21 + $0x14] ss:$24 sps:$4 sm:$0xff]  }
  0x83   : > { %1323 = vmatprep.subr.bf16.mxu0 %v8109_v27  ;;  %1384 = vmatprep.mubr.bf16.mxu1 %v702_v52  ;;  %v9155_v9 = vsub.s32 2, %v9152_v8  ;;  %v9161_v11 = vsub.s32 0, %v9152_v8  ;;  %v8171_v26 = vld [vmem:[%s9025_s21 + $0x44] ss:$24 sps:$4 sm:$0xff]   ;;  %v8169_v27 = vld [vmem:[%s9025_s21 + $0x40] ss:$24 sps:$4 sm:$0xff]  }
  0x84   : > { %1343 = vmatprep.mubr.bf16.mxu0 %v702_v52  ;;  %v8202_v49 = vld [vmem:[%s9025_s21 + $0x250] ss:$24 sps:$4 sm:$0xff]   ;;  %s10195_s28 = sld [smem:[#allocation14_spill]]  ;;  %vm1517_vm2 = vcmask 18432   ;;  %vm1533_vm3 = vcmask 1042432   ;;  %vm1529_vm4 = vcmask 23552  }
  0x85   : > { %1365 = vmatpush1.bf16.msra.mxu1 %v8108_v28  ;;  %v812_v12 = vrot.slane %v9158_v10, %v9155_v9  ;;  %v804_v13 = vrot.slane %v9158_v10, %v9161_v11  ;;  %v8174_v28 = vld [vmem:[%s9025_s21 + $0x74] ss:$24 sps:$4 sm:$0xff]   ;;  %s10197_s4 = sld [smem:[#allocation16_spill]]  ;;  %vm3057_vm5 = vcmask 1045504  }
  0x86   : > { %1366 = vmatprep.subr.bf16.mxu1 %v8112_v29  ;;  %1324 = vmatpush1.bf16.msra.mxu0 %v8111_v30  ;;  %v8172_v29 = vld [vmem:[%s9025_s21 + $0x70] ss:$24 sps:$4 sm:$0xff]   ;;  %v8177_v30 = vld [vmem:[%s9025_s21 + $0xa4] ss:$24 sps:$4 sm:$0xff]   ;;  %s10201_s22 = sld [smem:[#allocation13_spill]] }
  0x87   : > { %1325 = vmatprep.subr.bf16.mxu0 %v8115_v31  ;;  %v8175_v31 = vld [vmem:[%s9025_s21 + $0xa0] ss:$24 sps:$4 sm:$0xff]  }
  0x89   : > { %1367 = vmatpush1.bf16.msra.mxu1 %v8114_v32  ;;  %v8180_v32 = vld [vmem:[%s9025_s21 + $0xd4] ss:$24 sps:$4 sm:$0xff]  }
  0x8a   : > { %1368 = vmatprep.subr.bf16.mxu1 %v8118_v33  ;;  %1326 = vmatpush1.bf16.msra.mxu0 %v8117_v34  ;;  %v8178_v33 = vld [vmem:[%s9025_s21 + $0xd0] ss:$24 sps:$4 sm:$0xff]   ;;  %v8183_v34 = vld [vmem:[%s9025_s21 + $0x104] ss:$24 sps:$4 sm:$0xff]  }
  0x8b   : > { %1327 = vmatprep.subr.bf16.mxu0 %v8121_v35  ;;  %v8181_v35 = vld [vmem:[%s9025_s21 + $0x100] ss:$24 sps:$4 sm:$0xff]   ;;  %s10198_s24 = scalar_lea.vmem %s10197_s4, %s9016_s15 }
  0x8d   : > { %1369 = vmatpush1.bf16.msra.mxu1 %v8120_v36  ;;  %v8186_v36 = vld [vmem:[%s9025_s21 + $0x134] ss:$24 sps:$4 sm:$0xff]  }
  0x8e   : > { %1370 = vmatprep.subr.bf16.mxu1 %v8124_v37  ;;  %1328 = vmatpush1.bf16.msra.mxu0 %v8123_v38  ;;  %v8184_v37 = vld [vmem:[%s9025_s21 + $0x130] ss:$24 sps:$4 sm:$0xff]   ;;  %v8189_v38 = vld [vmem:[%s9025_s21 + $0x164] ss:$24 sps:$4 sm:$0xff]  }
  0x8f   : > { %1329 = vmatprep.subr.bf16.mxu0 %v8127_v39  ;;  %v8187_v39 = vld [vmem:[%s9025_s21 + $0x160] ss:$24 sps:$4 sm:$0xff]  }
  0x91   : > { %1371 = vmatpush1.bf16.msra.mxu1 %v8126_v40  ;;  %v8192_v40 = vld [vmem:[%s9025_s21 + $0x194] ss:$24 sps:$4 sm:$0xff]  }
  0x92   : > { %1372 = vmatprep.subr.bf16.mxu1 %v8130_v41  ;;  %1330 = vmatpush1.bf16.msra.mxu0 %v8129_v42  ;;  %v8190_v41 = vld [vmem:[%s9025_s21 + $0x190] ss:$24 sps:$4 sm:$0xff]   ;;  %v8195_v42 = vld [vmem:[%s9025_s21 + $0x1c4] ss:$24 sps:$4 sm:$0xff]  }
  0x93   : > { %1331 = vmatprep.subr.bf16.mxu0 %v8133_v43  ;;  %v8193_v43 = vld [vmem:[%s9025_s21 + $0x1c0] ss:$24 sps:$4 sm:$0xff]  }
  0x95   : > { %1373 = vmatpush1.bf16.msra.mxu1 %v8132_v44  ;;  %v8198_v44 = vld [vmem:[%s9025_s21 + $0x1f4] ss:$24 sps:$4 sm:$0xff]  }
  0x96   : > { %1374 = vmatprep.subr.bf16.mxu1 %v8136_v45  ;;  %1332 = vmatpush1.bf16.msra.mxu0 %v8135_v46  ;;  %v8196_v45 = vld [vmem:[%s9025_s21 + $0x1f0] ss:$24 sps:$4 sm:$0xff]   ;;  %v8201_v46 = vld [vmem:[%s9025_s21 + $0x224] ss:$24 sps:$4 sm:$0xff]  }
  0x97   : > { %1333 = vmatprep.subr.bf16.mxu0 %v8139_v48  ;;  %v8204_v48 = vld [vmem:[%s9025_s21 + $0x254] ss:$24 sps:$4 sm:$0xff]  }
  0x99   : > { %1375 = vmatpush1.bf16.msra.mxu1 %v8138_v47  ;;  %v8199_v47 = vld [vmem:[%s9025_s21 + $0x220] ss:$24 sps:$4 sm:$0xff]  }
  0x9a   : > { %1376 = vmatprep.subr.bf16.mxu1 %v8142_v51  ;;  %1334 = vmatpush1.bf16.msra.mxu0 %v8141_v50  ;;  %v8207_v50 = vld [vmem:[%s9025_s21 + $0x284] ss:$24 sps:$4 sm:$0xff]   ;;  %v8205_v51 = vld [vmem:[%s9025_s21 + $0x280] ss:$24 sps:$4 sm:$0xff]  }
  0x9b   : > { %1335 = vmatprep.subr.bf16.mxu0 %v8145_v53  ;;  %v8208_v53 = vld [vmem:[%s9025_s21 + $0x2b0] ss:$24 sps:$4 sm:$0xff]  }
  0x9d   : > { %1377 = vmatpush1.bf16.msra.mxu1 %v8144_v54  ;;  %v8213_v54 = vld [vmem:[%s9025_s21 + $0x2e4] ss:$24 sps:$4 sm:$0xff]  }
  0x9e   : > { %1378 = vmatprep.subr.bf16.mxu1 %v8148_v55  ;;  %1336 = vmatpush1.bf16.msra.mxu0 %v8147_v56  ;;  %v8211_v55 = vld [vmem:[%s9025_s21 + $0x2e0] ss:$24 sps:$4 sm:$0xff]  }
  0x9f   : > { %1337 = vmatprep.subr.bf16.mxu0 %v8151_v57  ;;  %v699_v56 = vld [vmem:[%s10195_s28] sm:$0x3] }
  0xa0   : > { %v9222_v57 = vmul.f32 -1e+30, %v699_v56 }
  0xa1   : > { %1379 = vmatpush1.bf16.msra.mxu1 %v8150_v58 }
  0xa2   : > { %1380 = vmatprep.subr.bf16.mxu1 %v8154_v59  ;;  %1338 = vmatpush1.bf16.msra.mxu0 %v8153_v60  ;;  %v9226_v58 = vrot.slane %v9222_v57, %v9161_v11 }
  0xa3   : > { %1339 = vmatprep.subr.bf16.mxu0 %v8157_v61 }
  0xa5   : > { %1381 = vmatpush1.bf16.msra.mxu1 %v8156_v62 }
  0xa6   : > { %1382 = vmatprep.subr.bf16.mxu1 %v8160_v63  ;;  %1340 = vmatpush1.bf16.msra.mxu0 %v8159_v0 }
  0xa7   : > { %1341 = vmatprep.subr.bf16.mxu0 %v8163_v1 }
  0xa9   : > { %1383 = vmatpush1.bf16.msra.mxu1 %v8162_v2 }
  0xaa   : > { %1342 = vmatpush1.bf16.msra.mxu0 %v8165_v4  ;;  %7929 = vmatprep.subr.mxu1 %v8788_v6 }
  0xab   : > { %1393 = vmatprep.subr.bf16.mxu0 %v8168_v25 }
  0xac   : > { %1385 = vmatmul.mubr.bf16.vlgmr.msra.gmra.mrb[0].mxu1 %v9145_v5 }
  0xad   : > { %1344 = vmatmul.mubr.bf16.vlgmr.msra.gmra.mrb[0].mxu0 %v9145_v5  ;;  %7931 = vmatprep.mubr.msk.f32.mxu1 %vm8789_vm0, %v8788_v6 }
  0xae   : > { %1425 = vmatprep.mubr.bf16.mxu0 %v702_v52  ;;  %1394 = vmatpush1.bf16.msra.mxu0 %v8166_v24  ;;  %v8210_v52 = vld [vmem:[%s9025_s21 + $0x2b4] ss:$24 sps:$4 sm:$0xff]   ;;  %s10196_s21 = sld [smem:[#allocation12_spill]] }
  0xaf   : > { %1395 = vmatprep.subr.bf16.mxu0 %v8171_v26 }
  0xb2   : > { %1396 = vmatpush1.bf16.msra.mxu0 %v8169_v27 }
  0xb3   : > { %1397 = vmatprep.subr.bf16.mxu0 %v8174_v28 }
  0xb6   : > { %1398 = vmatpush1.bf16.msra.mxu0 %v8172_v29 }
  0xb7   : > { %1399 = vmatprep.subr.bf16.mxu0 %v8177_v30 }
  0xba   : > { %1400 = vmatpush1.bf16.msra.mxu0 %v8175_v31 }
  0xbb   : > { %1401 = vmatprep.subr.bf16.mxu0 %v8180_v32 }
  0xbe   : > { %1402 = vmatpush1.bf16.msra.mxu0 %v8178_v33 }
  0xbf   : > { %1403 = vmatprep.subr.bf16.mxu0 %v8183_v34 }
  0xc2   : > { %1404 = vmatpush1.bf16.msra.mxu0 %v8181_v35 }
  0xc3   : > { %1405 = vmatprep.subr.bf16.mxu0 %v8186_v36 }
  0xc6   : > { %1406 = vmatpush1.bf16.msra.mxu0 %v8184_v37 }
  0xc7   : > { %1407 = vmatprep.subr.bf16.mxu0 %v8189_v38 }
  0xca   : > { %1408 = vmatpush1.bf16.msra.mxu0 %v8187_v39 }
  0xcb   : > { %1409 = vmatprep.subr.bf16.mxu0 %v8192_v40  ;;  %v9259_v40 = vsub.s32 3, %v9152_v8 }
  0xce   : > { %1410 = vmatpush1.bf16.msra.mxu0 %v8190_v41  ;;  %v9262_v41 = vsub.s32 1, %v9152_v8 }
  0xcf   : > { %1411 = vmatprep.subr.bf16.mxu0 %v8195_v42  ;;  %v816_v42 = vrot.slane %v9158_v10, %v9259_v40 }
  0xd2   : > { %1412 = vmatpush1.bf16.msra.mxu0 %v8193_v43  ;;  %v9267_v43 = vsub.s32 5, %v9152_v8 }
  0xd3   : > { %1413 = vmatprep.subr.bf16.mxu0 %v8198_v44 }
  0xd6   : > { %1414 = vmatpush1.bf16.msra.mxu0 %v8196_v45  ;;  %v808_v45 = vrot.slane %v9158_v10, %v9262_v41 }
  0xd7   : > { %1415 = vmatprep.subr.bf16.mxu0 %v8201_v46 }
  0xda   : > { %1416 = vmatpush1.bf16.msra.mxu0 %v8199_v47 }
  0xdb   : > { %1417 = vmatprep.subr.bf16.mxu0 %v8204_v48  ;;  %v824_v48 = vrot.slane %v9158_v10, %v9267_v43 }
  0xde   : > { %1418 = vmatpush1.bf16.msra.mxu0 %v8202_v49 }
  0xdf   : > { %1419 = vmatprep.subr.bf16.mxu0 %v8207_v50 }
  0xe2   : > { %1420 = vmatpush1.bf16.msra.mxu0 %v8205_v51 }
  0xe3   : > { %1421 = vmatprep.subr.bf16.mxu0 %v8210_v52 }
  0xe6   : > { %1422 = vmatpush1.bf16.msra.mxu0 %v8208_v53 }
  0xe7   : > { %1423 = vmatprep.subr.bf16.mxu0 %v8213_v54 }
  0xea   : > { %1424 = vmatpush1.bf16.msra.mxu0 %v8211_v55 }
  0xed   : > { %1426 = vmatmul.mubr.bf16.vlgmr.msra.gmra.mrb[4].mxu0 %v9145_v5  ;;  %v9232_v5 = vsub.s32 4, %v9152_v8 }
 0x17f   : > { %v1386_v14 = vpop.f32.mrb[0].mxu1 }
 0x180   : > { %v9167_v15 = vadd.f32 %v1386_v14, %v812_v12  ;;  %v9169_v16 = vpop.f32.mrb[1].mxu1  ;;  %v1345_v18 = vpop.f32.mrb[0].mxu0  ;;  %v820_v12 = vrot.slane %v9158_v10, %v9232_v5 }
 0x181   : > { %v1390_v17 = vpop.f32.mrb[2].mxu1  ;;  %v9173_v20 = vadd.f32 %v1345_v18, %v804_v13  ;;  %v9177_v21 = vpop.f32.mrb[1].mxu0  ;;  %v9272_v47 = vadd.f32 %v9169_v16, %v816_v42 }
 0x182   : > { %v1391_v19 = vpop.f32.mrb[3].mxu1  ;;  %1609 = vrot.lane.b32.xlu1 %v9167_v15, %s8790_s10  ;;  %7930 = vmatpush3.xpose.msk.msra.mxu1 %vm1434_vm1, %v9167_v15  ;;  %v1349_v22 = vpop.f32.mrb[2].mxu0  ;;  %v9282_v49 = vadd.f32 %v9177_v21, %v808_v45 }
 0x183   : > { %7934 = vmatprep.subr.mxu1 %v8788_v6  ;;  %v1350_v23 = vpop.f32.mrb[3].mxu0 }
 0x185   : > { %7932 = vmatmul.mubr.msk.f32.vlgmr.msra.gmra.mrb[4].mxu1 %vm1434_vm1, %v9173_v20 }
 0x186   : > { %1607 = vrot.lane.b32.xlu1 %v9173_v20, %s8790_s10  ;;  %7936 = vmatprep.mubr.msk.f32.mxu1 %vm8789_vm0, %v8788_v6 }
 0x1c0   : > { %v1427_v7 = vpop.f32.mrb[4].mxu0 }
 0x1c1   : > { %v1429_v13 = vpop.f32.mrb[5].mxu0  ;;  %v9236_v17 = vadd.f32 %v1427_v7, %v820_v12 }
 0x1c2   : > { %v1431_v14 = vpop.f32.mrb[6].mxu0  ;;  %v9285_v50 = vadd.f32 %v1429_v13, %v824_v48 }
 0x1c3   : > { %v1432_v18 = vpop.f32.mrb[7].mxu0  ;;  %7935 = vmatpush3.msk.msra.mxu1 %vm1533_vm3, %v9236_v17 }
 0x1c4   : > { %7939 = vmatprep.subr.mxu1 %v8788_v6 }
 0x1f4   : > { %v1610_v23 = vpop.permute.xlu1 %1609 }
 0x1f8   : > { %v1608_v25 = vpop.permute.xlu1 %1607 }
 0x258   : > { %v1507_v59 = vpop.f32.mrb[4].mxu1 }
 0x259   : > { %v1511_v60 = vmul.f32 0.125, %v1507_v59  ;;  %v7933_v61 = vpop.f32.mrb[5].mxu1 }
 0x25b   : > { %v1516_v62 = vadd.f32 %v9226_v58, %v1511_v60 }
 0x25d   : > { %v1518_v63 = vsel %vm1517_vm2, %v1516_v62, -inf }
 0x25e   : > { %1519 = vmax.xlane.f32.xlu0 %v1518_v63 }
 0x2eb   : > { %v1520_v0 = vpop.xlane.xlu0 %1519 }
 0x2ec   : > { %v1521_v1 = vsub.f32 %v1516_v62, %v1520_v0 }
 0x2ee   : > { %v1522_v2 = vmul.f32 1.442695, %v1521_v1 }
 0x2f0   : > { %8646 = vpow2.f32 %v1522_v2 }
 0x2fa   : > { %v8647_v3 = vpop.eup %8646 }
 0x2fb   : > { %v1524_v4 = vsel %vm1517_vm2, %v8647_v3, 0.0 }
 0x2fc   : > { %1525 = vadd.xlane.f32.xlu0 %v1524_v4 }
 0x389   : > { %v1526_v19 = vpop.xlane.xlu0 %1525 }
 0x38a   : > { %8648 = vrcp.f32 %v1526_v19 }
 0x394   : > { %v8649_v22 = vpop.eup %8648 }
 0x395   : > { %v1528_v24 = vmul.f32 %v8649_v22, %v8647_v3 }
 0x397   : > { %7937 = vmatmul.mubr.msk.f32.vlgmr.msra.gmra.mrb[6].mxu1 %vm1529_vm4, %v1528_v24 }
 0x398   : > { %7940 = vmatpush3.xpose.msk.msra.mxu1 %vm1434_vm1, %v1610_v23  ;;  %7941 = vmatprep.mubr.msk.f32.mxu1 %vm8789_vm0, %v8788_v6 }
 0x399   : > { %7944 = vmatprep.subr.mxu1 %v8788_v6 }
 0x39b   : > { %7942 = vmatmul.mubr.msk.f32.vlgmr.msra.gmra.mrb[8].mxu1 %vm1434_vm1, %v1608_v25 }
 0x39c   : > { %7946 = vmatprep.mubr.msk.f32.mxu1 %vm8789_vm0, %v8788_v6 }
 0x46a   : > { %v9249_v26 = vpop.f32.mrb[6].mxu1 }
 0x46b   : > { %v7938_v27 = vpop.f32.mrb[7].mxu1 }
 0x46e   : > { %v1681_v28 = vpop.f32.mrb[8].mxu1 }
 0x46f   : > { %v1685_v29 = vmul.f32 0.125, %v1681_v28  ;;  %v7943_v30 = vpop.f32.mrb[9].mxu1 }
 0x470   : > { %v2119_v30 = vrot.slane %v9167_v15, 3 }
 0x471   : > { %v1686_v31 = vadd.f32 %v1685_v29, %v9226_v58 }
 0x473   : > { %v1687_v32 = vsel %vm1517_vm2, %v1686_v31, -inf }
 0x474   : > { %1688 = vmax.xlane.f32.xlu0 %v1687_v32  ;;  %v2211_v32 = vrot.slane %v9236_v17, 3 }
 0x48a   : > { %1698 = vrot.lane.b32.xlu0 %v9236_v17, %s8790_s10 }
 0x501   : > { %v1689_v33 = vpop.xlane.xlu0 %1688 }
 0x502   : > { %v1690_v34 = vsub.f32 %v1686_v31, %v1689_v33  ;;  %v2118_v31 = vrot.slane %v9173_v20, 3  ;;  %v9339_v20 = vrot.slane %v9222_v57, %v9262_v41 }
 0x504   : > { %v1691_v35 = vmul.f32 1.442695, %v1690_v34 }
 0x505   : > { %v1699_v36 = vpop.permute.xlu0 %1698 }
 0x506   : > { %8650 = vpow2.f32 %v1691_v35  ;;  %7945 = vmatpush3.msk.msra.mxu1 %vm1533_vm3, %v1699_v36 }
 0x507   : > { %7949 = vmatprep.subr.mxu1 %v8788_v6 }
 0x510   : > { %v8651_v37 = vpop.eup %8650 }
 0x511   : > { %v1693_v38 = vsel %vm1517_vm2, %v8651_v37, 0.0 }
 0x512   : > { %1694 = vadd.xlane.f32.xlu1 %v1693_v38 }
 0x59f   : > { %v1695_v39 = vpop.xlane.xlu1 %1694 }
 0x5a0   : > { %8652 = vrcp.f32 %v1695_v39 }
 0x5aa   : > { %v8653_v44 = vpop.eup %8652 }
 0x5ab   : > { %v1697_v46 = vmul.f32 %v8653_v44, %v8651_v37 }
 0x5ad   : > { %7947 = vmatmul.mubr.msk.f32.vlgmr.msra.gmra.mrb[10].mxu1 %vm1529_vm4, %v1697_v46 }
 0x5ae   : > { %7950 = vmatpush3.xpose.msk.msra.mxu1 %vm1434_vm1, %v9272_v47  ;;  %7951 = vmatprep.mubr.msk.f32.mxu1 %vm8789_vm0, %v8788_v6 }
 0x5af   : > { %7954 = vmatprep.subr.mxu1 %v8788_v6 }
 0x5b1   : > { %7952 = vmatmul.mubr.msk.f32.vlgmr.msra.gmra.mrb[12].mxu1 %vm1434_vm1, %v9282_v49 }
 0x5b2   : > { %7955 = vmatpush3.msk.msra.mxu1 %vm1533_vm3, %v9285_v50  ;;  %7956 = vmatprep.mubr.msk.f32.mxu1 %vm8789_vm0, %v8788_v6 }
 0x5b3   : > { %7959 = vmatprep.subr.mxu1 %v8788_v6 }
 0x680   : > { %v9294_v10 = vpop.f32.mrb[10].mxu1 }
 0x681   : > { %v7948_v16 = vpop.f32.mrb[11].mxu1 }
 0x684   : > { %v1847_v21 = vpop.f32.mrb[12].mxu1 }
 0x685   : > { %v1851_v51 = vmul.f32 0.125, %v1847_v21  ;;  %v7953_v52 = vpop.f32.mrb[13].mxu1 }
 0x687   : > { %v1852_v53 = vadd.f32 %v1851_v51, %v9226_v58 }
 0x689   : > { %v1853_v54 = vsel %vm1517_vm2, %v1852_v53, -inf }
 0x68a   : > { %1854 = vmax.xlane.f32.xlu0 %v1853_v54 }
 0x6a0   : > { %1940 = vrot.lane.b32.xlu0 %v9282_v49, %s8790_s10 }
 0x717   : > { %v1855_v55 = vpop.xlane.xlu0 %1854 }
 0x718   : > { %v1856_v56 = vsub.f32 %v1852_v53, %v1855_v55 }
 0x71a   : > { %v1857_v59 = vmul.f32 1.442695, %v1856_v56 }
 0x71b   : > { %v1941_v2 = vpop.permute.xlu0 %1940 }
 0x71c   : > { %8654 = vpow2.f32 %v1857_v59 }
 0x726   : > { %v8655_v60 = vpop.eup %8654 }
 0x727   : > { %v1859_v61 = vsel %vm1517_vm2, %v8655_v60, 0.0 }
 0x728   : > { %1860 = vadd.xlane.f32.xlu1 %v1859_v61  ;;  %v2456_v61 = vrot.slane %v9272_v47, 3 }
 0x739   : > { %1942 = vrot.lane.b32.xlu1 %v9272_v47, %s8790_s10 }
 0x7b5   : > { %v1861_v62 = vpop.xlane.xlu1 %1860 }
 0x7b6   : > { %8656 = vrcp.f32 %v1861_v62 }
 0x7b9   : > { %v1943_v1 = vpop.permute.xlu1 %1942 }
 0x7c0   : > { %v8657_v63 = vpop.eup %8656 }
 0x7c1   : > { %v1863_v0 = vmul.f32 %v8657_v63, %v8655_v60 }
 0x7c3   : > { %7957 = vmatmul.mubr.msk.f32.vlgmr.msra.gmra.mrb[14].mxu1 %vm1529_vm4, %v1863_v0 }
 0x7c4   : > { %7960 = vmatpush3.xpose.msk.msra.mxu1 %vm1434_vm1, %v1943_v1  ;;  %7961 = vmatprep.mubr.msk.f32.mxu1 %vm8789_vm0, %v8788_v6 }
 0x7c5   : > { %7964 = vmatprep.subr.mxu1 %v8788_v6 }
 0x7c7   : > { %7962 = vmatmul.mubr.msk.f32.vlgmr.msra.gmra.mrb[16].mxu1 %vm1434_vm1, %v1941_v2 }
 0x7c8   : > { %7966 = vmatprep.mubr.msk.f32.mxu1 %vm8789_vm0, %v8788_v6 }
 0x896   : > { %v9311_v3 = vpop.f32.mrb[14].mxu1 }
 0x897   : > { %v7958_v4 = vpop.f32.mrb[15].mxu1 }
 0x89a   : > { %v2014_v7 = vpop.f32.mrb[16].mxu1 }
 0x89b   : > { %v2018_v12 = vmul.f32 0.125, %v2014_v7  ;;  %v7963_v13 = vpop.f32.mrb[17].mxu1 }
 0x89c   : > { %v2455_v13 = vrot.slane %v9282_v49, 3 }
 0x89d   : > { %v2019_v14 = vadd.f32 %v2018_v12, %v9226_v58 }
 0x89f   : > { %v2020_v18 = vsel %vm1517_vm2, %v2019_v14, -inf }
 0x8a0   : > { %2021 = vmax.xlane.f32.xlu1 %v2020_v18 }
 0x8b1   : > { %2031 = vrot.lane.b32.xlu1 %v9285_v50, %s8790_s10 }
 0x92d   : > { %v2022_v19 = vpop.xlane.xlu1 %2021 }
 0x92e   : > { %v2023_v22 = vsub.f32 %v2019_v14, %v2022_v19  ;;  %v2544_v14 = vrot.slane %v9285_v50, 3 }
 0x930   : > { %v2024_v23 = vmul.f32 1.442695, %v2023_v22 }
 0x931   : > { %v2032_v24 = vpop.permute.xlu1 %2031 }
 0x932   : > { %8658 = vpow2.f32 %v2024_v23  ;;  %7965 = vmatpush3.msk.msra.mxu1 %vm1533_vm3, %v2032_v24 }
 0x933   : > { %7969 = vmatprep.subr.mxu1 %v8788_v6 }
 0x93c   : > { %v8659_v25 = vpop.eup %8658 }
 0x93d   : > { %v2026_v27 = vsel %vm1517_vm2, %v8659_v25, 0.0 }
 0x93e   : > { %2027 = vadd.xlane.f32.xlu0 %v2026_v27 }
 0x9cb   : > { %v2028_v58 = vpop.xlane.xlu0 %2027 }
 0x9cc   : > { %8660 = vrcp.f32 %v2028_v58 }
 0x9d6   : > { %v8661_v28 = vpop.eup %8660 }
 0x9d7   : > { %v2030_v29 = vmul.f32 %v8661_v28, %v8659_v25 }
 0x9d9   : > { %7967 = vmatmul.mubr.msk.f32.vlgmr.msra.gmra.mrb[18].mxu1 %vm1529_vm4, %v2030_v29 }
 0x9da   : > { %7970 = vmatpush3.xpose.msk.msra.mxu1 %vm1434_vm1, %v2119_v30  ;;  %7971 = vmatprep.mubr.msk.f32.mxu1 %vm8789_vm0, %v8788_v6 }
 0x9db   : > { %7974 = vmatprep.subr.mxu1 %v8788_v6 }
 0x9dd   : > { %7972 = vmatmul.mubr.msk.f32.vlgmr.msra.gmra.mrb[20].mxu1 %vm1434_vm1, %v2118_v31 }
 0x9de   : > { %7975 = vmatpush3.msk.msra.mxu1 %vm1533_vm3, %v2211_v32  ;;  %7976 = vmatprep.mubr.msk.f32.mxu1 %vm8789_vm0, %v8788_v6 }
 0x9df   : > { %7979 = vmatprep.subr.mxu1 %v8788_v6 }
 0xaac   : > { %v9333_v15 = vpop.f32.mrb[18].mxu1 }
 0xaad   : > { %v8065_v33 = vpack.i.bf16 %v9294_v10, %v9333_v15  ;;  %v7968_v34 = vpop.f32.mrb[19].mxu1 }
 0xab0   : > { %v2190_v17 = vpop.f32.mrb[20].mxu1 }
 0xab1   : > { %v2194_v35 = vmul.f32 0.125, %v2190_v17  ;;  %v7973_v36 = vpop.f32.mrb[21].mxu1 }
 0xab3   : > { %v2199_v37 = vadd.f32 %v9339_v20, %v2194_v35 }
 0xab5   : > { %v2200_v38 = vsel %vm1517_vm2, %v2199_v37, -inf }
 0xab6   : > { %2201 = vmax.xlane.f32.xlu0 %v2200_v38 }
 0xacc   : > { %2289 = vrot.lane.b32.xlu0 %v2119_v30, %s8790_s10 }
 0xad0   : > { %2287 = vrot.lane.b32.xlu0 %v2118_v31, %s8790_s10 }
 0xb43   : > { %v2202_v39 = vpop.xlane.xlu0 %2201 }
 0xb44   : > { %v2203_v42 = vsub.f32 %v2199_v37, %v2202_v39 }
 0xb46   : > { %v2204_v44 = vmul.f32 1.442695, %v2203_v42 }
 0xb47   : > { %v2290_v16 = vpop.permute.xlu0 %2289 }
 0xb48   : > { %8662 = vpow2.f32 %v2204_v44 }
 0xb4b   : > { %v2288_v51 = vpop.permute.xlu0 %2287 }
 0xb52   : > { %v8663_v45 = vpop.eup %8662 }
 0xb53   : > { %v2206_v57 = vsel %vm1517_vm2, %v8663_v45, 0.0 }
 0xb54   : > { %2207 = vadd.xlane.f32.xlu1 %v2206_v57 }
 0xbe1   : > { %v2208_v46 = vpop.xlane.xlu1 %2207 }
 0xbe2   : > { %8664 = vrcp.f32 %v2208_v46 }
 0xbec   : > { %v8665_v48 = vpop.eup %8664 }
 0xbed   : > { %v2210_v21 = vmul.f32 %v8665_v48, %v8663_v45 }
 0xbef   : > { %7977 = vmatmul.mubr.msk.f32.vlgmr.msra.gmra.mrb[22].mxu1 %vm1529_vm4, %v2210_v21 }
 0xbf0   : > { %7980 = vmatpush3.xpose.msk.msra.mxu1 %vm1434_vm1, %v2290_v16  ;;  %7981 = vmatprep.mubr.msk.f32.mxu1 %vm8789_vm0, %v8788_v6 }
 0xbf1   : > { %7984 = vmatprep.subr.mxu1 %v8788_v6 }
 0xbf3   : > { %7982 = vmatmul.mubr.msk.f32.vlgmr.msra.gmra.mrb[24].mxu1 %vm1434_vm1, %v2288_v51 }
 0xbf4   : > { %7986 = vmatprep.mubr.msk.f32.mxu1 %vm8789_vm0, %v8788_v6 }
 0xcc2   : > { %v9354_v52 = vpop.f32.mrb[22].mxu1 }
 0xcc3   : > { %v7978_v53 = vpop.f32.mrb[23].mxu1 }
 0xcc4   : > { %v8214_v53 = vld [vmem:[%s10196_s21] ss:$8 sps:$4 sm:$0xff]  }
 0xcc6   : > { %v2361_v54 = vpop.f32.mrb[24].mxu1 }
 0xcc7   : > { %v2365_v55 = vmul.f32 0.125, %v2361_v54  ;;  %v7983_v56 = vpop.f32.mrb[25].mxu1  ;;  %v8216_v54 = vld [vmem:[%s10196_s21 + $0x4] ss:$8 sps:$4 sm:$0xff]  }
 0xcc8   : > { %3012 = vmatprep.subr.bf16.mxu0 %v8216_v54  ;;  %v8217_v56 = vld [vmem:[%s10196_s21 + $0x10] ss:$8 sps:$4 sm:$0xff]  }
 0xcc9   : > { %v2366_v59 = vadd.f32 %v2365_v55, %v9339_v20  ;;  %v8219_v55 = vld [vmem:[%s10196_s21 + $0x14] ss:$8 sps:$4 sm:$0xff]   ;;  %3013 = vmatpush1.bf16.msra.mxu0 %v8214_v53 }
 0xcca   : > { %3014 = vmatprep.subr.bf16.mxu0 %v8219_v55  ;;  %v8682_v55 = vld [vmem:[%s10194_s1] sm:$0x3f] }
 0xccb   : > { %v2367_v60 = vsel %vm1517_vm2, %v2366_v59, -inf }
 0xccc   : > { %2368 = vmax.xlane.f32.xlu0 %v2367_v60  ;;  %v8220_v60 = vld [vmem:[%s10196_s21 + $0x20] ss:$8 sps:$4 sm:$0xff]  }
 0xccd   : > { %3015 = vmatpush1.bf16.msra.mxu0 %v8217_v56 }
 0xce2   : > { %2622 = vrot.lane.b32.xlu0 %v2456_v61, %s8790_s10 }
 0xd59   : > { %v2369_v62 = vpop.xlane.xlu0 %2368 }
 0xd5a   : > { %v2370_v63 = vsub.f32 %v2366_v59, %v2369_v62  ;;  %v8222_v59 = vld [vmem:[%s10196_s21 + $0x24] ss:$8 sps:$4 sm:$0xff]   ;;  %v8223_v62 = vld [vmem:[%s10196_s21 + $0x30] ss:$8 sps:$4 sm:$0xff]  }
 0xd5b   : > { %3016 = vmatprep.subr.bf16.mxu0 %v8222_v59 }
 0xd5c   : > { %v2371_v0 = vmul.f32 1.442695, %v2370_v63  ;;  %3017 = vmatpush1.bf16.msra.mxu0 %v8220_v60  ;;  %v8228_v63 = vld [vmem:[%s10196_s21 + $0x44] ss:$8 sps:$4 sm:$0xff]  }
 0xd5d   : > { %v2623_v30 = vpop.permute.xlu0 %2622  ;;  %v8683_v60 = vld [vmem:[%s10194_s1 + $0x8] sm:$0x3f] }
 0xd5e   : > { %8666 = vpow2.f32 %v2371_v0  ;;  %v8226_v0 = vld [vmem:[%s10196_s21 + $0x40] ss:$8 sps:$4 sm:$0xff]  }
 0xd68   : > { %v8667_v1 = vpop.eup %8666 }
 0xd69   : > { %v2373_v2 = vsel %vm1517_vm2, %v8667_v1, 0.0 }
 0xd6a   : > { %2374 = vadd.xlane.f32.xlu1 %v2373_v2  ;;  %v8229_v2 = vld [vmem:[%s10196_s21 + $0x50] ss:$8 sps:$4 sm:$0xff]  }
 0xd7b   : > { %2378 = vrot.lane.b32.xlu1 %v2211_v32, %s8790_s10 }
 0xdf7   : > { %v2375_v4 = vpop.xlane.xlu1 %2374 }
 0xdf8   : > { %8668 = vrcp.f32 %v2375_v4  ;;  %v8234_v4 = vld [vmem:[%s10196_s21 + $0x64] ss:$8 sps:$4 sm:$0xff]  }
 0xdfb   : > { %v2379_v7 = vpop.permute.xlu1 %2378 }
 0xdfc   : > { %7985 = vmatpush3.msk.msra.mxu1 %vm1533_vm3, %v2379_v7  ;;  %v8232_v7 = vld [vmem:[%s10196_s21 + $0x60] ss:$8 sps:$4 sm:$0xff]  }
 0xdfd   : > { %7989 = vmatprep.subr.mxu1 %v8788_v6 }
 0xe02   : > { %v8669_v47 = vpop.eup %8668 }
 0xe03   : > { %v2377_v12 = vmul.f32 %v8669_v47, %v8667_v1  ;;  %v8231_v1 = vld [vmem:[%s10196_s21 + $0x54] ss:$8 sps:$4 sm:$0xff]  }
 0xe04   : > { %v8237_v47 = vld [vmem:[%s10196_s21 + $0x74] ss:$8 sps:$4 sm:$0xff]  }
 0xe05   : > { %7987 = vmatmul.mubr.msk.f32.vlgmr.msra.gmra.mrb[26].mxu1 %vm1529_vm4, %v2377_v12  ;;  %v8235_v12 = vld [vmem:[%s10196_s21 + $0x70] ss:$8 sps:$4 sm:$0xff]  }
 0xe06   : > { %7990 = vmatpush3.xpose.msk.msra.mxu1 %vm1434_vm1, %v2456_v61  ;;  %7991 = vmatprep.mubr.msk.f32.mxu1 %vm8789_vm0, %v8788_v6  ;;  %v8225_v61 = vld [vmem:[%s10196_s21 + $0x34] ss:$8 sps:$4 sm:$0xff]  }
 0xe07   : > { %7994 = vmatprep.subr.mxu1 %v8788_v6  ;;  %3018 = vmatprep.subr.bf16.mxu0 %v8225_v61 }
 0xe08   : > { %3019 = vmatpush1.bf16.msra.mxu0 %v8223_v62 }
 0xe09   : > { %7992 = vmatmul.mubr.msk.f32.vlgmr.msra.gmra.mrb[28].mxu1 %vm1434_vm1, %v2455_v13  ;;  %3020 = vmatprep.subr.bf16.mxu0 %v8228_v63 }
 0xe0a   : > { %7995 = vmatpush3.msk.msra.mxu1 %vm1533_vm3, %v2544_v14  ;;  %7996 = vmatprep.mubr.msk.f32.mxu1 %vm8789_vm0, %v8788_v6 }
 0xe0b   : > { %7999 = vmatprep.subr.mxu1 %v8788_v6 }
 0xe0c   : > { %3021 = vmatpush1.bf16.msra.mxu0 %v8226_v0 }
 0xe0d   : > { %3022 = vmatprep.subr.bf16.mxu0 %v8231_v1  ;;  %v3107_v1 = vld [vmem:[%s9043_s18] sm:$0xff] }
 0xe10   : > { %3023 = vmatpush1.bf16.msra.mxu0 %v8229_v2  ;;  %v3115_v2 = vld [vmem:[%s9043_s18 + $0x40] sm:$0xff] }
 0xe11   : > { %3024 = vmatprep.subr.bf16.mxu0 %v8234_v4  ;;  %v3108_v4 = vld [vmem:[%s9043_s18 + $0x8] sm:$0xff] }
 0xe14   : > { %3025 = vmatpush1.bf16.msra.mxu0 %v8232_v7  ;;  %v7380_v7 = vcombine.low %v3107_v1, %v3115_v2 }
 0xe15   : > { %3026 = vmatprep.subr.bf16.mxu0 %v8237_v47  ;;  %v7381_v47 = vcombine.high %v3107_v1, %v3115_v2  ;;  %v3227_v1 = vld [vmem:[%s9043_s18 + $0x3c0] sm:$0xff]  ;;  %v3220_v2 = vld [vmem:[%s9043_s18 + $0x388] sm:$0xff] }
 0xe18   : > { %3027 = vmatpush1.bf16.msra.mxu0 %v8235_v12  ;;  %v3116_v12 = vld [vmem:[%s9043_s18 + $0x48] sm:$0xff] }
 0xed8   : > { %v9376_v18 = vpop.f32.mrb[26].mxu1 }
 0xed9   : > { %v7988_v19 = vpop.f32.mrb[27].mxu1 }
 0xeda   : > { %v8243_v19 = vld [vmem:[%s10196_s21 + $0x94] ss:$8 sps:$4 sm:$0xff]  }
 0xedc   : > { %v2527_v22 = vpop.f32.mrb[28].mxu1 }
 0xedd   : > { %v2531_v23 = vmul.f32 0.125, %v2527_v22  ;;  %v7993_v24 = vpop.f32.mrb[29].mxu1  ;;  %v8241_v22 = vld [vmem:[%s10196_s21 + $0x90] ss:$8 sps:$4 sm:$0xff]  }
 0xede   : > { %v8244_v24 = vld [vmem:[%s10196_s21 + $0xa0] ss:$8 sps:$4 sm:$0xff]  }
 0xedf   : > { %v2532_v49 = vadd.f32 %v2531_v23, %v9339_v20  ;;  %v8246_v23 = vld [vmem:[%s10196_s21 + $0xa4] ss:$8 sps:$4 sm:$0xff]  }
 0xee1   : > { %v2533_v25 = vsel %vm1517_vm2, %v2532_v49, -inf }
 0xee2   : > { %2534 = vmax.xlane.f32.xlu1 %v2533_v25  ;;  %v8247_v25 = vld [vmem:[%s10196_s21 + $0xb0] ss:$8 sps:$4 sm:$0xff]  }
 0xf6f   : > { %v2535_v50 = vpop.xlane.xlu1 %2534 }
 0xf70   : > { %v2536_v27 = vsub.f32 %v2532_v49, %v2535_v50  ;;  %v8249_v49 = vld [vmem:[%s10196_s21 + $0xb4] ss:$8 sps:$4 sm:$0xff]   ;;  %v8252_v50 = vld [vmem:[%s10196_s21 + $0xc4] ss:$8 sps:$4 sm:$0xff]  }
 0xf72   : > { %v2537_v58 = vmul.f32 1.442695, %v2536_v27  ;;  %v8250_v27 = vld [vmem:[%s10196_s21 + $0xc0] ss:$8 sps:$4 sm:$0xff]  }
 0xf74   : > { %8670 = vpow2.f32 %v2537_v58  ;;  %v8255_v58 = vld [vmem:[%s10196_s21 + $0xd4] ss:$8 sps:$4 sm:$0xff]  }
 0xf7e   : > { %v8671_v28 = vpop.eup %8670 }
 0xf7f   : > { %v2539_v29 = vsel %vm1517_vm2, %v8671_v28, 0.0 }
 0xf80   : > { %2540 = vadd.xlane.f32.xlu0 %v2539_v29  ;;  %v8256_v29 = vld [vmem:[%s10196_s21 + $0xe0] ss:$8 sps:$4 sm:$0xff]  }
 0xf96   : > { %2620 = vrot.lane.b32.xlu0 %v2455_v13, %s8790_s10  ;;  %v8240_v13 = vld [vmem:[%s10196_s21 + $0x84] ss:$8 sps:$4 sm:$0xff]  }
 0xf97   : > { %3028 = vmatprep.subr.bf16.mxu0 %v8240_v13  ;;  %v3123_v13 = vld [vmem:[%s9043_s18 + $0x80] sm:$0xff] }
0x100d   : > { %v2541_v31 = vpop.xlane.xlu0 %2540 }
0x100e   : > { %8672 = vrcp.f32 %v2541_v31  ;;  %v8259_v31 = vld [vmem:[%s10196_s21 + $0xf0] ss:$8 sps:$4 sm:$0xff]  }
0x1011   : > { %v2621_v17 = vpop.permute.xlu0 %2620 }
0x1018   : > { %v8673_v32 = vpop.eup %8672 }
0x1019   : > { %v2543_v34 = vmul.f32 %v8673_v32, %v8671_v28  ;;  %v8253_v28 = vld [vmem:[%s10196_s21 + $0xd0] ss:$8 sps:$4 sm:$0xff]   ;;  %v8261_v32 = vld [vmem:[%s10196_s21 + $0xf4] ss:$8 sps:$4 sm:$0xff]  }
0x101b   : > { %7997 = vmatmul.mubr.msk.f32.vlgmr.msra.gmra.mrb[30].mxu1 %vm1529_vm4, %v2543_v34 }
0x101c   : > { %8000 = vmatpush3.xpose.msk.msra.mxu1 %vm1434_vm1, %v2623_v30  ;;  %8001 = vmatprep.mubr.msk.f32.mxu1 %vm8789_vm0, %v8788_v6  ;;  %v8258_v30 = vld [vmem:[%s10196_s21 + $0xe4] ss:$8 sps:$4 sm:$0xff]  }
0x101d   : > { %8004 = vmatprep.subr.mxu1 %v8788_v6 }
0x101f   : > { %8002 = vmatmul.mubr.msk.f32.vlgmr.msra.gmra.mrb[32].mxu1 %vm1434_vm1, %v2621_v17 }
0x1020   : > { %8006 = vmatprep.mubr.msk.f32.mxu1 %vm8789_vm0, %v8788_v6 }
0x10ee   : > { %v9390_v35 = vpop.f32.mrb[30].mxu1 }
0x10ef   : > { %v7998_v36 = vpop.f32.mrb[31].mxu1 }
0x10f2   : > { %v2694_v37 = vpop.f32.mrb[32].mxu1 }
0x10f3   : > { %v2698_v38 = vmul.f32 0.125, %v2694_v37  ;;  %v8003_v39 = vpop.f32.mrb[33].mxu1 }
0x10f5   : > { %v2699_v42 = vadd.f32 %v2698_v38, %v9339_v20 }
0x10f7   : > { %v2700_v44 = vsel %vm1517_vm2, %v2699_v42, -inf }
0x10f8   : > { %2701 = vmax.xlane.f32.xlu0 %v2700_v44 }
0x1185   : > { %v2702_v45 = vpop.xlane.xlu0 %2701 }
0x1186   : > { %v2703_v57 = vsub.f32 %v2699_v42, %v2702_v45 }
0x1188   : > { %v2704_v46 = vmul.f32 1.442695, %v2703_v57 }
0x118a   : > { %8674 = vpow2.f32 %v2704_v46 }
0x1194   : > { %v8675_v48 = vpop.eup %8674 }
0x1195   : > { %v2706_v6 = vsel %vm1517_vm2, %v8675_v48, 0.0 }
0x1196   : > { %2707 = vadd.xlane.f32.xlu1 %v2706_v6 }
0x11a7   : > { %2711 = vrot.lane.b32.xlu1 %v2544_v14, %s8790_s10  ;;  %v8238_v14 = vld [vmem:[%s10196_s21 + $0x80] ss:$8 sps:$4 sm:$0xff]   ;;  %s10200_s21 = scalar_lea.vmem %s10156_s7, %s9016_s15 }
0x11a8   : > { %3029 = vmatpush1.bf16.msra.mxu0 %v8238_v14  ;;  %v3131_v14 = vld [vmem:[%s9043_s18 + $0xc0] sm:$0xff] }
0x11a9   : > { %3030 = vmatprep.subr.bf16.mxu0 %v8243_v19  ;;  %v7382_v19 = vcombine.low %v3108_v4, %v3116_v12 }
0x11ac   : > { %3031 = vmatpush1.bf16.msra.mxu0 %v8241_v22  ;;  %v7383_v22 = vcombine.high %v3108_v4, %v3116_v12  ;;  %v3228_v4 = vld [vmem:[%s9043_s18 + $0x3c8] sm:$0xff] }
0x11ad   : > { %3032 = vmatprep.subr.bf16.mxu0 %v8246_v23  ;;  %v7397_v23 = vcombine.high %v3123_v13, %v3131_v14 }
0x11b0   : > { %3033 = vmatpush1.bf16.msra.mxu0 %v8244_v24  ;;  %v3124_v24 = vld [vmem:[%s9043_s18 + $0x88] sm:$0xff] }
0x11b1   : > { %3034 = vmatprep.subr.bf16.mxu0 %v8249_v49  ;;  %v3132_v49 = vld [vmem:[%s9043_s18 + $0xc8] sm:$0xff] }
0x11b4   : > { %3035 = vmatpush1.bf16.msra.mxu0 %v8247_v25  ;;  %v3139_v25 = vld [vmem:[%s9043_s18 + $0x100] sm:$0xff] }
0x11b5   : > { %3036 = vmatprep.subr.bf16.mxu0 %v8252_v50  ;;  %v7399_v50 = vcombine.high %v3124_v24, %v3132_v49 }
0x11b8   : > { %3037 = vmatpush1.bf16.msra.mxu0 %v8250_v27  ;;  %v3147_v27 = vld [vmem:[%s9043_s18 + $0x140] sm:$0xff] }
0x11b9   : > { %3038 = vmatprep.subr.bf16.mxu0 %v8255_v58  ;;  %v3140_v58 = vld [vmem:[%s9043_s18 + $0x108] sm:$0xff] }
0x11bc   : > { %3039 = vmatpush1.bf16.msra.mxu0 %v8253_v28  ;;  %v3148_v28 = vld [vmem:[%s9043_s18 + $0x148] sm:$0xff] }
0x11bd   : > { %3040 = vmatprep.subr.bf16.mxu0 %v8258_v30  ;;  %v7398_v30 = vcombine.low %v3124_v24, %v3132_v49  ;;  %v7494_v49 = vcombine.low %v3220_v2, %v3228_v4 }
0x11c0   : > { %3041 = vmatpush1.bf16.msra.mxu0 %v8256_v29  ;;  %v7396_v29 = vcombine.low %v3123_v13, %v3131_v14  ;;  %v7495_v13 = vcombine.high %v3220_v2, %v3228_v4  ;;  %v3235_v14 = vld [vmem:[%s9043_s18 + $0x400] sm:$0xff] }
0x11c1   : > { %3042 = vmatprep.subr.bf16.mxu0 %v8261_v32  ;;  %v7415_v32 = vcombine.high %v3140_v58, %v3148_v28  ;;  %v3315_v2 = vld [vmem:[%s9043_s18 + $0x680] sm:$0xff] }
0x11c2   : > { %v3323_v4 = vld [vmem:[%s9043_s18 + $0x6c0] sm:$0xff] }
0x11c4   : > { %3043 = vmatpush1.bf16.msra.mxu0 %v8259_v31  ;;  %v7413_v31 = vcombine.high %v3139_v25, %v3147_v27 }
0x11c5   : > { %4768 = vmatprep.subr.bf16.mxu0 %v7383_v22  ;;  %v3236_v22 = vld [vmem:[%s9043_s18 + $0x408] sm:$0xff] }
0x1223   : > { %v2708_v16 = vpop.xlane.xlu1 %2707 }
0x1224   : > { %8676 = vrcp.f32 %v2708_v16 }
0x1227   : > { %v2712_v20 = vpop.permute.xlu1 %2711 }
0x1228   : > { %8005 = vmatpush3.msk.msra.mxu1 %vm1533_vm3, %v2712_v20 }
0x1229   : > { %4727 = vmatprep.subr.bf16.mxu1 %v7381_v47 }
0x122e   : > { %v8677_v21 = vpop.eup %8676 }
0x122f   : > { %v2710_v51 = vmul.f32 %v8677_v21, %v8675_v48 }
0x1231   : > { %8007 = vmatmul.mubr.msk.f32.vlgmr.msra.gmra.mrb[34].mxu1 %vm1529_vm4, %v2710_v51 }
0x1232   : > { %4728 = vmatpush1.bf16.msra.mxu1 %v7380_v7 }
0x1233   : > { %4729 = vmatprep.subr.bf16.mxu1 %v7397_v23  ;;  %v3244_v23 = vld [vmem:[%s9043_s18 + $0x448] sm:$0xff] }
0x1236   : > { %4730 = vmatpush1.bf16.msra.mxu1 %v7396_v29  ;;  %v3260_v29 = vld [vmem:[%s9043_s18 + $0x4c8] sm:$0xff] }
0x1237   : > { %4731 = vmatprep.subr.bf16.mxu1 %v7413_v31  ;;  %v7510_v31 = vcombine.low %v3236_v22, %v3244_v23 }
0x1304   : > { %v2784_v34 = vpop.f32.mrb[34].mxu1 }
0x1305   : > { %v8060_v17 = vpack.i.bf16 %v9376_v18, %v2784_v34  ;;  %v8008_v36 = vpop.f32.mrb[35].mxu1  ;;  %v3155_v34 = vld [vmem:[%s9043_s18 + $0x180] sm:$0xff] }
0x1306   : > { %v3156_v36 = vld [vmem:[%s9043_s18 + $0x188] sm:$0xff] }
0x1307   : > { %8061 = vrot.lane.b32.xlu1 %v8060_v17, %s8790_s10  ;;  %v3163_v17 = vld [vmem:[%s9043_s18 + $0x1c0] sm:$0xff] }
0x130b   : > { %8066 = vrot.lane.b32.xlu1 %v8065_v33, %s8790_s10 }
0x1379   : > { %v8062_v37 = vpop.permute.xlu1 %8061 }
0x137a   : > { %v8064_v38 = vunpack.i.h.bf16 %v8062_v37  ;;  %v8063_v39 = vunpack.i.l.bf16 %v8062_v37  ;;  %v3164_v37 = vld [vmem:[%s9043_s18 + $0x1c8] sm:$0xff] }
0x137c   : > { %v2796_v42 = vsel %vm1434_vm1, %v9354_v52, %v8064_v38  ;;  %v2797_v44 = vsel %vm1434_vm1, %v9390_v35, %v8063_v39  ;;  %v2840_v35 = vld [vmem:[%s10198_s24] sm:$0x3]  ;;  %v7412_v38 = vcombine.low %v3139_v25, %v3147_v27  ;;  %v7414_v39 = vcombine.low %v3140_v58, %v3148_v28  ;;  %v3252_v28 = vld [vmem:[%s9043_s18 + $0x488] sm:$0xff] }
0x137d   : > { %v8067_v45 = vpop.permute.xlu1 %8066  ;;  %v2800_v46 = vrot.slane %v2796_v42, 5  ;;  %v2801_v48 = vrot.slane %v2797_v44, 5  ;;  %v2845_v20 = vrot.slane %v2840_v35, %v9161_v11  ;;  %v7429_v42 = vcombine.high %v3155_v34, %v3163_v17  ;;  %v3251_v27 = vld [vmem:[%s9043_s18 + $0x480] sm:$0xff] }
0x137e   : > { %v8069_v18 = vunpack.i.h.bf16 %v8067_v45  ;;  %v8068_v57 = vunpack.i.l.bf16 %v8067_v45  ;;  %v7431_v44 = vcombine.high %v3156_v36, %v3164_v37  ;;  %v3171_v45 = vld [vmem:[%s9043_s18 + $0x200] sm:$0xff]  ;;  %4732 = vmatpush1.bf16.msra.mxu1 %v7412_v38  ;;  %v3276_v38 = vld [vmem:[%s9043_s18 + $0x548] sm:$0xff] }
0x137f   : > { %4733 = vmatprep.subr.bf16.mxu1 %v7429_v42  ;;  %v3259_v58 = vld [vmem:[%s9043_s18 + $0x4c0] sm:$0xff]  ;;  %v7526_v42 = vcombine.low %v3252_v28, %v3260_v29 }
0x1380   : > { %v2116_v6 = vsel %vm1434_vm1, %v9249_v26, %v8069_v18  ;;  %v2117_v10 = vsel %vm1434_vm1, %v9311_v3, %v8068_v57  ;;  %v2849_v26 = vrot.slane %v2840_v35, %v9262_v41  ;;  %v3179_v18 = vld [vmem:[%s9043_s18 + $0x240] sm:$0xff]  ;;  %v3172_v57 = vld [vmem:[%s9043_s18 + $0x208] sm:$0xff] }
0x1381   : > { %v2805_v15 = vsel %vm1533_vm3, %v2117_v10, %v2801_v48  ;;  %v2804_v33 = vsel %vm1533_vm3, %v2116_v6, %v2800_v46  ;;  %v3180_v46 = vld [vmem:[%s9043_s18 + $0x248] sm:$0xff]  ;;  %v7428_v48 = vcombine.low %v3155_v34, %v3163_v17  ;;  %v7430_v6 = vcombine.low %v3156_v36, %v3164_v37  ;;  %v3267_v17 = vld [vmem:[%s9043_s18 + $0x500] sm:$0xff] }
0x1382   : > { %v2807_v16 = vpack.c.bf16 %v2805_v15, %v2805_v15  ;;  %v2806_v52 = vpack.c.bf16 %v2804_v33, %v2804_v33  ;;  %v7445_v10 = vcombine.high %v3171_v45, %v3179_v18  ;;  %v7447_v15 = vcombine.high %v3172_v57, %v3180_v46  ;;  %v3187_v33 = vld [vmem:[%s9043_s18 + $0x280] sm:$0xff]  ;;  %v3196_v35 = vld [vmem:[%s9043_s18 + $0x2c8] sm:$0xff] }
0x1383   : > { %4734 = vmatpush1.bf16.msra.mxu1 %v7428_v48  ;;  %v7527_v34 = vcombine.high %v3252_v28, %v3260_v29  ;;  %v3275_v36 = vld [vmem:[%s9043_s18 + $0x540] sm:$0xff]  ;;  %v3268_v37 = vld [vmem:[%s9043_s18 + $0x508] sm:$0xff] }
0x1384   : > { %3044 = vmatprep.mubr.bf16.mxu0 %v2807_v16  ;;  %v3195_v16 = vld [vmem:[%s9043_s18 + $0x2c0] sm:$0xff]  ;;  %4735 = vmatprep.subr.bf16.mxu1 %v7445_v10 }
0x1385   : > { %3045 = vmatmul.mubr.bf16.vlgmr.msra.gmra.mrb[8].mxu0 %v2806_v52  ;;  %v3188_v52 = vld [vmem:[%s9043_s18 + $0x288] sm:$0xff]  ;;  %v3347_v28 = vld [vmem:[%s9043_s18 + $0x780] sm:$0xff] }
0x1386   : > { %4769 = vmatpush1.bf16.msra.mxu0 %v7382_v19  ;;  %v3243_v19 = vld [vmem:[%s9043_s18 + $0x440] sm:$0xff] }
0x1387   : > { %4770 = vmatprep.subr.bf16.mxu0 %v7399_v50  ;;  %v7509_v25 = vcombine.high %v3235_v14, %v3243_v19  ;;  %v7511_v50 = vcombine.high %v3236_v22, %v3244_v23  ;;  %v3331_v22 = vld [vmem:[%s9043_s18 + $0x700] sm:$0xff] }
0x1388   : > { %v3339_v23 = vld [vmem:[%s9043_s18 + $0x740] sm:$0xff] }
0x1389   : > { %v3355_v29 = vld [vmem:[%s9043_s18 + $0x7c0] sm:$0xff] }
0x138a   : > { %4771 = vmatpush1.bf16.msra.mxu0 %v7398_v30  ;;  %v7508_v30 = vcombine.low %v3235_v14, %v3243_v19 }
0x138b   : > { %4772 = vmatprep.subr.bf16.mxu0 %v7415_v32  ;;  %v7525_v32 = vcombine.high %v3251_v27, %v3259_v58 }
0x138e   : > { %4773 = vmatpush1.bf16.msra.mxu0 %v7414_v39  ;;  %v7524_v39 = vcombine.low %v3251_v27, %v3259_v58 }
0x138f   : > { %4774 = vmatprep.subr.bf16.mxu0 %v7431_v44  ;;  %v7541_v44 = vcombine.high %v3267_v17, %v3275_v36 }
0x1392   : > { %4775 = vmatpush1.bf16.msra.mxu0 %v7430_v6 }
0x1393   : > { %4776 = vmatprep.subr.bf16.mxu0 %v7447_v15 }
0x1458   : > { %v3046_v21 = vpop.f32.mrb[8].mxu0 }
0x1459   : > { %v3047_v3 = vadd.f32 %v3046_v21, %v2845_v20  ;;  %v3048_v51 = vpop.f32.mrb[9].mxu0  ;;  %v7444_v20 = vcombine.low %v3171_v45, %v3179_v18  ;;  %v7461_v21 = vcombine.high %v3187_v33, %v3195_v16  ;;  %v7543_v45 = vcombine.high %v3268_v37, %v3276_v38 }
0x145a   : > { %v3049_v53 = vadd.f32 %v3048_v51, %v2849_v26  ;;  %v3050_v54 = vpop.f32.mrb[10].mxu0  ;;  %v7446_v26 = vcombine.low %v3172_v57, %v3180_v46  ;;  %v3203_v51 = vld [vmem:[%s9043_s18 + $0x300] sm:$0xff]  ;;  %v7540_v18 = vcombine.low %v3267_v17, %v3275_v36  ;;  %v7542_v57 = vcombine.low %v3268_v37, %v3276_v38  ;;  %v3109_v37 = vld [vmem:[%s9043_s18 + $0x10] sm:$0xff] }
0x145b   : > { %v9456_v56 = vadd.f32 %v8682_v55, %v3047_v3  ;;  %v3051_v59 = vpop.f32.mrb[11].mxu0  ;;  %v7463_v3 = vcombine.high %v3188_v52, %v3196_v35  ;;  %v3204_v54 = vld [vmem:[%s9043_s18 + $0x308] sm:$0xff]  ;;  %4736 = vmatpush1.bf16.msra.mxu1 %v7444_v20  ;;  %v3291_v20 = vld [vmem:[%s9043_s18 + $0x5c0] sm:$0xff]  ;;  %v3117_v38 = vld [vmem:[%s9043_s18 + $0x50] sm:$0xff] }
0x145c   : > { %v9461_v61 = vadd.f32 %v8683_v60, %v3049_v53  ;;  %v3211_v53 = vld [vmem:[%s9043_s18 + $0x340] sm:$0xff]  ;;  %v3212_v55 = vld [vmem:[%s9043_s18 + $0x348] sm:$0xff]  ;;  %v7460_v59 = vcombine.low %v3187_v33, %v3195_v16  ;;  %4777 = vmatpush1.bf16.msra.mxu0 %v7446_v26  ;;  %4737 = vmatprep.subr.bf16.mxu1 %v7461_v21  ;;  %v7462_v60 = vcombine.low %v3188_v52, %v3196_v35 }
0x145d   : > { %v3058_v62 = vsel %vm3057_vm5, %v9456_v56, 0.0  ;;  %4778 = vmatprep.subr.bf16.mxu0 %v7463_v3  ;;  %v7476_v7 = vcombine.low %v3203_v51, %v3211_v53  ;;  %v7478_v47 = vcombine.low %v3204_v54, %v3212_v55  ;;  %v3292_v21 = vld [vmem:[%s9043_s18 + $0x5c8] sm:$0xff] }
0x145e   : > { %v3059_v63 = vsel %vm3057_vm5, %v9461_v61, 0.0 }
0x145f   : > { %v3060_v0 = vadd.f32 %v3059_v63, %v3058_v62  ;;  %v7477_v62 = vcombine.high %v3203_v51, %v3211_v53  ;;  %v7479_v63 = vcombine.high %v3204_v54, %v3212_v55  ;;  %4738 = vmatpush1.bf16.msra.mxu1 %v7460_v59  ;;  %v3299_v54 = vld [vmem:[%s9043_s18 + $0x600] sm:$0xff]  ;;  %v3300_v59 = vld [vmem:[%s9043_s18 + $0x608] sm:$0xff] }
0x1460   : > { %4779 = vmatpush1.bf16.msra.mxu0 %v7462_v60  ;;  %v3307_v55 = vld [vmem:[%s9043_s18 + $0x640] sm:$0xff] }
0x1461   : > { %3061 = vadd.xlane.f32.xlu0 %v3060_v0  ;;  %v3219_v0 = vld [vmem:[%s9043_s18 + $0x380] sm:$0xff]  ;;  %4739 = vmatprep.subr.bf16.mxu1 %v7477_v62  ;;  %v7573_v60 = vcombine.high %v3299_v54, %v3307_v55  ;;  %v3308_v62 = vld [vmem:[%s9043_s18 + $0x648] sm:$0xff] }
0x1462   : > { %v7493_v12 = vcombine.high %v3219_v0, %v3227_v1  ;;  %4780 = vmatprep.subr.bf16.mxu0 %v7479_v63  ;;  %v7492_v24 = vcombine.low %v3219_v0, %v3227_v1  ;;  %v7572_v63 = vcombine.low %v3299_v54, %v3307_v55  ;;  %v7574_v0 = vcombine.low %v3300_v59, %v3308_v62  ;;  %v3125_v55 = vld [vmem:[%s9043_s18 + $0x90] sm:$0xff] }
0x1463   : > { %4740 = vmatpush1.bf16.msra.mxu1 %v7476_v7  ;;  %v7575_v1 = vcombine.high %v3300_v59, %v3308_v62  ;;  %v3316_v7 = vld [vmem:[%s9043_s18 + $0x688] sm:$0xff]  ;;  %v3133_v59 = vld [vmem:[%s9043_s18 + $0xd0] sm:$0xff]  ;;  %v3134_v62 = vld [vmem:[%s9043_s18 + $0xd8] sm:$0xff] }
0x1464   : > { %4781 = vmatpush1.bf16.msra.mxu0 %v7478_v47  ;;  %4741 = vmatprep.subr.bf16.mxu1 %v7493_v12  ;;  %v7589_v47 = vcombine.high %v3315_v2, %v3323_v4  ;;  %v3324_v12 = vld [vmem:[%s9043_s18 + $0x6c8] sm:$0xff] }
0x1465   : > { %4782 = vmatprep.subr.bf16.mxu0 %v7495_v13  ;;  %v7588_v13 = vcombine.low %v3315_v2, %v3323_v4  ;;  %v7590_v14 = vcombine.low %v3316_v7, %v3324_v12  ;;  %v7591_v19 = vcombine.high %v3316_v7, %v3324_v12  ;;  %v3149_v2 = vld [vmem:[%s9043_s18 + $0x150] sm:$0xff]  ;;  %v3142_v4 = vld [vmem:[%s9043_s18 + $0x118] sm:$0xff] }
0x1466   : > { %v3150_v7 = vld [vmem:[%s9043_s18 + $0x158] sm:$0xff] }
0x1467   : > { %4742 = vmatpush1.bf16.msra.mxu1 %v7492_v24  ;;  %v3332_v24 = vld [vmem:[%s9043_s18 + $0x708] sm:$0xff] }
0x1468   : > { %4783 = vmatpush1.bf16.msra.mxu0 %v7494_v49  ;;  %4743 = vmatprep.subr.bf16.mxu1 %v7509_v25  ;;  %v7605_v49 = vcombine.high %v3331_v22, %v3339_v23  ;;  %v3340_v25 = vld [vmem:[%s9043_s18 + $0x748] sm:$0xff] }
0x1469   : > { %4784 = vmatprep.subr.bf16.mxu0 %v7511_v50  ;;  %v7604_v50 = vcombine.low %v3331_v22, %v3339_v23  ;;  %v7606_v27 = vcombine.low %v3332_v24, %v3340_v25  ;;  %v7607_v58 = vcombine.high %v3332_v24, %v3340_v25  ;;  %v3165_v22 = vld [vmem:[%s9043_s18 + $0x1d0] sm:$0xff]  ;;  %v3158_v23 = vld [vmem:[%s9043_s18 + $0x198] sm:$0xff]  ;;  %v7418_v25 = vcombine.low %v3142_v4, %v3150_v7 }
0x146a   : > { %v3166_v24 = vld [vmem:[%s9043_s18 + $0x1d8] sm:$0xff] }
0x146b   : > { %4744 = vmatpush1.bf16.msra.mxu1 %v7508_v30  ;;  %v3348_v30 = vld [vmem:[%s9043_s18 + $0x788] sm:$0xff] }
0x146c   : > { %4785 = vmatpush1.bf16.msra.mxu0 %v7510_v31  ;;  %4745 = vmatprep.subr.bf16.mxu1 %v7525_v32  ;;  %v7621_v31 = vcombine.high %v3347_v28, %v3355_v29  ;;  %v3356_v32 = vld [vmem:[%s9043_s18 + $0x7c8] sm:$0xff] }
0x146d   : > { %4786 = vmatprep.subr.bf16.mxu0 %v7527_v34  ;;  %v7620_v34 = vcombine.low %v3347_v28, %v3355_v29  ;;  %v7622_v17 = vcombine.low %v3348_v30, %v3356_v32  ;;  %v7623_v36 = vcombine.high %v3348_v30, %v3356_v32  ;;  %v3181_v28 = vld [vmem:[%s9043_s18 + $0x250] sm:$0xff]  ;;  %v3174_v29 = vld [vmem:[%s9043_s18 + $0x218] sm:$0xff]  ;;  %v7434_v32 = vcombine.low %v3158_v23, %v3166_v24 }
0x146e   : > { %v3182_v30 = vld [vmem:[%s9043_s18 + $0x258] sm:$0xff] }
0x146f   : > { %4746 = vmatpush1.bf16.msra.mxu1 %v7524_v39  ;;  %v3110_v39 = vld [vmem:[%s9043_s18 + $0x18] sm:$0xff] }
0x1470   : > { %4787 = vmatpush1.bf16.msra.mxu0 %v7526_v42  ;;  %4747 = vmatprep.subr.bf16.mxu1 %v7541_v44  ;;  %v7384_v42 = vcombine.low %v3109_v37, %v3117_v38  ;;  %v7385_v44 = vcombine.high %v3109_v37, %v3117_v38  ;;  %v3197_v37 = vld [vmem:[%s9043_s18 + $0x2d0] sm:$0xff]  ;;  %v3190_v38 = vld [vmem:[%s9043_s18 + $0x298] sm:$0xff] }
0x1471   : > { %4788 = vmatprep.subr.bf16.mxu0 %v7543_v45  ;;  %v3118_v45 = vld [vmem:[%s9043_s18 + $0x58] sm:$0xff] }
0x1473   : > { %4748 = vmatpush1.bf16.msra.mxu1 %v7540_v18  ;;  %v7386_v18 = vcombine.low %v3110_v39, %v3118_v45 }
0x1474   : > { %4789 = vmatpush1.bf16.msra.mxu0 %v7542_v57  ;;  %v7387_v57 = vcombine.high %v3110_v39, %v3118_v45  ;;  %v3198_v39 = vld [vmem:[%s9043_s18 + $0x2d8] sm:$0xff] }
0x14ee   : > { %v3062_v46 = vpop.xlane.xlu0 %3061 }
0x14ef   : > { %v3064_v48 = vmul.f32 0.00390625, %v3062_v46 }
0x14f1   : > { %v9512_v6 = vsub.f32 %v9456_v56, %v3064_v48  ;;  %v9515_v10 = vsub.f32 %v9461_v61, %v3064_v48  ;;  %v3283_v56 = vld [vmem:[%s9043_s18 + $0x580] sm:$0xff]  ;;  %v3284_v61 = vld [vmem:[%s9043_s18 + $0x588] sm:$0xff] }
0x14f2   : > { %v7557_v26 = vcombine.high %v3283_v56, %v3291_v20  ;;  %v7556_v3 = vcombine.low %v3283_v56, %v3291_v20  ;;  %v7558_v51 = vcombine.low %v3284_v61, %v3292_v21  ;;  %v7559_v53 = vcombine.high %v3284_v61, %v3292_v21 }
0x14f3   : > { %v3067_v15 = vmul.f32 %v9512_v6, %v9512_v6  ;;  %v3068_v33 = vmul.f32 %v9515_v10, %v9515_v10 }
0x14f4   : > { %4749 = vmatprep.subr.bf16.mxu1 %v7557_v26  ;;  %4790 = vmatprep.subr.bf16.mxu0 %v7559_v53 }
0x14f5   : > { %v3069_v16 = vsel %vm3057_vm5, %v3067_v15, 0.0  ;;  %v3070_v52 = vsel %vm3057_vm5, %v3068_v33, 0.0  ;;  %4750 = vmatpush1.bf16.msra.mxu1 %v7556_v3  ;;  %4791 = vmatpush1.bf16.msra.mxu0 %v7558_v51  ;;  %v3055_v33 = vld [vmem:[%s10199_s29] sm:$0x3] }
0x14f6   : > { %v3071_v35 = vadd.f32 %v3070_v52, %v3069_v16  ;;  %4751 = vmatprep.subr.bf16.mxu1 %v7573_v60  ;;  %4792 = vmatprep.subr.bf16.mxu0 %v7575_v1  ;;  %v3056_v16 = vld [vmem:[%s10200_s21] sm:$0x3]  ;;  %v3083_v52 = vrot.slane %v3055_v33, %v9161_v11  ;;  %v3126_v60 = vld [vmem:[%s9043_s18 + $0x98] sm:$0xff] }
0x14f7   : > { %v3096_v20 = vrot.slane %v3056_v16, %v9161_v11  ;;  %v3100_v61 = vrot.slane %v3056_v16, %v9262_v41  ;;  %v7403_v1 = vcombine.high %v3126_v60, %v3134_v62  ;;  %v7402_v12 = vcombine.low %v3126_v60, %v3134_v62  ;;  %v3245_v60 = vld [vmem:[%s9043_s18 + $0x450] sm:$0xff]  ;;  %v3238_v62 = vld [vmem:[%s9043_s18 + $0x418] sm:$0xff] }
0x14f8   : > { %3072 = vadd.xlane.f32.xlu1 %v3071_v35  ;;  %v3087_v35 = vrot.slane %v3055_v33, %v9262_v41  ;;  %v7466_v16 = vcombine.low %v3190_v38, %v3198_v39 }
0x14f9   : > { %4752 = vmatpush1.bf16.msra.mxu1 %v7572_v63  ;;  %4793 = vmatpush1.bf16.msra.mxu0 %v7574_v0  ;;  %v7401_v0 = vcombine.high %v3125_v55, %v3133_v59 }
0x14fa   : > { %4753 = vmatprep.subr.bf16.mxu1 %v7589_v47  ;;  %4794 = vmatprep.subr.bf16.mxu0 %v7591_v19  ;;  %v7400_v47 = vcombine.low %v3125_v55, %v3133_v59  ;;  %v3157_v19 = vld [vmem:[%s9043_s18 + $0x190] sm:$0xff] }
0x14fb   : > { %v3237_v59 = vld [vmem:[%s9043_s18 + $0x410] sm:$0xff] }
0x14fd   : > { %4754 = vmatpush1.bf16.msra.mxu1 %v7588_v13  ;;  %4795 = vmatpush1.bf16.msra.mxu0 %v7590_v14  ;;  %v7419_v14 = vcombine.high %v3142_v4, %v3150_v7  ;;  %v3253_v7 = vld [vmem:[%s9043_s18 + $0x490] sm:$0xff] }
0x14fe   : > { %4755 = vmatprep.subr.bf16.mxu1 %v7605_v49  ;;  %4796 = vmatprep.subr.bf16.mxu0 %v7607_v58  ;;  %v3173_v58 = vld [vmem:[%s9043_s18 + $0x210] sm:$0xff] }
0x1501   : > { %4756 = vmatpush1.bf16.msra.mxu1 %v7604_v50  ;;  %4797 = vmatpush1.bf16.msra.mxu0 %v7606_v27  ;;  %v7433_v50 = vcombine.high %v3157_v19, %v3165_v22  ;;  %v7435_v27 = vcombine.high %v3158_v23, %v3166_v24  ;;  %v3269_v24 = vld [vmem:[%s9043_s18 + $0x510] sm:$0xff] }
0x1502   : > { %4757 = vmatprep.subr.bf16.mxu1 %v7621_v31  ;;  %4798 = vmatprep.subr.bf16.mxu0 %v7623_v36  ;;  %v7432_v31 = vcombine.low %v3157_v19, %v3165_v22  ;;  %v3189_v36 = vld [vmem:[%s9043_s18 + $0x290] sm:$0xff] }
0x1503   : > { %v7465_v45 = vcombine.high %v3189_v36, %v3197_v37  ;;  %v7464_v33 = vcombine.low %v3189_v36, %v3197_v37 }
0x1505   : > { %4758 = vmatpush1.bf16.msra.mxu1 %v7620_v34  ;;  %4799 = vmatpush1.bf16.msra.mxu0 %v7622_v17  ;;  %v7449_v34 = vcombine.high %v3173_v58, %v3181_v28  ;;  %v7451_v17 = vcombine.high %v3174_v29, %v3182_v30 }
0x1506   : > { %4809 = vmatprep.subr.bf16.mxu1 %v7385_v44  ;;  %4850 = vmatprep.subr.bf16.mxu0 %v7387_v57  ;;  %v7450_v44 = vcombine.low %v3174_v29, %v3182_v30  ;;  %v3205_v57 = vld [vmem:[%s9043_s18 + $0x310] sm:$0xff] }
0x1507   : > { %v3285_v30 = vld [vmem:[%s9043_s18 + $0x590] sm:$0xff] }
0x1585   : > { %v3073_v46 = vpop.xlane.xlu1 %3072 }
0x1586   : > { %v3074_v48 = vmul.f32 0.00390625, %v3073_v46  ;;  %v3213_v46 = vld [vmem:[%s9043_s18 + $0x350] sm:$0xff] }
0x1588   : > { %v3075_v15 = vadd.f32 1e-05, %v3074_v48  ;;  %v3206_v48 = vld [vmem:[%s9043_s18 + $0x318] sm:$0xff] }
0x158a   : > { %8678 = vrsqrt.f32 %v3075_v15  ;;  %v3214_v15 = vld [vmem:[%s9043_s18 + $0x358] sm:$0xff] }
0x1594   : > { %v8679_v56 = vpop.eup %8678 }
0x1595   : > { %v3077_v26 = vmul.f32 %v8679_v56, %v9512_v6  ;;  %v3078_v21 = vmul.f32 %v8679_v56, %v9515_v10  ;;  %v3141_v10 = vld [vmem:[%s9043_s18 + $0x110] sm:$0xff] }
0x1596   : > { %v7417_v13 = vcombine.high %v3141_v10, %v3149_v2  ;;  %v7416_v49 = vcombine.low %v3141_v10, %v3149_v2  ;;  %v3221_v56 = vld [vmem:[%s9043_s18 + $0x390] sm:$0xff]  ;;  %v3246_v10 = vld [vmem:[%s9043_s18 + $0x458] sm:$0xff]  ;;  %v7513_v2 = vcombine.high %v3237_v59, %v3245_v60 }
0x1597   : > { %v3090_v3 = vmul.f32 %v3083_v52, %v3077_v26  ;;  %v3091_v51 = vmul.f32 %v3087_v35, %v3078_v21  ;;  %v7481_v52 = vcombine.high %v3205_v57, %v3213_v46  ;;  %v7483_v35 = vcombine.high %v3206_v48, %v3214_v15  ;;  %v3230_v26 = vld [vmem:[%s9043_s18 + $0x3d8] sm:$0xff] }
0x1598   : > { %v7480_v21 = vcombine.low %v3205_v57, %v3213_v46  ;;  %v7515_v4 = vcombine.high %v3238_v62, %v3246_v10  ;;  %v7514_v19 = vcombine.low %v3238_v62, %v3246_v10  ;;  %v3349_v10 = vld [vmem:[%s9043_s18 + $0x790] sm:$0xff] }
0x1599   : > { %v9563_v53 = vadd.f32 %v3096_v20, %v3090_v3  ;;  %v9565_v54 = vadd.f32 %v3100_v61, %v3091_v51  ;;  %v3229_v20 = vld [vmem:[%s9043_s18 + $0x3d0] sm:$0xff]  ;;  %v3222_v61 = vld [vmem:[%s9043_s18 + $0x398] sm:$0xff]  ;;  %v7482_v3 = vcombine.low %v3206_v48, %v3214_v15 }
0x159a   : > { %v7497_v51 = vcombine.high %v3221_v56, %v3229_v20  ;;  %v7499_v55 = vcombine.high %v3222_v61, %v3230_v26  ;;  %v3317_v15 = vld [vmem:[%s9043_s18 + $0x690] sm:$0xff] }
0x159b   : > { %v9573_v63 = vpack.c.bf16 %v9563_v53, %v9563_v53  ;;  %v9577_v6 = vpack.c.bf16 %v9565_v54, %v9565_v54 }
0x159d   : > { %4759 = vmatprep.mubr.bf16.mxu1 %v9577_v6  ;;  %4800 = vmatprep.mubr.bf16.mxu0 %v9577_v6 }
0x159e   : > { %4760 = vmatmul.mubr.bf16.vlgmr.msra.gmra.mrb[36].mxu1 %v9573_v63  ;;  %4801 = vmatmul.mubr.bf16.vlgmr.msra.gmra.mrb[12].mxu0 %v9573_v63 }
0x159f   : > { %4810 = vmatpush1.bf16.msra.mxu1 %v7384_v42  ;;  %4851 = vmatpush1.bf16.msra.mxu0 %v7386_v18  ;;  %v7448_v42 = vcombine.low %v3173_v58, %v3181_v28  ;;  %v7467_v18 = vcombine.high %v3190_v38, %v3198_v39  ;;  %v3301_v39 = vld [vmem:[%s9043_s18 + $0x610] sm:$0xff] }
0x15a0   : > { %4841 = vmatprep.mubr.bf16.mxu1 %v9577_v6  ;;  %4882 = vmatprep.mubr.bf16.mxu0 %v9577_v6 }
0x15a1   : > { %4811 = vmatprep.subr.bf16.mxu1 %v7401_v0  ;;  %4852 = vmatprep.subr.bf16.mxu0 %v7403_v1  ;;  %v7496_v0 = vcombine.low %v3221_v56, %v3229_v20  ;;  %v7498_v1 = vcombine.low %v3222_v61, %v3230_v26  ;;  %v3333_v26 = vld [vmem:[%s9043_s18 + $0x710] sm:$0xff] }
0x15a3   : > { %4812 = vmatpush1.bf16.msra.mxu1 %v7400_v47  ;;  %4853 = vmatpush1.bf16.msra.mxu0 %v7402_v12  ;;  %v3261_v47 = vld [vmem:[%s9043_s18 + $0x4d0] sm:$0xff]  ;;  %v3254_v12 = vld [vmem:[%s9043_s18 + $0x498] sm:$0xff] }
0x15a4   : > { %4813 = vmatprep.subr.bf16.mxu1 %v7417_v13  ;;  %4854 = vmatprep.subr.bf16.mxu0 %v7419_v14  ;;  %v3262_v13 = vld [vmem:[%s9043_s18 + $0x4d8] sm:$0xff]  ;;  %v7512_v14 = vcombine.low %v3237_v59, %v3245_v60  ;;  %v7529_v22 = vcombine.high %v3253_v7, %v3261_v47 }
0x15a5   : > { %v7531_v23 = vcombine.high %v3254_v12, %v3262_v13  ;;  %v7530_v58 = vcombine.low %v3254_v12, %v3262_v13  ;;  %v3111_v13 = vld [vmem:[%s9043_s18 + $0x20] sm:$0xff] }
0x15a7   : > { %4814 = vmatpush1.bf16.msra.mxu1 %v7416_v49  ;;  %4855 = vmatpush1.bf16.msra.mxu0 %v7418_v25  ;;  %v3277_v49 = vld [vmem:[%s9043_s18 + $0x550] sm:$0xff]  ;;  %v3270_v25 = vld [vmem:[%s9043_s18 + $0x518] sm:$0xff] }
0x15a8   : > { %4815 = vmatprep.subr.bf16.mxu1 %v7433_v50  ;;  %4856 = vmatprep.subr.bf16.mxu0 %v7435_v27  ;;  %v3278_v50 = vld [vmem:[%s9043_s18 + $0x558] sm:$0xff]  ;;  %v7528_v27 = vcombine.low %v3253_v7, %v3261_v47  ;;  %v7545_v28 = vcombine.high %v3269_v24, %v3277_v49 }
0x15a9   : > { %v7547_v29 = vcombine.high %v3270_v25, %v3278_v50  ;;  %v7546_v36 = vcombine.low %v3270_v25, %v3278_v50  ;;  %v3127_v50 = vld [vmem:[%s9043_s18 + $0xa0] sm:$0xff] }
0x15ab   : > { %4816 = vmatpush1.bf16.msra.mxu1 %v7432_v31  ;;  %4857 = vmatpush1.bf16.msra.mxu0 %v7434_v32  ;;  %v3293_v31 = vld [vmem:[%s9043_s18 + $0x5d0] sm:$0xff]  ;;  %v3286_v32 = vld [vmem:[%s9043_s18 + $0x598] sm:$0xff] }
0x15ac   : > { %4817 = vmatprep.subr.bf16.mxu1 %v7449_v34  ;;  %4858 = vmatprep.subr.bf16.mxu0 %v7451_v17  ;;  %v3294_v34 = vld [vmem:[%s9043_s18 + $0x5d8] sm:$0xff]  ;;  %v7544_v17 = vcombine.low %v3269_v24, %v3277_v49  ;;  %v7561_v37 = vcombine.high %v3285_v30, %v3293_v31 }
0x15ad   : > { %v7563_v38 = vcombine.high %v3286_v32, %v3294_v34  ;;  %v7562_v57 = vcombine.low %v3286_v32, %v3294_v34  ;;  %v3143_v34 = vld [vmem:[%s9043_s18 + $0x120] sm:$0xff] }
0x15af   : > { %4818 = vmatpush1.bf16.msra.mxu1 %v7448_v42  ;;  %4859 = vmatpush1.bf16.msra.mxu0 %v7450_v44  ;;  %v3309_v42 = vld [vmem:[%s9043_s18 + $0x650] sm:$0xff]  ;;  %v3302_v44 = vld [vmem:[%s9043_s18 + $0x618] sm:$0xff] }
0x15b0   : > { %4819 = vmatprep.subr.bf16.mxu1 %v7465_v45  ;;  %4860 = vmatprep.subr.bf16.mxu0 %v7467_v18  ;;  %v3310_v45 = vld [vmem:[%s9043_s18 + $0x658] sm:$0xff]  ;;  %v7560_v18 = vcombine.low %v3285_v30, %v3293_v31  ;;  %v7577_v46 = vcombine.high %v3301_v39, %v3309_v42 }
0x15b1   : > { %v7579_v48 = vcombine.high %v3302_v44, %v3310_v45  ;;  %v7578_v56 = vcombine.low %v3302_v44, %v3310_v45  ;;  %v3159_v45 = vld [vmem:[%s9043_s18 + $0x1a0] sm:$0xff] }
0x15b3   : > { %4820 = vmatpush1.bf16.msra.mxu1 %v7464_v33  ;;  %4861 = vmatpush1.bf16.msra.mxu0 %v7466_v16  ;;  %v3325_v33 = vld [vmem:[%s9043_s18 + $0x6d0] sm:$0xff]  ;;  %v3318_v16 = vld [vmem:[%s9043_s18 + $0x698] sm:$0xff] }
0x15b4   : > { %4821 = vmatprep.subr.bf16.mxu1 %v7481_v52  ;;  %4862 = vmatprep.subr.bf16.mxu0 %v7483_v35  ;;  %v3326_v52 = vld [vmem:[%s9043_s18 + $0x6d8] sm:$0xff]  ;;  %v7576_v35 = vcombine.low %v3301_v39, %v3309_v42  ;;  %v7593_v20 = vcombine.high %v3317_v15, %v3325_v33 }
0x15b5   : > { %v7595_v61 = vcombine.high %v3318_v16, %v3326_v52  ;;  %v7594_v59 = vcombine.low %v3318_v16, %v3326_v52  ;;  %v3175_v52 = vld [vmem:[%s9043_s18 + $0x220] sm:$0xff] }
0x15b7   : > { %4822 = vmatpush1.bf16.msra.mxu1 %v7480_v21  ;;  %4863 = vmatpush1.bf16.msra.mxu0 %v7482_v3  ;;  %v3341_v21 = vld [vmem:[%s9043_s18 + $0x750] sm:$0xff]  ;;  %v3334_v3 = vld [vmem:[%s9043_s18 + $0x718] sm:$0xff] }
0x15b8   : > { %4823 = vmatprep.subr.bf16.mxu1 %v7497_v51  ;;  %4864 = vmatprep.subr.bf16.mxu0 %v7499_v55  ;;  %v3342_v51 = vld [vmem:[%s9043_s18 + $0x758] sm:$0xff]  ;;  %v7592_v55 = vcombine.low %v3317_v15, %v3325_v33  ;;  %v7609_v60 = vcombine.high %v3333_v26, %v3341_v21 }
0x15b9   : > { %v7611_v62 = vcombine.high %v3334_v3, %v3342_v51  ;;  %v7610_v7 = vcombine.low %v3334_v3, %v3342_v51  ;;  %v3191_v51 = vld [vmem:[%s9043_s18 + $0x2a0] sm:$0xff] }
0x15bb   : > { %4824 = vmatpush1.bf16.msra.mxu1 %v7496_v0  ;;  %4865 = vmatpush1.bf16.msra.mxu0 %v7498_v1  ;;  %v3357_v0 = vld [vmem:[%s9043_s18 + $0x7d0] sm:$0xff]  ;;  %v3350_v1 = vld [vmem:[%s9043_s18 + $0x798] sm:$0xff] }
0x15bc   : > { %4825 = vmatprep.subr.bf16.mxu1 %v7513_v2  ;;  %4866 = vmatprep.subr.bf16.mxu0 %v7515_v4  ;;  %v3358_v2 = vld [vmem:[%s9043_s18 + $0x7d8] sm:$0xff]  ;;  %v7608_v4 = vcombine.low %v3333_v26, %v3341_v21  ;;  %v7625_v47 = vcombine.high %v3349_v10, %v3357_v0 }
0x15bd   : > { %v7627_v12 = vcombine.high %v3350_v1, %v3358_v2  ;;  %v7626_v24 = vcombine.low %v3350_v1, %v3358_v2  ;;  %v3207_v2 = vld [vmem:[%s9043_s18 + $0x320] sm:$0xff] }
0x15bf   : > { %4826 = vmatpush1.bf16.msra.mxu1 %v7512_v14  ;;  %4867 = vmatpush1.bf16.msra.mxu0 %v7514_v19  ;;  %v3119_v14 = vld [vmem:[%s9043_s18 + $0x60] sm:$0xff]  ;;  %v3112_v19 = vld [vmem:[%s9043_s18 + $0x28] sm:$0xff] }
0x15c0   : > { %4827 = vmatprep.subr.bf16.mxu1 %v7529_v22  ;;  %4868 = vmatprep.subr.bf16.mxu0 %v7531_v23  ;;  %v3120_v22 = vld [vmem:[%s9043_s18 + $0x68] sm:$0xff]  ;;  %v7624_v23 = vcombine.low %v3349_v10, %v3357_v0  ;;  %v7389_v49 = vcombine.high %v3111_v13, %v3119_v14 }
0x15c1   : > { %v7391_v25 = vcombine.high %v3112_v19, %v3120_v22  ;;  %v7390_v30 = vcombine.low %v3112_v19, %v3120_v22  ;;  %v3223_v22 = vld [vmem:[%s9043_s18 + $0x3a0] sm:$0xff] }
0x15c3   : > { %4828 = vmatpush1.bf16.msra.mxu1 %v7528_v27  ;;  %4869 = vmatpush1.bf16.msra.mxu0 %v7530_v58  ;;  %v3135_v27 = vld [vmem:[%s9043_s18 + $0xe0] sm:$0xff]  ;;  %v3128_v58 = vld [vmem:[%s9043_s18 + $0xa8] sm:$0xff] }
0x15c4   : > { %4829 = vmatprep.subr.bf16.mxu1 %v7545_v28  ;;  %4870 = vmatprep.subr.bf16.mxu0 %v7547_v29  ;;  %v3136_v28 = vld [vmem:[%s9043_s18 + $0xe8] sm:$0xff]  ;;  %v7388_v29 = vcombine.low %v3111_v13, %v3119_v14  ;;  %v7405_v31 = vcombine.high %v3127_v50, %v3135_v27 }
0x15c5   : > { %v7407_v32 = vcombine.high %v3128_v58, %v3136_v28  ;;  %v7406_v39 = vcombine.low %v3128_v58, %v3136_v28  ;;  %v3239_v28 = vld [vmem:[%s9043_s18 + $0x420] sm:$0xff] }
0x15c7   : > { %4830 = vmatpush1.bf16.msra.mxu1 %v7544_v17  ;;  %4871 = vmatpush1.bf16.msra.mxu0 %v7546_v36  ;;  %v3151_v17 = vld [vmem:[%s9043_s18 + $0x160] sm:$0xff]  ;;  %v3144_v36 = vld [vmem:[%s9043_s18 + $0x128] sm:$0xff] }
0x15c8   : > { %4831 = vmatprep.subr.bf16.mxu1 %v7561_v37  ;;  %4872 = vmatprep.subr.bf16.mxu0 %v7563_v38  ;;  %v3152_v37 = vld [vmem:[%s9043_s18 + $0x168] sm:$0xff]  ;;  %v7404_v38 = vcombine.low %v3127_v50, %v3135_v27  ;;  %v7421_v42 = vcombine.high %v3143_v34, %v3151_v17 }
0x15c9   : > { %v7423_v44 = vcombine.high %v3144_v36, %v3152_v37  ;;  %v7422_v15 = vcombine.low %v3144_v36, %v3152_v37  ;;  %v3255_v37 = vld [vmem:[%s9043_s18 + $0x4a0] sm:$0xff] }
0x15cb   : > { %4832 = vmatpush1.bf16.msra.mxu1 %v7560_v18  ;;  %4873 = vmatpush1.bf16.msra.mxu0 %v7562_v57  ;;  %v3167_v18 = vld [vmem:[%s9043_s18 + $0x1e0] sm:$0xff]  ;;  %v3160_v57 = vld [vmem:[%s9043_s18 + $0x1a8] sm:$0xff] }
0x15cc   : > { %4833 = vmatprep.subr.bf16.mxu1 %v7577_v46  ;;  %4874 = vmatprep.subr.bf16.mxu0 %v7579_v48  ;;  %v3168_v46 = vld [vmem:[%s9043_s18 + $0x1e8] sm:$0xff]  ;;  %v7420_v48 = vcombine.low %v3143_v34, %v3151_v17  ;;  %v7437_v33 = vcombine.high %v3159_v45, %v3167_v18 }
0x15cd   : > { %v7439_v16 = vcombine.high %v3160_v57, %v3168_v46  ;;  %v7438_v26 = vcombine.low %v3160_v57, %v3168_v46  ;;  %v3271_v46 = vld [vmem:[%s9043_s18 + $0x520] sm:$0xff] }
0x15cf   : > { %4834 = vmatpush1.bf16.msra.mxu1 %v7576_v35  ;;  %4875 = vmatpush1.bf16.msra.mxu0 %v7578_v56  ;;  %v3183_v35 = vld [vmem:[%s9043_s18 + $0x260] sm:$0xff]  ;;  %v3176_v56 = vld [vmem:[%s9043_s18 + $0x228] sm:$0xff] }
0x15d0   : > { %4835 = vmatprep.subr.bf16.mxu1 %v7593_v20  ;;  %4876 = vmatprep.subr.bf16.mxu0 %v7595_v61  ;;  %v3184_v20 = vld [vmem:[%s9043_s18 + $0x268] sm:$0xff]  ;;  %v7436_v61 = vcombine.low %v3159_v45, %v3167_v18  ;;  %v7453_v21 = vcombine.high %v3175_v52, %v3183_v35 }
0x15d1   : > { %v7455_v3 = vcombine.high %v3176_v56, %v3184_v20  ;;  %v7454_v10 = vcombine.low %v3176_v56, %v3184_v20  ;;  %v3287_v20 = vld [vmem:[%s9043_s18 + $0x5a0] sm:$0xff] }
0x15d3   : > { %4836 = vmatpush1.bf16.msra.mxu1 %v7592_v55  ;;  %4877 = vmatpush1.bf16.msra.mxu0 %v7594_v59  ;;  %v3199_v55 = vld [vmem:[%s9043_s18 + $0x2e0] sm:$0xff]  ;;  %v3192_v59 = vld [vmem:[%s9043_s18 + $0x2a8] sm:$0xff] }
0x15d4   : > { %4837 = vmatprep.subr.bf16.mxu1 %v7609_v60  ;;  %4878 = vmatprep.subr.bf16.mxu0 %v7611_v62  ;;  %v3200_v60 = vld [vmem:[%s9043_s18 + $0x2e8] sm:$0xff]  ;;  %v7452_v62 = vcombine.low %v3175_v52, %v3183_v35  ;;  %v7469_v0 = vcombine.high %v3191_v51, %v3199_v55 }
0x15d5   : > { %v7471_v1 = vcombine.high %v3192_v59, %v3200_v60  ;;  %v7470_v13 = vcombine.low %v3192_v59, %v3200_v60  ;;  %v3303_v60 = vld [vmem:[%s9043_s18 + $0x620] sm:$0xff] }
0x15d7   : > { %4838 = vmatpush1.bf16.msra.mxu1 %v7608_v4  ;;  %4879 = vmatpush1.bf16.msra.mxu0 %v7610_v7  ;;  %v3215_v4 = vld [vmem:[%s9043_s18 + $0x360] sm:$0xff]  ;;  %v3208_v7 = vld [vmem:[%s9043_s18 + $0x328] sm:$0xff] }
0x15d8   : > { %4839 = vmatprep.subr.bf16.mxu1 %v7625_v47  ;;  %4880 = vmatprep.subr.bf16.mxu0 %v7627_v12  ;;  %v3216_v47 = vld [vmem:[%s9043_s18 + $0x368] sm:$0xff]  ;;  %v7468_v12 = vcombine.low %v3191_v51, %v3199_v55  ;;  %v7485_v14 = vcombine.high %v3207_v2, %v3215_v4 }
0x15d9   : > { %v7487_v19 = vcombine.high %v3208_v7, %v3216_v47  ;;  %v7486_v50 = vcombine.low %v3208_v7, %v3216_v47  ;;  %v3319_v47 = vld [vmem:[%s9043_s18 + $0x6a0] sm:$0xff] }
0x15db   : > { %4840 = vmatpush1.bf16.msra.mxu1 %v7624_v23  ;;  %4881 = vmatpush1.bf16.msra.mxu0 %v7626_v24  ;;  %v3231_v23 = vld [vmem:[%s9043_s18 + $0x3e0] sm:$0xff]  ;;  %v3224_v24 = vld [vmem:[%s9043_s18 + $0x3a8] sm:$0xff] }
0x15dc   : > { %4891 = vmatprep.subr.bf16.mxu1 %v7389_v49  ;;  %4932 = vmatprep.subr.bf16.mxu0 %v7391_v25  ;;  %v3232_v49 = vld [vmem:[%s9043_s18 + $0x3e8] sm:$0xff]  ;;  %v7484_v25 = vcombine.low %v3207_v2, %v3215_v4  ;;  %v7501_v27 = vcombine.high %v3223_v22, %v3231_v23 }
0x15dd   : > { %v7503_v58 = vcombine.high %v3224_v24, %v3232_v49  ;;  %v7502_v34 = vcombine.low %v3224_v24, %v3232_v49  ;;  %v3335_v49 = vld [vmem:[%s9043_s18 + $0x720] sm:$0xff] }
0x15de   : > { %4842 = vmatmul.mubr.bf16.vlgmr.msra.gmra.mrb[40].mxu1 %v9573_v63  ;;  %4883 = vmatmul.mubr.bf16.vlgmr.msra.gmra.mrb[16].mxu0 %v9573_v63 }
0x15df   : > { %4892 = vmatpush1.bf16.msra.mxu1 %v7388_v29  ;;  %4923 = vmatprep.mubr.bf16.mxu1 %v9577_v6  ;;  %v3247_v29 = vld [vmem:[%s9043_s18 + $0x460] sm:$0xff] }
0x15e0   : > { %4933 = vmatpush1.bf16.msra.mxu0 %v7390_v30  ;;  %4964 = vmatprep.mubr.bf16.mxu0 %v9577_v6  ;;  %v3240_v30 = vld [vmem:[%s9043_s18 + $0x428] sm:$0xff]  ;;  %v7517_v17 = vcombine.high %v3239_v28, %v3247_v29 }
0x15e1   : > { %4893 = vmatprep.subr.bf16.mxu1 %v7405_v31  ;;  %4934 = vmatprep.subr.bf16.mxu0 %v7407_v32  ;;  %v3248_v31 = vld [vmem:[%s9043_s18 + $0x468] sm:$0xff]  ;;  %v7500_v32 = vcombine.low %v3223_v22, %v3231_v23 }
0x15e2   : > { %v7519_v36 = vcombine.high %v3240_v30, %v3248_v31  ;;  %v7518_v45 = vcombine.low %v3240_v30, %v3248_v31  ;;  %v3351_v31 = vld [vmem:[%s9043_s18 + $0x7a0] sm:$0xff] }
0x15e3   : > { %4894 = vmatpush1.bf16.msra.mxu1 %v7404_v38  ;;  %v3263_v38 = vld [vmem:[%s9043_s18 + $0x4e0] sm:$0xff] }
0x15e4   : > { %4935 = vmatpush1.bf16.msra.mxu0 %v7406_v39  ;;  %4895 = vmatprep.subr.bf16.mxu1 %v7421_v42  ;;  %v3256_v39 = vld [vmem:[%s9043_s18 + $0x4a8] sm:$0xff]  ;;  %v7533_v18 = vcombine.high %v3255_v37, %v3263_v38 }
0x15e5   : > { %4936 = vmatprep.subr.bf16.mxu0 %v7423_v44  ;;  %v3264_v42 = vld [vmem:[%s9043_s18 + $0x4e8] sm:$0xff]  ;;  %v7516_v44 = vcombine.low %v3239_v28, %v3247_v29 }
0x15e6   : > { %v7535_v57 = vcombine.high %v3256_v39, %v3264_v42  ;;  %v7534_v52 = vcombine.low %v3256_v39, %v3264_v42  ;;  %v3113_v42 = vld [vmem:[%s9043_s18 + $0x30] sm:$0xff] }
0x15e7   : > { %4896 = vmatpush1.bf16.msra.mxu1 %v7420_v48  ;;  %v3279_v48 = vld [vmem:[%s9043_s18 + $0x560] sm:$0xff] }
0x15e8   : > { %4937 = vmatpush1.bf16.msra.mxu0 %v7422_v15  ;;  %4897 = vmatprep.subr.bf16.mxu1 %v7437_v33  ;;  %v3272_v15 = vld [vmem:[%s9043_s18 + $0x528] sm:$0xff]  ;;  %v7549_v35 = vcombine.high %v3271_v46, %v3279_v48 }
0x15e9   : > { %4938 = vmatprep.subr.bf16.mxu0 %v7439_v16  ;;  %v3280_v33 = vld [vmem:[%s9043_s18 + $0x568] sm:$0xff]  ;;  %v7532_v16 = vcombine.low %v3255_v37, %v3263_v38 }
0x15ea   : > { %v7551_v56 = vcombine.high %v3272_v15, %v3280_v33  ;;  %v7550_v51 = vcombine.low %v3272_v15, %v3280_v33  ;;  %v3129_v33 = vld [vmem:[%s9043_s18 + $0xb0] sm:$0xff] }
0x15eb   : > { %4898 = vmatpush1.bf16.msra.mxu1 %v7436_v61  ;;  %v3295_v61 = vld [vmem:[%s9043_s18 + $0x5e0] sm:$0xff] }
0x15ec   : > { %4939 = vmatpush1.bf16.msra.mxu0 %v7438_v26  ;;  %4899 = vmatprep.subr.bf16.mxu1 %v7453_v21  ;;  %v3288_v26 = vld [vmem:[%s9043_s18 + $0x5a8] sm:$0xff]  ;;  %v7565_v55 = vcombine.high %v3287_v20, %v3295_v61 }
0x15ed   : > { %4940 = vmatprep.subr.bf16.mxu0 %v7455_v3  ;;  %v3296_v21 = vld [vmem:[%s9043_s18 + $0x5e8] sm:$0xff]  ;;  %v7548_v3 = vcombine.low %v3271_v46, %v3279_v48 }
0x15ee   : > { %v7567_v59 = vcombine.high %v3288_v26, %v3296_v21  ;;  %v7566_v2 = vcombine.low %v3288_v26, %v3296_v21  ;;  %v3145_v26 = vld [vmem:[%s9043_s18 + $0x130] sm:$0xff] }
0x15ef   : > { %4900 = vmatpush1.bf16.msra.mxu1 %v7452_v62  ;;  %v3311_v62 = vld [vmem:[%s9043_s18 + $0x660] sm:$0xff]  ;;  %v3153_v21 = vld [vmem:[%s9043_s18 + $0x170] sm:$0xff] }
0x15f0   : > { %4941 = vmatpush1.bf16.msra.mxu0 %v7454_v10  ;;  %4901 = vmatprep.subr.bf16.mxu1 %v7469_v0  ;;  %v3304_v10 = vld [vmem:[%s9043_s18 + $0x628] sm:$0xff]  ;;  %v7581_v4 = vcombine.high %v3303_v60, %v3311_v62 }
0x15f1   : > { %4942 = vmatprep.subr.bf16.mxu0 %v7471_v1  ;;  %v3312_v0 = vld [vmem:[%s9043_s18 + $0x668] sm:$0xff]  ;;  %v7564_v1 = vcombine.low %v3287_v20, %v3295_v61 }
0x15f2   : > { %v7583_v7 = vcombine.high %v3304_v10, %v3312_v0  ;;  %v7582_v22 = vcombine.low %v3304_v10, %v3312_v0  ;;  %v3161_v0 = vld [vmem:[%s9043_s18 + $0x1b0] sm:$0xff] }
0x15f3   : > { %4902 = vmatpush1.bf16.msra.mxu1 %v7468_v12  ;;  %v3327_v12 = vld [vmem:[%s9043_s18 + $0x6e0] sm:$0xff] }
0x15f4   : > { %4943 = vmatpush1.bf16.msra.mxu0 %v7470_v13  ;;  %4903 = vmatprep.subr.bf16.mxu1 %v7485_v14  ;;  %v3320_v13 = vld [vmem:[%s9043_s18 + $0x6a8] sm:$0xff]  ;;  %v7597_v23 = vcombine.high %v3319_v47, %v3327_v12 }
0x15f5   : > { %4944 = vmatprep.subr.bf16.mxu0 %v7487_v19  ;;  %v3328_v14 = vld [vmem:[%s9043_s18 + $0x6e8] sm:$0xff]  ;;  %v7580_v19 = vcombine.low %v3303_v60, %v3311_v62  ;;  %v7425_v62 = vcombine.high %v3145_v26, %v3153_v21 }
0x15f6   : > { %v7599_v24 = vcombine.high %v3320_v13, %v3328_v14  ;;  %v7598_v28 = vcombine.low %v3320_v13, %v3328_v14  ;;  %v3177_v13 = vld [vmem:[%s9043_s18 + $0x230] sm:$0xff] }
0x15f7   : > { %4904 = vmatpush1.bf16.msra.mxu1 %v7484_v25  ;;  %v3343_v25 = vld [vmem:[%s9043_s18 + $0x760] sm:$0xff]  ;;  %v3185_v14 = vld [vmem:[%s9043_s18 + $0x270] sm:$0xff] }
0x15f8   : > { %4945 = vmatpush1.bf16.msra.mxu0 %v7486_v50  ;;  %4905 = vmatprep.subr.bf16.mxu1 %v7501_v27  ;;  %v3336_v50 = vld [vmem:[%s9043_s18 + $0x728] sm:$0xff]  ;;  %v7613_v29 = vcombine.high %v3335_v49, %v3343_v25 }
0x15f9   : > { %4946 = vmatprep.subr.bf16.mxu0 %v7503_v58  ;;  %v3344_v27 = vld [vmem:[%s9043_s18 + $0x768] sm:$0xff]  ;;  %v7596_v58 = vcombine.low %v3319_v47, %v3327_v12 }
0x15fa   : > { %v7615_v30 = vcombine.high %v3336_v50, %v3344_v27  ;;  %v7614_v37 = vcombine.low %v3336_v50, %v3344_v27  ;;  %v3193_v50 = vld [vmem:[%s9043_s18 + $0x2b0] sm:$0xff] }
0x15fb   : > { %4906 = vmatpush1.bf16.msra.mxu1 %v7500_v32  ;;  %v3359_v32 = vld [vmem:[%s9043_s18 + $0x7e0] sm:$0xff]  ;;  %v3201_v27 = vld [vmem:[%s9043_s18 + $0x2f0] sm:$0xff] }
0x15fc   : > { %4947 = vmatpush1.bf16.msra.mxu0 %v7502_v34  ;;  %4907 = vmatprep.subr.bf16.mxu1 %v7517_v17  ;;  %v3352_v34 = vld [vmem:[%s9043_s18 + $0x7a8] sm:$0xff]  ;;  %v7629_v38 = vcombine.high %v3351_v31, %v3359_v32 }
0x15fd   : > { %4948 = vmatprep.subr.bf16.mxu0 %v7519_v36  ;;  %v3360_v17 = vld [vmem:[%s9043_s18 + $0x7e8] sm:$0xff]  ;;  %v7612_v36 = vcombine.low %v3335_v49, %v3343_v25  ;;  %v7457_v49 = vcombine.high %v3177_v13, %v3185_v14 }
0x15fe   : > { %v7631_v39 = vcombine.high %v3352_v34, %v3360_v17  ;;  %v7630_v46 = vcombine.low %v3352_v34, %v3360_v17  ;;  %v3209_v34 = vld [vmem:[%s9043_s18 + $0x330] sm:$0xff] }
0x15ff   : > { %4908 = vmatpush1.bf16.msra.mxu1 %v7516_v44  ;;  %v3121_v44 = vld [vmem:[%s9043_s18 + $0x70] sm:$0xff] }
0x1600   : > { %4949 = vmatpush1.bf16.msra.mxu0 %v7518_v45  ;;  %4909 = vmatprep.subr.bf16.mxu1 %v7533_v18  ;;  %v3114_v45 = vld [vmem:[%s9043_s18 + $0x38] sm:$0xff]  ;;  %v7393_v48 = vcombine.high %v3113_v42, %v3121_v44  ;;  %v3217_v17 = vld [vmem:[%s9043_s18 + $0x370] sm:$0xff] }
0x1601   : > { %4950 = vmatprep.subr.bf16.mxu0 %v7535_v57  ;;  %v3122_v18 = vld [vmem:[%s9043_s18 + $0x78] sm:$0xff]  ;;  %v7628_v57 = vcombine.low %v3351_v31, %v3359_v32  ;;  %v7473_v31 = vcombine.high %v3193_v50, %v3201_v27 }
0x1602   : > { %v7395_v15 = vcombine.high %v3114_v45, %v3122_v18  ;;  %v7394_v20 = vcombine.low %v3114_v45, %v3122_v18  ;;  %v3225_v45 = vld [vmem:[%s9043_s18 + $0x3b0] sm:$0xff] }
0x1603   : > { %4910 = vmatpush1.bf16.msra.mxu1 %v7532_v16  ;;  %v3137_v16 = vld [vmem:[%s9043_s18 + $0xf0] sm:$0xff] }
0x1604   : > { %4951 = vmatpush1.bf16.msra.mxu0 %v7534_v52  ;;  %4911 = vmatprep.subr.bf16.mxu1 %v7549_v35  ;;  %v7392_v52 = vcombine.low %v3113_v42, %v3121_v44  ;;  %v3130_v35 = vld [vmem:[%s9043_s18 + $0xb8] sm:$0xff]  ;;  %v7409_v61 = vcombine.high %v3129_v33, %v3137_v16  ;;  %v7489_v42 = vcombine.high %v3209_v34, %v3217_v17  ;;  %v3233_v18 = vld [vmem:[%s9043_s18 + $0x3f0] sm:$0xff] }
0x1605   : > { %4952 = vmatprep.subr.bf16.mxu0 %v7551_v56  ;;  %v3138_v56 = vld [vmem:[%s9043_s18 + $0xf8] sm:$0xff] }
0x1606   : > { %v7410_v60 = vcombine.low %v3130_v35, %v3138_v56 }
0x1607   : > { %4912 = vmatpush1.bf16.msra.mxu1 %v7548_v3  ;;  %v7411_v3 = vcombine.high %v3130_v35, %v3138_v56  ;;  %v3249_v35 = vld [vmem:[%s9043_s18 + $0x470] sm:$0xff]  ;;  %v3242_v56 = vld [vmem:[%s9043_s18 + $0x438] sm:$0xff] }
0x1608   : > { %4953 = vmatpush1.bf16.msra.mxu0 %v7550_v51  ;;  %4913 = vmatprep.subr.bf16.mxu1 %v7565_v55  ;;  %v3146_v51 = vld [vmem:[%s9043_s18 + $0x138] sm:$0xff] }
0x1609   : > { %4954 = vmatprep.subr.bf16.mxu0 %v7567_v59  ;;  %v3154_v55 = vld [vmem:[%s9043_s18 + $0x178] sm:$0xff]  ;;  %v7408_v59 = vcombine.low %v3129_v33, %v3137_v16  ;;  %v7505_v33 = vcombine.high %v3225_v45, %v3233_v18 }
0x160a   : > { %v7427_v10 = vcombine.high %v3146_v51, %v3154_v55  ;;  %v7426_v47 = vcombine.low %v3146_v51, %v3154_v55  ;;  %v3257_v51 = vld [vmem:[%s9043_s18 + $0x4b0] sm:$0xff] }
0x160b   : > { %4914 = vmatpush1.bf16.msra.mxu1 %v7564_v1  ;;  %v3169_v1 = vld [vmem:[%s9043_s18 + $0x1f0] sm:$0xff] }
0x160c   : > { %4955 = vmatpush1.bf16.msra.mxu0 %v7566_v2  ;;  %4915 = vmatprep.subr.bf16.mxu1 %v7581_v4  ;;  %v3162_v2 = vld [vmem:[%s9043_s18 + $0x1b8] sm:$0xff]  ;;  %v7441_v12 = vcombine.high %v3161_v0, %v3169_v1  ;;  %v3265_v55 = vld [vmem:[%s9043_s18 + $0x4f0] sm:$0xff] }
0x160d   : > { %4956 = vmatprep.subr.bf16.mxu0 %v7583_v7  ;;  %v3170_v4 = vld [vmem:[%s9043_s18 + $0x1f8] sm:$0xff]  ;;  %v7424_v7 = vcombine.low %v3145_v26, %v3153_v21 }
0x160f   : > { %4916 = vmatpush1.bf16.msra.mxu1 %v7580_v19  ;;  %v3178_v19 = vld [vmem:[%s9043_s18 + $0x238] sm:$0xff] }
0x1610   : > { %4957 = vmatpush1.bf16.msra.mxu0 %v7582_v22  ;;  %4917 = vmatprep.subr.bf16.mxu1 %v7597_v23  ;;  %v3186_v22 = vld [vmem:[%s9043_s18 + $0x278] sm:$0xff]  ;;  %v7440_v23 = vcombine.low %v3161_v0, %v3169_v1  ;;  %v7537_v0 = vcombine.high %v3257_v51, %v3265_v55 }
0x1611   : > { %4958 = vmatprep.subr.bf16.mxu0 %v7599_v24  ;;  %v7442_v24 = vcombine.low %v3162_v2, %v3170_v4  ;;  %v7459_v25 = vcombine.high %v3178_v19, %v3186_v22 }
0x1613   : > { %4918 = vmatpush1.bf16.msra.mxu1 %v7596_v58  ;;  %v3194_v58 = vld [vmem:[%s9043_s18 + $0x2b8] sm:$0xff] }
0x1614   : > { %4959 = vmatpush1.bf16.msra.mxu0 %v7598_v28  ;;  %4919 = vmatprep.subr.bf16.mxu1 %v7613_v29  ;;  %v3202_v28 = vld [vmem:[%s9043_s18 + $0x2f8] sm:$0xff]  ;;  %v7456_v29 = vcombine.low %v3177_v13, %v3185_v14 }
0x1615   : > { %4960 = vmatprep.subr.bf16.mxu0 %v7615_v30  ;;  %v7458_v30 = vcombine.low %v3178_v19, %v3186_v22  ;;  %v7475_v32 = vcombine.high %v3194_v58, %v3202_v28  ;;  %v3289_v19 = vld [vmem:[%s9043_s18 + $0x5b0] sm:$0xff] }
0x1616   : > { %v3297_v22 = vld [vmem:[%s9043_s18 + $0x5f0] sm:$0xff] }
0x1617   : > { %4920 = vmatpush1.bf16.msra.mxu1 %v7612_v36  ;;  %v3210_v36 = vld [vmem:[%s9043_s18 + $0x338] sm:$0xff] }
0x1618   : > { %4961 = vmatpush1.bf16.msra.mxu0 %v7614_v37  ;;  %4921 = vmatprep.subr.bf16.mxu1 %v7629_v38  ;;  %v3218_v37 = vld [vmem:[%s9043_s18 + $0x378] sm:$0xff]  ;;  %v7472_v38 = vcombine.low %v3193_v50, %v3201_v27  ;;  %v7569_v50 = vcombine.high %v3289_v19, %v3297_v22 }
0x1619   : > { %4962 = vmatprep.subr.bf16.mxu0 %v7631_v39  ;;  %v7474_v39 = vcombine.low %v3194_v58, %v3202_v28  ;;  %v7491_v44 = vcombine.high %v3210_v36, %v3218_v37  ;;  %v3305_v58 = vld [vmem:[%s9043_s18 + $0x630] sm:$0xff] }
0x161a   : > { %v3313_v28 = vld [vmem:[%s9043_s18 + $0x670] sm:$0xff] }
0x161b   : > { %4922 = vmatpush1.bf16.msra.mxu1 %v7628_v57  ;;  %v3226_v57 = vld [vmem:[%s9043_s18 + $0x3b8] sm:$0xff] }
0x161c   : > { %4963 = vmatpush1.bf16.msra.mxu0 %v7630_v46  ;;  %4973 = vmatprep.subr.bf16.mxu1 %v7393_v48  ;;  %v3234_v46 = vld [vmem:[%s9043_s18 + $0x3f8] sm:$0xff]  ;;  %v7488_v48 = vcombine.low %v3209_v34, %v3217_v17  ;;  %v7585_v34 = vcombine.high %v3305_v58, %v3313_v28 }
0x161d   : > { %5014 = vmatprep.subr.bf16.mxu0 %v7395_v15  ;;  %v7490_v15 = vcombine.low %v3210_v36, %v3218_v37  ;;  %v7507_v16 = vcombine.high %v3226_v57, %v3234_v46  ;;  %v7506_v26 = vcombine.low %v3226_v57, %v3234_v46  ;;  %v3321_v36 = vld [vmem:[%s9043_s18 + $0x6b0] sm:$0xff] }
0x161e   : > { %4924 = vmatmul.mubr.bf16.vlgmr.msra.gmra.mrb[44].mxu1 %v9573_v63  ;;  %v3329_v37 = vld [vmem:[%s9043_s18 + $0x6f0] sm:$0xff] }
0x161f   : > { %4965 = vmatmul.mubr.bf16.vlgmr.msra.gmra.mrb[20].mxu0 %v9573_v63  ;;  %4974 = vmatpush1.bf16.msra.mxu1 %v7392_v52  ;;  %v3241_v52 = vld [vmem:[%s9043_s18 + $0x430] sm:$0xff] }
0x1620   : > { %5005 = vmatprep.mubr.bf16.mxu1 %v9577_v6  ;;  %5015 = vmatpush1.bf16.msra.mxu0 %v7394_v20  ;;  %v3250_v20 = vld [vmem:[%s9043_s18 + $0x478] sm:$0xff]  ;;  %v7521_v21 = vcombine.high %v3241_v52, %v3249_v35  ;;  %v3337_v57 = vld [vmem:[%s9043_s18 + $0x730] sm:$0xff] }
0x1621   : > { %5046 = vmatprep.mubr.bf16.mxu0 %v9577_v6  ;;  %4975 = vmatprep.subr.bf16.mxu1 %v7409_v61  ;;  %v7443_v6 = vcombine.high %v3162_v2, %v3170_v4  ;;  %v7504_v61 = vcombine.low %v3225_v45, %v3233_v18  ;;  %v3273_v2 = vld [vmem:[%s9043_s18 + $0x530] sm:$0xff]  ;;  %v7601_v45 = vcombine.high %v3321_v36, %v3329_v37 }
0x1622   : > { %5016 = vmatprep.subr.bf16.mxu0 %v7411_v3  ;;  %v7523_v3 = vcombine.high %v3242_v56, %v3250_v20  ;;  %v3281_v4 = vld [vmem:[%s9043_s18 + $0x570] sm:$0xff] }
0x1623   : > { %4976 = vmatpush1.bf16.msra.mxu1 %v7408_v59  ;;  %v3258_v59 = vld [vmem:[%s9043_s18 + $0x4b8] sm:$0xff]  ;;  %v7553_v13 = vcombine.high %v3273_v2, %v3281_v4  ;;  %v3345_v46 = vld [vmem:[%s9043_s18 + $0x770] sm:$0xff] }
0x1624   : > { %5017 = vmatpush1.bf16.msra.mxu0 %v7410_v60  ;;  %4977 = vmatprep.subr.bf16.mxu1 %v7425_v62  ;;  %v3266_v60 = vld [vmem:[%s9043_s18 + $0x4f8] sm:$0xff]  ;;  %v7520_v62 = vcombine.low %v3241_v52, %v3249_v35  ;;  %v7617_v52 = vcombine.high %v3337_v57, %v3345_v46 }
0x1625   : > { %5018 = vmatprep.subr.bf16.mxu0 %v7427_v10  ;;  %v7522_v10 = vcombine.low %v3242_v56, %v3250_v20  ;;  %v7539_v1 = vcombine.high %v3258_v59, %v3266_v60  ;;  %v3353_v56 = vld [vmem:[%s9043_s18 + $0x7b0] sm:$0xff] }
0x1626   : > { %v3361_v20 = vld [vmem:[%s9043_s18 + $0x7f0] sm:$0xff] }
0x1627   : > { %4978 = vmatpush1.bf16.msra.mxu1 %v7424_v7  ;;  %v3274_v7 = vld [vmem:[%s9043_s18 + $0x538] sm:$0xff] }
0x1628   : > { %5019 = vmatpush1.bf16.msra.mxu0 %v7426_v47  ;;  %4979 = vmatprep.subr.bf16.mxu1 %v7441_v12  ;;  %v3282_v47 = vld [vmem:[%s9043_s18 + $0x578] sm:$0xff]  ;;  %v7536_v12 = vcombine.low %v3257_v51, %v3265_v55  ;;  %v7633_v51 = vcombine.high %v3353_v56, %v3361_v20 }
0x1629   : > { %5020 = vmatprep.subr.bf16.mxu0 %v7443_v6  ;;  %v7538_v6 = vcombine.low %v3258_v59, %v3266_v60  ;;  %v7555_v14 = vcombine.high %v3274_v7, %v3282_v47  ;;  %v7632_v59 = vcombine.low %v3353_v56, %v3361_v20 }
0x162b   : > { %4980 = vmatpush1.bf16.msra.mxu1 %v7440_v23  ;;  %v3290_v23 = vld [vmem:[%s9043_s18 + $0x5b8] sm:$0xff] }
0x162c   : > { %5021 = vmatpush1.bf16.msra.mxu0 %v7442_v24  ;;  %4981 = vmatprep.subr.bf16.mxu1 %v7457_v49  ;;  %v3298_v24 = vld [vmem:[%s9043_s18 + $0x5f8] sm:$0xff]  ;;  %v7552_v49 = vcombine.low %v3273_v2, %v3281_v4 }
0x162d   : > { %5022 = vmatprep.subr.bf16.mxu0 %v7459_v25  ;;  %v7554_v25 = vcombine.low %v3274_v7, %v3282_v47  ;;  %v7571_v27 = vcombine.high %v3290_v23, %v3298_v24  ;;  %v8270_v2 = vld [vmem:[%s10201_s22 + $0x14] ss:$8 sps:$4 sm:$0xff]   ;;  %v8268_v7 = vld [vmem:[%s10201_s22 + $0x10] ss:$8 sps:$4 sm:$0xff]  }
0x162e   : > { %v8273_v4 = vld [vmem:[%s10201_s22 + $0x114] ss:$8 sps:$4 sm:$0xff]   ;;  %v8271_v47 = vld [vmem:[%s10201_s22 + $0x110] ss:$8 sps:$4 sm:$0xff]  }
0x162f   : > { %4982 = vmatpush1.bf16.msra.mxu1 %v7456_v29  ;;  %v3306_v29 = vld [vmem:[%s9043_s18 + $0x638] sm:$0xff] }
0x1630   : > { %5023 = vmatpush1.bf16.msra.mxu0 %v7458_v30  ;;  %4983 = vmatprep.subr.bf16.mxu1 %v7473_v31  ;;  %v3314_v30 = vld [vmem:[%s9043_s18 + $0x678] sm:$0xff]  ;;  %v7568_v31 = vcombine.low %v3289_v19, %v3297_v22 }
0x1631   : > { %5024 = vmatprep.subr.bf16.mxu0 %v7475_v32  ;;  %v7570_v32 = vcombine.low %v3290_v23, %v3298_v24  ;;  %v7587_v17 = vcombine.high %v3306_v29, %v3314_v30  ;;  %v8285_v19 = vld [vmem:[%s10201_s22 + $0x134] ss:$8 sps:$4 sm:$0xff]   ;;  %v8280_v22 = vld [vmem:[%s10201_s22 + $0x30] ss:$8 sps:$4 sm:$0xff]   ;;  %v8288_v24 = vld [vmem:[%s10201_s22 + $0x44] ss:$8 sps:$4 sm:$0xff]  }
0x1632   : > { %v8283_v23 = vld [vmem:[%s10201_s22 + $0x130] ss:$8 sps:$4 sm:$0xff]  }
0x1633   : > { %4984 = vmatpush1.bf16.msra.mxu1 %v7472_v38  ;;  %v3322_v38 = vld [vmem:[%s9043_s18 + $0x6b8] sm:$0xff] }
0x1634   : > { %5025 = vmatpush1.bf16.msra.mxu0 %v7474_v39  ;;  %4985 = vmatprep.subr.bf16.mxu1 %v7489_v42  ;;  %v3330_v39 = vld [vmem:[%s9043_s18 + $0x6f8] sm:$0xff]  ;;  %v7584_v42 = vcombine.low %v3305_v58, %v3313_v28 }
0x1635   : > { %5026 = vmatprep.subr.bf16.mxu0 %v7491_v44  ;;  %v7586_v44 = vcombine.low %v3306_v29, %v3314_v30  ;;  %v7603_v18 = vcombine.high %v3322_v38, %v3330_v39  ;;  %v8294_v58 = vld [vmem:[%s10201_s22 + $0x54] ss:$8 sps:$4 sm:$0xff]   ;;  %v8292_v29 = vld [vmem:[%s10201_s22 + $0x50] ss:$8 sps:$4 sm:$0xff]  }
0x1636   : > { %v8297_v28 = vld [vmem:[%s10201_s22 + $0x154] ss:$8 sps:$4 sm:$0xff]  }
0x1637   : > { %4986 = vmatpush1.bf16.msra.mxu1 %v7488_v48  ;;  %v3338_v48 = vld [vmem:[%s9043_s18 + $0x738] sm:$0xff] }
0x1638   : > { %5027 = vmatpush1.bf16.msra.mxu0 %v7490_v15  ;;  %4987 = vmatprep.subr.bf16.mxu1 %v7505_v33  ;;  %v3346_v15 = vld [vmem:[%s9043_s18 + $0x778] sm:$0xff]  ;;  %v7600_v33 = vcombine.low %v3321_v36, %v3329_v37  ;;  %v8303_v37 = vld [vmem:[%s10201_s22 + $0x164] ss:$8 sps:$4 sm:$0xff]  }
0x1639   : > { %5028 = vmatprep.subr.bf16.mxu0 %v7507_v16  ;;  %v7602_v16 = vcombine.low %v3322_v38, %v3330_v39  ;;  %v7619_v35 = vcombine.high %v3338_v48, %v3346_v15 }
0x163b   : > { %4988 = vmatpush1.bf16.msra.mxu1 %v7504_v61  ;;  %v3354_v61 = vld [vmem:[%s9043_s18 + $0x7b8] sm:$0xff] }
0x163c   : > { %5029 = vmatpush1.bf16.msra.mxu0 %v7506_v26  ;;  %4989 = vmatprep.subr.bf16.mxu1 %v7521_v21  ;;  %v3362_v26 = vld [vmem:[%s9043_s18 + $0x7f8] sm:$0xff]  ;;  %v7616_v21 = vcombine.low %v3337_v57, %v3345_v46  ;;  %v8298_v57 = vld [vmem:[%s10201_s22 + $0x60] ss:$8 sps:$4 sm:$0xff]  }
0x163d   : > { %5030 = vmatprep.subr.bf16.mxu0 %v7523_v3  ;;  %v7618_v3 = vcombine.low %v3338_v48, %v3346_v15  ;;  %v7635_v55 = vcombine.high %v3354_v61, %v3362_v26  ;;  %v7634_v60 = vcombine.low %v3354_v61, %v3362_v26  ;;  %v8301_v15 = vld [vmem:[%s10201_s22 + $0x160] ss:$8 sps:$4 sm:$0xff]   ;;  %v8304_v61 = vld [vmem:[%s10201_s22 + $0x70] ss:$8 sps:$4 sm:$0xff]  }
0x163e   : > { %v8307_v26 = vld [vmem:[%s10201_s22 + $0x170] ss:$8 sps:$4 sm:$0xff]  }
0x163f   : > { %4990 = vmatpush1.bf16.msra.mxu1 %v7520_v62  ;;  %v8264_v62 = vld [vmem:[%s10201_s22 + $0x4] ss:$8 sps:$4 sm:$0xff]  }
0x1640   : > { %5031 = vmatpush1.bf16.msra.mxu0 %v7522_v10  ;;  %4991 = vmatprep.subr.bf16.mxu1 %v7537_v0  ;;  %v8267_v10 = vld [vmem:[%s10201_s22 + $0x104] ss:$8 sps:$4 sm:$0xff]   ;;  %v8262_v0 = vld [vmem:[%s10201_s22] ss:$8 sps:$4 sm:$0xff]  }
0x1641   : > { %5032 = vmatprep.subr.bf16.mxu0 %v7539_v1  ;;  %v8265_v1 = vld [vmem:[%s10201_s22 + $0x100] ss:$8 sps:$4 sm:$0xff]  }
0x1643   : > { %4992 = vmatpush1.bf16.msra.mxu1 %v7536_v12  ;;  %v8276_v12 = vld [vmem:[%s10201_s22 + $0x24] ss:$8 sps:$4 sm:$0xff]  }
0x1644   : > { %5033 = vmatpush1.bf16.msra.mxu0 %v7538_v6  ;;  %4993 = vmatprep.subr.bf16.mxu1 %v7553_v13  ;;  %v8279_v6 = vld [vmem:[%s10201_s22 + $0x124] ss:$8 sps:$4 sm:$0xff]   ;;  %v8274_v13 = vld [vmem:[%s10201_s22 + $0x20] ss:$8 sps:$4 sm:$0xff]  }
0x1645   : > { %5034 = vmatprep.subr.bf16.mxu0 %v7555_v14  ;;  %v8277_v14 = vld [vmem:[%s10201_s22 + $0x120] ss:$8 sps:$4 sm:$0xff]  }
0x1647   : > { %4994 = vmatpush1.bf16.msra.mxu1 %v7552_v49  ;;  %v8291_v49 = vld [vmem:[%s10201_s22 + $0x144] ss:$8 sps:$4 sm:$0xff]  }
0x1648   : > { %5035 = vmatpush1.bf16.msra.mxu0 %v7554_v25  ;;  %4995 = vmatprep.subr.bf16.mxu1 %v7569_v50  ;;  %v8286_v25 = vld [vmem:[%s10201_s22 + $0x40] ss:$8 sps:$4 sm:$0xff]  }
0x1649   : > { %5036 = vmatprep.subr.bf16.mxu0 %v7571_v27  ;;  %v8289_v50 = vld [vmem:[%s10201_s22 + $0x140] ss:$8 sps:$4 sm:$0xff]  }
0x164a   : > { %v9800_v27 = vld [vmem:[%s9048_s19] sm:$0xff] }
0x164b   : > { %4996 = vmatpush1.bf16.msra.mxu1 %v7568_v31  ;;  %v3374_v30 = vrot.slane %v9800_v27, %v9262_v41  ;;  %v3382_v31 = vrot.slane %v9800_v27, %v9259_v40 }
0x164c   : > { %5037 = vmatpush1.bf16.msra.mxu0 %v7570_v32  ;;  %4997 = vmatprep.subr.bf16.mxu1 %v7585_v34  ;;  %v8295_v32 = vld [vmem:[%s10201_s22 + $0x150] ss:$8 sps:$4 sm:$0xff]   ;;  %v8300_v34 = vld [vmem:[%s10201_s22 + $0x64] ss:$8 sps:$4 sm:$0xff]  }
0x164d   : > { %5038 = vmatprep.subr.bf16.mxu0 %v7587_v17 }
0x164f   : > { %4998 = vmatpush1.bf16.msra.mxu1 %v7584_v42 }
0x1650   : > { %5039 = vmatpush1.bf16.msra.mxu0 %v7586_v44  ;;  %4999 = vmatprep.subr.bf16.mxu1 %v7601_v45 }
0x1651   : > { %5040 = vmatprep.subr.bf16.mxu0 %v7603_v18 }
0x1653   : > { %5000 = vmatpush1.bf16.msra.mxu1 %v7600_v33  ;;  %v8306_v33 = vld [vmem:[%s10201_s22 + $0x74] ss:$8 sps:$4 sm:$0xff]  }
0x1654   : > { %5041 = vmatpush1.bf16.msra.mxu0 %v7602_v16  ;;  %5001 = vmatprep.subr.bf16.mxu1 %v7617_v52 }
0x1655   : > { %5042 = vmatprep.subr.bf16.mxu0 %v7619_v35  ;;  %v8309_v35 = vld [vmem:[%s10201_s22 + $0x174] ss:$8 sps:$4 sm:$0xff]  }
0x1657   : > { %5002 = vmatpush1.bf16.msra.mxu1 %v7616_v21  ;;  %v8312_v21 = vld [vmem:[%s10201_s22 + $0x84] ss:$8 sps:$4 sm:$0xff]  }
0x1658   : > { %5043 = vmatpush1.bf16.msra.mxu0 %v7618_v3  ;;  %5003 = vmatprep.subr.bf16.mxu1 %v7633_v51  ;;  %v8315_v3 = vld [vmem:[%s10201_s22 + $0x184] ss:$8 sps:$4 sm:$0xff]   ;;  %v8310_v51 = vld [vmem:[%s10201_s22 + $0x80] ss:$8 sps:$4 sm:$0xff]  }
0x1659   : > { %5044 = vmatprep.subr.bf16.mxu0 %v7635_v55  ;;  %v8313_v55 = vld [vmem:[%s10201_s22 + $0x180] ss:$8 sps:$4 sm:$0xff]  }
0x165b   : > { %5004 = vmatpush1.bf16.msra.mxu1 %v7632_v59  ;;  %v8318_v59 = vld [vmem:[%s10201_s22 + $0x94] ss:$8 sps:$4 sm:$0xff]  }
0x165c   : > { %5045 = vmatpush1.bf16.msra.mxu0 %v7634_v60  ;;  %6635 = vmatprep.subr.bf16.mxu1 %v8264_v62  ;;  %v8321_v60 = vld [vmem:[%s10201_s22 + $0x194] ss:$8 sps:$4 sm:$0xff]   ;;  %v8316_v62 = vld [vmem:[%s10201_s22 + $0x90] ss:$8 sps:$4 sm:$0xff]  }
0x165d   : > { %6676 = vmatprep.subr.bf16.mxu0 %v8267_v10  ;;  %v8319_v10 = vld [vmem:[%s10201_s22 + $0x190] ss:$8 sps:$4 sm:$0xff]  }
0x165e   : > { %5006 = vmatmul.mubr.bf16.vlgmr.msra.gmra.mrb[48].mxu1 %v9573_v63 }
0x165f   : > { %5047 = vmatmul.mubr.bf16.vlgmr.msra.gmra.mrb[24].mxu0 %v9573_v63  ;;  %6636 = vmatpush1.bf16.msra.mxu1 %v8262_v0  ;;  %v8282_v63 = vld [vmem:[%s10201_s22 + $0x34] ss:$8 sps:$4 sm:$0xff]   ;;  %v8324_v0 = vld [vmem:[%s10201_s22 + $0xa4] ss:$8 sps:$4 sm:$0xff]  }
0x1660   : > { %6677 = vmatpush1.bf16.msra.mxu0 %v8265_v1  ;;  %6637 = vmatprep.subr.bf16.mxu1 %v8270_v2  ;;  %v8327_v1 = vld [vmem:[%s10201_s22 + $0x1a4] ss:$8 sps:$4 sm:$0xff]   ;;  %v8322_v2 = vld [vmem:[%s10201_s22 + $0xa0] ss:$8 sps:$4 sm:$0xff]  }
0x1661   : > { %6678 = vmatprep.subr.bf16.mxu0 %v8273_v4  ;;  %v8325_v4 = vld [vmem:[%s10201_s22 + $0x1a0] ss:$8 sps:$4 sm:$0xff]  }
0x1663   : > { %6638 = vmatpush1.bf16.msra.mxu1 %v8268_v7  ;;  %v8330_v7 = vld [vmem:[%s10201_s22 + $0xb4] ss:$8 sps:$4 sm:$0xff]  }
0x1664   : > { %6679 = vmatpush1.bf16.msra.mxu0 %v8271_v47  ;;  %6639 = vmatprep.subr.bf16.mxu1 %v8276_v12  ;;  %v8333_v47 = vld [vmem:[%s10201_s22 + $0x1b4] ss:$8 sps:$4 sm:$0xff]   ;;  %v8328_v12 = vld [vmem:[%s10201_s22 + $0xb0] ss:$8 sps:$4 sm:$0xff]  }
0x1665   : > { %6680 = vmatprep.subr.bf16.mxu0 %v8279_v6  ;;  %v8331_v6 = vld [vmem:[%s10201_s22 + $0x1b0] ss:$8 sps:$4 sm:$0xff]  }
0x1667   : > { %6640 = vmatpush1.bf16.msra.mxu1 %v8274_v13  ;;  %v8336_v13 = vld [vmem:[%s10201_s22 + $0xc4] ss:$8 sps:$4 sm:$0xff]  }
0x1668   : > { %6681 = vmatpush1.bf16.msra.mxu0 %v8277_v14  ;;  %6641 = vmatprep.subr.bf16.mxu1 %v8282_v63  ;;  %v8339_v14 = vld [vmem:[%s10201_s22 + $0x1c4] ss:$8 sps:$4 sm:$0xff]   ;;  %v8334_v63 = vld [vmem:[%s10201_s22 + $0xc0] ss:$8 sps:$4 sm:$0xff]  }
0x1669   : > { %6682 = vmatprep.subr.bf16.mxu0 %v8285_v19  ;;  %v8337_v19 = vld [vmem:[%s10201_s22 + $0x1c0] ss:$8 sps:$4 sm:$0xff]  }
0x166b   : > { %6642 = vmatpush1.bf16.msra.mxu1 %v8280_v22  ;;  %v8342_v22 = vld [vmem:[%s10201_s22 + $0xd4] ss:$8 sps:$4 sm:$0xff]  }
0x166c   : > { %6683 = vmatpush1.bf16.msra.mxu0 %v8283_v23  ;;  %6643 = vmatprep.subr.bf16.mxu1 %v8288_v24  ;;  %v8345_v23 = vld [vmem:[%s10201_s22 + $0x1d4] ss:$8 sps:$4 sm:$0xff]   ;;  %v8340_v24 = vld [vmem:[%s10201_s22 + $0xd0] ss:$8 sps:$4 sm:$0xff]  }
0x166d   : > { %6684 = vmatprep.subr.bf16.mxu0 %v8291_v49  ;;  %v3370_v49 = vrot.slane %v9800_v27, %v9161_v11 }
0x166f   : > { %6644 = vmatpush1.bf16.msra.mxu1 %v8286_v25  ;;  %v8343_v25 = vld [vmem:[%s10201_s22 + $0x1d0] ss:$8 sps:$4 sm:$0xff]  }
0x1670   : > { %6685 = vmatpush1.bf16.msra.mxu0 %v8289_v50  ;;  %6645 = vmatprep.subr.bf16.mxu1 %v8294_v58  ;;  %v8348_v50 = vld [vmem:[%s10201_s22 + $0xe4] ss:$8 sps:$4 sm:$0xff]   ;;  %v3378_v58 = vrot.slane %v9800_v27, %v9155_v9 }
0x1671   : > { %v9811_v17 = vpop.f32.mrb[36].mxu1  ;;  %v9813_v36 = vpop.f32.mrb[12].mxu0  ;;  %6686 = vmatprep.subr.bf16.mxu0 %v8297_v28  ;;  %v8351_v28 = vld [vmem:[%s10201_s22 + $0x1e4] ss:$8 sps:$4 sm:$0xff]  }
0x1672   : > { %v4763_v38 = vpop.f32.mrb[37].mxu1  ;;  %v4804_v39 = vpop.f32.mrb[13].mxu0 }
0x1673   : > { %v4764_v42 = vadd.f32 %v4763_v38, %v3374_v30  ;;  %v4805_v44 = vadd.f32 %v4804_v39, %v3382_v31  ;;  %6646 = vmatpush1.bf16.msra.mxu1 %v8292_v29  ;;  %v4765_v45 = vpop.f32.mrb[38].mxu1  ;;  %v4806_v18 = vpop.f32.mrb[14].mxu0  ;;  %v8346_v29 = vld [vmem:[%s10201_s22 + $0xe0] ss:$8 sps:$4 sm:$0xff]   ;;  %v4762_v30 = vadd.f32 %v9811_v17, %v3370_v49  ;;  %v8352_v38 = vld [vmem:[%s10201_s22 + $0xf0] ss:$8 sps:$4 sm:$0xff]  }
0x1674   : > { %6687 = vmatpush1.bf16.msra.mxu0 %v8295_v32  ;;  %v4766_v46 = vpop.f32.mrb[39].mxu1  ;;  %v4807_v48 = vpop.f32.mrb[15].mxu0  ;;  %6647 = vmatprep.subr.bf16.mxu1 %v8300_v34  ;;  %v8349_v31 = vld [vmem:[%s10201_s22 + $0x1e0] ss:$8 sps:$4 sm:$0xff]   ;;  %v8354_v32 = vld [vmem:[%s10201_s22 + $0xf4] ss:$8 sps:$4 sm:$0xff]   ;;  %v4803_v34 = vadd.f32 %v9813_v36, %v3378_v58 }
0x1675   : > { %v5056_v16 = vmax.f32 %v4764_v42, 0.0  ;;  %v5058_v52 = vmax.f32 %v4805_v44, 0.0  ;;  %6688 = vmatprep.subr.bf16.mxu0 %v8303_v37  ;;  %v8357_v37 = vld [vmem:[%s10201_s22 + $0x1f4] ss:$8 sps:$4 sm:$0xff]   ;;  %v5055_v39 = vmax.f32 %v4762_v30, 0.0 }
0x1676   : > { %v8355_v42 = vld [vmem:[%s10201_s22 + $0x1f0] ss:$8 sps:$4 sm:$0xff]   ;;  %v8360_v17 = vld [vmem:[%s10201_s22 + $0x204] ss:$8 sps:$4 sm:$0xff]   ;;  %v5057_v44 = vmax.f32 %v4803_v34, 0.0 }
0x1677   : > { %v5072_v56 = vpack.c.bf16 %v5056_v16, %v5056_v16  ;;  %v5074_v20 = vpack.c.bf16 %v5058_v52, %v5058_v52  ;;  %6648 = vmatpush1.bf16.msra.mxu1 %v8298_v57  ;;  %v8363_v45 = vld [vmem:[%s10201_s22 + $0x304] ss:$8 sps:$4 sm:$0xff]   ;;  %v8358_v18 = vld [vmem:[%s10201_s22 + $0x200] ss:$8 sps:$4 sm:$0xff]   ;;  %v5071_v36 = vpack.c.bf16 %v5055_v39, %v5055_v39  ;;  %v8366_v46 = vld [vmem:[%s10201_s22 + $0x214] ss:$8 sps:$4 sm:$0xff]  }
0x1678   : > { %6689 = vmatpush1.bf16.msra.mxu0 %v8301_v15  ;;  %6649 = vmatprep.subr.bf16.mxu1 %v8306_v33  ;;  %v8361_v57 = vld [vmem:[%s10201_s22 + $0x300] ss:$8 sps:$4 sm:$0xff]   ;;  %v5073_v48 = vpack.c.bf16 %v5057_v44, %v5057_v44  ;;  %v8369_v15 = vld [vmem:[%s10201_s22 + $0x314] ss:$8 sps:$4 sm:$0xff]   ;;  %v8364_v33 = vld [vmem:[%s10201_s22 + $0x210] ss:$8 sps:$4 sm:$0xff]  }
0x1679   : > { %6667 = vmatprep.mubr.bf16.mxu1 %v5072_v56  ;;  %6690 = vmatprep.subr.bf16.mxu0 %v8309_v35  ;;  %v8367_v16 = vld [vmem:[%s10201_s22 + $0x310] ss:$8 sps:$4 sm:$0xff]   ;;  %v8372_v52 = vld [vmem:[%s10201_s22 + $0x224] ss:$8 sps:$4 sm:$0xff]   ;;  %v8370_v56 = vld [vmem:[%s10201_s22 + $0x220] ss:$8 sps:$4 sm:$0xff]  }
0x167a   : > { %6708 = vmatprep.mubr.bf16.mxu0 %v5074_v20  ;;  %v8375_v35 = vld [vmem:[%s10201_s22 + $0x324] ss:$8 sps:$4 sm:$0xff]   ;;  %v8373_v20 = vld [vmem:[%s10201_s22 + $0x320] ss:$8 sps:$4 sm:$0xff]  }
0x167b   : > { %6650 = vmatpush1.bf16.msra.mxu1 %v8304_v61  ;;  %v8378_v61 = vld [vmem:[%s10201_s22 + $0x234] ss:$8 sps:$4 sm:$0xff]   ;;  %v8394_v49 = vld [vmem:[%s10201_s22 + $0x260] ss:$8 sps:$4 sm:$0xff]   ;;  %v8408_v39 = vld [vmem:[%s10201_s22 + $0x284] ss:$8 sps:$4 sm:$0xff]  }
0x167c   : > { %6691 = vmatpush1.bf16.msra.mxu0 %v8307_v26  ;;  %6651 = vmatprep.subr.bf16.mxu1 %v8312_v21  ;;  %v8381_v26 = vld [vmem:[%s10201_s22 + $0x334] ss:$8 sps:$4 sm:$0xff]   ;;  %v8376_v21 = vld [vmem:[%s10201_s22 + $0x230] ss:$8 sps:$4 sm:$0xff]   ;;  %v8397_v58 = vld [vmem:[%s10201_s22 + $0x360] ss:$8 sps:$4 sm:$0xff]  }
0x167d   : > { %6692 = vmatprep.subr.bf16.mxu0 %v8315_v3  ;;  %v8379_v3 = vld [vmem:[%s10201_s22 + $0x330] ss:$8 sps:$4 sm:$0xff]   ;;  %v8409_v44 = vld [vmem:[%s10201_s22 + $0x380] ss:$8 sps:$4 sm:$0xff]  }
0x167f   : > { %6652 = vmatpush1.bf16.msra.mxu1 %v8310_v51  ;;  %v8384_v51 = vld [vmem:[%s10201_s22 + $0x244] ss:$8 sps:$4 sm:$0xff]  }
0x1680   : > { %6693 = vmatpush1.bf16.msra.mxu0 %v8313_v55  ;;  %6653 = vmatprep.subr.bf16.mxu1 %v8318_v59  ;;  %v8387_v55 = vld [vmem:[%s10201_s22 + $0x344] ss:$8 sps:$4 sm:$0xff]   ;;  %v8382_v59 = vld [vmem:[%s10201_s22 + $0x240] ss:$8 sps:$4 sm:$0xff]  }
0x1681   : > { %6694 = vmatprep.subr.bf16.mxu0 %v8321_v60  ;;  %v3397_v60 = vsub.s32 7, %v9152_v8 }
0x1683   : > { %6654 = vmatpush1.bf16.msra.mxu1 %v8316_v62  ;;  %v8385_v62 = vld [vmem:[%s10201_s22 + $0x340] ss:$8 sps:$4 sm:$0xff]  }
0x1684   : > { %6695 = vmatpush1.bf16.msra.mxu0 %v8319_v10  ;;  %6655 = vmatprep.subr.bf16.mxu1 %v8324_v0  ;;  %v8390_v10 = vld [vmem:[%s10201_s22 + $0x254] ss:$8 sps:$4 sm:$0xff]  }
0x1685   : > { %6696 = vmatprep.subr.bf16.mxu0 %v8327_v1  ;;  %v8393_v0 = vld [vmem:[%s10201_s22 + $0x354] ss:$8 sps:$4 sm:$0xff]   ;;  %v3390_v1 = vrot.slane %v9800_v27, %v9267_v43 }
0x1687   : > { %6656 = vmatpush1.bf16.msra.mxu1 %v8322_v2  ;;  %v3398_v2 = vrot.slane %v9800_v27, %v3397_v60 }
0x1688   : > { %6697 = vmatpush1.bf16.msra.mxu0 %v8325_v4  ;;  %6657 = vmatprep.subr.bf16.mxu1 %v8330_v7  ;;  %v8388_v4 = vld [vmem:[%s10201_s22 + $0x250] ss:$8 sps:$4 sm:$0xff]  }
0x1689   : > { %6698 = vmatprep.subr.bf16.mxu0 %v8333_v47  ;;  %v8391_v7 = vld [vmem:[%s10201_s22 + $0x350] ss:$8 sps:$4 sm:$0xff]   ;;  %v8396_v47 = vld [vmem:[%s10201_s22 + $0x264] ss:$8 sps:$4 sm:$0xff]  }
0x168b   : > { %6658 = vmatpush1.bf16.msra.mxu1 %v8328_v12 }
0x168c   : > { %6699 = vmatpush1.bf16.msra.mxu0 %v8331_v6  ;;  %6659 = vmatprep.subr.bf16.mxu1 %v8336_v13  ;;  %v8399_v13 = vld [vmem:[%s10201_s22 + $0x364] ss:$8 sps:$4 sm:$0xff]  }
0x168d   : > { %6700 = vmatprep.subr.bf16.mxu0 %v8339_v14 }
0x168f   : > { %6660 = vmatpush1.bf16.msra.mxu1 %v8334_v63 }
0x1690   : > { %6701 = vmatpush1.bf16.msra.mxu0 %v8337_v19  ;;  %6661 = vmatprep.subr.bf16.mxu1 %v8342_v22 }
0x1691   : > { %6702 = vmatprep.subr.bf16.mxu0 %v8345_v23 }
0x1693   : > { %6662 = vmatpush1.bf16.msra.mxu1 %v8340_v24 }
0x1694   : > { %6703 = vmatpush1.bf16.msra.mxu0 %v8343_v25  ;;  %6663 = vmatprep.subr.bf16.mxu1 %v8348_v50 }
0x1695   : > { %6704 = vmatprep.subr.bf16.mxu0 %v8351_v28  ;;  %v8402_v28 = vld [vmem:[%s10201_s22 + $0x274] ss:$8 sps:$4 sm:$0xff]  }
0x1697   : > { %6664 = vmatpush1.bf16.msra.mxu1 %v8346_v29 }
0x1698   : > { %6705 = vmatpush1.bf16.msra.mxu0 %v8349_v31  ;;  %6665 = vmatprep.subr.bf16.mxu1 %v8354_v32  ;;  %v8405_v31 = vld [vmem:[%s10201_s22 + $0x374] ss:$8 sps:$4 sm:$0xff]  }
0x1699   : > { %6706 = vmatprep.subr.bf16.mxu0 %v8357_v37  ;;  %v8400_v37 = vld [vmem:[%s10201_s22 + $0x270] ss:$8 sps:$4 sm:$0xff]  }
0x169b   : > { %6666 = vmatpush1.bf16.msra.mxu1 %v8352_v38  ;;  %v8403_v38 = vld [vmem:[%s10201_s22 + $0x370] ss:$8 sps:$4 sm:$0xff]  }
0x169c   : > { %6707 = vmatpush1.bf16.msra.mxu0 %v8355_v42  ;;  %6717 = vmatprep.subr.bf16.mxu1 %v8360_v17  ;;  %v8411_v42 = vld [vmem:[%s10201_s22 + $0x384] ss:$8 sps:$4 sm:$0xff]   ;;  %v8406_v17 = vld [vmem:[%s10201_s22 + $0x280] ss:$8 sps:$4 sm:$0xff]  }
0x169d   : > { %6758 = vmatprep.subr.bf16.mxu0 %v8363_v45  ;;  %v8414_v45 = vld [vmem:[%s10201_s22 + $0x294] ss:$8 sps:$4 sm:$0xff]  }
0x169e   : > { %6668 = vmatmul.mubr.bf16.vlgmr.msra.gmra.mrb[52].mxu1 %v5071_v36  ;;  %v8412_v36 = vld [vmem:[%s10201_s22 + $0x290] ss:$8 sps:$4 sm:$0xff]  }
0x169f   : > { %6709 = vmatmul.mubr.bf16.vlgmr.msra.gmra.mrb[28].mxu0 %v5073_v48  ;;  %6718 = vmatpush1.bf16.msra.mxu1 %v8358_v18  ;;  %v8417_v18 = vld [vmem:[%s10201_s22 + $0x394] ss:$8 sps:$4 sm:$0xff]   ;;  %v8423_v48 = vld [vmem:[%s10201_s22 + $0x3a4] ss:$8 sps:$4 sm:$0xff]  }
0x16a0   : > { %6759 = vmatpush1.bf16.msra.mxu0 %v8361_v57  ;;  %6719 = vmatprep.subr.bf16.mxu1 %v8366_v46  ;;  %v8415_v57 = vld [vmem:[%s10201_s22 + $0x390] ss:$8 sps:$4 sm:$0xff]   ;;  %v8420_v46 = vld [vmem:[%s10201_s22 + $0x2a4] ss:$8 sps:$4 sm:$0xff]  }
0x16a1   : > { %6760 = vmatprep.subr.bf16.mxu0 %v8369_v15  ;;  %v8418_v15 = vld [vmem:[%s10201_s22 + $0x2a0] ss:$8 sps:$4 sm:$0xff]  }
0x16a3   : > { %6720 = vmatpush1.bf16.msra.mxu1 %v8364_v33  ;;  %v8421_v33 = vld [vmem:[%s10201_s22 + $0x3a0] ss:$8 sps:$4 sm:$0xff]  }
0x16a4   : > { %6761 = vmatpush1.bf16.msra.mxu0 %v8367_v16  ;;  %6721 = vmatprep.subr.bf16.mxu1 %v8372_v52  ;;  %v8426_v16 = vld [vmem:[%s10201_s22 + $0x2b4] ss:$8 sps:$4 sm:$0xff]  }
0x16a5   : > { %6762 = vmatprep.subr.bf16.mxu0 %v8375_v35  ;;  %v8429_v52 = vld [vmem:[%s10201_s22 + $0x3b4] ss:$8 sps:$4 sm:$0xff]   ;;  %v8424_v35 = vld [vmem:[%s10201_s22 + $0x2b0] ss:$8 sps:$4 sm:$0xff]  }
0x16a7   : > { %6722 = vmatpush1.bf16.msra.mxu1 %v8370_v56  ;;  %v8427_v56 = vld [vmem:[%s10201_s22 + $0x3b0] ss:$8 sps:$4 sm:$0xff]  }
0x16a8   : > { %6763 = vmatpush1.bf16.msra.mxu0 %v8373_v20  ;;  %6723 = vmatprep.subr.bf16.mxu1 %v8378_v61  ;;  %v8432_v20 = vld [vmem:[%s10201_s22 + $0x2c4] ss:$8 sps:$4 sm:$0xff]  }
0x16a9   : > { %6764 = vmatprep.subr.bf16.mxu0 %v8381_v26  ;;  %v8435_v61 = vld [vmem:[%s10201_s22 + $0x3c4] ss:$8 sps:$4 sm:$0xff]   ;;  %v8430_v26 = vld [vmem:[%s10201_s22 + $0x2c0] ss:$8 sps:$4 sm:$0xff]  }
0x16ab   : > { %6724 = vmatpush1.bf16.msra.mxu1 %v8376_v21  ;;  %v8433_v21 = vld [vmem:[%s10201_s22 + $0x3c0] ss:$8 sps:$4 sm:$0xff]  }
0x16ac   : > { %6765 = vmatpush1.bf16.msra.mxu0 %v8379_v3  ;;  %6725 = vmatprep.subr.bf16.mxu1 %v8384_v51  ;;  %v8438_v3 = vld [vmem:[%s10201_s22 + $0x2d4] ss:$8 sps:$4 sm:$0xff]   ;;  %v3393_v51 = vsub.s32 6, %v9152_v8  ;;  %v8640_v8 = vld [vmem:[%s10201_s22 + $0x6f0] ss:$8 sps:$4 sm:$0xff]  }
0x16ad   : > { %6766 = vmatprep.subr.bf16.mxu0 %v8387_v55  ;;  %v8441_v55 = vld [vmem:[%s10201_s22 + $0x3d4] ss:$8 sps:$4 sm:$0xff]  }
0x16af   : > { %6726 = vmatpush1.bf16.msra.mxu1 %v8382_v59  ;;  %v8436_v59 = vld [vmem:[%s10201_s22 + $0x2d0] ss:$8 sps:$4 sm:$0xff]  }
0x16b0   : > { %6767 = vmatpush1.bf16.msra.mxu0 %v8385_v62  ;;  %6727 = vmatprep.subr.bf16.mxu1 %v8390_v10  ;;  %v3386_v62 = vrot.slane %v9800_v27, %v9232_v5  ;;  %v8439_v10 = vld [vmem:[%s10201_s22 + $0x3d0] ss:$8 sps:$4 sm:$0xff]  }
0x16b1   : > { %v9891_v12 = vpop.f32.mrb[40].mxu1  ;;  %v9893_v6 = vpop.f32.mrb[16].mxu0  ;;  %6768 = vmatprep.subr.bf16.mxu0 %v8393_v0  ;;  %v8444_v0 = vld [vmem:[%s10201_s22 + $0x2e4] ss:$8 sps:$4 sm:$0xff]  }
0x16b2   : > { %v4845_v14 = vpop.f32.mrb[41].mxu1  ;;  %v4886_v63 = vpop.f32.mrb[17].mxu0 }
0x16b3   : > { %v4846_v19 = vadd.f32 %v4845_v14, %v3390_v1  ;;  %v4887_v22 = vadd.f32 %v4886_v63, %v3398_v2  ;;  %v4847_v23 = vpop.f32.mrb[42].mxu1  ;;  %v4888_v24 = vpop.f32.mrb[18].mxu0  ;;  %6728 = vmatpush1.bf16.msra.mxu1 %v8388_v4  ;;  %v3394_v1 = vrot.slane %v9800_v27, %v3393_v51  ;;  %v8447_v2 = vld [vmem:[%s10201_s22 + $0x3e4] ss:$8 sps:$4 sm:$0xff]   ;;  %v8442_v4 = vld [vmem:[%s10201_s22 + $0x2e0] ss:$8 sps:$4 sm:$0xff]  }
0x16b4   : > { %6769 = vmatpush1.bf16.msra.mxu0 %v8391_v7  ;;  %v4848_v25 = vpop.f32.mrb[43].mxu1  ;;  %v4889_v50 = vpop.f32.mrb[19].mxu0  ;;  %6729 = vmatprep.subr.bf16.mxu1 %v8396_v47  ;;  %v4844_v7 = vadd.f32 %v9891_v12, %v3386_v62  ;;  %v8445_v47 = vld [vmem:[%s10201_s22 + $0x3e0] ss:$8 sps:$4 sm:$0xff]   ;;  %v8453_v63 = vld [vmem:[%s10201_s22 + $0x3f4] ss:$8 sps:$4 sm:$0xff]  }
0x16b5   : > { %v5060_v29 = vmax.f32 %v4846_v19, 0.0  ;;  %v5062_v30 = vmax.f32 %v4887_v22, 0.0  ;;  %6770 = vmatprep.subr.bf16.mxu0 %v8399_v13  ;;  %v8450_v13 = vld [vmem:[%s10201_s22 + $0x2f4] ss:$8 sps:$4 sm:$0xff]   ;;  %v4885_v14 = vadd.f32 %v9893_v6, %v3394_v1  ;;  %v8448_v27 = vld [vmem:[%s10201_s22 + $0x2f0] ss:$8 sps:$4 sm:$0xff]  }
0x16b6   : > { %v5059_v19 = vmax.f32 %v4844_v7, 0.0  ;;  %v8451_v22 = vld [vmem:[%s10201_s22 + $0x3f0] ss:$8 sps:$4 sm:$0xff]   ;;  %v8456_v12 = vld [vmem:[%s10201_s22 + $0x404] ss:$8 sps:$4 sm:$0xff]  }
0x16b7   : > { %v5076_v32 = vpack.c.bf16 %v5060_v29, %v5060_v29  ;;  %v5078_v34 = vpack.c.bf16 %v5062_v30, %v5062_v30  ;;  %6730 = vmatpush1.bf16.msra.mxu1 %v8394_v49  ;;  %v5061_v23 = vmax.f32 %v4885_v14, 0.0  ;;  %v8459_v24 = vld [vmem:[%s10201_s22 + $0x504] ss:$8 sps:$4 sm:$0xff]   ;;  %v8454_v49 = vld [vmem:[%s10201_s22 + $0x400] ss:$8 sps:$4 sm:$0xff]  }
0x16b8   : > { %6771 = vmatpush1.bf16.msra.mxu0 %v8397_v58  ;;  %6731 = vmatprep.subr.bf16.mxu1 %v8402_v28  ;;  %v5075_v6 = vpack.c.bf16 %v5059_v19, %v5059_v19  ;;  %v8457_v25 = vld [vmem:[%s10201_s22 + $0x500] ss:$8 sps:$4 sm:$0xff]   ;;  %v8462_v50 = vld [vmem:[%s10201_s22 + $0x414] ss:$8 sps:$4 sm:$0xff]   ;;  %v8460_v29 = vld [vmem:[%s10201_s22 + $0x410] ss:$8 sps:$4 sm:$0xff]  }
0x16b9   : > { %6749 = vmatprep.mubr.bf16.mxu1 %v5076_v32  ;;  %6790 = vmatprep.mubr.bf16.mxu0 %v5078_v34  ;;  %v5077_v58 = vpack.c.bf16 %v5061_v23, %v5061_v23  ;;  %v8465_v28 = vld [vmem:[%s10201_s22 + $0x514] ss:$8 sps:$4 sm:$0xff]   ;;  %v8463_v30 = vld [vmem:[%s10201_s22 + $0x510] ss:$8 sps:$4 sm:$0xff]   ;;  %v8471_v32 = vld [vmem:[%s10201_s22 + $0x524] ss:$8 sps:$4 sm:$0xff]  }
0x16ba   : > { %6772 = vmatprep.subr.bf16.mxu0 %v8405_v31  ;;  %v8468_v31 = vld [vmem:[%s10201_s22 + $0x424] ss:$8 sps:$4 sm:$0xff]   ;;  %v8466_v34 = vld [vmem:[%s10201_s22 + $0x420] ss:$8 sps:$4 sm:$0xff]   ;;  %v8498_v1 = vld [vmem:[%s10201_s22 + $0x474] ss:$8 sps:$4 sm:$0xff]  }
0x16bb   : > { %6732 = vmatpush1.bf16.msra.mxu1 %v8400_v37  ;;  %v8469_v37 = vld [vmem:[%s10201_s22 + $0x520] ss:$8 sps:$4 sm:$0xff]   ;;  %v8501_v7 = vld [vmem:[%s10201_s22 + $0x574] ss:$8 sps:$4 sm:$0xff]   ;;  %v8496_v14 = vld [vmem:[%s10201_s22 + $0x470] ss:$8 sps:$4 sm:$0xff]  }
0x16bc   : > { %6773 = vmatpush1.bf16.msra.mxu0 %v8403_v38  ;;  %6733 = vmatprep.subr.bf16.mxu1 %v8408_v39  ;;  %v8474_v38 = vld [vmem:[%s10201_s22 + $0x434] ss:$8 sps:$4 sm:$0xff]   ;;  %v8504_v19 = vld [vmem:[%s10201_s22 + $0x484] ss:$8 sps:$4 sm:$0xff]   ;;  %v8505_v23 = vld [vmem:[%s10201_s22 + $0x580] ss:$8 sps:$4 sm:$0xff]  }
0x16bd   : > { %6774 = vmatprep.subr.bf16.mxu0 %v8411_v42  ;;  %v8477_v39 = vld [vmem:[%s10201_s22 + $0x534] ss:$8 sps:$4 sm:$0xff]   ;;  %v8472_v42 = vld [vmem:[%s10201_s22 + $0x430] ss:$8 sps:$4 sm:$0xff]  }
0x16bf   : > { %6734 = vmatpush1.bf16.msra.mxu1 %v8406_v17  ;;  %v8475_v17 = vld [vmem:[%s10201_s22 + $0x530] ss:$8 sps:$4 sm:$0xff]  }
0x16c0   : > { %6775 = vmatpush1.bf16.msra.mxu0 %v8409_v44  ;;  %6735 = vmatprep.subr.bf16.mxu1 %v8414_v45  ;;  %v8480_v44 = vld [vmem:[%s10201_s22 + $0x444] ss:$8 sps:$4 sm:$0xff]  }
0x16c1   : > { %6776 = vmatprep.subr.bf16.mxu0 %v8417_v18  ;;  %v8483_v45 = vld [vmem:[%s10201_s22 + $0x544] ss:$8 sps:$4 sm:$0xff]   ;;  %v8478_v18 = vld [vmem:[%s10201_s22 + $0x440] ss:$8 sps:$4 sm:$0xff]  }
0x16c3   : > { %6736 = vmatpush1.bf16.msra.mxu1 %v8412_v36  ;;  %v8481_v36 = vld [vmem:[%s10201_s22 + $0x540] ss:$8 sps:$4 sm:$0xff]  }
0x16c4   : > { %6777 = vmatpush1.bf16.msra.mxu0 %v8415_v57  ;;  %6737 = vmatprep.subr.bf16.mxu1 %v8420_v46  ;;  %v9963_v57 = vld [vmem:[%s9048_s19 + $0x8] sm:$0xff]  ;;  %v8486_v46 = vld [vmem:[%s10201_s22 + $0x454] ss:$8 sps:$4 sm:$0xff]  }
0x16c5   : > { %6778 = vmatprep.subr.bf16.mxu0 %v8423_v48  ;;  %v8489_v48 = vld [vmem:[%s10201_s22 + $0x554] ss:$8 sps:$4 sm:$0xff]  }
0x16c7   : > { %6738 = vmatpush1.bf16.msra.mxu1 %v8418_v15  ;;  %v3406_v15 = vrot.slane %v9963_v57, %v9262_v41 }
0x16c8   : > { %6779 = vmatpush1.bf16.msra.mxu0 %v8421_v33  ;;  %6739 = vmatprep.subr.bf16.mxu1 %v8426_v16  ;;  %v8484_v33 = vld [vmem:[%s10201_s22 + $0x450] ss:$8 sps:$4 sm:$0xff]   ;;  %v3414_v16 = vrot.slane %v9963_v57, %v9259_v40 }
0x16c9   : > { %6780 = vmatprep.subr.bf16.mxu0 %v8429_v52  ;;  %v8487_v52 = vld [vmem:[%s10201_s22 + $0x550] ss:$8 sps:$4 sm:$0xff]  }
0x16cb   : > { %6740 = vmatpush1.bf16.msra.mxu1 %v8424_v35  ;;  %v8492_v35 = vld [vmem:[%s10201_s22 + $0x464] ss:$8 sps:$4 sm:$0xff]  }
0x16cc   : > { %6781 = vmatpush1.bf16.msra.mxu0 %v8427_v56  ;;  %6741 = vmatprep.subr.bf16.mxu1 %v8432_v20  ;;  %v8495_v20 = vld [vmem:[%s10201_s22 + $0x564] ss:$8 sps:$4 sm:$0xff]  }
0x16cd   : > { %6782 = vmatprep.subr.bf16.mxu0 %v8435_v61 }
0x16cf   : > { %6742 = vmatpush1.bf16.msra.mxu1 %v8430_v26 }
0x16d0   : > { %6783 = vmatpush1.bf16.msra.mxu0 %v8433_v21  ;;  %6743 = vmatprep.subr.bf16.mxu1 %v8438_v3 }
0x16d1   : > { %6784 = vmatprep.subr.bf16.mxu0 %v8441_v55 }
0x16d3   : > { %6744 = vmatpush1.bf16.msra.mxu1 %v8436_v59  ;;  %v8490_v59 = vld [vmem:[%s10201_s22 + $0x460] ss:$8 sps:$4 sm:$0xff]  }
0x16d4   : > { %6785 = vmatpush1.bf16.msra.mxu0 %v8439_v10  ;;  %6745 = vmatprep.subr.bf16.mxu1 %v8444_v0  ;;  %v8493_v0 = vld [vmem:[%s10201_s22 + $0x560] ss:$8 sps:$4 sm:$0xff]  }
0x16d5   : > { %6786 = vmatprep.subr.bf16.mxu0 %v8447_v2 }
0x16d7   : > { %6746 = vmatpush1.bf16.msra.mxu1 %v8442_v4 }
0x16d8   : > { %6787 = vmatpush1.bf16.msra.mxu0 %v8445_v47  ;;  %6747 = vmatprep.subr.bf16.mxu1 %v8450_v13 }
0x16d9   : > { %6788 = vmatprep.subr.bf16.mxu0 %v8453_v63 }
0x16db   : > { %6748 = vmatpush1.bf16.msra.mxu1 %v8448_v27  ;;  %v8499_v27 = vld [vmem:[%s10201_s22 + $0x570] ss:$8 sps:$4 sm:$0xff]  }
0x16dc   : > { %6789 = vmatpush1.bf16.msra.mxu0 %v8451_v22  ;;  %6799 = vmatprep.subr.bf16.mxu1 %v8456_v12  ;;  %v8507_v22 = vld [vmem:[%s10201_s22 + $0x584] ss:$8 sps:$4 sm:$0xff]   ;;  %v8502_v12 = vld [vmem:[%s10201_s22 + $0x480] ss:$8 sps:$4 sm:$0xff]  }
0x16dd   : > { %6840 = vmatprep.subr.bf16.mxu0 %v8459_v24  ;;  %v8510_v24 = vld [vmem:[%s10201_s22 + $0x494] ss:$8 sps:$4 sm:$0xff]  }
0x16de   : > { %6750 = vmatmul.mubr.bf16.vlgmr.msra.gmra.mrb[56].mxu1 %v5075_v6  ;;  %v8508_v6 = vld [vmem:[%s10201_s22 + $0x490] ss:$8 sps:$4 sm:$0xff]  }
0x16df   : > { %6791 = vmatmul.mubr.bf16.vlgmr.msra.gmra.mrb[32].mxu0 %v5077_v58  ;;  %6800 = vmatpush1.bf16.msra.mxu1 %v8454_v49  ;;  %v8513_v49 = vld [vmem:[%s10201_s22 + $0x594] ss:$8 sps:$4 sm:$0xff]   ;;  %v8519_v58 = vld [vmem:[%s10201_s22 + $0x5a4] ss:$8 sps:$4 sm:$0xff]  }
0x16e0   : > { %6841 = vmatpush1.bf16.msra.mxu0 %v8457_v25  ;;  %6801 = vmatprep.subr.bf16.mxu1 %v8462_v50  ;;  %v8511_v25 = vld [vmem:[%s10201_s22 + $0x590] ss:$8 sps:$4 sm:$0xff]   ;;  %v8516_v50 = vld [vmem:[%s10201_s22 + $0x4a4] ss:$8 sps:$4 sm:$0xff]  }
0x16e1   : > { %6842 = vmatprep.subr.bf16.mxu0 %v8465_v28  ;;  %v8514_v28 = vld [vmem:[%s10201_s22 + $0x4a0] ss:$8 sps:$4 sm:$0xff]  }
0x16e3   : > { %6802 = vmatpush1.bf16.msra.mxu1 %v8460_v29  ;;  %v8517_v29 = vld [vmem:[%s10201_s22 + $0x5a0] ss:$8 sps:$4 sm:$0xff]  }
0x16e4   : > { %6843 = vmatpush1.bf16.msra.mxu0 %v8463_v30  ;;  %6803 = vmatprep.subr.bf16.mxu1 %v8468_v31  ;;  %v8522_v30 = vld [vmem:[%s10201_s22 + $0x4b4] ss:$8 sps:$4 sm:$0xff]  }
0x16e5   : > { %6844 = vmatprep.subr.bf16.mxu0 %v8471_v32  ;;  %v8525_v31 = vld [vmem:[%s10201_s22 + $0x5b4] ss:$8 sps:$4 sm:$0xff]   ;;  %v8520_v32 = vld [vmem:[%s10201_s22 + $0x4b0] ss:$8 sps:$4 sm:$0xff]  }
0x16e7   : > { %6804 = vmatpush1.bf16.msra.mxu1 %v8466_v34  ;;  %v8523_v34 = vld [vmem:[%s10201_s22 + $0x5b0] ss:$8 sps:$4 sm:$0xff]  }
0x16e8   : > { %6845 = vmatpush1.bf16.msra.mxu0 %v8469_v37  ;;  %6805 = vmatprep.subr.bf16.mxu1 %v8474_v38  ;;  %v8528_v37 = vld [vmem:[%s10201_s22 + $0x4c4] ss:$8 sps:$4 sm:$0xff]  }
0x16e9   : > { %6846 = vmatprep.subr.bf16.mxu0 %v8477_v39  ;;  %v8531_v38 = vld [vmem:[%s10201_s22 + $0x5c4] ss:$8 sps:$4 sm:$0xff]   ;;  %v8526_v39 = vld [vmem:[%s10201_s22 + $0x4c0] ss:$8 sps:$4 sm:$0xff]  }
0x16eb   : > { %6806 = vmatpush1.bf16.msra.mxu1 %v8472_v42  ;;  %v8529_v42 = vld [vmem:[%s10201_s22 + $0x5c0] ss:$8 sps:$4 sm:$0xff]  }
0x16ec   : > { %6847 = vmatpush1.bf16.msra.mxu0 %v8475_v17  ;;  %6807 = vmatprep.subr.bf16.mxu1 %v8480_v44  ;;  %v8534_v17 = vld [vmem:[%s10201_s22 + $0x4d4] ss:$8 sps:$4 sm:$0xff]  }
0x16ed   : > { %6848 = vmatprep.subr.bf16.mxu0 %v8483_v45  ;;  %v8537_v44 = vld [vmem:[%s10201_s22 + $0x5d4] ss:$8 sps:$4 sm:$0xff]   ;;  %v8532_v45 = vld [vmem:[%s10201_s22 + $0x4d0] ss:$8 sps:$4 sm:$0xff]  }
0x16ef   : > { %6808 = vmatpush1.bf16.msra.mxu1 %v8478_v18  ;;  %v3402_v18 = vrot.slane %v9963_v57, %v9161_v11 }
0x16f0   : > { %6849 = vmatpush1.bf16.msra.mxu0 %v8481_v36  ;;  %6809 = vmatprep.subr.bf16.mxu1 %v8486_v46  ;;  %v8535_v36 = vld [vmem:[%s10201_s22 + $0x5d0] ss:$8 sps:$4 sm:$0xff]   ;;  %v8540_v46 = vld [vmem:[%s10201_s22 + $0x4e4] ss:$8 sps:$4 sm:$0xff]  }
0x16f1   : > { %v9974_v56 = vpop.f32.mrb[44].mxu1  ;;  %6850 = vmatprep.subr.bf16.mxu0 %v8489_v48  ;;  %v3410_v48 = vrot.slane %v9963_v57, %v9155_v9  ;;  %v8544_v9 = vld [vmem:[%s10201_s22 + $0x4f0] ss:$8 sps:$4 sm:$0xff]  }
0x16f2   : > { %v9977_v61 = vpop.f32.mrb[20].mxu0  ;;  %v4927_v26 = vpop.f32.mrb[45].mxu1 }
0x16f3   : > { %v4928_v21 = vadd.f32 %v4927_v26, %v3406_v15  ;;  %v4968_v3 = vpop.f32.mrb[21].mxu0  ;;  %v4929_v55 = vpop.f32.mrb[46].mxu1  ;;  %6810 = vmatpush1.bf16.msra.mxu1 %v8484_v33  ;;  %v8543_v15 = vld [vmem:[%s10201_s22 + $0x5e4] ss:$8 sps:$4 sm:$0xff]   ;;  %v8538_v33 = vld [vmem:[%s10201_s22 + $0x4e0] ss:$8 sps:$4 sm:$0xff]  }
0x16f4   : > { %v4969_v40 = vadd.f32 %v4968_v3, %v3414_v16  ;;  %v4970_v62 = vpop.f32.mrb[22].mxu0  ;;  %6851 = vmatpush1.bf16.msra.mxu0 %v8487_v52  ;;  %v4930_v10 = vpop.f32.mrb[47].mxu1  ;;  %6811 = vmatprep.subr.bf16.mxu1 %v8492_v35  ;;  %v4926_v16 = vadd.f32 %v9974_v56, %v3402_v18  ;;  %v8541_v52 = vld [vmem:[%s10201_s22 + $0x5e0] ss:$8 sps:$4 sm:$0xff]   ;;  %v8546_v35 = vld [vmem:[%s10201_s22 + $0x4f4] ss:$8 sps:$4 sm:$0xff]  }
0x16f5   : > { %v5064_v2 = vmax.f32 %v4928_v21, 0.0  ;;  %v4971_v4 = vpop.f32.mrb[23].mxu0  ;;  %6852 = vmatprep.subr.bf16.mxu0 %v8495_v20  ;;  %v4967_v20 = vadd.f32 %v9977_v61, %v3410_v48  ;;  %v8549_v26 = vld [vmem:[%s10201_s22 + $0x5f4] ss:$8 sps:$4 sm:$0xff]   ;;  %v8547_v3 = vld [vmem:[%s10201_s22 + $0x5f0] ss:$8 sps:$4 sm:$0xff]  }
0x16f6   : > { %v5066_v47 = vmax.f32 %v4969_v40, 0.0  ;;  %v5063_v21 = vmax.f32 %v4926_v16, 0.0  ;;  %v8552_v56 = vld [vmem:[%s10201_s22 + $0x604] ss:$8 sps:$4 sm:$0xff]   ;;  %v8550_v40 = vld [vmem:[%s10201_s22 + $0x600] ss:$8 sps:$4 sm:$0xff]  }
0x16f7   : > { %v5080_v13 = vpack.c.bf16 %v5064_v2, %v5064_v2  ;;  %6812 = vmatpush1.bf16.msra.mxu1 %v8490_v59  ;;  %v5065_v55 = vmax.f32 %v4967_v20, 0.0  ;;  %v8555_v59 = vld [vmem:[%s10201_s22 + $0x704] ss:$8 sps:$4 sm:$0xff]   ;;  %v8553_v62 = vld [vmem:[%s10201_s22 + $0x700] ss:$8 sps:$4 sm:$0xff]  }
0x16f8   : > { %v5082_v63 = vpack.c.bf16 %v5066_v47, %v5066_v47  ;;  %6853 = vmatpush1.bf16.msra.mxu0 %v8493_v0  ;;  %6813 = vmatprep.subr.bf16.mxu1 %v8498_v1  ;;  %v5079_v61 = vpack.c.bf16 %v5063_v21, %v5063_v21  ;;  %v8558_v10 = vld [vmem:[%s10201_s22 + $0x614] ss:$8 sps:$4 sm:$0xff]   ;;  %v8556_v2 = vld [vmem:[%s10201_s22 + $0x610] ss:$8 sps:$4 sm:$0xff]   ;;  %v8567_v47 = vld [vmem:[%s10201_s22 + $0x724] ss:$8 sps:$4 sm:$0xff]  }
0x16f9   : > { %6831 = vmatprep.mubr.bf16.mxu1 %v5080_v13  ;;  %6854 = vmatprep.subr.bf16.mxu0 %v8501_v7  ;;  %v5081_v0 = vpack.c.bf16 %v5065_v55, %v5065_v55  ;;  %v8561_v1 = vld [vmem:[%s10201_s22 + $0x714] ss:$8 sps:$4 sm:$0xff]   ;;  %v8559_v4 = vld [vmem:[%s10201_s22 + $0x710] ss:$8 sps:$4 sm:$0xff]   ;;  %v8564_v7 = vld [vmem:[%s10201_s22 + $0x624] ss:$8 sps:$4 sm:$0xff]  }
0x16fa   : > { %6872 = vmatprep.mubr.bf16.mxu0 %v5082_v63  ;;  %v8562_v13 = vld [vmem:[%s10201_s22 + $0x620] ss:$8 sps:$4 sm:$0xff]   ;;  %v8570_v63 = vld [vmem:[%s10201_s22 + $0x634] ss:$8 sps:$4 sm:$0xff]   ;;  %v8592_v16 = vld [vmem:[%s10201_s22 + $0x670] ss:$8 sps:$4 sm:$0xff]  }
0x16fb   : > { %6814 = vmatpush1.bf16.msra.mxu1 %v8496_v14  ;;  %v8565_v14 = vld [vmem:[%s10201_s22 + $0x720] ss:$8 sps:$4 sm:$0xff]   ;;  %v8594_v18 = vld [vmem:[%s10201_s22 + $0x674] ss:$8 sps:$4 sm:$0xff]   ;;  %v8600_v20 = vld [vmem:[%s10201_s22 + $0x684] ss:$8 sps:$4 sm:$0xff]  }
0x16fc   : > { %6855 = vmatpush1.bf16.msra.mxu0 %v8499_v27  ;;  %6815 = vmatprep.subr.bf16.mxu1 %v8504_v19  ;;  %v8573_v27 = vld [vmem:[%s10201_s22 + $0x734] ss:$8 sps:$4 sm:$0xff]   ;;  %v8568_v19 = vld [vmem:[%s10201_s22 + $0x630] ss:$8 sps:$4 sm:$0xff]   ;;  %v8601_v21 = vld [vmem:[%s10201_s22 + $0x780] ss:$8 sps:$4 sm:$0xff]  }
0x16fd   : > { %6856 = vmatprep.subr.bf16.mxu0 %v8507_v22  ;;  %v8571_v22 = vld [vmem:[%s10201_s22 + $0x730] ss:$8 sps:$4 sm:$0xff]   ;;  %v8597_v48 = vld [vmem:[%s10201_s22 + $0x774] ss:$8 sps:$4 sm:$0xff]  }
0x16fe   : > { %v8604_v55 = vld [vmem:[%s10201_s22 + $0x690] ss:$8 sps:$4 sm:$0xff]  }
0x16ff   : > { %6816 = vmatpush1.bf16.msra.mxu1 %v8502_v12  ;;  %v8576_v12 = vld [vmem:[%s10201_s22 + $0x644] ss:$8 sps:$4 sm:$0xff]  }
0x1700   : > { %6857 = vmatpush1.bf16.msra.mxu0 %v8505_v23  ;;  %6817 = vmatprep.subr.bf16.mxu1 %v8510_v24  ;;  %v8579_v23 = vld [vmem:[%s10201_s22 + $0x744] ss:$8 sps:$4 sm:$0xff]   ;;  %v8574_v24 = vld [vmem:[%s10201_s22 + $0x640] ss:$8 sps:$4 sm:$0xff]  }
0x1701   : > { %6858 = vmatprep.subr.bf16.mxu0 %v8513_v49  ;;  %v8577_v49 = vld [vmem:[%s10201_s22 + $0x740] ss:$8 sps:$4 sm:$0xff]  }
0x1703   : > { %6818 = vmatpush1.bf16.msra.mxu1 %v8508_v6  ;;  %v8582_v6 = vld [vmem:[%s10201_s22 + $0x654] ss:$8 sps:$4 sm:$0xff]  }
0x1704   : > { %6859 = vmatpush1.bf16.msra.mxu0 %v8511_v25  ;;  %6819 = vmatprep.subr.bf16.mxu1 %v8516_v50  ;;  %v8585_v25 = vld [vmem:[%s10201_s22 + $0x754] ss:$8 sps:$4 sm:$0xff]   ;;  %v3422_v50 = vrot.slane %v9963_v57, %v9267_v43 }
0x1705   : > { %6860 = vmatprep.subr.bf16.mxu0 %v8519_v58  ;;  %v8580_v58 = vld [vmem:[%s10201_s22 + $0x650] ss:$8 sps:$4 sm:$0xff]  }
0x1707   : > { %6820 = vmatpush1.bf16.msra.mxu1 %v8514_v28  ;;  %v3430_v28 = vrot.slane %v9963_v57, %v3397_v60 }
0x1708   : > { %6861 = vmatpush1.bf16.msra.mxu0 %v8517_v29  ;;  %6821 = vmatprep.subr.bf16.mxu1 %v8522_v30  ;;  %v8583_v29 = vld [vmem:[%s10201_s22 + $0x750] ss:$8 sps:$4 sm:$0xff]   ;;  %v8588_v30 = vld [vmem:[%s10201_s22 + $0x664] ss:$8 sps:$4 sm:$0xff]  }
0x1709   : > { %6862 = vmatprep.subr.bf16.mxu0 %v8525_v31 }
0x170b   : > { %6822 = vmatpush1.bf16.msra.mxu1 %v8520_v32  ;;  %v8591_v32 = vld [vmem:[%s10201_s22 + $0x764] ss:$8 sps:$4 sm:$0xff]  }
0x170c   : > { %6863 = vmatpush1.bf16.msra.mxu0 %v8523_v34  ;;  %6823 = vmatprep.subr.bf16.mxu1 %v8528_v37 }
0x170d   : > { %6864 = vmatprep.subr.bf16.mxu0 %v8531_v38 }
0x170f   : > { %6824 = vmatpush1.bf16.msra.mxu1 %v8526_v39 }
0x1710   : > { %6865 = vmatpush1.bf16.msra.mxu0 %v8529_v42  ;;  %6825 = vmatprep.subr.bf16.mxu1 %v8534_v17  ;;  %v8586_v42 = vld [vmem:[%s10201_s22 + $0x660] ss:$8 sps:$4 sm:$0xff]  }
0x1711   : > { %6866 = vmatprep.subr.bf16.mxu0 %v8537_v44 }
0x1713   : > { %6826 = vmatpush1.bf16.msra.mxu1 %v8532_v45  ;;  %v8589_v45 = vld [vmem:[%s10201_s22 + $0x760] ss:$8 sps:$4 sm:$0xff]  }
0x1714   : > { %6867 = vmatpush1.bf16.msra.mxu0 %v8535_v36  ;;  %6827 = vmatprep.subr.bf16.mxu1 %v8540_v46 }
0x1715   : > { %6868 = vmatprep.subr.bf16.mxu0 %v8543_v15 }
0x1717   : > { %6828 = vmatpush1.bf16.msra.mxu1 %v8538_v33 }
0x1718   : > { %6869 = vmatpush1.bf16.msra.mxu0 %v8541_v52  ;;  %6829 = vmatprep.subr.bf16.mxu1 %v8546_v35  ;;  %v8595_v35 = vld [vmem:[%s10201_s22 + $0x770] ss:$8 sps:$4 sm:$0xff]  }
0x1719   : > { %6870 = vmatprep.subr.bf16.mxu0 %v8549_v26  ;;  %v8603_v26 = vld [vmem:[%s10201_s22 + $0x784] ss:$8 sps:$4 sm:$0xff]  }
0x171b   : > { %6830 = vmatpush1.bf16.msra.mxu1 %v8544_v9  ;;  %v8598_v9 = vld [vmem:[%s10201_s22 + $0x680] ss:$8 sps:$4 sm:$0xff]  }
0x171c   : > { %6871 = vmatpush1.bf16.msra.mxu0 %v8547_v3  ;;  %6881 = vmatprep.subr.bf16.mxu1 %v8552_v56  ;;  %v8606_v3 = vld [vmem:[%s10201_s22 + $0x694] ss:$8 sps:$4 sm:$0xff]  }
0x171d   : > { %6922 = vmatprep.subr.bf16.mxu0 %v8555_v59  ;;  %v8609_v56 = vld [vmem:[%s10201_s22 + $0x794] ss:$8 sps:$4 sm:$0xff]   ;;  %v8607_v59 = vld [vmem:[%s10201_s22 + $0x790] ss:$8 sps:$4 sm:$0xff]  }
0x171e   : > { %6832 = vmatmul.mubr.bf16.vlgmr.msra.gmra.mrb[60].mxu1 %v5079_v61  ;;  %v8615_v61 = vld [vmem:[%s10201_s22 + $0x7a4] ss:$8 sps:$4 sm:$0xff]  }
0x171f   : > { %6873 = vmatmul.mubr.bf16.vlgmr.msra.gmra.mrb[36].mxu0 %v5081_v0  ;;  %6882 = vmatpush1.bf16.msra.mxu1 %v8550_v40  ;;  %v8612_v40 = vld [vmem:[%s10201_s22 + $0x6a4] ss:$8 sps:$4 sm:$0xff]   ;;  %v8618_v0 = vld [vmem:[%s10201_s22 + $0x6b4] ss:$8 sps:$4 sm:$0xff]  }
0x1720   : > { %6923 = vmatpush1.bf16.msra.mxu0 %v8553_v62  ;;  %6883 = vmatprep.subr.bf16.mxu1 %v8558_v10  ;;  %v8610_v62 = vld [vmem:[%s10201_s22 + $0x6a0] ss:$8 sps:$4 sm:$0xff]  }
0x1721   : > { %6924 = vmatprep.subr.bf16.mxu0 %v8561_v1  ;;  %v8613_v10 = vld [vmem:[%s10201_s22 + $0x7a0] ss:$8 sps:$4 sm:$0xff]   ;;  %v8621_v1 = vld [vmem:[%s10201_s22 + $0x7b4] ss:$8 sps:$4 sm:$0xff]  }
0x1723   : > { %6884 = vmatpush1.bf16.msra.mxu1 %v8556_v2  ;;  %v8616_v2 = vld [vmem:[%s10201_s22 + $0x6b0] ss:$8 sps:$4 sm:$0xff]  }
0x1724   : > { %6925 = vmatpush1.bf16.msra.mxu0 %v8559_v4  ;;  %6885 = vmatprep.subr.bf16.mxu1 %v8564_v7  ;;  %v8619_v4 = vld [vmem:[%s10201_s22 + $0x7b0] ss:$8 sps:$4 sm:$0xff]   ;;  %v8624_v7 = vld [vmem:[%s10201_s22 + $0x6c4] ss:$8 sps:$4 sm:$0xff]  }
0x1725   : > { %6926 = vmatprep.subr.bf16.mxu0 %v8567_v47  ;;  %v8627_v47 = vld [vmem:[%s10201_s22 + $0x7c4] ss:$8 sps:$4 sm:$0xff]  }
0x1727   : > { %6886 = vmatpush1.bf16.msra.mxu1 %v8562_v13  ;;  %v8622_v13 = vld [vmem:[%s10201_s22 + $0x6c0] ss:$8 sps:$4 sm:$0xff]  }
0x1728   : > { %6927 = vmatpush1.bf16.msra.mxu0 %v8565_v14  ;;  %6887 = vmatprep.subr.bf16.mxu1 %v8570_v63  ;;  %v8625_v14 = vld [vmem:[%s10201_s22 + $0x7c0] ss:$8 sps:$4 sm:$0xff]   ;;  %v8630_v63 = vld [vmem:[%s10201_s22 + $0x6d4] ss:$8 sps:$4 sm:$0xff]  }
0x1729   : > { %6928 = vmatprep.subr.bf16.mxu0 %v8573_v27  ;;  %v8633_v27 = vld [vmem:[%s10201_s22 + $0x7d4] ss:$8 sps:$4 sm:$0xff]  }
0x172b   : > { %6888 = vmatpush1.bf16.msra.mxu1 %v8568_v19  ;;  %v8628_v19 = vld [vmem:[%s10201_s22 + $0x6d0] ss:$8 sps:$4 sm:$0xff]  }
0x172c   : > { %6929 = vmatpush1.bf16.msra.mxu0 %v8571_v22  ;;  %6889 = vmatprep.subr.bf16.mxu1 %v8576_v12  ;;  %v3418_v22 = vrot.slane %v9963_v57, %v9232_v5  ;;  %v8631_v12 = vld [vmem:[%s10201_s22 + $0x7d0] ss:$8 sps:$4 sm:$0xff]   ;;  %v8637_v5 = vld [vmem:[%s10201_s22 + $0x7e0] ss:$8 sps:$4 sm:$0xff]  }
0x172d   : > { %6930 = vmatprep.subr.bf16.mxu0 %v8579_v23  ;;  %v8636_v23 = vld [vmem:[%s10201_s22 + $0x6e4] ss:$8 sps:$4 sm:$0xff]  }
0x172f   : > { %6890 = vmatpush1.bf16.msra.mxu1 %v8574_v24  ;;  %v3426_v24 = vrot.slane %v9963_v57, %v3393_v51  ;;  %v8643_v51 = vld [vmem:[%s10201_s22 + $0x7f0] ss:$8 sps:$4 sm:$0xff]  }
0x1730   : > { %6931 = vmatpush1.bf16.msra.mxu0 %v8577_v49  ;;  %6891 = vmatprep.subr.bf16.mxu1 %v8582_v6  ;;  %v8639_v49 = vld [vmem:[%s10201_s22 + $0x7e4] ss:$8 sps:$4 sm:$0xff]   ;;  %v8634_v6 = vld [vmem:[%s10201_s22 + $0x6e0] ss:$8 sps:$4 sm:$0xff]  }
0x1731   : > { %v10053_v31 = vpop.f32.mrb[48].mxu1  ;;  %6932 = vmatprep.subr.bf16.mxu0 %v8585_v25 }
0x1732   : > { %v10056_v34 = vpop.f32.mrb[24].mxu0  ;;  %v5009_v37 = vpop.f32.mrb[49].mxu1  ;;  %v5008_v25 = vadd.f32 %v10053_v31, %v3418_v22 }
0x1733   : > { %v5010_v43 = vadd.f32 %v5009_v37, %v3422_v50  ;;  %v5050_v38 = vpop.f32.mrb[25].mxu0  ;;  %v5011_v39 = vpop.f32.mrb[50].mxu1  ;;  %6892 = vmatpush1.bf16.msra.mxu1 %v8580_v58  ;;  %v8642_v50 = vld [vmem:[%s10201_s22 + $0x6f4] ss:$8 sps:$4 sm:$0xff]   ;;  %v5049_v58 = vadd.f32 %v10056_v34, %v3426_v24 }
0x1734   : > { %v5051_v60 = vadd.f32 %v5050_v38, %v3430_v28  ;;  %v5052_v17 = vpop.f32.mrb[26].mxu0  ;;  %6933 = vmatpush1.bf16.msra.mxu0 %v8583_v29  ;;  %v5012_v44 = vpop.f32.mrb[51].mxu1  ;;  %6893 = vmatprep.subr.bf16.mxu1 %v8588_v30  ;;  %v8645_v28 = vld [vmem:[%s10201_s22 + $0x7f4] ss:$8 sps:$4 sm:$0xff]   ;;  %v5067_v29 = vmax.f32 %v5008_v25, 0.0 }
0x1735   : > { %v5068_v36 = vmax.f32 %v5010_v43, 0.0  ;;  %v5053_v46 = vpop.f32.mrb[27].mxu0  ;;  %6934 = vmatprep.subr.bf16.mxu0 %v8591_v32  ;;  %v5069_v57 = vmax.f32 %v5049_v58, 0.0  ;;  %v5343_v32 = vld [vmem:[%s680_s26] sm:$0x3] }
0x1736   : > { %v5070_v15 = vmax.f32 %v5051_v60, 0.0  ;;  %v5083_v30 = vpack.c.bf16 %v5067_v29, %v5067_v29  ;;  %v5348_v34 = vrot.slane %v5343_v32, %v9161_v11  ;;  %v5352_v37 = vrot.slane %v5343_v32, %v9262_v41 }
0x1737   : > { %v5084_v33 = vpack.c.bf16 %v5068_v36, %v5068_v36  ;;  %6894 = vmatpush1.bf16.msra.mxu1 %v8586_v42  ;;  %v5085_v31 = vpack.c.bf16 %v5069_v57, %v5069_v57 }
0x1738   : > { %v5086_v52 = vpack.c.bf16 %v5070_v15, %v5070_v15  ;;  %6935 = vmatpush1.bf16.msra.mxu0 %v8589_v45  ;;  %6895 = vmatprep.subr.bf16.mxu1 %v8594_v18 }
0x1739   : > { %6913 = vmatprep.mubr.bf16.mxu1 %v5084_v33  ;;  %6936 = vmatprep.subr.bf16.mxu0 %v8597_v48 }
0x173a   : > { %6954 = vmatprep.mubr.bf16.mxu0 %v5086_v52 }
0x173b   : > { %6896 = vmatpush1.bf16.msra.mxu1 %v8592_v16 }
0x173c   : > { %6937 = vmatpush1.bf16.msra.mxu0 %v8595_v35  ;;  %6897 = vmatprep.subr.bf16.mxu1 %v8600_v20 }
0x173d   : > { %6938 = vmatprep.subr.bf16.mxu0 %v8603_v26 }
0x173f   : > { %6898 = vmatpush1.bf16.msra.mxu1 %v8598_v9 }
0x1740   : > { %6939 = vmatpush1.bf16.msra.mxu0 %v8601_v21  ;;  %6899 = vmatprep.subr.bf16.mxu1 %v8606_v3 }
0x1741   : > { %6940 = vmatprep.subr.bf16.mxu0 %v8609_v56 }
0x1743   : > { %6900 = vmatpush1.bf16.msra.mxu1 %v8604_v55 }
0x1744   : > { %6941 = vmatpush1.bf16.msra.mxu0 %v8607_v59  ;;  %6901 = vmatprep.subr.bf16.mxu1 %v8612_v40 }
0x1745   : > { %6942 = vmatprep.subr.bf16.mxu0 %v8615_v61 }
0x1747   : > { %6902 = vmatpush1.bf16.msra.mxu1 %v8610_v62 }
0x1748   : > { %6943 = vmatpush1.bf16.msra.mxu0 %v8613_v10  ;;  %6903 = vmatprep.subr.bf16.mxu1 %v8618_v0 }
0x1749   : > { %6944 = vmatprep.subr.bf16.mxu0 %v8621_v1 }
0x174b   : > { %6904 = vmatpush1.bf16.msra.mxu1 %v8616_v2 }
0x174c   : > { %6945 = vmatpush1.bf16.msra.mxu0 %v8619_v4  ;;  %6905 = vmatprep.subr.bf16.mxu1 %v8624_v7 }
0x174d   : > { %6946 = vmatprep.subr.bf16.mxu0 %v8627_v47 }
0x174f   : > { %6906 = vmatpush1.bf16.msra.mxu1 %v8622_v13 }
0x1750   : > { %6947 = vmatpush1.bf16.msra.mxu0 %v8625_v14  ;;  %6907 = vmatprep.subr.bf16.mxu1 %v8630_v63 }
0x1751   : > { %6948 = vmatprep.subr.bf16.mxu0 %v8633_v27 }
0x1753   : > { %6908 = vmatpush1.bf16.msra.mxu1 %v8628_v19 }
0x1754   : > { %6949 = vmatpush1.bf16.msra.mxu0 %v8631_v12  ;;  %6909 = vmatprep.subr.bf16.mxu1 %v8636_v23 }
0x1755   : > { %6950 = vmatprep.subr.bf16.mxu0 %v8639_v49 }
0x1757   : > { %6910 = vmatpush1.bf16.msra.mxu1 %v8634_v6 }
0x1758   : > { %6951 = vmatpush1.bf16.msra.mxu0 %v8637_v5  ;;  %6911 = vmatprep.subr.bf16.mxu1 %v8642_v50 }
0x1759   : > { %6952 = vmatprep.subr.bf16.mxu0 %v8645_v28 }
0x175b   : > { %6912 = vmatpush1.bf16.msra.mxu1 %v8640_v8 }
0x175c   : > { %6953 = vmatpush1.bf16.msra.mxu0 %v8643_v51 }
0x175e   : > { %6914 = vmatmul.mubr.bf16.vlgmr.msra.gmra.mrb[64].mxu1 %v5083_v30 }
0x175f   : > { %6955 = vmatmul.mubr.bf16.vlgmr.msra.gmra.mrb[40].mxu0 %v5085_v31 }
0x1771   : > { %v6669_v43 = vpop.f32.mrb[52].mxu1 }
0x1772   : > { %v6670_v38 = vadd.f32 %v6669_v43, %v5348_v34  ;;  %v6710_v39 = vpop.f32.mrb[28].mxu0  ;;  %v6671_v42 = vpop.f32.mrb[53].mxu1 }
0x1773   : > { %v6672_v60 = vadd.f32 %v6671_v42, %v5352_v37  ;;  %v6712_v17 = vpop.f32.mrb[29].mxu0  ;;  %v6673_v44 = vpop.f32.mrb[54].mxu1  ;;  %v6965_v42 = vld [vmem:[%s684_s30] sm:$0x3] }
0x1774   : > { %v6711_v45 = vadd.f32 %v6710_v39, %v6670_v38  ;;  %v6714_v18 = vpop.f32.mrb[30].mxu0  ;;  %v6674_v36 = vpop.f32.mrb[55].mxu1  ;;  %v6995_v44 = vrot.slane %v6965_v42, %v9262_v41 }
0x1775   : > { %v6713_v46 = vadd.f32 %v6712_v17, %v6672_v60  ;;  %v6715_v48 = vpop.f32.mrb[31].mxu0  ;;  %v6966_v60 = vld [vmem:[%s688_s27] sm:$0x3]  ;;  %v6991_v17 = vrot.slane %v6965_v42, %v9161_v11 }
0x1776   : > { %v7004_v18 = vrot.slane %v6966_v60, %v9161_v11  ;;  %v7008_v36 = vrot.slane %v6966_v60, %v9262_v41 }
0x17b1   : > { %v6751_v15 = vpop.f32.mrb[56].mxu1 }
0x17b2   : > { %v6752_v33 = vadd.f32 %v6751_v15, %v6711_v45  ;;  %v6792_v16 = vpop.f32.mrb[32].mxu0  ;;  %v6753_v52 = vpop.f32.mrb[57].mxu1 }
0x17b3   : > { %v6754_v35 = vadd.f32 %v6753_v52, %v6713_v46  ;;  %v6794_v20 = vpop.f32.mrb[33].mxu0  ;;  %v6755_v26 = vpop.f32.mrb[58].mxu1 }
0x17b4   : > { %v6793_v9 = vadd.f32 %v6792_v16, %v6752_v33  ;;  %v6796_v21 = vpop.f32.mrb[34].mxu0  ;;  %v6756_v3 = vpop.f32.mrb[59].mxu1 }
0x17b5   : > { %v6795_v56 = vadd.f32 %v6794_v20, %v6754_v35  ;;  %v6797_v55 = vpop.f32.mrb[35].mxu0 }
0x17f1   : > { %v6833_v59 = vpop.f32.mrb[60].mxu1 }
0x17f2   : > { %v6834_v40 = vadd.f32 %v6833_v59, %v6793_v9  ;;  %v6874_v61 = vpop.f32.mrb[36].mxu0  ;;  %v6835_v62 = vpop.f32.mrb[61].mxu1 }
0x17f3   : > { %v6836_v10 = vadd.f32 %v6835_v62, %v6795_v56  ;;  %v6876_v0 = vpop.f32.mrb[37].mxu0  ;;  %v6837_v1 = vpop.f32.mrb[62].mxu1 }
0x17f4   : > { %v6875_v2 = vadd.f32 %v6874_v61, %v6834_v40  ;;  %v6878_v4 = vpop.f32.mrb[38].mxu0  ;;  %v6838_v7 = vpop.f32.mrb[63].mxu1 }
0x17f5   : > { %v6877_v47 = vadd.f32 %v6876_v0, %v6836_v10  ;;  %v6879_v13 = vpop.f32.mrb[39].mxu0 }
0x1831   : > { %v6915_v14 = vpop.f32.mrb[64].mxu1 }
0x1832   : > { %v6916_v63 = vadd.f32 %v6915_v14, %v6875_v2  ;;  %v6956_v27 = vpop.f32.mrb[40].mxu0  ;;  %v6917_v19 = vpop.f32.mrb[65].mxu1 }
0x1833   : > { %v6918_v22 = vadd.f32 %v6917_v19, %v6877_v47  ;;  %v6958_v12 = vpop.f32.mrb[41].mxu0  ;;  %v6919_v23 = vpop.f32.mrb[66].mxu1 }
0x1834   : > { %v6957_v24 = vadd.f32 %v6956_v27, %v6916_v63  ;;  %v6960_v49 = vpop.f32.mrb[42].mxu0  ;;  %v6920_v6 = vpop.f32.mrb[67].mxu1 }
0x1835   : > { %v6959_v25 = vadd.f32 %v6958_v12, %v6918_v22  ;;  %v6961_v5 = vpop.f32.mrb[43].mxu0 }
0x1836   : > { %v6963_v50 = vadd.f32 %v6957_v24, %v9563_v53 }
0x1837   : > { %v6964_v58 = vadd.f32 %v6959_v25, %v9565_v54 }
0x1838   : > { %v6967_v28 = vsel %vm3057_vm5, %v6963_v50, 0.0 }
0x1839   : > { %v6968_v8 = vsel %vm3057_vm5, %v6964_v58, 0.0 }
0x183a   : > { %v6969_v29 = vadd.f32 %v6968_v8, %v6967_v28 }
0x183c   : > { %6970 = vadd.xlane.f32.xlu0 %v6969_v29 }
0x18c9   : > { %v6971_v51 = vpop.xlane.xlu0 %6970 }
0x18ca   : > { %v6972_v57 = vmul.f32 0.00390625, %v6971_v51 }
0x18cc   : > { %v6973_v30 = vsub.f32 %v6963_v50, %v6972_v57  ;;  %v6974_v31 = vsub.f32 %v6964_v58, %v6972_v57 }
0x18ce   : > { %v6975_v32 = vmul.f32 %v6973_v30, %v6973_v30  ;;  %v6976_v34 = vmul.f32 %v6974_v31, %v6974_v31 }
0x18d0   : > { %v6977_v37 = vsel %vm3057_vm5, %v6975_v32, 0.0  ;;  %v6978_v53 = vsel %vm3057_vm5, %v6976_v34, 0.0 }
0x18d1   : > { %v6979_v43 = vadd.f32 %v6978_v53, %v6977_v37 }
0x18d3   : > { %6980 = vadd.xlane.f32.xlu0 %v6979_v43 }
0x1960   : > { %v6981_v54 = vpop.xlane.xlu0 %6980 }
0x1961   : > { %v6982_v38 = vmul.f32 0.00390625, %v6981_v54 }
0x1963   : > { %v6983_v39 = vadd.f32 1e-05, %v6982_v38 }
0x1965   : > { %8680 = vrsqrt.f32 %v6983_v39 }
0x196f   : > { %v8681_v45 = vpop.eup %8680 }
0x1970   : > { %v6985_v46 = vmul.f32 %v8681_v45, %v6973_v30  ;;  %v6986_v48 = vmul.f32 %v8681_v45, %v6974_v31 }
0x1972   : > { %v6998_v15 = vmul.f32 %v6991_v17, %v6985_v46  ;;  %v6999_v33 = vmul.f32 %v6995_v44, %v6986_v48 }
0x1974   : > { %v7011_v16 = vadd.f32 %v7004_v18, %v6998_v15  ;;  %v7012_v52 = vadd.f32 %v7008_v36, %v6999_v33 }
0x1976   : > { %7013 = vst [vmem:[%s10194_s1] sm:$0x3f] %v7011_v16  ;;  %7014 = vst [vmem:[%s10194_s1 + $0x8] sm:$0x3f] %v7012_v52 }
0x1977 PF: > { %s10202_s16 = sld [smem:[#allocation10_spill]]  ;;  %s10203_s29 = sld [smem:[#allocation8_spill]] }
0x1978   : > { %s10204_s30 = sld [smem:[#allocation9_spill]]  ;;  %s10205_s15 = sld [smem:[#allocation11_spill]] }
0x197d   : > { %p27_p3 = scmp.ge.s32.totalorder %s10202_s16, 5  }
0x197f   :  { %29 = sbr.rel (!%p27_p3) target bundleno = 11 (0xb), region = 159 }
0x1986   :  { %7026 = vsyncpa [#allocation3], 1 }
0x1987   :  { %7028 = vsyncpa [#allocation3 + $0x1], 1 }
0x1988   :  { %7029 = vsyncpa [#allocation5], 1 }
0x1989   :  { %7031 = vsyncpa [#allocation5 + $0x1], 1 }

</bundles_post_ra>
